<compile_context>
chip_gen: v7x
topology: tpu7x:2x2x1
jax: 0.10.0
libtpu: 0.0.40
codegen_flags: <defaults>
</compile_context>

<pallas_src>
import functools

import jax
import jax.numpy as jnp
from jax import lax
from jax.experimental import pallas as pl
from jax.experimental.pallas import tpu as pltpu

_EPS = 1e-5
_MID = 128          # CenterNet's fixed intermediate channel count
_LANES = 128
_SUBLANES = 8


def _round_up(x, m):
    return (x + m - 1) // m * m


# ------------------------------ Pallas kernel -------------------------------

def _im2col9(xpad, h, w):
    """(BB, H+2, Wp, C) VMEM value -> (BB*H*W, 9*C) im2col matrix for a 3x3 conv.

    One sublane-shifted slice per kw (the kh shifts are leading-dim slices and
    therefore free).  Columns are ordered kh-major / kw-minor to match the
    (3,3,Cin,Cout) -> (9*Cin, Cout) weight reshape.
    """
    bb, _, _, c = xpad.shape
    taps = {}
    for kw in range(3):
        xw = xpad[:, :, kw:kw + w, :]                 # (bb, h+2, w, c)
        for kh in range(3):
            taps[(kh, kw)] = xw[:, kh:kh + h, :, :].reshape(bb * h * w, c)
    return jnp.concatenate(
        [taps[(kh, kw)] for kh in range(3) for kw in range(3)], axis=-1)


def _zero_halo(buf, h, w):
    """Zero only the 1-element halo ring (+ W alignment columns) of a padded
    (BB, H+2, Wp, C) scratch.  The interior [1:h+1, 1:w+1] is fully
    overwritten every grid step, so ring + interior covers the whole buffer
    and each step is self-contained (safe under megacore grid sharding)."""
    bb, hp, wp, cc = buf.shape
    buf[:, 0:1, :, :] = jnp.zeros((bb, 1, wp, cc), buf.dtype)
    buf[:, h + 1:h + 2, :, :] = jnp.zeros((bb, 1, wp, cc), buf.dtype)
    buf[:, :, 0:1, :] = jnp.zeros((bb, hp, 1, cc), buf.dtype)
    buf[:, :, w + 1:wp, :] = jnp.zeros((bb, hp, wp - w - 1, cc), buf.dtype)


def _pool_cross_kernel(xpad_ref, w12_ref, s12_ref, b12_ref,
                       pw_ref, ps_ref, pb_ref,
                       c1w_ref, c1s_ref, c1b_ref,
                       c2w_ref, c2s_ref, c2b_ref,
                       out_ref, pool_pad, relu_pad, *, h, w):
    """Whole pool_cross forward for one batch block (bb elements), fused in VMEM."""
    bb = xpad_ref.shape[0]
    c = xpad_ref.shape[-1]          # lane-padded channel count (multiple of 128)
    hw = h * w

    # ---- stage 1: fused p1/p2 3x3 conv (dim -> 256) + BN + ReLU -------------
    xp = xpad_ref[...]                                      # (bb, h+2, wp, c) bf16
    xcol = _im2col9(xp, h, w)                               # (bb*hw, 9c) bf16
    y = jnp.dot(xcol, w12_ref[...], preferred_element_type=jnp.float32)
    y = jnp.maximum(y * s12_ref[...] + b12_ref[...], 0.0)   # (bb*hw, 256) f32

    # ---- stage 2: center pooling (cummax composition == global max) ---------
    p1 = y[:, :_MID].reshape(bb, h, w, _MID)
    p2 = y[:, _MID:].reshape(bb, h, w, _MID)
    colmax = jnp.max(p1, axis=1)                            # (bb, w, 128)  H-max
    rowmax = jnp.max(p2, axis=2)                            # (bb, h, 128)  W-max
    pooled = colmax[:, None, :, :] + rowmax[:, :, None, :]  # (bb, h, w, 128) f32

    # zero-padded pooled map lives in VMEM only (no HBM round trip);
    # only the halo ring is re-zeroed, the interior is overwritten below.
    _zero_halo(pool_pad, h, w)
    pool_pad[:, 1:h + 1, 1:w + 1, :] = pooled.astype(pool_pad.dtype)

    # ---- stage 3: p_conv1 3x3 (128 -> C) + BN -------------------------------
    pcol = _im2col9(pool_pad[...], h, w)                    # (bb*hw, 9*128) bf16
    p_bn1 = jnp.dot(pcol, pw_ref[...], preferred_element_type=jnp.float32)
    p_bn1 = p_bn1 * ps_ref[...] + pb_ref[...]

    # ---- stage 4: conv1x1(x) + BN, residual add, ReLU -----------------------
    # conv1x1 input == centre tap (kh=1, kw=1) of xcol: columns [4c, 5c).
    xin = xcol[:, 4 * c:5 * c]                              # (bb*hw, c) bf16
    bn1 = jnp.dot(xin, c1w_ref[...], preferred_element_type=jnp.float32)
    bn1 = bn1 * c1s_ref[...] + c1b_ref[...]
    relu1 = jnp.maximum(p_bn1 + bn1, 0.0)                   # (bb*hw, c) f32

    # ---- stage 5: final 3x3 conv (C -> C) + BN + ReLU -----------------------
    _zero_halo(relu_pad, h, w)
    relu_pad[:, 1:h + 1, 1:w + 1, :] = (
        relu1.reshape(bb, h, w, c).astype(relu_pad.dtype))
    rcol = _im2col9(relu_pad[...], h, w)                    # (bb*hw, 9c) bf16
    out = jnp.dot(rcol, c2w_ref[...], preferred_element_type=jnp.float32)
    out = jnp.maximum(out * c2s_ref[...] + c2b_ref[...], 0.0)
    out_ref[...] = out.reshape(bb, hw, c).astype(out_ref.dtype)


# ------------------------------ JAX wrapper ----------------------------------

def _prep_w3x3(w_hwio, cin_pad, cout_pad):
    """(3,3,Cin,Cout) HWIO weights -> lane-padded (9*Cin_pad, Cout_pad) bf16."""
    kh, kw, cin, cout = w_hwio.shape
    wpad = jnp.pad(w_hwio, ((0, 0), (0, 0),
                            (0, cin_pad - cin), (0, cout_pad - cout)))
    return wpad.reshape(kh * kw * cin_pad, cout_pad).astype(jnp.bfloat16)


def _pad_lanes(a, c):
    return jnp.pad(a, ((0, 0), (0, c - a.shape[-1])))     # stays f32


def _pick_batch_block(n, hw):
    """Largest divisor of n that keeps M = bb*hw just above 128 (MXU height)."""
    target = max(1, -(-128 // hw))
    bb = 1
    for d in range(1, n + 1):
        if n % d == 0 and d <= target:
            bb = d
    return bb


def pool_cross_forward(x_nhwc, P):
    n, h, w, dim = x_nhwc.shape
    c = _round_up(dim, _LANES)
    hw = h * w
    hp = h + 2
    wp = _round_up(w + 2, _SUBLANES)        # sublane-aligned padded width

    bb = _pick_batch_block(n, hw)           # fold batch into matmul M if hw small
    g = n // bb

    # pad channels to a lane-dense multiple of 128, pad spatially:
    # left halo 1, right halo 1 + alignment zeros up to wp.
    xpad = jnp.pad(
        x_nhwc, ((0, 0), (1, 1), (1, wp - w - 1), (0, c - dim))
    ).astype(jnp.bfloat16)

    # fused p1/p2 conv weights: concat along Cout -> 256
    w12 = _prep_w3x3(jnp.concatenate([P['p1_w'], P['p2_w']], axis=-1), c, 2 * _MID)
    s12 = jnp.concatenate([P['p1_scale'], P['p2_scale']], axis=-1)
    b12 = jnp.concatenate([P['p1_bias'], P['p2_bias']], axis=-1)
    pw = _prep_w3x3(P['p_w'], _MID, c)
    ps, pb = _pad_lanes(P['p_scale'], c), _pad_lanes(P['p_bias'], c)
    c1w = jnp.pad(P['c1_w'], ((0, c - dim), (0, c - dim))).astype(jnp.bfloat16)
    c1s, c1b = _pad_lanes(P['c1_scale'], c), _pad_lanes(P['c1_bias'], c)
    c2w = _prep_w3x3(P['c2_w'], c, c)
    c2s, c2b = _pad_lanes(P['c2_scale'], c), _pad_lanes(P['c2_bias'], c)

    kernel = functools.partial(_pool_cross_kernel, h=h, w=w)
    rep = lambda i: (0, 0)                   # constant weights / BN params
    out = pl.pallas_call(
        kernel,
        out_shape=jax.ShapeDtypeStruct((n, hw, c), jnp.float32),
        grid_spec=pltpu.PrefetchScalarGridSpec(
            num_scalar_prefetch=0,
            grid=(g,),
            in_specs=[
                pl.BlockSpec((bb, hp, wp, c), lambda i: (i, 0, 0, 0)),
                pl.BlockSpec(w12.shape, rep),
                pl.BlockSpec(s12.shape, rep),
                pl.BlockSpec(b12.shape, rep),
                pl.BlockSpec(pw.shape, rep),
                pl.BlockSpec(ps.shape, rep),
                pl.BlockSpec(pb.shape, rep),
                pl.BlockSpec(c1w.shape, rep),
                pl.BlockSpec(c1s.shape, rep),
                pl.BlockSpec(c1b.shape, rep),
                pl.BlockSpec(c2w.shape, rep),
                pl.BlockSpec(c2s.shape, rep),
                pl.BlockSpec(c2b.shape, rep),
            ],
            out_specs=pl.BlockSpec((bb, hw, c), lambda i: (i, 0, 0)),
            scratch_shapes=[
                pltpu.VMEM((bb, hp, wp, _MID), jnp.bfloat16),   # padded pooled
                pltpu.VMEM((bb, hp, wp, c), jnp.bfloat16),      # padded relu1
            ],
        ),
        compiler_params=pltpu.CompilerParams(
            dimension_semantics=("parallel",),
            vmem_limit_bytes=48 * 1024 * 1024),
    )(xpad, w12, s12, b12, pw, ps, pb, c1w, c1s, c1b, c2w, c2s, c2b)

    return out.reshape(n, h, w, c)[..., :dim]


# -------------------------- deterministic params ----------------------------

def _bn_affine(key, c):
    k1, k2, k3, k4 = jax.random.split(key, 4)
    gamma = 1.0 + 0.1 * jax.random.normal(k1, (c,), jnp.float32)
    beta = 0.1 * jax.random.normal(k2, (c,), jnp.float32)
    mean = 0.1 * jax.random.normal(k3, (c,), jnp.float32)
    var = 1.0 + 0.5 * jax.random.uniform(k4, (c,), jnp.float32)
    scale = gamma * lax.rsqrt(var + _EPS)
    bias = beta - mean * scale
    return scale.reshape(1, c), bias.reshape(1, c)


def init_params(key, dim):
    ks = jax.random.split(key, 10)
    P = {}
    P['p1_w'] = 0.05 * jax.random.normal(ks[0], (3, 3, dim, 128), jnp.float32)
    P['p1_scale'], P['p1_bias'] = _bn_affine(ks[1], 128)
    P['p2_w'] = 0.05 * jax.random.normal(ks[2], (3, 3, dim, 128), jnp.float32)
    P['p2_scale'], P['p2_bias'] = _bn_affine(ks[3], 128)
    P['p_w'] = 0.03 * jax.random.normal(ks[4], (3, 3, 128, dim), jnp.float32)
    P['p_scale'], P['p_bias'] = _bn_affine(ks[5], dim)
    P['c1_w'] = 0.1 * jax.random.normal(ks[6], (dim, dim), jnp.float32)
    P['c1_scale'], P['c1_bias'] = _bn_affine(ks[7], dim)
    P['c2_w'] = 0.05 * jax.random.normal(ks[8], (3, 3, dim, dim), jnp.float32)
    P['c2_scale'], P['c2_bias'] = _bn_affine(ks[9], dim)
    return P


# ---------------------------- pure-JAX reference ----------------------------

def _ref_conv3x3(x, w):
    return lax.conv_general_dilated(
        x, w, (1, 1), ((1, 1), (1, 1)),
        dimension_numbers=('NHWC', 'HWIO', 'NHWC'),
        precision=lax.Precision.HIGHEST)


def _ref_bn(y, scale, bias):
    return y * scale.reshape(1, 1, 1, -1) + bias.reshape(1, 1, 1, -1)


def ref_forward(x, P):
    p1 = jax.nn.relu(_ref_bn(_ref_conv3x3(x, P['p1_w']), P['p1_scale'], P['p1_bias']))
    p2 = jax.nn.relu(_ref_bn(_ref_conv3x3(x, P['p2_w']), P['p2_scale'], P['p2_bias']))
    pool1 = lax.cummax(p1, axis=1, reverse=True)      # TopPool
    pool1 = lax.cummax(pool1, axis=1)                 # BottomPool
    pool2 = lax.cummax(p2, axis=2, reverse=True)      # LeftPool
    pool2 = lax.cummax(pool2, axis=2)                 # RightPool
    p_bn1 = _ref_bn(_ref_conv3x3(pool1 + pool2, P['p_w']), P['p_scale'], P['p_bias'])
    bn1 = _ref_bn(jnp.einsum('nhwc,cd->nhwd', x, P['c1_w'],
                             precision=lax.Precision.HIGHEST),
                  P['c1_scale'], P['c1_bias'])
    relu1 = jax.nn.relu(p_bn1 + bn1)
    return jax.nn.relu(_ref_bn(_ref_conv3x3(relu1, P['c2_w']),
                               P['c2_scale'], P['c2_bias']))


# --------------------------------- main --------------------------------------

if __name__ == "__main__":
    key = jax.random.PRNGKey(0)
    kx, kp = jax.random.split(key)
    N, DIM, H, W = 2, 32, 16, 16

    x_nchw = jax.random.normal(kx, (N, DIM, H, W), jnp.float32)   # PyTorch NCHW input
    x_nhwc = jnp.transpose(x_nchw, (0, 2, 3, 1))                  # kernel layout
    P = init_params(kp, DIM)

    out_nhwc = jax.jit(pool_cross_forward)(x_nhwc, P)
    out_nhwc = jax.block_until_ready(out_nhwc)

    ref_nhwc = ref_forward(x_nhwc, P)
    # bf16 activations/weights (f32 accumulation) through three stacked convs
    # vs an f32-HIGHEST reference: mixed abs/rel tolerance.
    err = jnp.abs(out_nhwc - ref_nhwc)
    tol = 2e-2 + 2e-2 * jnp.abs(ref_nhwc)
    assert bool(jnp.all(err <= tol)), (
        f"mismatch vs reference: max abs err = {float(jnp.max(err))}")

    out_nchw = jnp.transpose(out_nhwc, (0, 3, 1, 2))  # back to the module's NCHW
    jax.block_until_ready(out_nchw)
    print("KERNEL_OK")
</pallas_src>

<mosaic_0001>
module attributes {stable_mosaic.version = 11 : i64} {
  func.func @_pool_cross_kernel(%arg0: i32, %arg1: memref<1x18x24x128xbf16, #tpu.memory_space<vmem>>, %arg2: memref<1152x256xbf16, #tpu.memory_space<vmem>>, %arg3: memref<1x256xf32, #tpu.memory_space<vmem>>, %arg4: memref<1x256xf32, #tpu.memory_space<vmem>>, %arg5: memref<1152x128xbf16, #tpu.memory_space<vmem>>, %arg6: memref<1x128xf32, #tpu.memory_space<vmem>>, %arg7: memref<1x128xf32, #tpu.memory_space<vmem>>, %arg8: memref<128x128xbf16, #tpu.memory_space<vmem>>, %arg9: memref<1x128xf32, #tpu.memory_space<vmem>>, %arg10: memref<1x128xf32, #tpu.memory_space<vmem>>, %arg11: memref<1152x128xbf16, #tpu.memory_space<vmem>>, %arg12: memref<1x128xf32, #tpu.memory_space<vmem>>, %arg13: memref<1x128xf32, #tpu.memory_space<vmem>>, %arg14: memref<1x256x128xf32, #tpu.memory_space<vmem>>, %arg15: memref<1x18x24x128xbf16, #tpu.memory_space<vmem>>, %arg16: memref<1x18x24x128xbf16, #tpu.memory_space<vmem>>) attributes {dimension_semantics = [#tpu.dimension_semantics<parallel>], iteration_bounds = array<i64: 2>, scalar_prefetch = 0 : i64, scratch_operands = 2 : i64, tpu.core_type = #tpu.core_type<tc>, window_params = [{transform_indices = @transform_0, window_bounds = array<i64: 1, 18, 24, 128>}, {pipeline_mode = #tpu.pipeline_mode<synchronous>, transform_indices = @transform_1, window_bounds = array<i64: 1152, 256>}, {pipeline_mode = #tpu.pipeline_mode<synchronous>, transform_indices = @transform_2, window_bounds = array<i64: 1, 256>}, {pipeline_mode = #tpu.pipeline_mode<synchronous>, transform_indices = @transform_3, window_bounds = array<i64: 1, 256>}, {pipeline_mode = #tpu.pipeline_mode<synchronous>, transform_indices = @transform_4, window_bounds = array<i64: 1152, 128>}, {pipeline_mode = #tpu.pipeline_mode<synchronous>, transform_indices = @transform_5, window_bounds = array<i64: 1, 128>}, {pipeline_mode = #tpu.pipeline_mode<synchronous>, transform_indices = @transform_6, window_bounds = array<i64: 1, 128>}, {pipeline_mode = #tpu.pipeline_mode<synchronous>, transform_indices = @transform_7, window_bounds = array<i64: 128, 128>}, {pipeline_mode = #tpu.pipeline_mode<synchronous>, transform_indices = @transform_8, window_bounds = array<i64: 1, 128>}, {pipeline_mode = #tpu.pipeline_mode<synchronous>, transform_indices = @transform_9, window_bounds = array<i64: 1, 128>}, {pipeline_mode = #tpu.pipeline_mode<synchronous>, transform_indices = @transform_10, window_bounds = array<i64: 1152, 128>}, {pipeline_mode = #tpu.pipeline_mode<synchronous>, transform_indices = @transform_11, window_bounds = array<i64: 1, 128>}, {pipeline_mode = #tpu.pipeline_mode<synchronous>, transform_indices = @transform_12, window_bounds = array<i64: 1, 128>}, {transform_indices = @transform_13, window_bounds = array<i64: 1, 256, 128>}]} {
    %c0 = arith.constant 0 : index
    %c0_0 = arith.constant 0 : index
    %c0_1 = arith.constant 0 : index
    %c0_2 = arith.constant 0 : index
    %0 = vector.load %arg1[%c0, %c0_0, %c0_1, %c0_2] : memref<1x18x24x128xbf16, #tpu.memory_space<vmem>>, vector<1x18x24x128xbf16>
    %1 = vector.extract_strided_slice %0 {offsets = [0, 0, 0, 0], sizes = [1, 18, 16, 128], strides = [1, 1, 1, 1]} : vector<1x18x24x128xbf16> to vector<1x18x16x128xbf16>
    %2 = vector.extract_strided_slice %1 {offsets = [0, 0, 0, 0], sizes = [1, 16, 16, 128], strides = [1, 1, 1, 1]} : vector<1x18x16x128xbf16> to vector<1x16x16x128xbf16>
    %3 = vector.shape_cast %2 : vector<1x16x16x128xbf16> to vector<256x128xbf16>
    %4 = vector.extract_strided_slice %1 {offsets = [0, 1, 0, 0], sizes = [1, 16, 16, 128], strides = [1, 1, 1, 1]} : vector<1x18x16x128xbf16> to vector<1x16x16x128xbf16>
    %5 = vector.shape_cast %4 : vector<1x16x16x128xbf16> to vector<256x128xbf16>
    %6 = vector.extract_strided_slice %1 {offsets = [0, 2, 0, 0], sizes = [1, 16, 16, 128], strides = [1, 1, 1, 1]} : vector<1x18x16x128xbf16> to vector<1x16x16x128xbf16>
    %7 = vector.shape_cast %6 : vector<1x16x16x128xbf16> to vector<256x128xbf16>
    %8 = vector.extract_strided_slice %0 {offsets = [0, 0, 1, 0], sizes = [1, 18, 16, 128], strides = [1, 1, 1, 1]} : vector<1x18x24x128xbf16> to vector<1x18x16x128xbf16>
    %9 = vector.extract_strided_slice %8 {offsets = [0, 0, 0, 0], sizes = [1, 16, 16, 128], strides = [1, 1, 1, 1]} : vector<1x18x16x128xbf16> to vector<1x16x16x128xbf16>
    %10 = vector.shape_cast %9 : vector<1x16x16x128xbf16> to vector<256x128xbf16>
    %11 = vector.extract_strided_slice %8 {offsets = [0, 1, 0, 0], sizes = [1, 16, 16, 128], strides = [1, 1, 1, 1]} : vector<1x18x16x128xbf16> to vector<1x16x16x128xbf16>
    %12 = vector.shape_cast %11 : vector<1x16x16x128xbf16> to vector<256x128xbf16>
    %13 = vector.extract_strided_slice %8 {offsets = [0, 2, 0, 0], sizes = [1, 16, 16, 128], strides = [1, 1, 1, 1]} : vector<1x18x16x128xbf16> to vector<1x16x16x128xbf16>
    %14 = vector.shape_cast %13 : vector<1x16x16x128xbf16> to vector<256x128xbf16>
    %15 = vector.extract_strided_slice %0 {offsets = [0, 0, 2, 0], sizes = [1, 18, 16, 128], strides = [1, 1, 1, 1]} : vector<1x18x24x128xbf16> to vector<1x18x16x128xbf16>
    %16 = vector.extract_strided_slice %15 {offsets = [0, 0, 0, 0], sizes = [1, 16, 16, 128], strides = [1, 1, 1, 1]} : vector<1x18x16x128xbf16> to vector<1x16x16x128xbf16>
    %17 = vector.shape_cast %16 : vector<1x16x16x128xbf16> to vector<256x128xbf16>
    %18 = vector.extract_strided_slice %15 {offsets = [0, 1, 0, 0], sizes = [1, 16, 16, 128], strides = [1, 1, 1, 1]} : vector<1x18x16x128xbf16> to vector<1x16x16x128xbf16>
    %19 = vector.shape_cast %18 : vector<1x16x16x128xbf16> to vector<256x128xbf16>
    %20 = vector.extract_strided_slice %15 {offsets = [0, 2, 0, 0], sizes = [1, 16, 16, 128], strides = [1, 1, 1, 1]} : vector<1x18x16x128xbf16> to vector<1x16x16x128xbf16>
    %21 = vector.shape_cast %20 : vector<1x16x16x128xbf16> to vector<256x128xbf16>
    %22 = tpu.concatenate %3, %10, %17, %5, %12, %19, %7, %14, %21 in 1 : vector<256x128xbf16>, vector<256x128xbf16>, vector<256x128xbf16>, vector<256x128xbf16>, vector<256x128xbf16>, vector<256x128xbf16>, vector<256x128xbf16>, vector<256x128xbf16>, vector<256x128xbf16> -> vector<256x1152xbf16>
    %c0_3 = arith.constant 0 : index
    %c0_4 = arith.constant 0 : index
    %23 = vector.load %arg2[%c0_3, %c0_4] : memref<1152x256xbf16, #tpu.memory_space<vmem>>, vector<1152x256xbf16>
    %cst = arith.constant dense<0.000000e+00> : vector<256x256xf32>
    %24 = tpu.matmul %22, %23, %cst {dimension_numbers = #tpu.dot_dimension_numbers<[1], [0], [0], [1], [0, 0, 1, 1], [], []>} : vector<256x1152xbf16>, vector<1152x256xbf16>, vector<256x256xf32> -> vector<256x256xf32>
    %c0_5 = arith.constant 0 : index
    %c0_6 = arith.constant 0 : index
    %25 = vector.load %arg3[%c0_5, %c0_6] : memref<1x256xf32, #tpu.memory_space<vmem>>, vector<1x256xf32>
    %26 = vector.broadcast %25 : vector<1x256xf32> to vector<256x256xf32>
    %27 = arith.mulf %24, %26 : vector<256x256xf32>
    %c0_7 = arith.constant 0 : index
    %c0_8 = arith.constant 0 : index
    %28 = vector.load %arg4[%c0_7, %c0_8] : memref<1x256xf32, #tpu.memory_space<vmem>>, vector<1x256xf32>
    %29 = vector.broadcast %28 : vector<1x256xf32> to vector<256x256xf32>
    %30 = arith.addf %27, %29 : vector<256x256xf32>
    %cst_9 = arith.constant 0.000000e+00 : f32
    %31 = vector.broadcast %cst_9 : f32 to vector<256x256xf32>
    %32 = arith.maximumf %30, %31 : vector<256x256xf32>
    %33 = vector.extract_strided_slice %32 {offsets = [0, 0], sizes = [256, 128], strides = [1, 1]} : vector<256x256xf32> to vector<256x128xf32>
    %34 = vector.shape_cast %33 : vector<256x128xf32> to vector<1x16x16x128xf32>
    %35 = vector.extract_strided_slice %32 {offsets = [0, 128], sizes = [256, 128], strides = [1, 1]} : vector<256x256xf32> to vector<256x128xf32>
    %36 = vector.shape_cast %35 : vector<256x128xf32> to vector<1x16x16x128xf32>
    %cst_10 = arith.constant dense<0xFF800000> : vector<1x16x128xf32>
    %37 = vector.multi_reduction <maximumf>, %34, %cst_10 [1] : vector<1x16x16x128xf32> to vector<1x16x128xf32>
    %cst_11 = arith.constant dense<0xFF800000> : vector<1x16x128xf32>
    %38 = vector.multi_reduction <maximumf>, %36, %cst_11 [2] : vector<1x16x16x128xf32> to vector<1x16x128xf32>
    %39 = vector.shape_cast %37 : vector<1x16x128xf32> to vector<1x1x16x128xf32>
    %40 = vector.shape_cast %38 : vector<1x16x128xf32> to vector<1x16x1x128xf32>
    %41 = vector.broadcast %39 : vector<1x1x16x128xf32> to vector<1x16x16x128xf32>
    %42 = vector.broadcast %40 : vector<1x16x1x128xf32> to vector<1x16x16x128xf32>
    %43 = arith.addf %41, %42 : vector<1x16x16x128xf32>
    %cst_12 = arith.constant 0.000000e+00 : bf16
    %44 = vector.broadcast %cst_12 : bf16 to vector<1x1x24x128xbf16>
    %c0_13 = arith.constant 0 : index
    %c0_14 = arith.constant 0 : index
    %c0_15 = arith.constant 0 : index
    %c0_16 = arith.constant 0 : index
    %45 = vector.load %arg15[%c0_13, %c0_14, %c0_15, %c0_16] : memref<1x18x24x128xbf16, #tpu.memory_space<vmem>>, vector<1x1x24x128xbf16>
    tpu.vector_store %arg15[%c0_13, %c0_14, %c0_15, %c0_16], %44 {strides = array<i32>} : memref<1x18x24x128xbf16, #tpu.memory_space<vmem>>, vector<1x1x24x128xbf16>,
    %cst_17 = arith.constant 0.000000e+00 : bf16
    %46 = vector.broadcast %cst_17 : bf16 to vector<1x1x24x128xbf16>
    %c0_18 = arith.constant 0 : index
    %c17 = arith.constant 17 : index
    %c0_19 = arith.constant 0 : index
    %c0_20 = arith.constant 0 : index
    %47 = vector.load %arg15[%c0_18, %c17, %c0_19, %c0_20] : memref<1x18x24x128xbf16, #tpu.memory_space<vmem>>, vector<1x1x24x128xbf16>
    tpu.vector_store %arg15[%c0_18, %c17, %c0_19, %c0_20], %46 {strides = array<i32>} : memref<1x18x24x128xbf16, #tpu.memory_space<vmem>>, vector<1x1x24x128xbf16>,
    %cst_21 = arith.constant 0.000000e+00 : bf16
    %48 = vector.broadcast %cst_21 : bf16 to vector<1x18x1x128xbf16>
    %c0_22 = arith.constant 0 : index
    %c0_23 = arith.constant 0 : index
    %c0_24 = arith.constant 0 : index
    %c0_25 = arith.constant 0 : index
    %49 = vector.load %arg15[%c0_22, %c0_23, %c0_24, %c0_25] : memref<1x18x24x128xbf16, #tpu.memory_space<vmem>>, vector<1x18x1x128xbf16>
    tpu.vector_store %arg15[%c0_22, %c0_23, %c0_24, %c0_25], %48 {strides = array<i32>} : memref<1x18x24x128xbf16, #tpu.memory_space<vmem>>, vector<1x18x1x128xbf16>,
    %cst_26 = arith.constant 0.000000e+00 : bf16
    %50 = vector.broadcast %cst_26 : bf16 to vector<1x18x7x128xbf16>
    %c0_27 = arith.constant 0 : index
    %c0_28 = arith.constant 0 : index
    %c17_29 = arith.constant 17 : index
    %c0_30 = arith.constant 0 : index
    %51 = vector.load %arg15[%c0_27, %c0_28, %c17_29, %c0_30] : memref<1x18x24x128xbf16, #tpu.memory_space<vmem>>, vector<1x18x7x128xbf16>
    tpu.vector_store %arg15[%c0_27, %c0_28, %c17_29, %c0_30], %50 {strides = array<i32>} : memref<1x18x24x128xbf16, #tpu.memory_space<vmem>>, vector<1x18x7x128xbf16>,
    %52 = arith.truncf %43 : vector<1x16x16x128xf32> to vector<1x16x16x128xbf16>
    %c0_31 = arith.constant 0 : index
    %c1 = arith.constant 1 : index
    %c1_32 = arith.constant 1 : index
    %c0_33 = arith.constant 0 : index
    %53 = vector.load %arg15[%c0_31, %c1, %c1_32, %c0_33] : memref<1x18x24x128xbf16, #tpu.memory_space<vmem>>, vector<1x16x16x128xbf16>
    tpu.vector_store %arg15[%c0_31, %c1, %c1_32, %c0_33], %52 {strides = array<i32>} : memref<1x18x24x128xbf16, #tpu.memory_space<vmem>>, vector<1x16x16x128xbf16>,
    %c0_34 = arith.constant 0 : index
    %c0_35 = arith.constant 0 : index
    %c0_36 = arith.constant 0 : index
    %c0_37 = arith.constant 0 : index
    %54 = vector.load %arg15[%c0_34, %c0_35, %c0_36, %c0_37] : memref<1x18x24x128xbf16, #tpu.memory_space<vmem>>, vector<1x18x24x128xbf16>
    %55 = vector.extract_strided_slice %54 {offsets = [0, 0, 0, 0], sizes = [1, 18, 16, 128], strides = [1, 1, 1, 1]} : vector<1x18x24x128xbf16> to vector<1x18x16x128xbf16>
    %56 = vector.extract_strided_slice %55 {offsets = [0, 0, 0, 0], sizes = [1, 16, 16, 128], strides = [1, 1, 1, 1]} : vector<1x18x16x128xbf16> to vector<1x16x16x128xbf16>
    %57 = vector.shape_cast %56 : vector<1x16x16x128xbf16> to vector<256x128xbf16>
    %58 = vector.extract_strided_slice %55 {offsets = [0, 1, 0, 0], sizes = [1, 16, 16, 128], strides = [1, 1, 1, 1]} : vector<1x18x16x128xbf16> to vector<1x16x16x128xbf16>
    %59 = vector.shape_cast %58 : vector<1x16x16x128xbf16> to vector<256x128xbf16>
    %60 = vector.extract_strided_slice %55 {offsets = [0, 2, 0, 0], sizes = [1, 16, 16, 128], strides = [1, 1, 1, 1]} : vector<1x18x16x128xbf16> to vector<1x16x16x128xbf16>
    %61 = vector.shape_cast %60 : vector<1x16x16x128xbf16> to vector<256x128xbf16>
    %62 = vector.extract_strided_slice %54 {offsets = [0, 0, 1, 0], sizes = [1, 18, 16, 128], strides = [1, 1, 1, 1]} : vector<1x18x24x128xbf16> to vector<1x18x16x128xbf16>
    %63 = vector.extract_strided_slice %62 {offsets = [0, 0, 0, 0], sizes = [1, 16, 16, 128], strides = [1, 1, 1, 1]} : vector<1x18x16x128xbf16> to vector<1x16x16x128xbf16>
    %64 = vector.shape_cast %63 : vector<1x16x16x128xbf16> to vector<256x128xbf16>
    %65 = vector.extract_strided_slice %62 {offsets = [0, 1, 0, 0], sizes = [1, 16, 16, 128], strides = [1, 1, 1, 1]} : vector<1x18x16x128xbf16> to vector<1x16x16x128xbf16>
    %66 = vector.shape_cast %65 : vector<1x16x16x128xbf16> to vector<256x128xbf16>
    %67 = vector.extract_strided_slice %62 {offsets = [0, 2, 0, 0], sizes = [1, 16, 16, 128], strides = [1, 1, 1, 1]} : vector<1x18x16x128xbf16> to vector<1x16x16x128xbf16>
    %68 = vector.shape_cast %67 : vector<1x16x16x128xbf16> to vector<256x128xbf16>
    %69 = vector.extract_strided_slice %54 {offsets = [0, 0, 2, 0], sizes = [1, 18, 16, 128], strides = [1, 1, 1, 1]} : vector<1x18x24x128xbf16> to vector<1x18x16x128xbf16>
    %70 = vector.extract_strided_slice %69 {offsets = [0, 0, 0, 0], sizes = [1, 16, 16, 128], strides = [1, 1, 1, 1]} : vector<1x18x16x128xbf16> to vector<1x16x16x128xbf16>
    %71 = vector.shape_cast %70 : vector<1x16x16x128xbf16> to vector<256x128xbf16>
    %72 = vector.extract_strided_slice %69 {offsets = [0, 1, 0, 0], sizes = [1, 16, 16, 128], strides = [1, 1, 1, 1]} : vector<1x18x16x128xbf16> to vector<1x16x16x128xbf16>
    %73 = vector.shape_cast %72 : vector<1x16x16x128xbf16> to vector<256x128xbf16>
    %74 = vector.extract_strided_slice %69 {offsets = [0, 2, 0, 0], sizes = [1, 16, 16, 128], strides = [1, 1, 1, 1]} : vector<1x18x16x128xbf16> to vector<1x16x16x128xbf16>
    %75 = vector.shape_cast %74 : vector<1x16x16x128xbf16> to vector<256x128xbf16>
    %76 = tpu.concatenate %57, %64, %71, %59, %66, %73, %61, %68, %75 in 1 : vector<256x128xbf16>, vector<256x128xbf16>, vector<256x128xbf16>, vector<256x128xbf16>, vector<256x128xbf16>, vector<256x128xbf16>, vector<256x128xbf16>, vector<256x128xbf16>, vector<256x128xbf16> -> vector<256x1152xbf16>
    %c0_38 = arith.constant 0 : index
    %c0_39 = arith.constant 0 : index
    %77 = vector.load %arg5[%c0_38, %c0_39] : memref<1152x128xbf16, #tpu.memory_space<vmem>>, vector<1152x128xbf16>
    %cst_40 = arith.constant dense<0.000000e+00> : vector<256x128xf32>
    %78 = tpu.matmul %76, %77, %cst_40 {dimension_numbers = #tpu.dot_dimension_numbers<[1], [0], [0], [1], [0, 0, 1, 1], [], []>} : vector<256x1152xbf16>, vector<1152x128xbf16>, vector<256x128xf32> -> vector<256x128xf32>
    %c0_41 = arith.constant 0 : index
    %c0_42 = arith.constant 0 : index
    %79 = vector.load %arg6[%c0_41, %c0_42] : memref<1x128xf32, #tpu.memory_space<vmem>>, vector<1x128xf32>
    %80 = vector.broadcast %79 : vector<1x128xf32> to vector<256x128xf32>
    %81 = arith.mulf %78, %80 : vector<256x128xf32>
    %c0_43 = arith.constant 0 : index
    %c0_44 = arith.constant 0 : index
    %82 = vector.load %arg7[%c0_43, %c0_44] : memref<1x128xf32, #tpu.memory_space<vmem>>, vector<1x128xf32>
    %83 = vector.broadcast %82 : vector<1x128xf32> to vector<256x128xf32>
    %84 = arith.addf %81, %83 : vector<256x128xf32>
    %85 = vector.extract_strided_slice %22 {offsets = [0, 512], sizes = [256, 128], strides = [1, 1]} : vector<256x1152xbf16> to vector<256x128xbf16>
    %c0_45 = arith.constant 0 : index
    %c0_46 = arith.constant 0 : index
    %86 = vector.load %arg8[%c0_45, %c0_46] : memref<128x128xbf16, #tpu.memory_space<vmem>>, vector<128x128xbf16>
    %cst_47 = arith.constant dense<0.000000e+00> : vector<256x128xf32>
    %87 = tpu.matmul %85, %86, %cst_47 {dimension_numbers = #tpu.dot_dimension_numbers<[1], [0], [0], [1], [0, 0, 1, 1], [], []>} : vector<256x128xbf16>, vector<128x128xbf16>, vector<256x128xf32> -> vector<256x128xf32>
    %c0_48 = arith.constant 0 : index
    %c0_49 = arith.constant 0 : index
    %88 = vector.load %arg9[%c0_48, %c0_49] : memref<1x128xf32, #tpu.memory_space<vmem>>, vector<1x128xf32>
    %89 = vector.broadcast %88 : vector<1x128xf32> to vector<256x128xf32>
    %90 = arith.mulf %87, %89 : vector<256x128xf32>
    %c0_50 = arith.constant 0 : index
    %c0_51 = arith.constant 0 : index
    %91 = vector.load %arg10[%c0_50, %c0_51] : memref<1x128xf32, #tpu.memory_space<vmem>>, vector<1x128xf32>
    %92 = vector.broadcast %91 : vector<1x128xf32> to vector<256x128xf32>
    %93 = arith.addf %90, %92 : vector<256x128xf32>
    %94 = arith.addf %84, %93 : vector<256x128xf32>
    %cst_52 = arith.constant 0.000000e+00 : f32
    %95 = vector.broadcast %cst_52 : f32 to vector<256x128xf32>
    %96 = arith.maximumf %94, %95 : vector<256x128xf32>
    %cst_53 = arith.constant 0.000000e+00 : bf16
    %97 = vector.broadcast %cst_53 : bf16 to vector<1x1x24x128xbf16>
    %c0_54 = arith.constant 0 : index
    %c0_55 = arith.constant 0 : index
    %c0_56 = arith.constant 0 : index
    %c0_57 = arith.constant 0 : index
    %98 = vector.load %arg16[%c0_54, %c0_55, %c0_56, %c0_57] : memref<1x18x24x128xbf16, #tpu.memory_space<vmem>>, vector<1x1x24x128xbf16>
    tpu.vector_store %arg16[%c0_54, %c0_55, %c0_56, %c0_57], %97 {strides = array<i32>} : memref<1x18x24x128xbf16, #tpu.memory_space<vmem>>, vector<1x1x24x128xbf16>,
    %cst_58 = arith.constant 0.000000e+00 : bf16
    %99 = vector.broadcast %cst_58 : bf16 to vector<1x1x24x128xbf16>
    %c0_59 = arith.constant 0 : index
    %c17_60 = arith.constant 17 : index
    %c0_61 = arith.constant 0 : index
    %c0_62 = arith.constant 0 : index
    %100 = vector.load %arg16[%c0_59, %c17_60, %c0_61, %c0_62] : memref<1x18x24x128xbf16, #tpu.memory_space<vmem>>, vector<1x1x24x128xbf16>
    tpu.vector_store %arg16[%c0_59, %c17_60, %c0_61, %c0_62], %99 {strides = array<i32>} : memref<1x18x24x128xbf16, #tpu.memory_space<vmem>>, vector<1x1x24x128xbf16>,
    %cst_63 = arith.constant 0.000000e+00 : bf16
    %101 = vector.broadcast %cst_63 : bf16 to vector<1x18x1x128xbf16>
    %c0_64 = arith.constant 0 : index
    %c0_65 = arith.constant 0 : index
    %c0_66 = arith.constant 0 : index
    %c0_67 = arith.constant 0 : index
    %102 = vector.load %arg16[%c0_64, %c0_65, %c0_66, %c0_67] : memref<1x18x24x128xbf16, #tpu.memory_space<vmem>>, vector<1x18x1x128xbf16>
    tpu.vector_store %arg16[%c0_64, %c0_65, %c0_66, %c0_67], %101 {strides = array<i32>} : memref<1x18x24x128xbf16, #tpu.memory_space<vmem>>, vector<1x18x1x128xbf16>,
    %cst_68 = arith.constant 0.000000e+00 : bf16
    %103 = vector.broadcast %cst_68 : bf16 to vector<1x18x7x128xbf16>
    %c0_69 = arith.constant 0 : index
    %c0_70 = arith.constant 0 : index
    %c17_71 = arith.constant 17 : index
    %c0_72 = arith.constant 0 : index
    %104 = vector.load %arg16[%c0_69, %c0_70, %c17_71, %c0_72] : memref<1x18x24x128xbf16, #tpu.memory_space<vmem>>, vector<1x18x7x128xbf16>
    tpu.vector_store %arg16[%c0_69, %c0_70, %c17_71, %c0_72], %103 {strides = array<i32>} : memref<1x18x24x128xbf16, #tpu.memory_space<vmem>>, vector<1x18x7x128xbf16>,
    %105 = vector.shape_cast %96 : vector<256x128xf32> to vector<1x16x16x128xf32>
    %106 = arith.truncf %105 : vector<1x16x16x128xf32> to vector<1x16x16x128xbf16>
    %c0_73 = arith.constant 0 : index
    %c1_74 = arith.constant 1 : index
    %c1_75 = arith.constant 1 : index
    %c0_76 = arith.constant 0 : index
    %107 = vector.load %arg16[%c0_73, %c1_74, %c1_75, %c0_76] : memref<1x18x24x128xbf16, #tpu.memory_space<vmem>>, vector<1x16x16x128xbf16>
    tpu.vector_store %arg16[%c0_73, %c1_74, %c1_75, %c0_76], %106 {strides = array<i32>} : memref<1x18x24x128xbf16, #tpu.memory_space<vmem>>, vector<1x16x16x128xbf16>,
    %c0_77 = arith.constant 0 : index
    %c0_78 = arith.constant 0 : index
    %c0_79 = arith.constant 0 : index
    %c0_80 = arith.constant 0 : index
    %108 = vector.load %arg16[%c0_77, %c0_78, %c0_79, %c0_80] : memref<1x18x24x128xbf16, #tpu.memory_space<vmem>>, vector<1x18x24x128xbf16>
    %109 = vector.extract_strided_slice %108 {offsets = [0, 0, 0, 0], sizes = [1, 18, 16, 128], strides = [1, 1, 1, 1]} : vector<1x18x24x128xbf16> to vector<1x18x16x128xbf16>
    %110 = vector.extract_strided_slice %109 {offsets = [0, 0, 0, 0], sizes = [1, 16, 16, 128], strides = [1, 1, 1, 1]} : vector<1x18x16x128xbf16> to vector<1x16x16x128xbf16>
    %111 = vector.shape_cast %110 : vector<1x16x16x128xbf16> to vector<256x128xbf16>
    %112 = vector.extract_strided_slice %109 {offsets = [0, 1, 0, 0], sizes = [1, 16, 16, 128], strides = [1, 1, 1, 1]} : vector<1x18x16x128xbf16> to vector<1x16x16x128xbf16>
    %113 = vector.shape_cast %112 : vector<1x16x16x128xbf16> to vector<256x128xbf16>
    %114 = vector.extract_strided_slice %109 {offsets = [0, 2, 0, 0], sizes = [1, 16, 16, 128], strides = [1, 1, 1, 1]} : vector<1x18x16x128xbf16> to vector<1x16x16x128xbf16>
    %115 = vector.shape_cast %114 : vector<1x16x16x128xbf16> to vector<256x128xbf16>
    %116 = vector.extract_strided_slice %108 {offsets = [0, 0, 1, 0], sizes = [1, 18, 16, 128], strides = [1, 1, 1, 1]} : vector<1x18x24x128xbf16> to vector<1x18x16x128xbf16>
    %117 = vector.extract_strided_slice %116 {offsets = [0, 0, 0, 0], sizes = [1, 16, 16, 128], strides = [1, 1, 1, 1]} : vector<1x18x16x128xbf16> to vector<1x16x16x128xbf16>
    %118 = vector.shape_cast %117 : vector<1x16x16x128xbf16> to vector<256x128xbf16>
    %119 = vector.extract_strided_slice %116 {offsets = [0, 1, 0, 0], sizes = [1, 16, 16, 128], strides = [1, 1, 1, 1]} : vector<1x18x16x128xbf16> to vector<1x16x16x128xbf16>
    %120 = vector.shape_cast %119 : vector<1x16x16x128xbf16> to vector<256x128xbf16>
    %121 = vector.extract_strided_slice %116 {offsets = [0, 2, 0, 0], sizes = [1, 16, 16, 128], strides = [1, 1, 1, 1]} : vector<1x18x16x128xbf16> to vector<1x16x16x128xbf16>
    %122 = vector.shape_cast %121 : vector<1x16x16x128xbf16> to vector<256x128xbf16>
    %123 = vector.extract_strided_slice %108 {offsets = [0, 0, 2, 0], sizes = [1, 18, 16, 128], strides = [1, 1, 1, 1]} : vector<1x18x24x128xbf16> to vector<1x18x16x128xbf16>
    %124 = vector.extract_strided_slice %123 {offsets = [0, 0, 0, 0], sizes = [1, 16, 16, 128], strides = [1, 1, 1, 1]} : vector<1x18x16x128xbf16> to vector<1x16x16x128xbf16>
    %125 = vector.shape_cast %124 : vector<1x16x16x128xbf16> to vector<256x128xbf16>
    %126 = vector.extract_strided_slice %123 {offsets = [0, 1, 0, 0], sizes = [1, 16, 16, 128], strides = [1, 1, 1, 1]} : vector<1x18x16x128xbf16> to vector<1x16x16x128xbf16>
    %127 = vector.shape_cast %126 : vector<1x16x16x128xbf16> to vector<256x128xbf16>
    %128 = vector.extract_strided_slice %123 {offsets = [0, 2, 0, 0], sizes = [1, 16, 16, 128], strides = [1, 1, 1, 1]} : vector<1x18x16x128xbf16> to vector<1x16x16x128xbf16>
    %129 = vector.shape_cast %128 : vector<1x16x16x128xbf16> to vector<256x128xbf16>
    %130 = tpu.concatenate %111, %118, %125, %113, %120, %127, %115, %122, %129 in 1 : vector<256x128xbf16>, vector<256x128xbf16>, vector<256x128xbf16>, vector<256x128xbf16>, vector<256x128xbf16>, vector<256x128xbf16>, vector<256x128xbf16>, vector<256x128xbf16>, vector<256x128xbf16> -> vector<256x1152xbf16>
    %c0_81 = arith.constant 0 : index
    %c0_82 = arith.constant 0 : index
    %131 = vector.load %arg11[%c0_81, %c0_82] : memref<1152x128xbf16, #tpu.memory_space<vmem>>, vector<1152x128xbf16>
    %cst_83 = arith.constant dense<0.000000e+00> : vector<256x128xf32>
    %132 = tpu.matmul %130, %131, %cst_83 {dimension_numbers = #tpu.dot_dimension_numbers<[1], [0], [0], [1], [0, 0, 1, 1], [], []>} : vector<256x1152xbf16>, vector<1152x128xbf16>, vector<256x128xf32> -> vector<256x128xf32>
    %c0_84 = arith.constant 0 : index
    %c0_85 = arith.constant 0 : index
    %133 = vector.load %arg12[%c0_84, %c0_85] : memref<1x128xf32, #tpu.memory_space<vmem>>, vector<1x128xf32>
    %134 = vector.broadcast %133 : vector<1x128xf32> to vector<256x128xf32>
    %135 = arith.mulf %132, %134 : vector<256x128xf32>
    %c0_86 = arith.constant 0 : index
    %c0_87 = arith.constant 0 : index
    %136 = vector.load %arg13[%c0_86, %c0_87] : memref<1x128xf32, #tpu.memory_space<vmem>>, vector<1x128xf32>
    %137 = vector.broadcast %136 : vector<1x128xf32> to vector<256x128xf32>
    %138 = arith.addf %135, %137 : vector<256x128xf32>
    %cst_88 = arith.constant 0.000000e+00 : f32
    %139 = vector.broadcast %cst_88 : f32 to vector<256x128xf32>
    %140 = arith.maximumf %138, %139 : vector<256x128xf32>
    %141 = vector.shape_cast %140 : vector<256x128xf32> to vector<1x256x128xf32>
    %c0_89 = arith.constant 0 : index
    %c0_90 = arith.constant 0 : index
    %c0_91 = arith.constant 0 : index
    %142 = vector.load %arg14[%c0_89, %c0_90, %c0_91] : memref<1x256x128xf32, #tpu.memory_space<vmem>>, vector<1x256x128xf32>
    tpu.vector_store %arg14[%c0_89, %c0_90, %c0_91], %141 {strides = array<i32>} : memref<1x256x128xf32, #tpu.memory_space<vmem>>, vector<1x256x128xf32>,
    return
  }
  func.func @transform_0(%arg0: i32) -> (i32, i32, i32, i32) {
    %c0_i32 = arith.constant 0 : i32
    %c0_i32_0 = arith.constant 0 : i32
    %c0_i32_1 = arith.constant 0 : i32
    %c0_i32_2 = arith.constant 0 : i32
    return %arg0, %c0_i32, %c0_i32_0, %c0_i32_1 : i32, i32, i32, i32
  }
  func.func @transform_1(%arg0: i32) -> (i32, i32) {
    %c0_i32 = arith.constant 0 : i32
    %c0_i32_0 = arith.constant 0 : i32
    %c0_i32_1 = arith.constant 0 : i32
    return %c0_i32, %c0_i32_0 : i32, i32
  }
  func.func @transform_2(%arg0: i32) -> (i32, i32) {
    %c0_i32 = arith.constant 0 : i32
    %c0_i32_0 = arith.constant 0 : i32
    %c0_i32_1 = arith.constant 0 : i32
    return %c0_i32, %c0_i32_0 : i32, i32
  }
  func.func @transform_3(%arg0: i32) -> (i32, i32) {
    %c0_i32 = arith.constant 0 : i32
    %c0_i32_0 = arith.constant 0 : i32
    %c0_i32_1 = arith.constant 0 : i32
    return %c0_i32, %c0_i32_0 : i32, i32
  }
  func.func @transform_4(%arg0: i32) -> (i32, i32) {
    %c0_i32 = arith.constant 0 : i32
    %c0_i32_0 = arith.constant 0 : i32
    %c0_i32_1 = arith.constant 0 : i32
    return %c0_i32, %c0_i32_0 : i32, i32
  }
  func.func @transform_5(%arg0: i32) -> (i32, i32) {
    %c0_i32 = arith.constant 0 : i32
    %c0_i32_0 = arith.constant 0 : i32
    %c0_i32_1 = arith.constant 0 : i32
    return %c0_i32, %c0_i32_0 : i32, i32
  }
  func.func @transform_6(%arg0: i32) -> (i32, i32) {
    %c0_i32 = arith.constant 0 : i32
    %c0_i32_0 = arith.constant 0 : i32
    %c0_i32_1 = arith.constant 0 : i32
    return %c0_i32, %c0_i32_0 : i32, i32
  }
  func.func @transform_7(%arg0: i32) -> (i32, i32) {
    %c0_i32 = arith.constant 0 : i32
    %c0_i32_0 = arith.constant 0 : i32
    %c0_i32_1 = arith.constant 0 : i32
    return %c0_i32, %c0_i32_0 : i32, i32
  }
  func.func @transform_8(%arg0: i32) -> (i32, i32) {
    %c0_i32 = arith.constant 0 : i32
    %c0_i32_0 = arith.constant 0 : i32
    %c0_i32_1 = arith.constant 0 : i32
    return %c0_i32, %c0_i32_0 : i32, i32
  }
  func.func @transform_9(%arg0: i32) -> (i32, i32) {
    %c0_i32 = arith.constant 0 : i32
    %c0_i32_0 = arith.constant 0 : i32
    %c0_i32_1 = arith.constant 0 : i32
    return %c0_i32, %c0_i32_0 : i32, i32
  }
  func.func @transform_10(%arg0: i32) -> (i32, i32) {
    %c0_i32 = arith.constant 0 : i32
    %c0_i32_0 = arith.constant 0 : i32
    %c0_i32_1 = arith.constant 0 : i32
    return %c0_i32, %c0_i32_0 : i32, i32
  }
  func.func @transform_11(%arg0: i32) -> (i32, i32) {
    %c0_i32 = arith.constant 0 : i32
    %c0_i32_0 = arith.constant 0 : i32
    %c0_i32_1 = arith.constant 0 : i32
    return %c0_i32, %c0_i32_0 : i32, i32
  }
  func.func @transform_12(%arg0: i32) -> (i32, i32) {
    %c0_i32 = arith.constant 0 : i32
    %c0_i32_0 = arith.constant 0 : i32
    %c0_i32_1 = arith.constant 0 : i32
    return %c0_i32, %c0_i32_0 : i32, i32
  }
  func.func @transform_13(%arg0: i32) -> (i32, i32, i32) {
    %c0_i32 = arith.constant 0 : i32
    %c0_i32_0 = arith.constant 0 : i32
    %c0_i32_1 = arith.constant 0 : i32
    return %arg0, %c0_i32, %c0_i32_0 : i32, i32, i32
  }
}

</mosaic_0001>

<bundles_post_ra>
// kernel: pool_cross_forward.1
= control target key start
LH: loop header
LB: loop body
LE: loop exit
PB: predicated region body
PF: predicated region fallthrough
CT: control target
= control target key end

     0   :  { %18 = vsyncpa [#allocation5], 0  ;;  %s17709_s0 = inlined_call_operand.vmem [shape: bf16[2,18,24,128], index: 0, kind: input, shape index: {}]   ;;  %s17710_s1 = inlined_call_operand.vmem [shape: bf16[1152,256], index: 1, kind: input, shape index: {}]   ;;  %s17711_s2 = inlined_call_operand.vmem [shape: f32[1,256], index: 2, kind: input, shape index: {}]   ;;  %s17712_s3 = inlined_call_operand.vmem [shape: f32[1,256], index: 3, kind: input, shape index: {}]   ;;  %s17713_s4 = inlined_call_operand.vmem [shape: bf16[1152,128], index: 4, kind: input, shape index: {}]   ;;  %s17714_s5 = inlined_call_operand.vmem [shape: f32[1,128], index: 5, kind: input, shape index: {}]   ;;  %s17715_s6 = inlined_call_operand.vmem [shape: f32[1,128], index: 6, kind: input, shape index: {}]   ;;  %s17716_s7 = inlined_call_operand.vmem [shape: bf16[128,128], index: 7, kind: input, shape index: {}]   ;;  %s17717_s8 = inlined_call_operand.vmem [shape: f32[1,128], index: 8, kind: input, shape index: {}]   ;;  %s17718_s9 = inlined_call_operand.vmem [shape: f32[1,128], index: 9, kind: input, shape index: {}]   ;;  %s17719_s10 = inlined_call_operand.vmem [shape: bf16[1152,128], index: 10, kind: input, shape index: {}]   ;;  %s17720_s11 = inlined_call_operand.vmem [shape: f32[1,128], index: 11, kind: input, shape index: {}]   ;;  %s17721_s12 = inlined_call_operand.vmem [shape: f32[1,128], index: 12, kind: input, shape index: {}]   ;;  %s17722_s13 = inlined_call_operand.hbm [shape: f32[2,256,128], index: 13, kind: output, shape index: {}]  }
   0x1   :  { %20 = vsyncpa [#allocation5 + $0x1], 0  ;;  %s12721_s25 = smov 0   ;;  %s12723_s26 = smov 0  }
   0x2   :  { %s12725_s27 = smov 0   ;;  %s12727_s28 = smov 0  }
   0x3 LB: > { %17835 = sst [smem:[#allocation7_spill]] %s12641_s27  ;;  %s12742_s29 = sadd.s32 4294967295, %s12645_s28   ;;  %s12645_s28 = sphi %s12727_s28, %s18034_s28   ;;  %s12641_s27 = sphi %s12725_s27, %s18036_s27   ;;  %s12637_s26 = sphi %s12723_s26, %s18038_s26   ;;  %s12633_s25 = sphi %s12721_s25, %s18037_s25  }
   0x4   : > { %s10032_s30 = sadd.s32 4294967294, %s12645_s28   ;;  %s12746_s14 = sadd.s32 1, %s12645_s28  }
   0x5   : > { %17836 = sst [smem:[#allocation8_spill]] %s12746_s14  ;;  %s311_s15 = sadd.s32 1, %s12641_s27 }
   0x6   : > { %s308_s16 = ssub.s32 %s12645_s28, %s12746_s14  ;;  %p321_p0 = scmp.ne.s32.totalorder %s12641_s27, %s12637_s26 }
   0x7   : > { %p309_p1 = scmp.eq.s32.totalorder %s308_s16, 0  ;;  %p322_p2 = scmp.eq.s32.totalorder %s12742_s29, 1 }
   0x8   : > { %p327_p3 = scmp.ne.s32.totalorder %s12637_s26, %s12633_s25  ;;  %p328_p4 = scmp.eq.s32.totalorder %s10032_s30, 1 }
   0x9   : > { %s12757_s17 = scalar_select %p309_p1, %s12641_s27, %s311_s15  }
   0xa   : > { %p12759_p5 = por %p322_p2, %p321_p0  ;;  %p12763_p6 = por %p328_p4, %p327_p3 }
   0xb   : > { %17837 = sst [smem:[#allocation9_spill]] %s12757_s17  ;;  %p10035_p7 = scmp.ge.s32.totalorder %s12645_s28, 1 }
   0xc   : > { %s17839_s19 = scalar_select %p12763_p6, 1, 0 }
   0xd   : > { %p390_p8 = scmp.lt.s32.totalorder %s12645_s28, 3 }
   0xe   : > { %17840 = sst [smem:[#allocation10_spill]] %s17839_s19 }
   0xf   : > { %p391_p9 = pnand %p10035_p7, %p390_p8 }
  0x11   : > { %394 = sbr.rel (%p391_p9) target bundleno = 2396 (0x95c), region = 72 }
  0x18   : > { %v12117_v0 = vld [vmem:[%s17710_s1 + $0x4] ss:$8 sps:$4 sm:$0xff]   ;;  %v12119_v1 = vld [vmem:[%s17710_s1] ss:$8 sps:$4 sm:$0xff]   ;;  %v12120_v2 = vld [vmem:[%s17710_s1 + $0x14] ss:$8 sps:$4 sm:$0xff]  }
  0x19   : > { %2192 = vmatprep.subr.bf16.mxu0 %v12117_v0  ;;  %v12122_v3 = vld [vmem:[%s17710_s1 + $0x10] ss:$8 sps:$4 sm:$0xff]   ;;  %v12123_v4 = vld [vmem:[%s17710_s1 + $0x24] ss:$8 sps:$4 sm:$0xff]   ;;  %p434_p10 = scmp.lt.s32.totalorder %s12742_s29, 1  ;;  %vm977_vm0 = vcmask 1042432  }
  0x1a   : > { %2193 = vmatpush1.bf16.msra.mxu0 %v12119_v1  ;;  %v12125_v5 = vld [vmem:[%s17710_s1 + $0x20] ss:$8 sps:$4 sm:$0xff]   ;;  %v12126_v6 = vld [vmem:[%s17710_s1 + $0x34] ss:$8 sps:$4 sm:$0xff]   ;;  %v12128_v7 = vld [vmem:[%s17710_s1 + $0x30] ss:$8 sps:$4 sm:$0xff]  }
  0x1b   : > { %2194 = vmatprep.subr.bf16.mxu0 %v12120_v2  ;;  %s435_s30 = scalar_select %p434_p10, %s12742_s29, 1  ;;  %v12129_v8 = vld [vmem:[%s17710_s1 + $0x44] ss:$8 sps:$4 sm:$0xff]   ;;  %v12131_v9 = vld [vmem:[%s17710_s1 + $0x40] ss:$8 sps:$4 sm:$0xff]   ;;  %vm978_vm2 = vcmask 1046532  }
  0x1c   : > { %v12132_v10 = vld [vmem:[%s17710_s1 + $0x54] ss:$8 sps:$4 sm:$0xff]   ;;  %v12134_v11 = vld [vmem:[%s17710_s1 + $0x50] ss:$8 sps:$4 sm:$0xff]   ;;  %vm494_vm1 = vsmask.f32 3328  ;;  %vm12835_vm4 = vmor %vm977_vm0, %vm978_vm2 }
  0x1d   : > { %s12074_s27 = smul.u32 216, %s435_s30  ;;  %v12135_v12 = vld [vmem:[%s17710_s1 + $0x64] ss:$8 sps:$4 sm:$0xff]   ;;  %vm495_vm3 = vsmask.f32 7440  ;;  %v17841_v29 = vmov 0 }
  0x1e   : > { %2195 = vmatpush1.bf16.msra.mxu0 %v12122_v3  ;;  %v12137_v13 = vld [vmem:[%s17710_s1 + $0x60] ss:$8 sps:$4 sm:$0xff]   ;;  %v12138_v24 = vld [vmem:[%s17710_s1 + $0x74] ss:$8 sps:$4 sm:$0xff]   ;;  %v17842_v29 = vsel %vm12835_vm4, 4294967295, %v17841_v29  ;;  %vm12846_vm5 = vmor %vm494_vm1, %vm495_vm3  ;;  %v17844_v32 = vmov 0 }
  0x1f   : > { %2196 = vmatprep.subr.bf16.mxu0 %v12123_v4  ;;  %s12807_s15 = scalar_lea.vmem %s17709_s0, %s12074_s27  ;;  %17843 = vst [vmem:[#allocation11_spill] sm:$0xff] %v17842_v29  ;;  %v12140_v31 = vld [vmem:[%s17710_s1 + $0x70] ss:$8 sps:$4 sm:$0xff]   ;;  %v17845_v32 = vsel %vm12846_vm5, 4294967295, %v17844_v32  ;;  %v12141_v37 = vld [vmem:[%s17710_s1 + $0x84] ss:$8 sps:$4 sm:$0xff]  }
  0x20   : > { %v12819_v14 = vld [vmem:[%s12807_s15] sm:$0xf]  ;;  %v12822_v15 = vld [vmem:[%s12807_s15 + $0x4] sm:$0xf]  ;;  %v442_v16 = vld [vmem:[%s12807_s15 + $0x8] sm:$0xf] }
  0x21   : > { %v498_v17 = vshrl.u32 %v12819_v14, 16  ;;  %v501_v18 = vshll.u32 %v12819_v14, 16  ;;  %v507_v19 = vshll.u32 %v12822_v15, 16  ;;  %v511_v20 = vshrl.u32 %v12822_v15, 16  ;;  %17846 = vst [vmem:[#allocation12_spill] sm:$0xff] %v17845_v32  ;;  %s431_s30 = sand.u32 1, %s12637_s26  }
  0x22   : > { %2197 = vmatpush1.bf16.msra.mxu0 %v12125_v5  ;;  %v517_v21 = vshll.u32 %v442_v16, 16  ;;  %v17727_v22 = vrot.slane %v12822_v15, 5  ;;  %v985_v23 = vrot.slane %v442_v16, 5  ;;  %v12143_v42 = vld [vmem:[%s17710_s1 + $0x80] ss:$8 sps:$4 sm:$0xff]   ;;  %vm3554_vm6 = vcmask 1040384  }
  0x23   : > { %2198 = vmatprep.subr.bf16.mxu0 %v12126_v6  ;;  %v500_v25 = vrot.slane %v498_v17, 4  ;;  %v503_v26 = vrot.slane %v501_v18, 5  ;;  %v509_v27 = vrot.slane %v507_v19, 5  ;;  %v513_v28 = vrot.slane %v511_v20, 4  ;;  %v12144_v44 = vld [vmem:[%s17710_s1 + $0x94] ss:$8 sps:$4 sm:$0xff]  }
  0x24   : > { %v984_v30 = vrot.slane %v17727_v22, 4  ;;  %v519_v35 = vrot.slane %v517_v21, 5  ;;  %v12146_v45 = vld [vmem:[%s17710_s1 + $0x90] ss:$8 sps:$4 sm:$0xff]   ;;  %v12147_v46 = vld [vmem:[%s17710_s1 + $0xa4] ss:$8 sps:$4 sm:$0xff]  }
  0x25   : > { %v504_v33 = vor.u32 %v503_v26, %v500_v25  ;;  %v514_v34 = vor.u32 %v513_v28, %v509_v27  ;;  %v12149_v47 = vld [vmem:[%s17710_s1 + $0xa0] ss:$8 sps:$4 sm:$0xff]   ;;  %v12150_v48 = vld [vmem:[%s17710_s1 + $0xb4] ss:$8 sps:$4 sm:$0xff]   ;;  %v12880_v49 = vld [vmem:[%s12807_s15 + $0xc] sm:$0xf] }
  0x26   : > { %2199 = vmatpush1.bf16.msra.mxu0 %v12128_v7  ;;  %v12852_v36 = vsel %vm12835_vm4, %v984_v30, %v985_v23  ;;  %v12883_v50 = vld [vmem:[%s12807_s15 + $0x10] sm:$0xf]  ;;  %v522_v52 = vshrl.u32 %v12880_v49, 16  ;;  %v525_v53 = vshll.u32 %v12880_v49, 16  ;;  %v12153_v56 = vld [vmem:[%s17710_s1 + $0xc4] ss:$8 sps:$4 sm:$0xff]  }
  0x27   : > { %2200 = vmatprep.subr.bf16.mxu0 %v12129_v8  ;;  %v505_v38 = vrot.slane %v504_v33, 4  ;;  %v515_v39 = vrot.slane %v514_v34, 4  ;;  %v12152_v51 = vld [vmem:[%s17710_s1 + $0xb0] ss:$8 sps:$4 sm:$0xff]   ;;  %v531_v54 = vshll.u32 %v12883_v50, 16  ;;  %v535_v55 = vshrl.u32 %v12883_v50, 16 }
  0x28   : > { %v12155_v57 = vld [vmem:[%s17710_s1 + $0xc0] ss:$8 sps:$4 sm:$0xff]   ;;  %v445_v58 = vld [vmem:[%s12807_s15 + $0x14] sm:$0xf]  ;;  %v524_v59 = vrot.slane %v522_v52, 4  ;;  %v527_v60 = vrot.slane %v525_v53, 5 }
  0x29   : > { %v510_v40 = vsel %vm12846_vm5, %v505_v38, %v509_v27  ;;  %v520_v41 = vsel %vm12846_vm5, %v515_v39, %v519_v35  ;;  %v533_v61 = vrot.slane %v531_v54, 5  ;;  %v537_v62 = vrot.slane %v535_v55, 4  ;;  %v12156_v63 = vld [vmem:[%s17710_s1 + $0xd4] ss:$8 sps:$4 sm:$0xff]   ;;  %v12903_v0 = vld [vmem:[%s12807_s15 + $0x18] sm:$0xf] }
  0x2a   : > { %2201 = vmatpush1.bf16.msra.mxu0 %v12131_v9  ;;  %v10072_v43 = vcombine.low %v510_v40, %v520_v41  ;;  %v12906_v1 = vld [vmem:[%s12807_s15 + $0x1c] sm:$0xf]  ;;  %v541_v2 = vshll.u32 %v445_v58, 16  ;;  %v12158_v3 = vld [vmem:[%s17710_s1 + $0xd0] ss:$8 sps:$4 sm:$0xff]   ;;  %v528_v4 = vor.u32 %v527_v60, %v524_v59  ;;  %v546_v6 = vshrl.u32 %v12903_v0, 16 }
  0x2b   : > { %2202 = vmatprep.subr.bf16.mxu0 %v12132_v10  ;;  %v538_v5 = vor.u32 %v537_v62, %v533_v61  ;;  %v549_v7 = vshll.u32 %v12903_v0, 16  ;;  %v12159_v8 = vld [vmem:[%s17710_s1 + $0xe4] ss:$8 sps:$4 sm:$0xff]   ;;  %v555_v9 = vshll.u32 %v12906_v1, 16  ;;  %v559_v10 = vshrl.u32 %v12906_v1, 16  ;;  %s10036_s14 = sshll.u32 %s431_s30, 8 }
  0x2c   : > { %2224 = vmatprep.mubr.bf16.mxu0 %v10072_v43  ;;  %v543_v16 = vrot.slane %v541_v2, 5  ;;  %v12928_v17 = vld [vmem:[%s12807_s15 + $0x20] sm:$0xf]  ;;  %v12931_v18 = vld [vmem:[%s12807_s15 + $0x28] sm:$0xf]  ;;  %v529_v19 = vrot.slane %v528_v4, 4 }
  0x2d   : > { %v539_v20 = vrot.slane %v538_v5, 4  ;;  %v548_v21 = vrot.slane %v546_v6, 4  ;;  %v551_v23 = vrot.slane %v549_v7, 5  ;;  %v561_v25 = vrot.slane %v559_v10, 4  ;;  %v12952_v40 = vld [vmem:[%s12807_s15 + $0x2c] sm:$0xf] }
  0x2e   : > { %2203 = vmatpush1.bf16.msra.mxu0 %v12134_v11  ;;  %v12161_v11 = vld [vmem:[%s17710_s1 + $0xe0] ss:$8 sps:$4 sm:$0xff]   ;;  %v579_v28 = vshll.u32 %v12931_v18, 16  ;;  %v583_v30 = vshrl.u32 %v12931_v18, 16  ;;  %v534_v33 = vsel %vm12846_vm5, %v529_v19, %v533_v61  ;;  %v565_v35 = vshll.u32 %v12928_v17, 16  ;;  %s17549_s27 = scalar_lea.vmem [#allocation4], %s10036_s14 }
  0x2f   : > { %2204 = vmatprep.subr.bf16.mxu0 %v12135_v12  ;;  %v12922_v12 = vld [vmem:[%s12807_s15 + $0x24] sm:$0xf]  ;;  %v552_v34 = vor.u32 %v551_v23, %v548_v21  ;;  %v544_v38 = vsel %vm12846_vm5, %v539_v20, %v543_v16  ;;  %v12170_v60 = vld [vmem:[%s17710_s1 + $0x110] ss:$8 sps:$4 sm:$0xff]   ;;  %v12989_v4 = vld [vmem:[%s12807_s15 + $0x40] sm:$0xf]  ;;  %v12998_v10 = vcombine.low %v12880_v49, %v12883_v50 }
  0x30   : > { %v570_v26 = vshrl.u32 %v12922_v12, 16  ;;  %v573_v27 = vshll.u32 %v12922_v12, 16  ;;  %v12954_v43 = vrot.slane %v579_v28, 5  ;;  %v567_v53 = vrot.slane %v565_v35, 5  ;;  %v12176_v6 = vld [vmem:[%s17710_s1 + $0x124] ss:$8 sps:$4 sm:$0xff]  }
  0x31   : > { %v553_v52 = vrot.slane %v552_v34, 4  ;;  %v13004_v16 = vld [vmem:[%s12807_s15 + $0x48] sm:$0xf]  ;;  %v13007_v19 = vld [vmem:[%s12807_s15 + $0x4c] sm:$0xf]  ;;  %v631_v28 = vshrl.u32 %v12989_v4, 16 }
  0x32   : > { %2205 = vmatpush1.bf16.msra.mxu0 %v12137_v13  ;;  %v12162_v13 = vld [vmem:[%s17710_s1 + $0xf4] ss:$8 sps:$4 sm:$0xff]   ;;  %v572_v41 = vrot.slane %v570_v26, 4  ;;  %v13010_v20 = vld [vmem:[%s12807_s15 + $0x38] sm:$0xf]  ;;  %v655_v34 = vshrl.u32 %v13007_v19, 16 }
  0x33   : > { %2206 = vmatprep.subr.bf16.mxu0 %v12138_v24  ;;  %v12933_v24 = vrot.slane %v555_v9, 5  ;;  %v12180_v50 = vld [vmem:[%s17710_s1 + $0x134] ss:$8 sps:$4 sm:$0xff]   ;;  %vm3555_vm7 = vsmask.f32 256  ;;  %vm3611_vm9 = vcmask 1043456  }
  0x34   : > { %vm14089_vm8 = vmand %vm3554_vm6, %vm3555_vm7  ;;  %vm3612_vm10 = vsmask.f32 7938  ;;  %vm3764_vm12 = vsmask.f32 4368  ;;  %s10689_s19 = sshll.u32 %s12742_s29, 12  ;;  %s9970_s21 = sshll.u32 %s17549_s27, 4  ;;  %s17661_s21 = int_to_ptr.vmem [resolvable:$true] %s9970_s21 }
  0x35   : > { %v562_v39 = vor.u32 %v561_v25, %v12933_v24  ;;  %v558_v62 = vsel %vm12846_vm5, %v553_v52, %v12933_v24  ;;  %v627_v25 = vshll.u32 %v12989_v4, 16  ;;  %v633_v52 = vrot.slane %v631_v28, 4  ;;  %vm14101_vm11 = vmand %vm3611_vm9, %vm3612_vm10  ;;  %s17659_s24 = scalar_lea.hbm %s17722_s13, %s10689_s19  ;;  %s17668_s29 = scalar_lea.sflag [#allocation5], %s431_s30 }
  0x36   : > { %2207 = vmatpush1.bf16.msra.mxu0 %v12140_v31  ;;  %v12164_v31 = vld [vmem:[%s17710_s1 + $0xf0] ss:$8 sps:$4 sm:$0xff]   ;;  %vm14543_vm13 = vmor %vm3555_vm7, %vm3764_vm12  ;;  %s12583_s16 = scalar_lea.vmem %s17661_s21, 4096 }
  0x37   : > { %2208 = vmatprep.subr.bf16.mxu0 %v12141_v37  ;;  %v12168_v37 = vld [vmem:[%s17710_s1 + $0x104] ss:$8 sps:$4 sm:$0xff]   ;;  %v563_v54 = vrot.slane %v562_v39, 4  ;;  %v613_v39 = vshll.u32 %v13010_v20, 16  ;;  %p12584_p11 = scmp.ne.s32.totalorder %s17661_s21, %s12583_s16 }
  0x39   : > { %v568_v5 = vsel %vm12846_vm5, %v563_v54, %v567_v53  ;;  %v13048_v53 = vld [vmem:[%s12807_s15 + $0x54] sm:$0xf]  ;;  %v13051_v54 = vld [vmem:[%s12807_s15 + $0x58] sm:$0xf]  ;;  %p12585_p12 = pnand %p12584_p11, %p12759_p5 }
  0x3a   : > { %2209 = vmatpush1.bf16.msra.mxu0 %v12143_v42  ;;  %v575_v42 = vrot.slane %v573_v27, 5  ;;  %v13015_v49 = vcombine.low %v558_v62, %v568_v5  ;;  %v615_v62 = vrot.slane %v613_v39, 5  ;;  %v13094_v39 = vld [vmem:[%s12807_s15 + $0x5c] sm:$0xf] }
  0x3b   : > { %2210 = vmatprep.subr.bf16.mxu0 %v12144_v44  ;;  %v585_v44 = vrot.slane %v583_v30, 4  ;;  %v642_v30 = vshrl.u32 %v13004_v16, 16  ;;  %p12586_p13 = pneg %p12585_p12 }
  0x3c   : > { %v576_v55 = vor.u32 %v575_v42, %v572_v41  ;;  %17848 = vst [vmem:[#allocation14_spill] sm:$0xff] %v13015_v49  ;;  %v12184_v42 = vld [vmem:[%s17710_s1 + $0x144] ss:$8 sps:$4 sm:$0xff]  }
  0x3d   : > { %v586_v59 = vor.u32 %v585_v44, %v12954_v43  ;;  %v13041_v44 = vld [vmem:[%s12807_s15 + $0x44] sm:$0xf] }
  0x3e   : > { %2211 = vmatpush1.bf16.msra.mxu0 %v12146_v45  ;;  %v12957_v45 = vld [vmem:[%s12807_s15 + $0x30] sm:$0xf]  ;;  %v577_v7 = vrot.slane %v576_v55, 4  ;;  %v644_v55 = vrot.slane %v642_v30, 4 }
  0x3f   : > { %2212 = vmatprep.subr.bf16.mxu0 %v12147_v46  ;;  %v10056_v46 = vcombine.low %v12819_v14, %v12822_v15  ;;  %v594_v58 = vshrl.u32 %v12957_v45, 16  ;;  %v597_v61 = vshll.u32 %v12957_v45, 16  ;;  %v12186_v30 = vld [vmem:[%s17710_s1 + $0x150] ss:$8 sps:$4 sm:$0xff]  }
  0x40   : > { %v582_v35 = vsel %vm12846_vm5, %v577_v7, %v12954_v43  ;;  %v666_v7 = vshrl.u32 %v13048_v53, 16 }
  0x41   : > { %v596_v9 = vrot.slane %v594_v58, 4  ;;  %v599_v21 = vrot.slane %v597_v61, 5 }
  0x42   : > { %2213 = vmatpush1.bf16.msra.mxu0 %v12149_v47  ;;  %v12166_v47 = vld [vmem:[%s17710_s1 + $0x100] ss:$8 sps:$4 sm:$0xff]  }
  0x43   : > { %2214 = vmatprep.subr.bf16.mxu0 %v12150_v48  ;;  %v12964_v48 = vcombine.low %v534_v33, %v544_v38  ;;  %v651_v33 = vshll.u32 %v13007_v19, 16  ;;  %v12178_v38 = vld [vmem:[%s17710_s1 + $0x130] ss:$8 sps:$4 sm:$0xff]   ;;  %v600_v41 = vor.u32 %v599_v21, %v596_v9  ;;  %v675_v21 = vshll.u32 %v13051_v54, 16 }
  0x45   : > { %17847 = vst [vmem:[#allocation13_spill] sm:$0xff] %v12964_v48  ;;  %v13053_v58 = vrot.slane %v651_v33, 5 }
  0x46   : > { %2215 = vmatpush1.bf16.msra.mxu0 %v12152_v51  ;;  %v12172_v51 = vld [vmem:[%s17710_s1 + $0x114] ss:$8 sps:$4 sm:$0xff]  }
  0x47   : > { %2216 = vmatprep.subr.bf16.mxu0 %v12153_v56  ;;  %v589_v56 = vshll.u32 %v12952_v40, 16 }
  0x4a   : > { %2217 = vmatpush1.bf16.msra.mxu0 %v12155_v57  ;;  %v12971_v57 = vld [vmem:[%s12807_s15 + $0x34] sm:$0xf] }
  0x4b   : > { %2218 = vmatprep.subr.bf16.mxu0 %v12156_v63  ;;  %v603_v63 = vshll.u32 %v12971_v57, 16  ;;  %v607_v2 = vshrl.u32 %v12971_v57, 16 }
  0x4d   : > { %v13020_v26 = vrot.slane %v603_v63, 5  ;;  %v609_v27 = vrot.slane %v607_v2, 4  ;;  %v13062_v63 = vld [vmem:[%s12807_s15 + $0x50] sm:$0xf]  ;;  %v601_v2 = vrot.slane %v600_v41, 4  ;;  %v668_v41 = vrot.slane %v666_v7, 4 }
  0x4e   : > { %2219 = vmatpush1.bf16.msra.mxu0 %v12158_v3  ;;  %v12986_v3 = vld [vmem:[%s12807_s15 + $0x3c] sm:$0xf]  ;;  %v661_v28 = vshll.u32 %v13062_v63, 16 }
  0x4f   : > { %2220 = vmatprep.subr.bf16.mxu0 %v12159_v8  ;;  %v591_v8 = vrot.slane %v589_v56, 5  ;;  %v618_v23 = vshrl.u32 %v12986_v3, 16  ;;  %v621_v24 = vshll.u32 %v12986_v3, 16 }
  0x51   : > { %v620_v43 = vrot.slane %v618_v23, 4  ;;  %v679_v23 = vshrl.u32 %v13051_v54, 16 }
  0x52   : > { %2221 = vmatpush1.bf16.msra.mxu0 %v12161_v11  ;;  %v12174_v11 = vld [vmem:[%s17710_s1 + $0x120] ss:$8 sps:$4 sm:$0xff]  }
  0x53   : > { %2222 = vmatprep.subr.bf16.mxu0 %v12162_v13  ;;  %v587_v13 = vrot.slane %v586_v59, 4  ;;  %v657_v59 = vrot.slane %v655_v34, 4  ;;  %v606_v34 = vsel %vm12846_vm5, %v601_v2, %v13020_v26  ;;  %v466_v2 = vld [vmem:[%s12807_s15 + $0x68] sm:$0xf] }
  0x56   : > { %2223 = vmatpush1.bf16.msra.mxu0 %v12164_v31  ;;  %v645_v31 = vshll.u32 %v13004_v16, 16 }
  0x57   : > { %2385 = vmatprep.subr.bf16.mxu0 %v12168_v37  ;;  %v592_v37 = vsel %vm12846_vm5, %v587_v13, %v591_v8  ;;  %v13067_v8 = vld [vmem:[%s12807_s15 + $0x60] sm:$0xf]  ;;  %v669_v13 = vshll.u32 %v13048_v53, 16 }
  0x58   : > { %v647_v56 = vrot.slane %v645_v31, 5  ;;  %v13059_v61 = vcombine.low %v582_v35, %v592_v37  ;;  %v690_v31 = vshrl.u32 %v13067_v8, 16  ;;  %v693_v33 = vshll.u32 %v13067_v8, 16 }
  0x59   : > { %2225 = vmatmul.mubr.bf16.vlgmr.msra.gmra.mrb[0].mxu0 %v10056_v46  ;;  %v623_v46 = vrot.slane %v621_v24, 5 }
  0x5a   : > { %2386 = vmatpush1.bf16.msra.mxu0 %v12166_v47  ;;  %2234 = vmatprep.mubr.bf16.mxu0 %v12964_v48  ;;  %v13043_v47 = vrot.slane %v627_v25, 5  ;;  %17849 = vst [vmem:[#allocation15_spill] sm:$0xff] %v13059_v61  ;;  %v12188_v25 = vld [vmem:[%s17710_s1 + $0x154] ss:$8 sps:$4 sm:$0xff]   ;;  %v695_v7 = vrot.slane %v693_v33, 5  ;;  %v709_v33 = vshll.u32 %v466_v2, 16 }
  0x5b   : > { %2387 = vmatprep.subr.bf16.mxu0 %v12172_v51  ;;  %v610_v51 = vor.u32 %v609_v27, %v13020_v26  ;;  %v624_v5 = vor.u32 %v623_v46, %v620_v43  ;;  %v658_v27 = vor.u32 %v657_v59, %v13053_v58  ;;  %v671_v43 = vrot.slane %v669_v13, 5 }
  0x5c   : > { %v634_v24 = vor.u32 %v633_v52, %v13043_v47  ;;  %v13099_v46 = vrot.slane %v675_v21, 5  ;;  %v681_v26 = vrot.slane %v679_v23, 4  ;;  %v663_v59 = vrot.slane %v661_v28, 5  ;;  %v12196_v21 = vld [vmem:[%s17710_s1 + $0x174] ss:$8 sps:$4 sm:$0xff]  }
  0x5d   : > { %v611_v9 = vrot.slane %v610_v51, 4  ;;  %v625_v35 = vrot.slane %v624_v5, 4  ;;  %v13102_v51 = vld [vmem:[%s12807_s15 + $0x64] sm:$0xf]  ;;  %v12190_v5 = vld [vmem:[%s17710_s1 + $0x160] ss:$8 sps:$4 sm:$0xff]   ;;  %v13115_v13 = vcombine.low %v12922_v12, %v12931_v18 }
  0x5e   : > { %2388 = vmatpush1.bf16.msra.mxu0 %v12170_v60  ;;  %v13057_v60 = vcombine.low %v12903_v0, %v12906_v1  ;;  %v635_v52 = vrot.slane %v634_v24, 4  ;;  %v13121_v23 = vld [vmem:[%s12807_s15 + $0x70] sm:$0xf]  ;;  %v699_v28 = vshll.u32 %v13102_v51, 16  ;;  %v10042_v48 = vrot.slane %v12957_v45, 9 }
  0x5f   : > { %2389 = vmatprep.subr.bf16.mxu0 %v12176_v6  ;;  %v637_v6 = vshll.u32 %v13041_v44, 16 }
  0x61   : > { %2235 = vmatmul.mubr.bf16.gmra.mrb[4].mxu0 %v12998_v10  ;;  %v639_v37 = vrot.slane %v637_v6, 5  ;;  %v692_v6 = vrot.slane %v690_v31, 4  ;;  %v703_v31 = vshrl.u32 %v13102_v51, 16 }
  0x62   : > { %2244 = vmatprep.mubr.bf16.mxu0 %v13015_v49  ;;  %2390 = vmatpush1.bf16.msra.mxu0 %v12174_v11  ;;  %v12182_v11 = vld [vmem:[%s17710_s1 + $0x140] ss:$8 sps:$4 sm:$0xff]  }
  0x63   : > { %2391 = vmatprep.subr.bf16.mxu0 %v12180_v50  ;;  %v648_v50 = vor.u32 %v647_v56, %v644_v55  ;;  %v659_v56 = vrot.slane %v658_v27, 4  ;;  %v640_v27 = vsel %vm12846_vm5, %v635_v52, %v639_v37  ;;  %v696_v37 = vor.u32 %v695_v7, %v692_v6  ;;  %v13161_v52 = vld [vmem:[%s12807_s15 + $0x78] sm:$0xf] }
  0x64   : > { %v13176_v7 = vrot.slane %v699_v28, 5  ;;  %v705_v22 = vrot.slane %v703_v31, 4  ;;  %v12204_v31 = vld [vmem:[%s17710_s1 + $0x194] ss:$8 sps:$4 sm:$0xff]  }
  0x65   : > { %v649_v55 = vrot.slane %v648_v50, 4  ;;  %v672_v50 = vor.u32 %v671_v43, %v668_v41  ;;  %v13150_v41 = vcombine.low %v12986_v3, %v12989_v4  ;;  %v13180_v49 = vrot.slane %v696_v37, 4 }
  0x66   : > { %2392 = vmatpush1.bf16.msra.mxu0 %v12178_v38  ;;  %v12192_v38 = vld [vmem:[%s17710_s1 + $0x164] ss:$8 sps:$4 sm:$0xff]  }
  0x67   : > { %2393 = vmatprep.subr.bf16.mxu0 %v12184_v42  ;;  %v616_v42 = vsel %vm12846_vm5, %v611_v9, %v615_v62  ;;  %v685_v62 = vshll.u32 %v13094_v39, 16  ;;  %v13110_v9 = vld [vmem:[%s12807_s15 + $0x6c] sm:$0xf] }
  0x68   : > { %v13123_v24 = vcombine.low %v606_v34, %v616_v42  ;;  %v13156_v42 = vld [vmem:[%s12807_s15 + $0x74] sm:$0xf]  ;;  %v714_v43 = vshrl.u32 %v13110_v9, 16 }
  0x69   : > { %2245 = vmatmul.mubr.bf16.gmra.mrb[8].mxu0 %v13057_v60  ;;  %v13138_v34 = vrot.slane %v685_v62, 5  ;;  %v723_v62 = vshll.u32 %v13121_v23, 16 }
  0x6a   : > { %2254 = vmatprep.mubr.bf16.mxu0 %v13059_v61  ;;  %2394 = vmatpush1.bf16.msra.mxu0 %v12182_v11  ;;  %v10038_v11 = vrot.slane %v12819_v14, 9  ;;  %17850 = vst [vmem:[#allocation16_spill] sm:$0xff] %v13123_v24  ;;  %v682_v14 = vor.u32 %v681_v26, %v13099_v46  ;;  %v717_v26 = vshll.u32 %v13110_v9, 16  ;;  %v13178_v61 = vrot.slane %v709_v33, 5 }
  0x6b   : > { %2395 = vmatprep.subr.bf16.mxu0 %v12188_v25  ;;  %v630_v25 = vsel %vm12846_vm5, %v625_v35, %v13043_v47  ;;  %v654_v47 = vsel %vm12846_vm5, %v649_v55, %v13053_v58  ;;  %v12194_v35 = vld [vmem:[%s17710_s1 + $0x170] ss:$8 sps:$4 sm:$0xff]   ;;  %v12200_v58 = vld [vmem:[%s17710_s1 + $0x184] ss:$8 sps:$4 sm:$0xff]   ;;  %v13164_v55 = vld [vmem:[%s12807_s15 + $0x7c] sm:$0xf] }
  0x6c   : > { %v13171_v2 = vrot.slane %v682_v14, 4  ;;  %v17854_v14 = vrot.slane %v12822_v15, 5  ;;  %v13195_v28 = vrot.slane %v717_v26, 5  ;;  %v741_v33 = vshll.u32 %v13161_v52, 16 }
  0x6d   : > { %v747_v37 = vshll.u32 %v13164_v55, 16  ;;  %v10040_v26 = vrot.slane %v12903_v0, 9 }
  0x6e   : > { %2396 = vmatpush1.bf16.msra.mxu0 %v12186_v30  ;;  %v664_v30 = vsel %vm12846_vm5, %v659_v56, %v663_v59  ;;  %v13167_v56 = vcombine.low %v630_v25, %v640_v27  ;;  %v13169_v59 = vrot.slane %v672_v50, 4  ;;  %v727_v25 = vshrl.u32 %v13121_v23, 16 }
  0x6f   : > { %2397 = vmatprep.subr.bf16.mxu0 %v12192_v38  ;;  %v13146_v38 = vcombine.low %v12957_v45, %v12971_v57  ;;  %v13174_v6 = vcombine.low %v654_v47, %v664_v30  ;;  %v738_v50 = vshrl.u32 %v13161_v52, 16  ;;  %v13193_v27 = vrot.slane %v714_v43, 4 }
  0x70   : > { %17852 = vst [vmem:[#allocation18_spill] sm:$0xff] %v13167_v56  ;;  %v751_v43 = vshrl.u32 %v13164_v55, 16  ;;  %v999_v47 = vrot.slane %v12928_v17, 5  ;;  %v13216_v15 = vrot.slane %v727_v25, 4  ;;  %v13225_v0 = vrot.slane %v741_v33, 5 }
  0x71   : > { %2255 = vmatmul.mubr.bf16.gmra.mrb[12].mxu0 %v13115_v13  ;;  %17851 = vst [vmem:[#allocation17_spill] sm:$0xff] %v13146_v38  ;;  %17853 = vst [vmem:[#allocation19_spill] sm:$0xff] %v13174_v6  ;;  %v1003_v25 = vrot.slane %v12931_v18, 5  ;;  %v13239_v33 = vrot.slane %v747_v37, 5  ;;  %v1006_v30 = vrot.slane %v12952_v40, 5  ;;  %v1010_v45 = vrot.slane %v12971_v57, 5 }
  0x72   : > { %2264 = vmatprep.mubr.bf16.mxu0 %v13123_v24  ;;  %2398 = vmatpush1.bf16.msra.mxu0 %v12190_v5  ;;  %v12198_v5 = vld [vmem:[%s17710_s1 + $0x180] ss:$8 sps:$4 sm:$0xff]   ;;  %v706_v24 = vor.u32 %v705_v22, %v13176_v7  ;;  %v720_v57 = vor.u32 %v13195_v28, %v13193_v27  ;;  %v475_v27 = vld [vmem:[%s12807_s15 + $0x8c] sm:$0xf] }
  0x73   : > { %2399 = vmatprep.subr.bf16.mxu0 %v12196_v21  ;;  %v13191_v21 = vsel %vm12835_vm4, %v10038_v11, %v17854_v14  ;;  %v13207_v11 = vrot.slane %v723_v62, 5  ;;  %v996_v14 = vrot.slane %v12906_v1, 5  ;;  %v13221_v62 = vrot.slane %v738_v50, 4  ;;  %v12208_v1 = vld [vmem:[%s17710_s1 + $0x1a4] ss:$8 sps:$4 sm:$0xff]  }
  0x74   : > { %v472_v50 = vld [vmem:[%s12807_s15 + $0x80] sm:$0xf]  ;;  %v13261_v37 = vrot.slane %v706_v24, 4  ;;  %v1012_v24 = vrot.slane %v1010_v45, 4 }
  0x75   : > { %v997_v22 = vsel %vm12835_vm4, %v10040_v26, %v996_v14  ;;  %v998_v17 = vrot.slane %v996_v14, 4  ;;  %v753_v26 = vrot.slane %v751_v43, 4  ;;  %v13244_v14 = vld [vmem:[%s12807_s15 + $0x84] sm:$0xf] }
  0x76   : > { %2400 = vmatpush1.bf16.msra.mxu0 %v12194_v35  ;;  %v12202_v35 = vld [vmem:[%s17710_s1 + $0x190] ss:$8 sps:$4 sm:$0xff]   ;;  %v762_v28 = vshrl.u32 %v13244_v14, 16 }
  0x77   : > { %2401 = vmatprep.subr.bf16.mxu0 %v12200_v58  ;;  %v10041_v58 = vrot.slane %v12922_v12, 9  ;;  %v688_v12 = vsel %vm12846_vm5, %v13171_v2, %v13138_v34  ;;  %v1000_v18 = vsel %vm12835_vm4, %v998_v17, %v999_v47  ;;  %v12206_v34 = vld [vmem:[%s17710_s1 + $0x1a0] ss:$8 sps:$4 sm:$0xff]   ;;  %v12212_v47 = vld [vmem:[%s17710_s1 + $0x1b4] ss:$8 sps:$4 sm:$0xff]   ;;  %v730_v17 = vor.u32 %v13216_v15, %v13207_v11 }
  0x78   : > { %v13254_v2 = vld [vmem:[%s12807_s15 + $0x88] sm:$0xf]  ;;  %v13256_v40 = vcombine.low %v997_v22, %v1000_v18  ;;  %v1020_v22 = vrot.slane %v13041_v44, 5  ;;  %v10044_v18 = vrot.slane %v13004_v16, 9 }
  0x79   : > { %2265 = vmatmul.mubr.bf16.gmra.mrb[16].mxu0 %v13146_v38  ;;  %v1005_v38 = vrot.slane %v1003_v25, 4 }
  0x7a   : > { %2274 = vmatprep.mubr.bf16.mxu0 %v13167_v56  ;;  %2402 = vmatpush1.bf16.msra.mxu0 %v12198_v5  ;;  %v1004_v56 = vsel %vm12835_vm4, %v10041_v58, %v1003_v25  ;;  %v1013_v5 = vrot.slane %v13010_v20, 5  ;;  %v1017_v58 = vrot.slane %v12989_v4, 5  ;;  %v757_v25 = vshll.u32 %v472_v50, 16  ;;  %v13302_v50 = vld [vmem:[%s12807_s15 + $0x90] sm:$0xf] }
  0x7b   : > { %2403 = vmatprep.subr.bf16.mxu0 %v12204_v31  ;;  %v10043_v31 = vrot.slane %v12986_v3, 9  ;;  %v1007_v43 = vsel %vm12835_vm4, %v1005_v38, %v1006_v30  ;;  %v1011_v3 = vsel %vm12835_vm4, %v10042_v48, %v1010_v45  ;;  %v744_v38 = vor.u32 %v13225_v0, %v13221_v62  ;;  %v12210_v48 = vld [vmem:[%s17710_s1 + $0x1b0] ss:$8 sps:$4 sm:$0xff]   ;;  %v12216_v62 = vld [vmem:[%s17710_s1 + $0x1c4] ss:$8 sps:$4 sm:$0xff]  }
  0x7c   : > { %v13272_v20 = vcombine.low %v1004_v56, %v1007_v43  ;;  %v1019_v44 = vrot.slane %v1017_v58, 4  ;;  %v754_v56 = vor.u32 %v753_v26, %v13239_v33  ;;  %v1014_v15 = vsel %vm12835_vm4, %v1012_v24, %v1013_v5 }
  0x7d   : > { %v1018_v4 = vsel %vm12835_vm4, %v10043_v31, %v1017_v58  ;;  %v765_v30 = vshll.u32 %v13244_v14, 16  ;;  %v13296_v0 = vcombine.low %v1011_v3, %v1014_v15  ;;  %v1024_v45 = vrot.slane %v13007_v19, 5 }
  0x7e   : > { %2404 = vmatpush1.bf16.msra.mxu0 %v12202_v35  ;;  %v771_v35 = vshll.u32 %v13254_v2, 16  ;;  %v1027_v5 = vrot.slane %v13062_v63, 5  ;;  %v13311_v31 = vcombine.low %v13004_v16, %v13007_v19  ;;  %v13313_v43 = vrot.slane %v720_v57, 4  ;;  %v12214_v63 = vld [vmem:[%s17710_s1 + $0x1c0] ss:$8 sps:$4 sm:$0xff]  }
  0x7f   : > { %2405 = vmatprep.subr.bf16.mxu0 %v12208_v1  ;;  %v1021_v1 = vsel %vm12835_vm4, %v1019_v44, %v1020_v22  ;;  %v13315_v58 = vrot.slane %v730_v17, 4  ;;  %v13321_v3 = vrot.slane %v757_v25, 5  ;;  %v775_v24 = vshrl.u32 %v13254_v2, 16 }
  0x80   : > { %v13304_v26 = vcombine.low %v1018_v4, %v1021_v1  ;;  %v1025_v16 = vsel %vm12835_vm4, %v10044_v18, %v1024_v45  ;;  %v1026_v19 = vrot.slane %v1024_v45, 4  ;;  %v13338_v17 = vrot.slane %v754_v56, 4  ;;  %v12220_v4 = vld [vmem:[%s17710_s1 + $0x1d4] ss:$8 sps:$4 sm:$0xff]  }
  0x81   : > { %2275 = vmatmul.mubr.bf16.gmra.mrb[20].mxu0 %v13150_v41  ;;  %v781_v25 = vshll.u32 %v475_v27, 16  ;;  %v764_v44 = vrot.slane %v762_v28, 4  ;;  %v767_v15 = vrot.slane %v765_v30, 5  ;;  %v13343_v1 = vrot.slane %v771_v35, 5  ;;  %v12224_v27 = vld [vmem:[%s17710_s1 + $0x1e4] ss:$8 sps:$4 sm:$0xff]  }
  0x82   : > { %2284 = vmatprep.mubr.bf16.mxu0 %v13174_v6  ;;  %2406 = vmatpush1.bf16.msra.mxu0 %v12206_v34  ;;  %v17855_v34 = vshll.u32 %v13156_v42, 16  ;;  %v17856_v42 = vsel %vm12846_vm5, %v13169_v59, %v13099_v46  ;;  %v1028_v18 = vsel %vm12835_vm4, %v1026_v19, %v1027_v5  ;;  %v786_v46 = vshrl.u32 %v13302_v50, 16  ;;  %v13373_v5 = vld [vmem:[%s12807_s15 + $0x94] sm:$0xf] }
  0x83   : > { %2407 = vmatprep.subr.bf16.mxu0 %v12212_v47  ;;  %v13334_v57 = vcombine.low %v17856_v42, %v688_v12  ;;  %v13336_v47 = vrot.slane %v744_v38, 4  ;;  %v13348_v59 = vcombine.low %v1025_v16, %v1028_v18  ;;  %v12218_v12 = vld [vmem:[%s17710_s1 + $0x1d0] ss:$8 sps:$4 sm:$0xff]   ;;  %v777_v38 = vrot.slane %v775_v24, 4  ;;  %v13393_v42 = vld [vmem:[%s12807_s15 + $0x9c] sm:$0xf] }
  0x84   : > { %v13319_v22 = vrot.slane %v17855_v34, 5  ;;  %v13354_v56 = vrot.slane %v781_v25, 5  ;;  %v789_v28 = vshll.u32 %v13302_v50, 16  ;;  %v1031_v30 = vrot.slane %v13051_v54, 5  ;;  %v478_v34 = vld [vmem:[%s12807_s15 + $0x98] sm:$0xf] }
  0x85   : > { %17857 = vst [vmem:[#allocation20_spill] sm:$0xff] %v13334_v57  ;;  %v1034_v35 = vrot.slane %v13094_v39, 5  ;;  %v712_v45 = vsel %vm12846_vm5, %v13261_v37, %v13178_v61  ;;  %v788_v24 = vrot.slane %v786_v46, 4  ;;  %v12222_v39 = vld [vmem:[%s17710_s1 + $0x1e0] ss:$8 sps:$4 sm:$0xff]  }
  0x86   : > { %2408 = vmatpush1.bf16.msra.mxu0 %v12210_v48  ;;  %v10045_v48 = vrot.slane %v13048_v53, 9  ;;  %v1033_v16 = vrot.slane %v1031_v30, 4  ;;  %v12228_v61 = vld [vmem:[%s17710_s1 + $0x1f4] ss:$8 sps:$4 sm:$0xff]   ;;  %v12226_v18 = vld [vmem:[%s17710_s1 + $0x1f0] ss:$8 sps:$4 sm:$0xff]  }
  0x87   : > { %2409 = vmatprep.subr.bf16.mxu0 %v12216_v62  ;;  %v702_v62 = vsel %vm12846_vm5, %v13180_v49, %v13176_v7  ;;  %v13383_v49 = vcombine.low %v13048_v53, %v13051_v54  ;;  %v768_v7 = vor.u32 %v767_v15, %v764_v44  ;;  %v795_v54 = vshll.u32 %v13373_v5, 16  ;;  %v12231_v46 = vld [vmem:[%s17710_s1 + $0x204] ss:$8 sps:$4 sm:$0xff]  }
  0x88   : > { %v13388_v37 = vcombine.low %v702_v62, %v712_v45  ;;  %v1035_v19 = vsel %vm12835_vm4, %v1033_v16, %v1034_v35  ;;  %v799_v44 = vshrl.u32 %v13373_v5, 16  ;;  %v805_v15 = vshll.u32 %v478_v34, 16  ;;  %v13422_v35 = vld [vmem:[%s12807_s15 + $0xa0] sm:$0xf]  ;;  %v13427_v45 = vld [vmem:[%s12807_s15 + $0xa4] sm:$0xf] }
  0x89   : > { %2285 = vmatmul.mubr.bf16.gmra.mrb[24].mxu0 %v13311_v31  ;;  %v769_v53 = vrot.slane %v768_v7, 4  ;;  %v750_v16 = vsel %vm12846_vm5, %v13336_v47, %v13239_v33  ;;  %v829_v7 = vshll.u32 %v13427_v45, 16 }
  0x8a   : > { %2294 = vmatprep.mubr.bf16.mxu0 %v13334_v57  ;;  %2410 = vmatpush1.bf16.msra.mxu0 %v12214_v63  ;;  %v1032_v63 = vsel %vm12835_vm4, %v10045_v48, %v1031_v30  ;;  %17858 = vst [vmem:[#allocation21_spill] sm:$0xff] %v13388_v37  ;;  %v810_v48 = vshrl.u32 %v13393_v42, 16  ;;  %v13419_v30 = vcombine.low %v13067_v8, %v13102_v51  ;;  %v807_v34 = vrot.slane %v805_v15, 5  ;;  %v13454_v15 = vld [vmem:[%s12807_s15 + $0xac] sm:$0xf] }
  0x8b   : > { %2411 = vmatprep.subr.bf16.mxu0 %v12220_v4  ;;  %v13395_v25 = vcombine.low %v1032_v63, %v1035_v19  ;;  %v778_v4 = vor.u32 %v777_v38, %v13343_v1  ;;  %v736_v38 = vsel %vm12846_vm5, %v13315_v58, %v13319_v22  ;;  %v797_v58 = vrot.slane %v795_v54, 5 }
  0x8c   : > { %v801_v22 = vrot.slane %v799_v44, 4  ;;  %v812_v8 = vrot.slane %v810_v48, 4  ;;  %v813_v51 = vshll.u32 %v13393_v42, 16  ;;  %v823_v63 = vshrl.u32 %v13422_v35, 16 }
  0x8d   : > { %v13449_v19 = vcombine.low %v13110_v9, %v13121_v23  ;;  %v831_v9 = vrot.slane %v829_v7, 5  ;;  %v843_v48 = vshll.u32 %v13454_v15, 16 }
  0x8e   : > { %2412 = vmatpush1.bf16.msra.mxu0 %v12218_v12  ;;  %v726_v12 = vsel %vm12846_vm5, %v13313_v43, %v13207_v11  ;;  %v13430_v11 = vld [vmem:[%s12807_s15 + $0xa8] sm:$0xf]  ;;  %v791_v43 = vrot.slane %v789_v28, 5  ;;  %v760_v28 = vsel %vm12846_vm5, %v13338_v17, %v13321_v3  ;;  %v802_v54 = vor.u32 %v801_v22, %v797_v58 }
  0x8f   : > { %2413 = vmatprep.subr.bf16.mxu0 %v12224_v27  ;;  %v779_v27 = vrot.slane %v778_v4, 4  ;;  %v13424_v62 = vcombine.low %v726_v12, %v736_v38  ;;  %v13451_v44 = vcombine.low %v750_v16, %v760_v28  ;;  %v815_v47 = vrot.slane %v813_v51, 5  ;;  %v13466_v38 = vld [vmem:[%s12807_s15 + $0xb0] sm:$0xf] }
  0x90   : > { %v792_v4 = vor.u32 %v791_v43, %v788_v24  ;;  %v803_v3 = vrot.slane %v802_v54, 4  ;;  %v837_v24 = vshll.u32 %v13430_v11, 16  ;;  %v847_v43 = vshrl.u32 %v13454_v15, 16 }
  0x91   : > { %2295 = vmatmul.mubr.bf16.gmra.mrb[28].mxu0 %v13383_v49  ;;  %17859 = vst [vmem:[#allocation22_spill] sm:$0xff] %v13424_v62  ;;  %17860 = vst [vmem:[#allocation23_spill] sm:$0xff] %v13451_v44  ;;  %v784_v12 = vsel %vm12846_vm5, %v779_v27, %v13354_v56  ;;  %v13472_v22 = vcombine.low %v13161_v52, %v13164_v55  ;;  %v816_v51 = vor.u32 %v815_v47, %v812_v8 }
  0x92   : > { %2304 = vmatprep.mubr.bf16.mxu0 %v13388_v37  ;;  %2414 = vmatpush1.bf16.msra.mxu0 %v12222_v39  ;;  %v819_v39 = vshll.u32 %v13422_v35, 16  ;;  %v793_v33 = vrot.slane %v792_v4, 4  ;;  %v839_v27 = vrot.slane %v837_v24, 5  ;;  %v845_v16 = vrot.slane %v843_v48, 5 }
  0x93   : > { %2415 = vmatprep.subr.bf16.mxu0 %v12228_v61  ;;  %v834_v61 = vshrl.u32 %v13430_v11, 16  ;;  %v817_v56 = vrot.slane %v816_v51, 4  ;;  %v853_v28 = vshll.u32 %v13466_v38, 16  ;;  %v849_v55 = vrot.slane %v847_v43, 4  ;;  %v13501_v43 = vld [vmem:[%s12807_s15 + $0xbc] sm:$0xf] }
  0x94   : > { %v821_v17 = vrot.slane %v819_v39, 5  ;;  %v13475_v39 = vld [vmem:[%s12807_s15 + $0xb4] sm:$0xf]  ;;  %v808_v4 = vsel %vm12846_vm5, %v803_v3, %v807_v34 }
  0x95   : > { %v836_v23 = vrot.slane %v834_v61, 4  ;;  %v858_v8 = vshrl.u32 %v13475_v39, 16  ;;  %v861_v7 = vshll.u32 %v13475_v39, 16  ;;  %v798_v61 = vsel %vm12846_vm5, %v793_v33, %v797_v58 }
  0x96   : > { %2416 = vmatpush1.bf16.msra.mxu0 %v12226_v18  ;;  %v825_v18 = vrot.slane %v823_v63, 4  ;;  %v13497_v24 = vcombine.low %v798_v61, %v808_v4  ;;  %v855_v48 = vrot.slane %v853_v28, 5  ;;  %v13535_v4 = vcombine.low %v13430_v11, %v13454_v15 }
  0x97   : > { %2578 = vmatprep.subr.bf16.mxu0 %v12231_v46  ;;  %v774_v46 = vsel %vm12846_vm5, %v769_v53, %v13343_v1  ;;  %v13480_v53 = vld [vmem:[%s12807_s15 + $0xb8] sm:$0xf]  ;;  %v860_v58 = vrot.slane %v858_v8, 4  ;;  %v863_v3 = vrot.slane %v861_v7, 5 }
  0x98   : > { %v13477_v63 = vcombine.low %v774_v46, %v784_v12  ;;  %v826_v1 = vor.u32 %v825_v18, %v821_v17  ;;  %v867_v54 = vshll.u32 %v13480_v53, 16  ;;  %v871_v47 = vshrl.u32 %v13480_v53, 16  ;;  %17862 = vst [vmem:[#allocation25_spill] sm:$0xff] %v13497_v24 }
  0x99   : > { %2305 = vmatmul.mubr.bf16.gmra.mrb[32].mxu0 %v13419_v30  ;;  %v13495_v18 = vcombine.low %v13244_v14, %v13254_v2  ;;  %v840_v46 = vor.u32 %v839_v27, %v836_v23  ;;  %v850_v12 = vor.u32 %v849_v55, %v845_v16  ;;  %v822_v14 = vsel %vm12846_vm5, %v817_v56, %v821_v17 }
  0x9a   : > { %2314 = vmatprep.mubr.bf16.mxu0 %v13424_v62  ;;  %17861 = vst [vmem:[#allocation24_spill] sm:$0xff] %v13477_v63  ;;  %v827_v52 = vrot.slane %v826_v1, 4  ;;  %v869_v51 = vrot.slane %v867_v54, 5  ;;  %v873_v23 = vrot.slane %v871_v47, 4  ;;  %v877_v1 = vshll.u32 %v13501_v43, 16 }
  0x9b   : > { %v841_v34 = vrot.slane %v840_v46, 4  ;;  %v851_v33 = vrot.slane %v850_v12, 4  ;;  %v13511_v27 = vcombine.low %v13302_v50, %v13373_v5  ;;  %v864_v55 = vor.u32 %v863_v3, %v860_v58  ;;  %v12540_v12 = vld [vmem:[%s12807_s15 + $0xc] sm:$0xf]  ;;  %v12229_v3 = vld [vmem:[%s17710_s1 + $0x200] ss:$8 sps:$4 sm:$0xff]  }
  0x9c   : > { %v832_v2 = vsel %vm12846_vm5, %v827_v52, %v831_v9  ;;  %v874_v8 = vor.u32 %v873_v23, %v869_v51  ;;  %v879_v17 = vrot.slane %v877_v1, 5  ;;  %v13523_v5 = vcombine.low %v13393_v42, %v13422_v35  ;;  %v12539_v42 = vld [vmem:[%s12807_s15 + $0x10] sm:$0xf] }
  0x9d   : > { %v13513_v28 = vcombine.low %v822_v14, %v832_v2  ;;  %v846_v9 = vsel %vm12846_vm5, %v841_v34, %v845_v16  ;;  %v856_v56 = vsel %vm12846_vm5, %v851_v33, %v855_v48  ;;  %v865_v52 = vrot.slane %v864_v55, 4  ;;  %v12541_v34 = vld [vmem:[%s12807_s15 + $0x14] sm:$0xf]  ;;  %v12232_v2 = vld [vmem:[%s17710_s1 + $0x210] ss:$8 sps:$4 sm:$0xff]  }
  0x9e   : > { %v875_v50 = vrot.slane %v874_v8, 4  ;;  %v13525_v7 = vcombine.low %v846_v9, %v856_v56  ;;  %v989_v47 = vrot.slane %v12539_v42, 5  ;;  %v13544_v46 = vcombine.low %v13475_v39, %v13480_v53  ;;  %v12240_v55 = vld [vmem:[%s17710_s1 + $0x234] ss:$8 sps:$4 sm:$0xff]   ;;  %v12238_v8 = vld [vmem:[%s17710_s1 + $0x230] ss:$8 sps:$4 sm:$0xff]  }
  0x9f   : > { %17863 = vst [vmem:[#allocation26_spill] sm:$0xff] %v13513_v28  ;;  %v870_v16 = vsel %vm12846_vm5, %v865_v52, %v869_v51  ;;  %v10039_v48 = vrot.slane %v12540_v12, 9  ;;  %v992_v33 = vrot.slane %v12541_v34, 5  ;;  %v12234_v51 = vld [vmem:[%s17710_s1 + $0x214] ss:$8 sps:$4 sm:$0xff]   ;;  %v17866_v14 = vcombine.low %v13191_v21, %v12852_v36 }
  0xa0   : > { %17864 = vst [vmem:[#allocation27_spill] sm:$0xff] %v13525_v7  ;;  %v880_v61 = vsel %vm12846_vm5, %v875_v50, %v879_v17  ;;  %v991_v58 = vrot.slane %v989_v47, 4  ;;  %v12235_v36 = vld [vmem:[%s17710_s1 + $0x220] ss:$8 sps:$4 sm:$0xff]   ;;  %v12243_v17 = vld [vmem:[%s17710_s1 + $0x244] ss:$8 sps:$4 sm:$0xff]  }
  0xa1   : > { %2315 = vmatmul.mubr.bf16.gmra.mrb[36].mxu0 %v13449_v19  ;;  %v13537_v54 = vcombine.low %v870_v16, %v880_v61  ;;  %v990_v23 = vsel %vm12835_vm4, %v10039_v48, %v989_v47  ;;  %v12241_v9 = vld [vmem:[%s17710_s1 + $0x240] ss:$8 sps:$4 sm:$0xff]   ;;  %v12246_v56 = vld [vmem:[%s17710_s1 + $0x254] ss:$8 sps:$4 sm:$0xff]   ;;  %v12244_v52 = vld [vmem:[%s17710_s1 + $0x250] ss:$8 sps:$4 sm:$0xff]  }
  0xa2   : > { %2324 = vmatprep.mubr.bf16.mxu0 %v13451_v44  ;;  %v993_v1 = vsel %vm12835_vm4, %v991_v58, %v992_v33  ;;  %v12249_v50 = vld [vmem:[%s17710_s1 + $0x264] ss:$8 sps:$4 sm:$0xff]   ;;  %v12247_v61 = vld [vmem:[%s17710_s1 + $0x260] ss:$8 sps:$4 sm:$0xff]   ;;  %v12252_v42 = vld [vmem:[%s17710_s1 + $0x274] ss:$8 sps:$4 sm:$0xff]  }
  0xa3   : > { %17865 = vst [vmem:[#allocation28_spill] sm:$0xff] %v13537_v54  ;;  %v13573_v21 = vcombine.low %v990_v23, %v993_v1  ;;  %v17867_v16 = vld [vmem:[#allocation17_spill] sm:$0xff]  ;;  %v12250_v47 = vld [vmem:[%s17710_s1 + $0x270] ss:$8 sps:$4 sm:$0xff]   ;;  %v12258_v58 = vld [vmem:[%s17710_s1 + $0x294] ss:$8 sps:$4 sm:$0xff]  }
  0xa4   : > { %v12255_v12 = vld [vmem:[%s17710_s1 + $0x284] ss:$8 sps:$4 sm:$0xff]   ;;  %v12253_v48 = vld [vmem:[%s17710_s1 + $0x280] ss:$8 sps:$4 sm:$0xff]   ;;  %v12256_v34 = vld [vmem:[%s17710_s1 + $0x290] ss:$8 sps:$4 sm:$0xff]  }
  0xa5   : > { %v12261_v33 = vld [vmem:[%s17710_s1 + $0x2a4] ss:$8 sps:$4 sm:$0xff]   ;;  %v12270_v23 = vld [vmem:[%s17710_s1 + $0x2d4] ss:$8 sps:$4 sm:$0xff]  }
  0xa6   : > { %v12542_v1 = vld [vmem:[%s12807_s15 + $0x64] sm:$0xf] }
  0xa9   : > { %2325 = vmatmul.mubr.bf16.gmra.mrb[40].mxu0 %v13472_v22 }
  0xaa   : > { %2334 = vmatprep.mubr.bf16.mxu0 %v13477_v63 }
  0xb1   : > { %2335 = vmatmul.mubr.bf16.gmra.mrb[44].mxu0 %v13495_v18 }
  0xb2   : > { %2344 = vmatprep.mubr.bf16.mxu0 %v13497_v24 }
  0xb9   : > { %2345 = vmatmul.mubr.bf16.gmra.mrb[48].mxu0 %v13511_v27 }
  0xba   : > { %2354 = vmatprep.mubr.bf16.mxu0 %v13513_v28 }
  0xc1   : > { %2355 = vmatmul.mubr.bf16.gmra.mrb[52].mxu0 %v13523_v5 }
  0xc2   : > { %2364 = vmatprep.mubr.bf16.mxu0 %v13525_v7 }
  0xc9   : > { %2365 = vmatmul.mubr.bf16.gmra.mrb[56].mxu0 %v13535_v4 }
  0xca   : > { %2374 = vmatprep.mubr.bf16.mxu0 %v13537_v54 }
  0xd1   : > { %2375 = vmatmul.mubr.bf16.gmra.mrb[60].mxu0 %v13544_v46 }
  0xd2   : > { %2417 = vmatprep.mubr.bf16.mxu0 %v12998_v10  ;;  %v12237_v10 = vld [vmem:[%s17710_s1 + $0x224] ss:$8 sps:$4 sm:$0xff]  }
  0xd9   : > { %2418 = vmatmul.mubr.bf16.vlgmr.msra.gmra.mrb[0].mxu0 %v17866_v14  ;;  %v12262_v14 = vld [vmem:[%s17710_s1 + $0x2b0] ss:$8 sps:$4 sm:$0xff]  }
  0xda   : > { %2579 = vmatpush1.bf16.msra.mxu0 %v12229_v3  ;;  %2427 = vmatprep.mubr.bf16.mxu0 %v13057_v60  ;;  %v12259_v3 = vld [vmem:[%s17710_s1 + $0x2a0] ss:$8 sps:$4 sm:$0xff]  }
  0xdb   : > { %2580 = vmatprep.subr.bf16.mxu0 %v12234_v51  ;;  %v12264_v51 = vld [vmem:[%s17710_s1 + $0x2b4] ss:$8 sps:$4 sm:$0xff]  }
  0xde   : > { %2581 = vmatpush1.bf16.msra.mxu0 %v12232_v2  ;;  %v12267_v2 = vld [vmem:[%s17710_s1 + $0x2c4] ss:$8 sps:$4 sm:$0xff]  }
  0xdf   : > { %2582 = vmatprep.subr.bf16.mxu0 %v12237_v10  ;;  %v12265_v10 = vld [vmem:[%s17710_s1 + $0x2c0] ss:$8 sps:$4 sm:$0xff]  }
  0xe1   : > { %2428 = vmatmul.mubr.bf16.gmra.mrb[4].mxu0 %v13573_v21 }
  0xe2   : > { %2437 = vmatprep.mubr.bf16.mxu0 %v13115_v13  ;;  %2583 = vmatpush1.bf16.msra.mxu0 %v12235_v36  ;;  %v1038_v36 = vrot.slane %v12542_v1, 5 }
  0xe3   : > { %2584 = vmatprep.subr.bf16.mxu0 %v12240_v55  ;;  %v12268_v55 = vld [vmem:[%s17710_s1 + $0x2d0] ss:$8 sps:$4 sm:$0xff]  }
  0xe6   : > { %2585 = vmatpush1.bf16.msra.mxu0 %v12238_v8  ;;  %v12273_v8 = vld [vmem:[%s17710_s1 + $0x2e4] ss:$8 sps:$4 sm:$0xff]  }
  0xe7   : > { %2586 = vmatprep.subr.bf16.mxu0 %v12243_v17  ;;  %v12543_v17 = vld [vmem:[%s12807_s15 + $0x60] sm:$0xf] }
  0xe9   : > { %2438 = vmatmul.mubr.bf16.gmra.mrb[8].mxu0 %v13256_v40 }
  0xea   : > { %2447 = vmatprep.mubr.bf16.mxu0 %v17867_v16  ;;  %2587 = vmatpush1.bf16.msra.mxu0 %v12241_v9  ;;  %v10046_v9 = vrot.slane %v12543_v17, 9 }
  0xeb   : > { %2588 = vmatprep.subr.bf16.mxu0 %v12246_v56  ;;  %v1040_v56 = vrot.slane %v1038_v36, 4 }
  0xee   : > { %2589 = vmatpush1.bf16.msra.mxu0 %v12244_v52  ;;  %v12544_v52 = vld [vmem:[%s12807_s15 + $0x68] sm:$0xf] }
  0xef   : > { %2590 = vmatprep.subr.bf16.mxu0 %v12249_v50  ;;  %v1041_v50 = vrot.slane %v12544_v52, 5 }
  0xf1   : > { %2448 = vmatmul.mubr.bf16.gmra.mrb[12].mxu0 %v13272_v20 }
  0xf2   : > { %2457 = vmatprep.mubr.bf16.mxu0 %v13150_v41  ;;  %2591 = vmatpush1.bf16.msra.mxu0 %v12247_v61  ;;  %v12271_v61 = vld [vmem:[%s17710_s1 + $0x2e0] ss:$8 sps:$4 sm:$0xff]  }
  0xf3   : > { %2592 = vmatprep.subr.bf16.mxu0 %v12252_v42  ;;  %v12277_v42 = vld [vmem:[%s17710_s1 + $0x2f4] ss:$8 sps:$4 sm:$0xff]  }
  0xf6   : > { %2593 = vmatpush1.bf16.msra.mxu0 %v12250_v47  ;;  %v1039_v47 = vsel %vm12835_vm4, %v10046_v9, %v1038_v36  ;;  %v12549_v9 = vld [vmem:[%s12807_s15 + $0x78] sm:$0xf] }
  0xf7   : > { %2594 = vmatprep.subr.bf16.mxu0 %v12255_v12  ;;  %v1042_v12 = vsel %vm12835_vm4, %v1040_v56, %v1041_v50  ;;  %v10048_v56 = vrot.slane %v12549_v9, 9  ;;  %v12550_v50 = vld [vmem:[%s12807_s15 + $0x80] sm:$0xf] }
  0xf9   : > { %2458 = vmatmul.mubr.bf16.gmra.mrb[16].mxu0 %v13296_v0 }
  0xfa   : > { %2467 = vmatprep.mubr.bf16.mxu0 %v13311_v31  ;;  %2595 = vmatpush1.bf16.msra.mxu0 %v12253_v48  ;;  %v12545_v48 = vld [vmem:[%s12807_s15 + $0x70] sm:$0xf] }
  0xfb   : > { %2596 = vmatprep.subr.bf16.mxu0 %v12258_v58  ;;  %v1045_v58 = vrot.slane %v12545_v48, 5 }
  0xfe   : > { %2597 = vmatpush1.bf16.msra.mxu0 %v12256_v34  ;;  %v12275_v34 = vld [vmem:[%s17710_s1 + $0x2f0] ss:$8 sps:$4 sm:$0xff]  }
  0xff   : > { %2598 = vmatprep.subr.bf16.mxu0 %v12261_v33  ;;  %v12280_v33 = vld [vmem:[%s17710_s1 + $0x304] ss:$8 sps:$4 sm:$0xff]  }
 0x101   : > { %2468 = vmatmul.mubr.bf16.gmra.mrb[20].mxu0 %v13304_v26 }
 0x102   : > { %2477 = vmatprep.mubr.bf16.mxu0 %v13383_v49  ;;  %2599 = vmatpush1.bf16.msra.mxu0 %v12259_v3  ;;  %v13678_v3 = vcombine.low %v1039_v47, %v1042_v12  ;;  %v12551_v12 = vld [vmem:[%s12807_s15 + $0x88] sm:$0xf] }
 0x103   : > { %2600 = vmatprep.subr.bf16.mxu0 %v12264_v51  ;;  %v12546_v51 = vld [vmem:[%s12807_s15 + $0x6c] sm:$0xf]  ;;  %v1059_v48 = vrot.slane %v12551_v12, 5 }
 0x106   : > { %2601 = vmatpush1.bf16.msra.mxu0 %v12262_v14  ;;  %v10047_v14 = vrot.slane %v12546_v51, 9  ;;  %v1061_v51 = vrot.slane %v1059_v48, 4 }
 0x107   : > { %2602 = vmatprep.subr.bf16.mxu0 %v12267_v2  ;;  %v1047_v2 = vrot.slane %v1045_v58, 4 }
 0x108   : > { %v1046_v1 = vsel %vm12835_vm4, %v10047_v14, %v1045_v58  ;;  %v12553_v14 = vld [vmem:[%s12807_s15 + $0x8c] sm:$0xf] }
 0x109   : > { %2478 = vmatmul.mubr.bf16.gmra.mrb[24].mxu0 %v13348_v59 }
 0x10a   : > { %2487 = vmatprep.mubr.bf16.mxu0 %v13419_v30  ;;  %2603 = vmatpush1.bf16.msra.mxu0 %v12265_v10  ;;  %v12547_v10 = vld [vmem:[%s12807_s15 + $0x74] sm:$0xf] }
 0x10b   : > { %2604 = vmatprep.subr.bf16.mxu0 %v12270_v23  ;;  %v1048_v23 = vrot.slane %v12547_v10, 5 }
 0x10d   : > { %v1049_v36 = vsel %vm12835_vm4, %v1047_v2, %v1048_v23  ;;  %v1062_v2 = vrot.slane %v12553_v14, 5 }
 0x10e   : > { %2605 = vmatpush1.bf16.msra.mxu0 %v12268_v55  ;;  %v12548_v55 = vld [vmem:[%s12807_s15 + $0x7c] sm:$0xf]  ;;  %v13689_v17 = vcombine.low %v1046_v1, %v1049_v36  ;;  %v12554_v1 = vld [vmem:[%s12807_s15 + $0x94] sm:$0xf] }
 0x10f   : > { %2606 = vmatprep.subr.bf16.mxu0 %v12273_v8  ;;  %v1052_v8 = vrot.slane %v12548_v55, 5  ;;  %v1063_v23 = vsel %vm12835_vm4, %v1061_v51, %v1062_v2  ;;  %v1066_v36 = vrot.slane %v12554_v1, 5  ;;  %v1076_v51 = vrot.slane %v13427_v45, 5 }
 0x110   : > { %v1083_v45 = vrot.slane %v13466_v38, 5 }
 0x111   : > { %2488 = vmatmul.mubr.bf16.gmra.mrb[28].mxu0 %v13395_v25  ;;  %v1054_v52 = vrot.slane %v1052_v8, 4 }
 0x112   : > { %2497 = vmatprep.mubr.bf16.mxu0 %v13449_v19  ;;  %2607 = vmatpush1.bf16.msra.mxu0 %v12271_v61  ;;  %v1055_v61 = vrot.slane %v12550_v50, 5 }
 0x113   : > { %2608 = vmatprep.subr.bf16.mxu0 %v12277_v42  ;;  %v1053_v42 = vsel %vm12835_vm4, %v10048_v56, %v1052_v8  ;;  %v12555_v8 = vld [vmem:[%s12807_s15 + $0x90] sm:$0xf]  ;;  %v1068_v56 = vrot.slane %v1066_v36, 4 }
 0x114   : > { %v1056_v47 = vsel %vm12835_vm4, %v1054_v52, %v1055_v61  ;;  %v10050_v9 = vrot.slane %v12555_v8, 9  ;;  %v12556_v52 = vld [vmem:[%s12807_s15 + $0x98] sm:$0xf] }
 0x115   : > { %v13700_v58 = vcombine.low %v1053_v42, %v1056_v47  ;;  %v1069_v50 = vrot.slane %v12556_v52, 5  ;;  %v1073_v47 = vrot.slane %v13422_v35, 5  ;;  %v1080_v35 = vrot.slane %v13454_v15, 5  ;;  %v13745_v15 = vld [vmem:[%s12807_s15 + $0xc0] sm:$0xf] }
 0x116   : > { %2609 = vmatpush1.bf16.msra.mxu0 %v12275_v34  ;;  %v12552_v34 = vld [vmem:[%s12807_s15 + $0x84] sm:$0xf]  ;;  %v1067_v61 = vsel %vm12835_vm4, %v10050_v9, %v1066_v36  ;;  %v1087_v9 = vrot.slane %v13480_v53, 5  ;;  %v10053_v52 = vrot.slane %v13475_v39, 9  ;;  %v12278_v39 = vld [vmem:[%s17710_s1 + $0x300] ss:$8 sps:$4 sm:$0xff]  }
 0x117   : > { %2771 = vmatprep.subr.bf16.mxu0 %v12280_v33  ;;  %v10049_v33 = vrot.slane %v12552_v34, 9  ;;  %v1070_v42 = vsel %vm12835_vm4, %v1068_v56, %v1069_v50  ;;  %v1082_v1 = vrot.slane %v1080_v35, 4  ;;  %v13748_v56 = vld [vmem:[%s12807_s15 + $0xc4] sm:$0xf] }
 0x118   : > { %v13722_v12 = vcombine.low %v1067_v61, %v1070_v42  ;;  %v13754_v38 = vcombine.low %v13745_v15, %v13748_v56  ;;  %v1089_v50 = vrot.slane %v1087_v9, 4  ;;  %v1090_v61 = vrot.slane %v13501_v43, 5  ;;  %v12283_v43 = vld [vmem:[%s17710_s1 + $0x314] ss:$8 sps:$4 sm:$0xff]  }
 0x119   : > { %2498 = vmatmul.mubr.bf16.gmra.mrb[32].mxu0 %v13678_v3  ;;  %v1060_v10 = vsel %vm12835_vm4, %v10049_v33, %v1059_v48  ;;  %v12557_v48 = vld [vmem:[%s12807_s15 + $0x9c] sm:$0xf]  ;;  %v1075_v33 = vrot.slane %v1073_v47, 4  ;;  %v1084_v8 = vsel %vm12835_vm4, %v1082_v1, %v1083_v45  ;;  %v1088_v53 = vsel %vm12835_vm4, %v10053_v52, %v1087_v9  ;;  %v17870_v45 = vld [vmem:[#allocation15_spill] sm:$0xff]  ;;  %v12296_v9 = vld [vmem:[%s17710_s1 + $0x360] ss:$8 sps:$4 sm:$0xff]  }
 0x11a   : > { %2507 = vmatprep.mubr.bf16.mxu0 %v13472_v22  ;;  %v13711_v55 = vcombine.low %v1060_v10, %v1063_v23  ;;  %v10051_v34 = vrot.slane %v12557_v48, 9  ;;  %v10052_v23 = vrot.slane %v13430_v11, 9  ;;  %v1091_v42 = vsel %vm12835_vm4, %v1089_v50, %v1090_v61  ;;  %v17868_v48 = vld [vmem:[#allocation13_spill] sm:$0xff]  ;;  %v12295_v1 = vld [vmem:[%s17710_s1 + $0x354] ss:$8 sps:$4 sm:$0xff]  }
 0x11b   : > { %v1077_v2 = vsel %vm12835_vm4, %v1075_v33, %v1076_v51  ;;  %v12284_v33 = vld [vmem:[%s17710_s1 + $0x320] ss:$8 sps:$4 sm:$0xff]   ;;  %v12289_v51 = vld [vmem:[%s17710_s1 + $0x334] ss:$8 sps:$4 sm:$0xff]   ;;  %v12299_v61 = vld [vmem:[%s17710_s1 + $0x370] ss:$8 sps:$4 sm:$0xff]  }
 0x11c   : > { %v1074_v14 = vsel %vm12835_vm4, %v10051_v34, %v1073_v47  ;;  %v1081_v36 = vsel %vm12835_vm4, %v10052_v23, %v1080_v35  ;;  %v13764_v47 = vcombine.low %v1088_v53, %v1091_v42  ;;  %v12281_v34 = vld [vmem:[%s17710_s1 + $0x310] ss:$8 sps:$4 sm:$0xff]   ;;  %v12292_v35 = vld [vmem:[%s17710_s1 + $0x344] ss:$8 sps:$4 sm:$0xff]   ;;  %v12290_v23 = vld [vmem:[%s17710_s1 + $0x340] ss:$8 sps:$4 sm:$0xff]  }
 0x11d   : > { %v13733_v10 = vcombine.low %v1074_v14, %v1077_v2  ;;  %v13750_v11 = vcombine.low %v1081_v36, %v1084_v8  ;;  %v17869_v14 = vld [vmem:[#allocation14_spill] sm:$0xff]  ;;  %v12287_v2 = vld [vmem:[%s17710_s1 + $0x330] ss:$8 sps:$4 sm:$0xff]   ;;  %v12301_v52 = vld [vmem:[%s17710_s1 + $0x374] ss:$8 sps:$4 sm:$0xff]  }
 0x11e   : > { %v12293_v36 = vld [vmem:[%s17710_s1 + $0x350] ss:$8 sps:$4 sm:$0xff]   ;;  %v12298_v8 = vld [vmem:[%s17710_s1 + $0x364] ss:$8 sps:$4 sm:$0xff]   ;;  %v12302_v42 = vld [vmem:[%s17710_s1 + $0x380] ss:$8 sps:$4 sm:$0xff]  }
 0x11f   : > { %v17871_v50 = vld [vmem:[#allocation16_spill] sm:$0xff]  ;;  %v12304_v53 = vld [vmem:[%s17710_s1 + $0x384] ss:$8 sps:$4 sm:$0xff]  }
 0x121   : > { %2508 = vmatmul.mubr.bf16.gmra.mrb[36].mxu0 %v13689_v17 }
 0x122   : > { %2517 = vmatprep.mubr.bf16.mxu0 %v13495_v18 }
 0x129   : > { %2518 = vmatmul.mubr.bf16.gmra.mrb[40].mxu0 %v13700_v58 }
 0x12a   : > { %2527 = vmatprep.mubr.bf16.mxu0 %v13511_v27 }
 0x131   : > { %2528 = vmatmul.mubr.bf16.gmra.mrb[44].mxu0 %v13711_v55 }
 0x132   : > { %2537 = vmatprep.mubr.bf16.mxu0 %v13523_v5 }
 0x139   : > { %2538 = vmatmul.mubr.bf16.gmra.mrb[48].mxu0 %v13722_v12 }
 0x13a   : > { %2547 = vmatprep.mubr.bf16.mxu0 %v13535_v4 }
 0x141   : > { %2548 = vmatmul.mubr.bf16.gmra.mrb[52].mxu0 %v13733_v10 }
 0x142   : > { %2557 = vmatprep.mubr.bf16.mxu0 %v13544_v46 }
 0x149   : > { %2558 = vmatmul.mubr.bf16.gmra.mrb[56].mxu0 %v13750_v11 }
 0x14a   : > { %2567 = vmatprep.mubr.bf16.mxu0 %v13754_v38 }
 0x151   : > { %2568 = vmatmul.mubr.bf16.gmra.mrb[60].mxu0 %v13764_v47 }
 0x152   : > { %2610 = vmatprep.mubr.bf16.mxu0 %v13573_v21  ;;  %v12286_v21 = vld [vmem:[%s17710_s1 + $0x324] ss:$8 sps:$4 sm:$0xff]  }
 0x159   : > { %2611 = vmatmul.mubr.bf16.vlgmr.msra.gmra.mrb[0].mxu0 %v17868_v48 }
 0x15a   : > { %2772 = vmatpush1.bf16.msra.mxu0 %v12278_v39  ;;  %2620 = vmatprep.mubr.bf16.mxu0 %v13256_v40  ;;  %v12307_v39 = vld [vmem:[%s17710_s1 + $0x394] ss:$8 sps:$4 sm:$0xff]  }
 0x15b   : > { %2773 = vmatprep.subr.bf16.mxu0 %v12283_v43  ;;  %v17872_v43 = vld [vmem:[#allocation18_spill] sm:$0xff] }
 0x15e   : > { %2774 = vmatpush1.bf16.msra.mxu0 %v12281_v34  ;;  %v12305_v34 = vld [vmem:[%s17710_s1 + $0x390] ss:$8 sps:$4 sm:$0xff]  }
 0x15f   : > { %2775 = vmatprep.subr.bf16.mxu0 %v12286_v21  ;;  %v12310_v21 = vld [vmem:[%s17710_s1 + $0x3a4] ss:$8 sps:$4 sm:$0xff]  }
 0x161   : > { %2621 = vmatmul.mubr.bf16.gmra.mrb[4].mxu0 %v17869_v14 }
 0x162   : > { %2630 = vmatprep.mubr.bf16.mxu0 %v13272_v20  ;;  %2776 = vmatpush1.bf16.msra.mxu0 %v12284_v33  ;;  %v12308_v33 = vld [vmem:[%s17710_s1 + $0x3a0] ss:$8 sps:$4 sm:$0xff]  }
 0x163   : > { %2777 = vmatprep.subr.bf16.mxu0 %v12289_v51  ;;  %v12313_v51 = vld [vmem:[%s17710_s1 + $0x3b4] ss:$8 sps:$4 sm:$0xff]  }
 0x166   : > { %2778 = vmatpush1.bf16.msra.mxu0 %v12287_v2  ;;  %v12311_v2 = vld [vmem:[%s17710_s1 + $0x3b0] ss:$8 sps:$4 sm:$0xff]  }
 0x167   : > { %2779 = vmatprep.subr.bf16.mxu0 %v12292_v35  ;;  %v12316_v35 = vld [vmem:[%s17710_s1 + $0x3c4] ss:$8 sps:$4 sm:$0xff]  }
 0x169   : > { %2631 = vmatmul.mubr.bf16.gmra.mrb[8].mxu0 %v17870_v45 }
 0x16a   : > { %2640 = vmatprep.mubr.bf16.mxu0 %v13296_v0  ;;  %2780 = vmatpush1.bf16.msra.mxu0 %v12290_v23  ;;  %v12314_v23 = vld [vmem:[%s17710_s1 + $0x3c0] ss:$8 sps:$4 sm:$0xff]  }
 0x16b   : > { %2781 = vmatprep.subr.bf16.mxu0 %v12295_v1  ;;  %v12319_v1 = vld [vmem:[%s17710_s1 + $0x3d4] ss:$8 sps:$4 sm:$0xff]  }
 0x16e   : > { %2782 = vmatpush1.bf16.msra.mxu0 %v12293_v36  ;;  %v12317_v36 = vld [vmem:[%s17710_s1 + $0x3d0] ss:$8 sps:$4 sm:$0xff]  }
 0x16f   : > { %2783 = vmatprep.subr.bf16.mxu0 %v12298_v8  ;;  %v12322_v8 = vld [vmem:[%s17710_s1 + $0x3e4] ss:$8 sps:$4 sm:$0xff]  }
 0x171   : > { %2641 = vmatmul.mubr.bf16.gmra.mrb[12].mxu0 %v17871_v50 }
 0x172   : > { %2650 = vmatprep.mubr.bf16.mxu0 %v13304_v26  ;;  %2784 = vmatpush1.bf16.msra.mxu0 %v12296_v9  ;;  %v12320_v9 = vld [vmem:[%s17710_s1 + $0x3e0] ss:$8 sps:$4 sm:$0xff]  }
 0x173   : > { %2785 = vmatprep.subr.bf16.mxu0 %v12301_v52  ;;  %v12325_v52 = vld [vmem:[%s17710_s1 + $0x3f4] ss:$8 sps:$4 sm:$0xff]  }
 0x176   : > { %2786 = vmatpush1.bf16.msra.mxu0 %v12299_v61  ;;  %v12323_v61 = vld [vmem:[%s17710_s1 + $0x3f0] ss:$8 sps:$4 sm:$0xff]  }
 0x177   : > { %2787 = vmatprep.subr.bf16.mxu0 %v12304_v53  ;;  %v12328_v53 = vld [vmem:[%s17710_s1 + $0x404] ss:$8 sps:$4 sm:$0xff]  }
 0x179   : > { %2651 = vmatmul.mubr.bf16.gmra.mrb[16].mxu0 %v17872_v43 }
 0x17a   : > { %2660 = vmatprep.mubr.bf16.mxu0 %v13348_v59  ;;  %2788 = vmatpush1.bf16.msra.mxu0 %v12302_v42  ;;  %v882_v42 = vshrl.u32 %v13745_v15, 16 }
 0x17b   : > { %2789 = vmatprep.subr.bf16.mxu0 %v12307_v39  ;;  %v885_v39 = vshll.u32 %v13745_v15, 16 }
 0x17e   : > { %2790 = vmatpush1.bf16.msra.mxu0 %v12305_v34  ;;  %v895_v34 = vshrl.u32 %v13748_v56, 16 }
 0x17f   : > { %2791 = vmatprep.subr.bf16.mxu0 %v12310_v21  ;;  %v891_v21 = vshll.u32 %v13748_v56, 16 }
 0x181   : > { %2661 = vmatmul.mubr.bf16.gmra.mrb[20].mxu0 %v13174_v6 }
 0x182   : > { %2670 = vmatprep.mubr.bf16.mxu0 %v13395_v25  ;;  %2792 = vmatpush1.bf16.msra.mxu0 %v12308_v33  ;;  %v1097_v33 = vrot.slane %v13748_v56, 5 }
 0x183   : > { %2793 = vmatprep.subr.bf16.mxu0 %v12313_v51  ;;  %v490_v51 = vld [vmem:[%s12807_s15 + $0xc8] sm:$0xf] }
 0x186   : > { %2794 = vmatpush1.bf16.msra.mxu0 %v12311_v2  ;;  %v884_v2 = vrot.slane %v882_v42, 4 }
 0x187   : > { %2795 = vmatprep.subr.bf16.mxu0 %v12316_v35  ;;  %v887_v35 = vrot.slane %v885_v39, 5 }
 0x189   : > { %2671 = vmatmul.mubr.bf16.gmra.mrb[24].mxu0 %v13334_v57 }
 0x18a   : > { %2680 = vmatprep.mubr.bf16.mxu0 %v13678_v3  ;;  %2796 = vmatpush1.bf16.msra.mxu0 %v12314_v23  ;;  %v893_v23 = vrot.slane %v891_v21, 5 }
 0x18b   : > { %2797 = vmatprep.subr.bf16.mxu0 %v12319_v1  ;;  %v897_v1 = vrot.slane %v895_v34, 4 }
 0x18e   : > { %2798 = vmatpush1.bf16.msra.mxu0 %v12317_v36  ;;  %v10054_v36 = vrot.slane %v13745_v15, 9 }
 0x18f   : > { %2799 = vmatprep.subr.bf16.mxu0 %v12322_v8  ;;  %v1099_v8 = vrot.slane %v1097_v33, 4 }
 0x190   : > { %v1098_v48 = vsel %vm12835_vm4, %v10054_v36, %v1097_v33  ;;  %v12326_v33 = vld [vmem:[%s17710_s1 + $0x400] ss:$8 sps:$4 sm:$0xff]  }
 0x191   : > { %2681 = vmatmul.mubr.bf16.gmra.mrb[28].mxu0 %v13388_v37  ;;  %v12332_v36 = vld [vmem:[%s17710_s1 + $0x420] ss:$8 sps:$4 sm:$0xff]  }
 0x192   : > { %2690 = vmatprep.mubr.bf16.mxu0 %v13689_v17  ;;  %2800 = vmatpush1.bf16.msra.mxu0 %v12320_v9  ;;  %v1100_v9 = vrot.slane %v490_v51, 5 }
 0x193   : > { %2801 = vmatprep.subr.bf16.mxu0 %v12325_v52  ;;  %v888_v52 = vor.u32 %v887_v35, %v884_v2  ;;  %v12331_v35 = vld [vmem:[%s17710_s1 + $0x414] ss:$8 sps:$4 sm:$0xff]  }
 0x194   : > { %v1101_v56 = vsel %vm12835_vm4, %v1099_v8, %v1100_v9  ;;  %v12335_v8 = vld [vmem:[%s17710_s1 + $0x430] ss:$8 sps:$4 sm:$0xff]   ;;  %v12340_v9 = vld [vmem:[%s17710_s1 + $0x444] ss:$8 sps:$4 sm:$0xff]  }
 0x195   : > { %v13903_v42 = vcombine.low %v1098_v48, %v1101_v56  ;;  %v889_v39 = vrot.slane %v888_v52, 4  ;;  %v12647_v48 = vmov 0   ;;  %v12338_v52 = vld [vmem:[%s17710_s1 + $0x440] ss:$8 sps:$4 sm:$0xff]  }
 0x196   : > { %2802 = vmatpush1.bf16.msra.mxu0 %v12323_v61  ;;  %v898_v61 = vor.u32 %v897_v1, %v893_v23  ;;  %3547 = vst [vmem:[#allocation2] sm:$0xf] %v12647_v48  ;;  %3548 = vst [vmem:[#allocation2 + $0x4] sm:$0xf] %v12647_v48  ;;  %v12334_v1 = vld [vmem:[%s17710_s1 + $0x424] ss:$8 sps:$4 sm:$0xff]  }
 0x197   : > { %2964 = vmatprep.subr.bf16.mxu0 %v12328_v53  ;;  %v901_v53 = vshll.u32 %v490_v51, 16  ;;  %v894_v21 = vsel %vm12846_vm5, %v889_v39, %v893_v23  ;;  %3549 = vst [vmem:[#allocation2 + $0x8] sm:$0xf] %v12647_v48  ;;  %3551 = vst [vmem:[#allocation2 + $0xcc] sm:$0xf] %v12647_v48 }
 0x198   : > { %v899_v34 = vrot.slane %v898_v61, 4  ;;  %3552 = vst [vmem:[#allocation2 + $0xd0] sm:$0xf] %v12647_v48  ;;  %3553 = vst [vmem:[#allocation2 + $0xd4] sm:$0xf] %v12647_v48 }
 0x199   : > { %2691 = vmatmul.mubr.bf16.gmra.mrb[32].mxu0 %v13424_v62  ;;  %v903_v15 = vrot.slane %v901_v53, 5  ;;  %6907 = vst [vmem:[#allocation3] sm:$0xf] %v12647_v48  ;;  %6908 = vst [vmem:[#allocation3 + $0x4] sm:$0xf] %v12647_v48 }
 0x19a   : > { %2700 = vmatprep.mubr.bf16.mxu0 %v13700_v58  ;;  %6909 = vst [vmem:[#allocation3 + $0x8] sm:$0xf] %v12647_v48  ;;  %6911 = vst [vmem:[#allocation3 + $0xcc] sm:$0xf] %v12647_v48  ;;  %v12329_v23 = vld [vmem:[%s17710_s1 + $0x410] ss:$8 sps:$4 sm:$0xff]  }
 0x19b   : > { %v904_v51 = vsel %vm12846_vm5, %v899_v34, %v903_v15  ;;  %6912 = vst [vmem:[#allocation3 + $0xd0] sm:$0xf] %v12647_v48  ;;  %6913 = vst [vmem:[#allocation3 + $0xd4] sm:$0xf] %v12647_v48  ;;  %v12341_v61 = vld [vmem:[%s17710_s1 + $0x450] ss:$8 sps:$4 sm:$0xff]  }
 0x19c   : > { %v13911_v2 = vcombine.low %v894_v21, %v904_v51  ;;  %v12346_v53 = vld [vmem:[%s17710_s1 + $0x464] ss:$8 sps:$4 sm:$0xff]   ;;  %v12344_v56 = vld [vmem:[%s17710_s1 + $0x460] ss:$8 sps:$4 sm:$0xff]   ;;  %v12347_v39 = vld [vmem:[%s17710_s1 + $0x470] ss:$8 sps:$4 sm:$0xff]  }
 0x19d   : > { %v493_v21 = vld [vmem:[%s12807_s15 + $0xd4] sm:$0xf] }
 0x19e   : > { %17873 = vst [vmem:[#allocation17_spill] sm:$0xff] %v13911_v2 }
 0x1a1   : > { %2701 = vmatmul.mubr.bf16.gmra.mrb[36].mxu0 %v13451_v44 }
 0x1a2   : > { %2710 = vmatprep.mubr.bf16.mxu0 %v13711_v55 }
 0x1a9   : > { %2711 = vmatmul.mubr.bf16.gmra.mrb[40].mxu0 %v13477_v63 }
 0x1aa   : > { %2720 = vmatprep.mubr.bf16.mxu0 %v13722_v12 }
 0x1b1   : > { %2721 = vmatmul.mubr.bf16.gmra.mrb[44].mxu0 %v13497_v24 }
 0x1b2   : > { %2730 = vmatprep.mubr.bf16.mxu0 %v13733_v10 }
 0x1b9   : > { %2731 = vmatmul.mubr.bf16.gmra.mrb[48].mxu0 %v13513_v28 }
 0x1ba   : > { %2740 = vmatprep.mubr.bf16.mxu0 %v13750_v11 }
 0x1c1   : > { %2741 = vmatmul.mubr.bf16.gmra.mrb[52].mxu0 %v13525_v7 }
 0x1c2   : > { %2750 = vmatprep.mubr.bf16.mxu0 %v13764_v47 }
 0x1c9   : > { %2751 = vmatmul.mubr.bf16.gmra.mrb[56].mxu0 %v13537_v54 }
 0x1ca   : > { %2760 = vmatprep.mubr.bf16.mxu0 %v13903_v42 }
 0x1d1   : > { %2761 = vmatmul.mubr.bf16.gmra.mrb[60].mxu0 %v13911_v2 }
 0x1d2   : > { %2803 = vmatprep.mubr.bf16.mxu0 %v17869_v14 }
 0x1d9   : > { %2804 = vmatmul.mubr.bf16.vlgmr.msra.gmra.mrb[0].mxu0 %v13057_v60  ;;  %v12337_v60 = vld [vmem:[%s17710_s1 + $0x434] ss:$8 sps:$4 sm:$0xff]  }
 0x1da   : > { %2965 = vmatpush1.bf16.msra.mxu0 %v12326_v33  ;;  %2813 = vmatprep.mubr.bf16.mxu0 %v17870_v45  ;;  %v925_v33 = vshll.u32 %v493_v21, 16 }
 0x1db   : > { %2966 = vmatprep.subr.bf16.mxu0 %v12331_v35 }
 0x1de   : > { %2967 = vmatpush1.bf16.msra.mxu0 %v12329_v23 }
 0x1df   : > { %2968 = vmatprep.subr.bf16.mxu0 %v12334_v1  ;;  %v927_v1 = vrot.slane %v925_v33, 5  ;;  %v3563_v33 = vld [vmem:[#allocation2 + $0x18] sm:$0x1] }
 0x1e1   : > { %2814 = vmatmul.mubr.bf16.gmra.mrb[4].mxu0 %v13115_v13  ;;  %v12343_v13 = vld [vmem:[%s17710_s1 + $0x454] ss:$8 sps:$4 sm:$0xff]  }
 0x1e2   : > { %2823 = vmatprep.mubr.bf16.mxu0 %v17871_v50  ;;  %2969 = vmatpush1.bf16.msra.mxu0 %v12332_v36 }
 0x1e3   : > { %2970 = vmatprep.subr.bf16.mxu0 %v12337_v60 }
 0x1e6   : > { %2971 = vmatpush1.bf16.msra.mxu0 %v12335_v8 }
 0x1e7   : > { %2972 = vmatprep.subr.bf16.mxu0 %v12340_v9 }
 0x1e9   : > { %2824 = vmatmul.mubr.bf16.gmra.mrb[8].mxu0 %v17867_v16  ;;  %v12349_v16 = vld [vmem:[%s17710_s1 + $0x474] ss:$8 sps:$4 sm:$0xff]  }
 0x1ea   : > { %2833 = vmatprep.mubr.bf16.mxu0 %v17872_v43  ;;  %2973 = vmatpush1.bf16.msra.mxu0 %v12338_v52 }
 0x1eb   : > { %2974 = vmatprep.subr.bf16.mxu0 %v12343_v13  ;;  %v12356_v13 = vld [vmem:[%s17713_s4 + $0x10] sm:$0xff]  }
 0x1ee   : > { %2975 = vmatpush1.bf16.msra.mxu0 %v12341_v61 }
 0x1ef   : > { %2976 = vmatprep.subr.bf16.mxu0 %v12346_v53 }
 0x1f1   : > { %2834 = vmatmul.mubr.bf16.gmra.mrb[12].mxu0 %v13150_v41  ;;  %v13995_v41 = vld [vmem:[%s12807_s15 + $0xcc] sm:$0xf] }
 0x1f2   : > { %2843 = vmatprep.mubr.bf16.mxu0 %v13174_v6  ;;  %2977 = vmatpush1.bf16.msra.mxu0 %v12344_v56 }
 0x1f3   : > { %2978 = vmatprep.subr.bf16.mxu0 %v12349_v16 }
 0x1f6   : > { %2979 = vmatpush1.bf16.msra.mxu0 %v12347_v39 }
 0x1f9   : > { %2844 = vmatmul.mubr.bf16.gmra.mrb[16].mxu0 %v13311_v31  ;;  %v13998_v31 = vld [vmem:[%s12807_s15 + $0xd0] sm:$0xf]  ;;  %s12648_s15 = smov [#allocation4]  }
 0x1fa   : > { %2853 = vmatprep.mubr.bf16.mxu0 %v13334_v57  ;;  %s12587_s17 = sshll.u32 %s12648_s15, 4  ;;  %s12588_s17 = int_to_ptr.vmem [resolvable:$false] %s12587_s17 }
 0x1fb   : > { %s12589_s20 = scalar_lea.vmem %s12588_s17, 8192  ;;  %p12590_p0 = scmp.lt.s32.totalorder %s17661_s21, %s12588_s17 }
 0x1fc   : > { %p12591_p1 = scmp.lt.s32.totalorder %s12589_s20, %s12583_s16 }
 0x1fe   : > { %p12592_p2 = por %p12591_p1, %p12590_p0 }
 0x200   : > { %p12593_p3 = pnand %p12592_p2, %p12586_p13 }
 0x201   : > { %2854 = vmatmul.mubr.bf16.gmra.mrb[20].mxu0 %v13383_v49  ;;  %v906_v49 = vshrl.u32 %v13995_v41, 16 }
 0x202   : > { %2863 = vmatprep.mubr.bf16.mxu0 %v13388_v37 }
 0x209   : > { %2864 = vmatmul.mubr.bf16.gmra.mrb[24].mxu0 %v13419_v30  ;;  %v909_v30 = vshll.u32 %v13995_v41, 16 }
 0x20a   : > { %2873 = vmatprep.mubr.bf16.mxu0 %v13424_v62 }
 0x211   : > { %2874 = vmatmul.mubr.bf16.gmra.mrb[28].mxu0 %v13449_v19  ;;  %v915_v19 = vshll.u32 %v13998_v31, 16 }
 0x212   : > { %2883 = vmatprep.mubr.bf16.mxu0 %v13451_v44 }
 0x213   : > { %v917_v34 = vrot.slane %v915_v19, 5 }
 0x219   : > { %2884 = vmatmul.mubr.bf16.gmra.mrb[32].mxu0 %v13472_v22  ;;  %v919_v22 = vshrl.u32 %v13998_v31, 16 }
 0x21a   : > { %2893 = vmatprep.mubr.bf16.mxu0 %v13477_v63 }
 0x21b   : > { %v921_v15 = vrot.slane %v919_v22, 4  ;;  %v12358_v22 = vld [vmem:[%s17713_s4 + $0x18] sm:$0xff]  }
 0x21d   : > { %v922_v51 = vor.u32 %v921_v15, %v917_v34 }
 0x21f   : > { %v923_v23 = vrot.slane %v922_v51, 4 }
 0x221   : > { %2894 = vmatmul.mubr.bf16.gmra.mrb[36].mxu0 %v13495_v18  ;;  %v908_v18 = vrot.slane %v906_v49, 4  ;;  %v928_v60 = vsel %vm12846_vm5, %v923_v23, %v927_v1  ;;  %v3557_v49 = vld [vmem:[#allocation2] sm:$0x1] }
 0x222   : > { %2903 = vmatprep.mubr.bf16.mxu0 %v13497_v24  ;;  %v12359_v1 = vld [vmem:[%s17713_s4 + $0x60] sm:$0xff]  }
 0x229   : > { %2904 = vmatmul.mubr.bf16.gmra.mrb[40].mxu0 %v13511_v27  ;;  %v911_v27 = vrot.slane %v909_v30, 5 }
 0x22a   : > { %2913 = vmatprep.mubr.bf16.mxu0 %v13513_v28  ;;  %v3602_v28 = vld [vmem:[#allocation2 + $0xb4] sm:$0x1] }
 0x231   : > { %2914 = vmatmul.mubr.bf16.gmra.mrb[44].mxu0 %v13523_v5  ;;  %v912_v5 = vor.u32 %v911_v27, %v908_v18  ;;  %v3560_v18 = vld [vmem:[#allocation2 + $0xc] sm:$0x1]  ;;  %v17877_v27 = vmov 0 }
 0x232   : > { %2923 = vmatprep.mubr.bf16.mxu0 %v13525_v7  ;;  %v17878_v27 = vsel %vm14101_vm11, 4294967295, %v17877_v27  ;;  %v3561_v15 = vsel %vm14089_vm8, 0, %v3560_v18 }
 0x233   : > { %v913_v35 = vrot.slane %v912_v5, 4  ;;  %17879 = vst [vmem:[#allocation30_spill] sm:$0xff] %v17878_v27  ;;  %3562 = vst [vmem:[#allocation2 + $0xc] sm:$0x1] %v3561_v15 }
 0x235   : > { %v918_v36 = vsel %vm12846_vm5, %v913_v35, %v917_v34  ;;  %v3558_v34 = vsel %vm14089_vm8, 0, %v3557_v49 }
 0x236   : > { %v10108_v8 = vcombine.low %v918_v36, %v928_v60  ;;  %3559 = vst [vmem:[#allocation2] sm:$0x1] %v3558_v34  ;;  %v3614_v36 = vld [vmem:[#allocation2 + $0x8] sm:$0xf]  ;;  %v3564_v60 = vsel %vm14089_vm8, 0, %v3563_v33 }
 0x237   : > { %3565 = vst [vmem:[#allocation2 + $0x18] sm:$0x1] %v3564_v60 }
 0x239   : > { %2924 = vmatmul.mubr.bf16.gmra.mrb[48].mxu0 %v13535_v4  ;;  %v10107_v4 = vcombine.low %v13995_v41, %v13998_v31 }
 0x23a   : > { %2933 = vmatprep.mubr.bf16.mxu0 %v13537_v54  ;;  %v3596_v54 = vld [vmem:[#allocation2 + $0x9c] sm:$0x1] }
 0x241   : > { %2934 = vmatmul.mubr.bf16.gmra.mrb[52].mxu0 %v13544_v46 }
 0x242   : > { %2943 = vmatprep.mubr.bf16.mxu0 %v13911_v2 }
 0x249   : > { %2944 = vmatmul.mubr.bf16.gmra.mrb[56].mxu0 %v13754_v38  ;;  %v12354_v38 = vld [vmem:[%s17713_s4 + $0x8] sm:$0xff]  }
 0x24a   : > { %2953 = vmatprep.mubr.bf16.mxu0 %v10108_v8 }
 0x251   : > { %2954 = vmatmul.mubr.bf16.gmra.mrb[60].mxu0 %v10107_v4 }
 0x252   : > { %2996 = vmatprep.mubr.bf16.mxu0 %v12647_v48 }
 0x259   : > { %2997 = vmatmul.mubr.bf16.vlgmr.msra.gmra.mrb[0].mxu0 %v13256_v40  ;;  %v1107_v40 = vrot.slane %v13998_v31, 5  ;;  %v12357_v31 = vld [vmem:[%s17713_s4 + $0x58] sm:$0xff]  }
 0x25a   : > { %3006 = vmatprep.mubr.bf16.mxu0 %v12647_v48 }
 0x261   : > { %3007 = vmatmul.mubr.bf16.gmra.mrb[4].mxu0 %v13272_v20  ;;  %v10055_v20 = vrot.slane %v13995_v41, 9  ;;  %v17874_v41 = vmov 0 }
 0x262   : > { %3016 = vmatprep.mubr.bf16.mxu0 %v12647_v48  ;;  %v17875_v41 = vsel %vm14089_vm8, 4294967295, %v17874_v41 }
 0x263   : > { %17876 = vst [vmem:[#allocation29_spill] sm:$0xff] %v17875_v41 }
 0x269   : > { %3017 = vmatmul.mubr.bf16.gmra.mrb[8].mxu0 %v13296_v0  ;;  %v1109_v0 = vrot.slane %v1107_v40, 4 }
 0x26a   : > { %3026 = vmatprep.mubr.bf16.mxu0 %v12647_v48 }
 0x271   : > { %3027 = vmatmul.mubr.bf16.gmra.mrb[12].mxu0 %v13304_v26  ;;  %v1110_v26 = vrot.slane %v493_v21, 5  ;;  %v3617_v21 = vld [vmem:[#allocation2 + $0x14] sm:$0xf] }
 0x272   : > { %3036 = vmatprep.mubr.bf16.mxu0 %v12647_v48  ;;  %v3618_v51 = vsel %vm14101_vm11, 0, %v3617_v21  ;;  %v3605_v21 = vld [vmem:[#allocation2 + $0xc0] sm:$0x1] }
 0x273   : > { %3619 = vst [vmem:[#allocation2 + $0x14] sm:$0xf] %v3618_v51 }
 0x279   : > { %3037 = vmatmul.mubr.bf16.gmra.mrb[16].mxu0 %v13348_v59  ;;  %v1108_v59 = vsel %vm12835_vm4, %v10055_v20, %v1107_v40  ;;  %v12360_v40 = vld [vmem:[%s17713_s4 + $0x20] sm:$0xff]   ;;  %v3615_v20 = vsel %vm14101_vm11, 0, %v3614_v36  ;;  %v3662_v36 = vld [vmem:[#allocation2 + $0xc8] sm:$0xf] }
 0x27a   : > { %3046 = vmatprep.mubr.bf16.mxu0 %v12647_v48  ;;  %3616 = vst [vmem:[#allocation2 + $0x8] sm:$0xf] %v3615_v20 }
 0x281   : > { %3047 = vmatmul.mubr.bf16.gmra.mrb[20].mxu0 %v13395_v25  ;;  %v1111_v25 = vsel %vm12835_vm4, %v1109_v0, %v1110_v26  ;;  %v3620_v0 = vld [vmem:[#allocation2 + $0x20] sm:$0xf] }
 0x282   : > { %3056 = vmatprep.mubr.bf16.mxu0 %v12647_v48  ;;  %v10109_v46 = vcombine.low %v1108_v59, %v1111_v25  ;;  %v3621_v59 = vsel %vm14101_vm11, 0, %v3620_v0  ;;  %v3566_v25 = vld [vmem:[#allocation2 + $0x24] sm:$0x1]  ;;  %v3663_v0 = vsel %vm14101_vm11, 0, %v3662_v36 }
 0x283   : > { %3622 = vst [vmem:[#allocation2 + $0x20] sm:$0xf] %v3621_v59  ;;  %3664 = vst [vmem:[#allocation2 + $0xc8] sm:$0xf] %v3663_v0 }
 0x289   : > { %3057 = vmatmul.mubr.bf16.gmra.mrb[24].mxu0 %v13678_v3  ;;  %v3159_v3 = vlaneseq }
 0x28a   : > { %3066 = vmatprep.mubr.bf16.mxu0 %v12647_v48 }
 0x291   : > { %3067 = vmatmul.mubr.bf16.gmra.mrb[28].mxu0 %v13689_v17  ;;  %v14055_v17 = vshrl.u32 %v3159_v3, 7 }
 0x292   : > { %3076 = vmatprep.mubr.bf16.mxu0 %v12647_v48 }
 0x293   : > { %v3161_v16 = vsub.s32 0, %v14055_v17 }
 0x299   : > { %3077 = vmatmul.mubr.bf16.gmra.mrb[32].mxu0 %v13700_v58  ;;  %v12351_v58 = vld [vmem:[%s17713_s4 + $0x40] sm:$0xff]  }
 0x29a   : > { %3086 = vmatprep.mubr.bf16.mxu0 %v12647_v48  ;;  %10690 = vmatprep.subr.bf16.mxu1 %v12351_v58  ;;  %v3567_v58 = vsel %vm14089_vm8, 0, %v3566_v25 }
 0x29b   : > { %3568 = vst [vmem:[#allocation2 + $0x24] sm:$0x1] %v3567_v58 }
 0x2a1   : > { %3087 = vmatmul.mubr.bf16.gmra.mrb[36].mxu0 %v13711_v55  ;;  %v12352_v55 = vld [vmem:[%s17713_s4] sm:$0xff]  }
 0x2a2   : > { %3096 = vmatprep.mubr.bf16.mxu0 %v12647_v48  ;;  %10691 = vmatpush3.bf16.msra.mxu1 %v12352_v55 }
 0x2a9   : > { %3097 = vmatmul.mubr.bf16.gmra.mrb[40].mxu0 %v13722_v12  ;;  %v3165_v12 = vsub.s32 1, %v14055_v17 }
 0x2aa   : > { %3106 = vmatprep.mubr.bf16.mxu0 %v12647_v48 }
 0x2b1   : > { %3107 = vmatmul.mubr.bf16.gmra.mrb[44].mxu0 %v13733_v10  ;;  %v3157_v10 = vld [vmem:[%s17711_s2] sm:$0x3] }
 0x2b2   : > { %3116 = vmatprep.mubr.bf16.mxu0 %v12647_v48  ;;  %v14112_v35 = vrot.slane %v3157_v10, %v3161_v16 }
 0x2b9   : > { %3117 = vmatmul.mubr.bf16.gmra.mrb[48].mxu0 %v13750_v11  ;;  %v12353_v11 = vld [vmem:[%s17713_s4 + $0x48] sm:$0xff]  }
 0x2ba   : > { %3126 = vmatprep.mubr.bf16.mxu0 %v12647_v48  ;;  %10692 = vmatprep.subr.bf16.mxu1 %v12353_v11  ;;  %v12361_v11 = vld [vmem:[%s17713_s4 + $0x68] sm:$0xff]  }
 0x2bb   : > { %10693 = vmatpush3.bf16.msra.mxu1 %v12354_v38  ;;  %v3623_v38 = vld [vmem:[#allocation2 + $0x2c] sm:$0xf] }
 0x2c1   : > { %3127 = vmatmul.mubr.bf16.gmra.mrb[52].mxu0 %v13764_v47  ;;  %v3233_v47 = vld [vmem:[%s17712_s3] sm:$0x3] }
 0x2c2   : > { %3136 = vmatprep.mubr.bf16.mxu0 %v12647_v48  ;;  %v14081_v52 = vrot.slane %v3233_v47, %v3165_v12 }
 0x2c9   : > { %3137 = vmatmul.mubr.bf16.gmra.mrb[56].mxu0 %v13903_v42  ;;  %v14076_v42 = vrot.slane %v3157_v10, %v3165_v12  ;;  %v14134_v12 = vrot.slane %v3233_v47, %v3161_v16  ;;  %v3624_v47 = vsel %vm14101_vm11, 0, %v3623_v38  ;;  %v14149_v16 = vld [vmem:[#allocation2] sm:$0xf] }
 0x2ca   : > { %3146 = vmatprep.mubr.bf16.mxu0 %v12647_v48  ;;  %v12355_v48 = vld [vmem:[%s17713_s4 + $0x50] sm:$0xff]   ;;  %3625 = vst [vmem:[#allocation2 + $0x2c] sm:$0xf] %v3624_v47  ;;  %v4254_v49 = vshrl.u32 %v14149_v16, 16 }
 0x2cb   : > { %10694 = vmatprep.subr.bf16.mxu1 %v12355_v48 }
 0x2cc   : > { %10695 = vmatpush3.bf16.msra.mxu1 %v12356_v13  ;;  %v4256_v58 = vrot.slane %v4254_v49, 4 }
 0x2cd   : > { %10696 = vmatprep.subr.bf16.mxu1 %v12357_v31  ;;  %v12363_v31 = vld [vmem:[%s17713_s4 + $0x70] sm:$0xff]  }
 0x2d0   : > { %10697 = vmatpush3.bf16.msra.mxu1 %v12358_v22 }
 0x2d1   : > { %3147 = vmatmul.mubr.bf16.gmra.mrb[60].mxu0 %v10109_v46  ;;  %10698 = vmatprep.subr.bf16.mxu1 %v12359_v1  ;;  %v3606_v1 = vsel %vm14089_vm8, 0, %v3605_v21 }
 0x2d2   : > { %3607 = vst [vmem:[#allocation2 + $0xc0] sm:$0x1] %v3606_v1 }
 0x2d4   : > { %10699 = vmatpush3.bf16.msra.mxu1 %v12360_v40 }
 0x2d5   : > { %10700 = vmatprep.subr.bf16.mxu1 %v12361_v11 }
 0x32c   : > { %v2998_v9 = vpop.f32.mrb[0].mxu0 }
 0x32d   : > { %v3000_v61 = vpop.f32.mrb[1].mxu0  ;;  %v3169_v55 = vmul.f32 %v14112_v35, %v2998_v9  ;;  %v14145_v9 = vld [vmem:[#allocation2 + $0x4] sm:$0xf] }
 0x32e   : > { %v3170_v53 = vmul.f32 %v14076_v42, %v3000_v61  ;;  %v3002_v56 = vpop.f32.mrb[2].mxu0  ;;  %v4267_v60 = vshrl.u32 %v14145_v9, 16 }
 0x32f   : > { %v3004_v39 = vpop.f32.mrb[3].mxu0  ;;  %v3171_v48 = vmul.f32 %v14112_v35, %v3002_v56  ;;  %v4263_v56 = vshll.u32 %v14145_v9, 16 }
 0x330   : > { %v3246_v30 = vadd.f32 %v14081_v52, %v3170_v53  ;;  %v3172_v19 = vmul.f32 %v14076_v42, %v3004_v39  ;;  %v12362_v53 = vld [vmem:[%s17713_s4 + $0x28] sm:$0xff]  }
 0x331   : > { %10701 = vmatpush3.bf16.msra.mxu1 %v12362_v53  ;;  %v3247_v22 = vadd.f32 %v14134_v12, %v3171_v48  ;;  %v12366_v48 = vld [vmem:[%s17713_s4 + $0x38] sm:$0xff]   ;;  %v4201_v53 = vld [vmem:[#allocation2 + $0x8] sm:$0xf] }
 0x332   : > { %v3248_v5 = vadd.f32 %v14081_v52, %v3172_v19  ;;  %v3310_v23 = vmax.f32 %v3246_v30, 0.0  ;;  %v4257_v30 = vshll.u32 %v14149_v16, 16  ;;  %v3245_v19 = vadd.f32 %v14134_v12, %v3169_v55  ;;  %10702 = vmatprep.subr.bf16.mxu1 %v12363_v31 }
 0x334   : > { %v3312_v8 = vmax.f32 %v3248_v5, 0.0  ;;  %v3008_v4 = vpop.f32.mrb[4].mxu0  ;;  %v12364_v5 = vld [vmem:[%s17713_s4 + $0x30] sm:$0xff]   ;;  %v4259_v55 = vrot.slane %v4257_v30, 5 }
 0x335   : > { %v3010_v26 = vpop.f32.mrb[5].mxu0  ;;  %v3173_v51 = vmul.f32 %v14112_v35, %v3008_v4  ;;  %10703 = vmatpush3.bf16.msra.mxu1 %v12364_v5  ;;  %v14173_v4 = vrot.slane %v4263_v56, 5  ;;  %v3311_v56 = vmax.f32 %v3247_v22, 0.0 }
 0x336   : > { %v14126_v46 = vmax.f32 %v3310_v23, %v3312_v8  ;;  %v3174_v3 = vmul.f32 %v14076_v42, %v3010_v26  ;;  %v14129_v17 = vpop.f32.mrb[6].mxu0  ;;  %v4260_v47 = vor.u32 %v4259_v55, %v4256_v58  ;;  %v12368_v58 = vld [vmem:[%s17713_s4 + $0xc0] sm:$0xff]  }
 0x337   : > { %v3014_v10 = vpop.f32.mrb[7].mxu0  ;;  %v3175_v31 = vmul.f32 %v14112_v35, %v14129_v17  ;;  %v3249_v30 = vadd.f32 %v14134_v12, %v3173_v51 }
 0x338   : > { %v3250_v13 = vadd.f32 %v14081_v52, %v3174_v3  ;;  %v3176_v61 = vmul.f32 %v14076_v42, %v3014_v10  ;;  %v12365_v3 = vld [vmem:[%s17713_s4 + $0x78] sm:$0xff]   ;;  %v3309_v10 = vmax.f32 %v3245_v19, 0.0 }
 0x339   : > { %10704 = vmatprep.subr.bf16.mxu1 %v12365_v3  ;;  %v17740_v3 = vrot.slane %v14145_v9, 5  ;;  %v3313_v55 = vmax.f32 %v3249_v30, 0.0  ;;  %v10304_v30 = vcombine.low %v14149_v16, %v14145_v9 }
 0x33a   : > { %v3252_v39 = vadd.f32 %v14081_v52, %v3176_v61  ;;  %v3314_v18 = vmax.f32 %v3250_v13, 0.0  ;;  %10705 = vmatpush3.bf16.msra.mxu1 %v12366_v48 }
 0x33b   : > { %10802 = vmatprep.subr.bf16.mxu1 %v12368_v58 }
 0x33c   : > { %v3316_v34 = vmax.f32 %v3252_v39, 0.0  ;;  %v3018_v15 = vpop.f32.mrb[8].mxu0  ;;  %v4269_v39 = vrot.slane %v4267_v60, 4  ;;  %v3251_v60 = vadd.f32 %v14134_v12, %v3175_v31 }
 0x33d   : > { %v3177_v33 = vmul.f32 %v14112_v35, %v3018_v15  ;;  %v3020_v23 = vpop.f32.mrb[9].mxu0 }
 0x33e   : > { %v14168_v8 = vmax.f32 %v3314_v18, %v3316_v34  ;;  %v3178_v40 = vmul.f32 %v14076_v42, %v3020_v23  ;;  %v3022_v20 = vpop.f32.mrb[10].mxu0  ;;  %v4270_v34 = vor.u32 %v4269_v39, %v14173_v4  ;;  %v4273_v23 = vshll.u32 %v4201_v53, 16  ;;  %v3569_v39 = vld [vmem:[#allocation2 + $0x30] sm:$0x1] }
 0x33f   : > { %v3253_v26 = vadd.f32 %v14134_v12, %v3177_v33  ;;  %v3179_v59 = vmul.f32 %v14112_v35, %v3022_v20  ;;  %v3024_v25 = vpop.f32.mrb[11].mxu0  ;;  %v4261_v33 = vrot.slane %v4260_v47, 4  ;;  %v4737_v47 = vrot.slane %v17740_v3, 4 }
 0x340   : > { %v3254_v11 = vadd.f32 %v14081_v52, %v3178_v40  ;;  %v3180_v38 = vmul.f32 %v14076_v42, %v3024_v25  ;;  %v4271_v36 = vrot.slane %v4270_v34, 4  ;;  %v4275_v0 = vrot.slane %v4273_v23, 5 }
 0x341   : > { %v3317_v13 = vmax.f32 %v3253_v26, 0.0  ;;  %v3255_v61 = vadd.f32 %v14134_v12, %v3179_v59  ;;  %v3315_v31 = vmax.f32 %v3251_v60, 0.0  ;;  %v4738_v34 = vrot.slane %v4201_v53, 5 }
 0x342   : > { %v3256_v49 = vadd.f32 %v14081_v52, %v3180_v38  ;;  %v3318_v15 = vmax.f32 %v3254_v11, 0.0  ;;  %v4266_v38 = vsel %vm12846_vm5, %v4261_v33, %v14173_v4 }
 0x343   : > { %v14190_v19 = vmax.f32 %v3309_v10, %v3317_v13  ;;  %v3319_v18 = vmax.f32 %v3255_v61, 0.0  ;;  %v4276_v61 = vsel %vm12846_vm5, %v4271_v36, %v4275_v0 }
 0x344   : > { %v3320_v21 = vmax.f32 %v3256_v49, 0.0  ;;  %v3028_v5 = vpop.f32.mrb[12].mxu0 }
 0x345   : > { %v14193_v1 = vmax.f32 %v3311_v56, %v3319_v18  ;;  %v3181_v22 = vmul.f32 %v14112_v35, %v3028_v5  ;;  %v3030_v17 = vpop.f32.mrb[13].mxu0  ;;  %v3626_v56 = vld [vmem:[#allocation2 + $0x38] sm:$0xf]  ;;  %v3572_v5 = vld [vmem:[#allocation2 + $0x3c] sm:$0x1] }
 0x346   : > { %v14197_v40 = vmax.f32 %v3318_v15, %v3320_v21  ;;  %v3182_v51 = vmul.f32 %v14076_v42, %v3030_v17  ;;  %v3032_v20 = vpop.f32.mrb[14].mxu0  ;;  %v10320_v15 = vcombine.low %v4266_v38, %v4276_v61  ;;  %v12369_v21 = vld [vmem:[%s17713_s4 + $0x80] sm:$0xff]   ;;  %v3570_v17 = vsel %vm14089_vm8, 0, %v3569_v39 }
 0x347   : > { %v3257_v26 = vadd.f32 %v14134_v12, %v3181_v22  ;;  %v3183_v59 = vmul.f32 %v14112_v35, %v3032_v20  ;;  %v3034_v25 = vpop.f32.mrb[15].mxu0  ;;  %v3627_v36 = vsel %vm14101_vm11, 0, %v3626_v56  ;;  %v14233_v20 = vsel %vm12835_vm4, %v4737_v47, %v4738_v34  ;;  %3571 = vst [vmem:[#allocation2 + $0x30] sm:$0x1] %v3570_v17 }
 0x348   : > { %v3258_v10 = vadd.f32 %v14081_v52, %v3182_v51  ;;  %v3184_v11 = vmul.f32 %v14076_v42, %v3034_v25  ;;  %5689 = vmatprep.mubr.bf16.mxu1 %v10320_v15  ;;  %3628 = vst [vmem:[#allocation2 + $0x38] sm:$0xf] %v3627_v36  ;;  %v3573_v0 = vsel %vm14089_vm8, 0, %v3572_v5 }
 0x349   : > { %v3321_v48 = vmax.f32 %v3257_v26, 0.0  ;;  %v3259_v13 = vadd.f32 %v14134_v12, %v3183_v59  ;;  %v3629_v26 = vld [vmem:[#allocation2 + $0x44] sm:$0xf]  ;;  %5690 = vmatmul.mubr.bf16.vlgmr.msra.gmra.mrb[0].mxu1 %v10304_v30  ;;  %3574 = vst [vmem:[#allocation2 + $0x3c] sm:$0x1] %v3573_v0 }
 0x34a   : > { %v3260_v49 = vadd.f32 %v14081_v52, %v3184_v11  ;;  %v3322_v33 = vmax.f32 %v3258_v10, 0.0  ;;  %10803 = vmatpush3.bf16.msra.mxu1 %v12369_v21  ;;  %v3632_v0 = vld [vmem:[#allocation2 + $0x50] sm:$0xf] }
 0x34b   : > { %v14219_v18 = vmax.f32 %v3313_v55, %v3321_v48  ;;  %v3323_v4 = vmax.f32 %v3259_v13, 0.0  ;;  %v3630_v55 = vsel %vm14101_vm11, 0, %v3629_v26 }
 0x34c   : > { %v3324_v23 = vmax.f32 %v3260_v49, 0.0  ;;  %v3038_v22 = vpop.f32.mrb[16].mxu0  ;;  %3631 = vst [vmem:[#allocation2 + $0x44] sm:$0xf] %v3630_v55  ;;  %v3633_v55 = vsel %vm14101_vm11, 0, %v3632_v0 }
 0x34d   : > { %v14228_v60 = vmax.f32 %v3315_v31, %v3323_v4  ;;  %v3185_v51 = vmul.f32 %v14112_v35, %v3038_v22  ;;  %v3040_v53 = vpop.f32.mrb[17].mxu0  ;;  %v3575_v22 = vld [vmem:[#allocation2 + $0x48] sm:$0x1]  ;;  %3634 = vst [vmem:[#allocation2 + $0x50] sm:$0xf] %v3633_v55 }
 0x34e   : > { %v14237_v59 = vmax.f32 %v3322_v33, %v3324_v23  ;;  %v3186_v25 = vmul.f32 %v14076_v42, %v3040_v53  ;;  %v3042_v58 = vpop.f32.mrb[18].mxu0  ;;  %v3638_v55 = vld [vmem:[#allocation2 + $0x68] sm:$0xf] }
 0x34f   : > { %v3261_v10 = vadd.f32 %v14134_v12, %v3185_v51  ;;  %v3187_v11 = vmul.f32 %v14112_v35, %v3042_v58  ;;  %v3044_v38 = vpop.f32.mrb[19].mxu0  ;;  %v3576_v51 = vsel %vm14089_vm8, 0, %v3575_v22  ;;  %v12372_v58 = vld [vmem:[%s17713_s4 + $0xc8] sm:$0xff]  }
 0x350   : > { %v3262_v48 = vadd.f32 %v14081_v52, %v3186_v25  ;;  %v3188_v13 = vmul.f32 %v14076_v42, %v3044_v38  ;;  %3577 = vst [vmem:[#allocation2 + $0x48] sm:$0x1] %v3576_v51  ;;  %v3578_v38 = vld [vmem:[#allocation2 + $0x54] sm:$0x1]  ;;  %10804 = vmatprep.subr.bf16.mxu1 %v12372_v58 }
 0x351   : > { %v3325_v61 = vmax.f32 %v3261_v10, 0.0  ;;  %v3263_v47 = vadd.f32 %v14134_v12, %v3187_v11  ;;  %v12373_v11 = vld [vmem:[%s17713_s4 + $0x88] sm:$0xff]  }
 0x352   : > { %v3264_v39 = vadd.f32 %v14081_v52, %v3188_v13  ;;  %v3326_v49 = vmax.f32 %v3262_v48, 0.0  ;;  %10805 = vmatpush3.bf16.msra.mxu1 %v12373_v11 }
 0x353   : > { %v3375_v56 = vmax.f32 %v14190_v19, %v3325_v61  ;;  %v3327_v31 = vmax.f32 %v3263_v47, 0.0  ;;  %v3579_v61 = vsel %vm14089_vm8, 0, %v3578_v38 }
 0x354   : > { %v3328_v30 = vmax.f32 %v3264_v39, 0.0  ;;  %v3048_v4 = vpop.f32.mrb[20].mxu0  ;;  %3580 = vst [vmem:[#allocation2 + $0x54] sm:$0x1] %v3579_v61 }
 0x355   : > { %v3390_v34 = vmax.f32 %v14193_v1, %v3327_v31  ;;  %v3189_v15 = vmul.f32 %v14112_v35, %v3048_v4  ;;  %v3050_v21 = vpop.f32.mrb[21].mxu0 }
 0x356   : > { %v14251_v5 = vmax.f32 %v3326_v49, %v3328_v30  ;;  %v3190_v33 = vmul.f32 %v14076_v42, %v3050_v21  ;;  %v3052_v23 = vpop.f32.mrb[22].mxu0  ;;  %v3635_v49 = vld [vmem:[#allocation2 + $0x5c] sm:$0xf] }
 0x357   : > { %v3265_v17 = vadd.f32 %v14134_v12, %v3189_v15  ;;  %v3191_v36 = vmul.f32 %v14112_v35, %v3052_v23  ;;  %v3054_v19 = vpop.f32.mrb[23].mxu0  ;;  %v3636_v21 = vsel %vm14101_vm11, 0, %v3635_v49 }
 0x358   : > { %v3266_v53 = vadd.f32 %v14081_v52, %v3190_v33  ;;  %v3192_v1 = vmul.f32 %v14076_v42, %v3054_v19  ;;  %3637 = vst [vmem:[#allocation2 + $0x5c] sm:$0xf] %v3636_v21 }
 0x359   : > { %v3329_v26 = vmax.f32 %v3265_v17, 0.0  ;;  %v3267_v25 = vadd.f32 %v14134_v12, %v3191_v36 }
 0x35a   : > { %v3268_v10 = vadd.f32 %v14081_v52, %v3192_v1  ;;  %v3330_v47 = vmax.f32 %v3266_v53, 0.0  ;;  %v3581_v1 = vld [vmem:[#allocation2 + $0x60] sm:$0x1] }
 0x35b   : > { %v3376_v48 = vmax.f32 %v14219_v18, %v3329_v26  ;;  %v3331_v13 = vmax.f32 %v3267_v25, 0.0  ;;  %v3582_v58 = vsel %vm14089_vm8, 0, %v3581_v1  ;;  %v4129_v62 = vld [vmem:[#allocation2 + $0x54] sm:$0xf] }
 0x35c   : > { %v3332_v39 = vmax.f32 %v3268_v10, 0.0  ;;  %v3058_v31 = vpop.f32.mrb[24].mxu0  ;;  %3583 = vst [vmem:[#allocation2 + $0x60] sm:$0x1] %v3582_v58 }
 0x35d   : > { %v3391_v30 = vmax.f32 %v14228_v60, %v3331_v13  ;;  %v3193_v4 = vmul.f32 %v14112_v35, %v3058_v31  ;;  %v3060_v15 = vpop.f32.mrb[25].mxu0  ;;  %v3639_v13 = vsel %vm14101_vm11, 0, %v3638_v55 }
 0x35e   : > { %v14277_v18 = vmax.f32 %v3330_v47, %v3332_v39  ;;  %v3194_v33 = vmul.f32 %v14076_v42, %v3060_v15  ;;  %v3062_v23 = vpop.f32.mrb[26].mxu0  ;;  %3640 = vst [vmem:[#allocation2 + $0x68] sm:$0xf] %v3639_v13  ;;  %v3584_v13 = vld [vmem:[#allocation2 + $0x6c] sm:$0x1] }
 0x35f   : > { %v3269_v22 = vadd.f32 %v14134_v12, %v3193_v4  ;;  %v3195_v17 = vmul.f32 %v14112_v35, %v3062_v23  ;;  %v3064_v36 = vpop.f32.mrb[27].mxu0 }
 0x360   : > { %v3270_v19 = vadd.f32 %v14081_v52, %v3194_v33  ;;  %v3196_v60 = vmul.f32 %v14076_v42, %v3064_v36  ;;  %v12376_v36 = vld [vmem:[%s17713_s4 + $0xd0] sm:$0xff]  }
 0x361   : > { %v3333_v51 = vmax.f32 %v3269_v22, 0.0  ;;  %v3271_v53 = vadd.f32 %v14134_v12, %v3195_v17  ;;  %10806 = vmatprep.subr.bf16.mxu1 %v12376_v36 }
 0x362   : > { %v3272_v0 = vadd.f32 %v14081_v52, %v3196_v60  ;;  %v3334_v10 = vmax.f32 %v3270_v19, 0.0 }
 0x363   : > { %v3377_v26 = vmax.f32 %v3375_v56, %v3333_v51  ;;  %v3335_v25 = vmax.f32 %v3271_v53, 0.0 }
 0x364   : > { %v3336_v11 = vmax.f32 %v3272_v0, 0.0  ;;  %v3068_v38 = vpop.f32.mrb[28].mxu0 }
 0x365   : > { %v3392_v61 = vmax.f32 %v3390_v34, %v3335_v25  ;;  %v3197_v47 = vmul.f32 %v14112_v35, %v3068_v38  ;;  %v3070_v39 = vpop.f32.mrb[29].mxu0  ;;  %v12377_v38 = vld [vmem:[%s17713_s4 + $0x90] sm:$0xff]  }
 0x366   : > { %v14291_v31 = vmax.f32 %v3334_v10, %v3336_v11  ;;  %v3198_v56 = vmul.f32 %v14076_v42, %v3070_v39  ;;  %v3072_v49 = vpop.f32.mrb[30].mxu0  ;;  %10807 = vmatpush3.bf16.msra.mxu1 %v12377_v38 }
 0x367   : > { %v3273_v4 = vadd.f32 %v14134_v12, %v3197_v47  ;;  %v3199_v15 = vmul.f32 %v14112_v35, %v3072_v49  ;;  %v3074_v21 = vpop.f32.mrb[31].mxu0 }
 0x368   : > { %v3274_v33 = vadd.f32 %v14081_v52, %v3198_v56  ;;  %v3200_v23 = vmul.f32 %v14076_v42, %v3074_v21 }
 0x369   : > { %v3337_v22 = vmax.f32 %v3273_v4, 0.0  ;;  %v3275_v34 = vadd.f32 %v14134_v12, %v3199_v15  ;;  %v3641_v4 = vld [vmem:[#allocation2 + $0x74] sm:$0xf] }
 0x36a   : > { %v3276_v17 = vadd.f32 %v14081_v52, %v3200_v23  ;;  %v3338_v51 = vmax.f32 %v3274_v33, 0.0  ;;  %v3642_v33 = vsel %vm14101_vm11, 0, %v3641_v4 }
 0x36b   : > { %v3378_v19 = vmax.f32 %v3376_v48, %v3337_v22  ;;  %v3339_v60 = vmax.f32 %v3275_v34, 0.0  ;;  %3643 = vst [vmem:[#allocation2 + $0x74] sm:$0xf] %v3642_v33 }
 0x36c   : > { %v3340_v53 = vmax.f32 %v3276_v17, 0.0  ;;  %v3078_v1 = vpop.f32.mrb[32].mxu0 }
 0x36d   : > { %v3393_v0 = vmax.f32 %v3391_v30, %v3339_v60  ;;  %v3201_v25 = vmul.f32 %v14112_v35, %v3078_v1  ;;  %v3080_v58 = vpop.f32.mrb[33].mxu0  ;;  %v3585_v30 = vsel %vm14089_vm8, 0, %v3584_v13 }
 0x36e   : > { %v14304_v55 = vmax.f32 %v3338_v51, %v3340_v53  ;;  %v3202_v10 = vmul.f32 %v14076_v42, %v3080_v58  ;;  %v3082_v11 = vpop.f32.mrb[34].mxu0  ;;  %3586 = vst [vmem:[#allocation2 + $0x6c] sm:$0x1] %v3585_v30 }
 0x36f   : > { %v3277_v48 = vadd.f32 %v14134_v12, %v3201_v25  ;;  %v3203_v47 = vmul.f32 %v14112_v35, %v3082_v11  ;;  %v3084_v39 = vpop.f32.mrb[35].mxu0 }
 0x370   : > { %v3278_v56 = vadd.f32 %v14081_v52, %v3202_v10  ;;  %v3204_v49 = vmul.f32 %v14076_v42, %v3084_v39  ;;  %v3404_v39 = vrot.slane %v14126_v46, 4 }
 0x371   : > { %v3341_v15 = vmax.f32 %v3277_v48, 0.0  ;;  %v3279_v21 = vadd.f32 %v14134_v12, %v3203_v47 }
 0x372   : > { %v3280_v23 = vadd.f32 %v14081_v52, %v3204_v49  ;;  %v3342_v17 = vmax.f32 %v3278_v56, 0.0  ;;  %v12380_v56 = vld [vmem:[%s17713_s4 + $0xd8] sm:$0xff]  }
 0x373   : > { %v3379_v22 = vmax.f32 %v3377_v26, %v3341_v15  ;;  %v3343_v34 = vmax.f32 %v3279_v21, 0.0  ;;  %10808 = vmatprep.subr.bf16.mxu1 %v12380_v56  ;;  %v3432_v56 = vrot.slane %v14251_v5, 4 }
 0x374   : > { %v3344_v36 = vmax.f32 %v3280_v23, 0.0  ;;  %v3088_v60 = vpop.f32.mrb[36].mxu0  ;;  %v3587_v23 = vld [vmem:[#allocation2 + $0x78] sm:$0x1] }
 0x375   : > { %v14320_v51 = vmax.f32 %v3392_v61, %v3343_v34  ;;  %v3205_v53 = vmul.f32 %v14112_v35, %v3088_v60  ;;  %v3090_v1 = vpop.f32.mrb[37].mxu0  ;;  %v3588_v60 = vsel %vm14089_vm8, 0, %v3587_v23 }
 0x376   : > { %v14323_v25 = vmax.f32 %v3342_v17, %v3344_v36  ;;  %v3206_v58 = vmul.f32 %v14076_v42, %v3090_v1  ;;  %v3092_v10 = vpop.f32.mrb[38].mxu0  ;;  %3589 = vst [vmem:[#allocation2 + $0x78] sm:$0x1] %v3588_v60 }
 0x377   : > { %v3281_v11 = vadd.f32 %v14134_v12, %v3205_v53  ;;  %v3207_v38 = vmul.f32 %v14112_v35, %v3092_v10  ;;  %v3094_v13 = vpop.f32.mrb[39].mxu0  ;;  %v3405_v53 = vmax.f32 %v14126_v46, %v3404_v39  ;;  %v3644_v10 = vld [vmem:[#allocation2 + $0x80] sm:$0xf] }
 0x378   : > { %v3282_v26 = vadd.f32 %v14081_v52, %v3206_v58  ;;  %v3208_v48 = vmul.f32 %v14076_v42, %v3094_v13  ;;  %v3645_v46 = vsel %vm14101_vm11, 0, %v3644_v10 }
 0x379   : > { %v3345_v47 = vmax.f32 %v3281_v11, 0.0  ;;  %v3283_v61 = vadd.f32 %v14134_v12, %v3207_v38  ;;  %v3411_v11 = vrot.slane %v14168_v8, 4  ;;  %3646 = vst [vmem:[#allocation2 + $0x80] sm:$0xf] %v3645_v46  ;;  %v3406_v23 = vrot.slane %v3405_v53, 2 }
 0x37a   : > { %v3284_v30 = vadd.f32 %v14081_v52, %v3208_v48  ;;  %v3346_v15 = vmax.f32 %v3282_v26, 0.0  ;;  %v12381_v26 = vld [vmem:[%s17713_s4 + $0x98] sm:$0xff]   ;;  %v3418_v48 = vrot.slane %v14197_v40, 4  ;;  %v3593_v46 = vld [vmem:[#allocation2 + $0x90] sm:$0x1] }
 0x37b   : > { %v14336_v49 = vmax.f32 %v3378_v19, %v3345_v47  ;;  %v3347_v4 = vmax.f32 %v3283_v61, 0.0  ;;  %v3425_v47 = vrot.slane %v14237_v59, 4  ;;  %10809 = vmatpush3.bf16.msra.mxu1 %v12381_v26 }
 0x37c   : > { %v3348_v21 = vmax.f32 %v3284_v30, 0.0  ;;  %v3098_v33 = vpop.f32.mrb[40].mxu0  ;;  %v3590_v30 = vld [vmem:[#allocation2 + $0x84] sm:$0x1]  ;;  %v3419_v10 = vmax.f32 %v14197_v40, %v3418_v48 }
 0x37d   : > { %v14338_v34 = vmax.f32 %v3393_v0, %v3347_v4  ;;  %v3209_v17 = vmul.f32 %v14112_v35, %v3098_v33  ;;  %v3100_v36 = vpop.f32.mrb[41].mxu0  ;;  %v3647_v33 = vld [vmem:[#allocation2 + $0x8c] sm:$0xf] }
 0x37e   : > { %v14344_v1 = vmax.f32 %v3346_v15, %v3348_v21  ;;  %v3210_v19 = vmul.f32 %v14076_v42, %v3100_v36  ;;  %v3102_v58 = vpop.f32.mrb[42].mxu0  ;;  %v3591_v21 = vsel %vm14089_vm8, 0, %v3590_v30  ;;  %v3412_v36 = vmax.f32 %v14168_v8, %v3411_v11 }
 0x37f   : > { %v3285_v0 = vadd.f32 %v14134_v12, %v3209_v17  ;;  %v3211_v38 = vmul.f32 %v14112_v35, %v3102_v58  ;;  %v3104_v13 = vpop.f32.mrb[43].mxu0  ;;  %3592 = vst [vmem:[#allocation2 + $0x84] sm:$0x1] %v3591_v21  ;;  %v3648_v58 = vsel %vm14101_vm11, 0, %v3647_v33  ;;  %v3594_v11 = vsel %vm14089_vm8, 0, %v3593_v46 }
 0x380   : > { %v3286_v61 = vadd.f32 %v14081_v52, %v3210_v19  ;;  %v3212_v39 = vmul.f32 %v14076_v42, %v3104_v13  ;;  %3649 = vst [vmem:[#allocation2 + $0x8c] sm:$0xf] %v3648_v58  ;;  %3595 = vst [vmem:[#allocation2 + $0x90] sm:$0x1] %v3594_v11  ;;  %v3413_v21 = vrot.slane %v3412_v36, 2  ;;  %v3420_v33 = vrot.slane %v3419_v10, 2 }
 0x381   : > { %v3349_v4 = vmax.f32 %v3285_v0, 0.0  ;;  %v3287_v15 = vadd.f32 %v14134_v12, %v3211_v38  ;;  %v3426_v0 = vmax.f32 %v14237_v59, %v3425_v47  ;;  %v3650_v47 = vld [vmem:[#allocation2 + $0x98] sm:$0xf] }
 0x382   : > { %v3288_v17 = vadd.f32 %v14081_v52, %v3212_v39  ;;  %v3350_v38 = vmax.f32 %v3286_v61, 0.0  ;;  %v3433_v39 = vmax.f32 %v14251_v5, %v3432_v56  ;;  %v3439_v61 = vrot.slane %v14277_v18, 4 }
 0x383   : > { %v14365_v60 = vmax.f32 %v3379_v22, %v3349_v4  ;;  %v3351_v19 = vmax.f32 %v3287_v15, 0.0  ;;  %v3407_v4 = vmax.f32 %v3405_v53, %v3406_v23  ;;  %v3651_v15 = vsel %vm14101_vm11, 0, %v3650_v47 }
 0x384   : > { %v3352_v13 = vmax.f32 %v3288_v17, 0.0  ;;  %v3108_v26 = vpop.f32.mrb[44].mxu0  ;;  %3652 = vst [vmem:[#allocation2 + $0x98] sm:$0xf] %v3651_v15  ;;  %v3427_v17 = vrot.slane %v3426_v0, 2 }
 0x385   : > { %v14373_v30 = vmax.f32 %v14320_v51, %v3351_v19  ;;  %v3213_v8 = vmul.f32 %v14112_v35, %v3108_v26  ;;  %v3110_v22 = vpop.f32.mrb[45].mxu0  ;;  %v3434_v19 = vrot.slane %v3433_v39, 2  ;;  %v12384_v26 = vld [vmem:[%s17713_s4 + $0xe0] sm:$0xff]   ;;  %v3408_v46 = vrot.slane %v3407_v4, 1 }
 0x386   : > { %v14378_v40 = vmax.f32 %v3350_v38, %v3352_v13  ;;  %v3214_v59 = vmul.f32 %v14076_v42, %v3110_v22  ;;  %v3112_v48 = vpop.f32.mrb[46].mxu0  ;;  %10810 = vmatprep.subr.bf16.mxu1 %v12384_v26  ;;  %v4157_v43 = vld [vmem:[#allocation2 + $0x84] sm:$0xf] }
 0x387   : > { %v3289_v5 = vadd.f32 %v14134_v12, %v3213_v8  ;;  %v3215_v51 = vmul.f32 %v14112_v35, %v3112_v48  ;;  %v3114_v56 = vpop.f32.mrb[47].mxu0  ;;  %v3440_v8 = vmax.f32 %v14277_v18, %v3439_v61  ;;  %v3421_v48 = vmax.f32 %v3419_v10, %v3420_v33 }
 0x388   : > { %v3290_v53 = vadd.f32 %v14081_v52, %v3214_v59  ;;  %v3216_v23 = vmul.f32 %v14076_v42, %v3114_v56  ;;  %v3414_v59 = vmax.f32 %v3412_v36, %v3413_v21  ;;  %v3435_v15 = vmax.f32 %v3433_v39, %v3434_v19  ;;  %v3653_v21 = vld [vmem:[#allocation2 + $0xa4] sm:$0xf] }
 0x389   : > { %v3353_v58 = vmax.f32 %v3289_v5, 0.0  ;;  %v3291_v38 = vadd.f32 %v14134_v12, %v3215_v51  ;;  %v3428_v51 = vmax.f32 %v3426_v0, %v3427_v17  ;;  %v3446_v18 = vrot.slane %v14291_v31, 4 }
 0x38a   : > { %v3292_v13 = vadd.f32 %v14081_v52, %v3216_v23  ;;  %v3354_v47 = vmax.f32 %v3290_v53, 0.0  ;;  %v3597_v61 = vsel %vm14089_vm8, 0, %v3596_v54  ;;  %v3441_v0 = vrot.slane %v3440_v8, 2 }
 0x38b   : > { %v14395_v22 = vmax.f32 %v14336_v49, %v3353_v58  ;;  %v3355_v11 = vmax.f32 %v3291_v38, 0.0  ;;  %3598 = vst [vmem:[#allocation2 + $0x9c] sm:$0x1] %v3597_v61  ;;  %v3654_v53 = vsel %vm14101_vm11, 0, %v3653_v21  ;;  %v3415_v17 = vrot.slane %v3414_v59, 1 }
 0x38c   : > { %v3356_v56 = vmax.f32 %v3292_v13, 0.0  ;;  %v3118_v5 = vpop.f32.mrb[48].mxu0  ;;  %3655 = vst [vmem:[#allocation2 + $0xa4] sm:$0xf] %v3654_v53  ;;  %v3422_v58 = vrot.slane %v3421_v48, 1  ;;  %v3429_v38 = vrot.slane %v3428_v51, 1  ;;  %v14414_v26 = vmax.f32 %v3407_v4, %v3408_v46 }
 0x38d   : > { %v14398_v23 = vmax.f32 %v14338_v34, %v3355_v11  ;;  %v3217_v3 = vmul.f32 %v14112_v35, %v3118_v5  ;;  %v3120_v2 = vpop.f32.mrb[49].mxu0  ;;  %v3453_v11 = vrot.slane %v14304_v55, 4  ;;  %v3436_v5 = vrot.slane %v3435_v15, 1 }
 0x38e   : > { %v14402_v49 = vmax.f32 %v3354_v47, %v3356_v56  ;;  %v3218_v36 = vmul.f32 %v14076_v42, %v3120_v2  ;;  %v3122_v10 = vpop.f32.mrb[50].mxu0  ;;  %v12385_v56 = vld [vmem:[%s17713_s4 + $0xa0] sm:$0xff]   ;;  %v14425_v21 = vmax.f32 %v3414_v59, %v3415_v17 }
 0x38f   : > { %v3293_v39 = vadd.f32 %v14134_v12, %v3217_v3  ;;  %v3219_v34 = vmul.f32 %v14112_v35, %v3122_v10  ;;  %v3124_v33 = vpop.f32.mrb[51].mxu0  ;;  %v3447_v3 = vmax.f32 %v14291_v31, %v3446_v18  ;;  %10811 = vmatpush3.bf16.msra.mxu1 %v12385_v56  ;;  %v14428_v18 = vmax.f32 %v3421_v48, %v3422_v58 }
 0x390   : > { %v3294_v19 = vadd.f32 %v14081_v52, %v3218_v36  ;;  %v3220_v2 = vmul.f32 %v14076_v42, %v3124_v33  ;;  %v3442_v36 = vmax.f32 %v3440_v8, %v3441_v0  ;;  %v3454_v59 = vmax.f32 %v14304_v55, %v3453_v11 }
 0x391   : > { %v3357_v54 = vmax.f32 %v3293_v39, 0.0  ;;  %v3295_v13 = vadd.f32 %v14134_v12, %v3219_v34  ;;  %v14430_v34 = vmax.f32 %v3428_v51, %v3429_v38  ;;  %v3448_v0 = vrot.slane %v3447_v3, 2 }
 0x392   : > { %v3296_v47 = vadd.f32 %v14081_v52, %v3220_v2  ;;  %v3358_v4 = vmax.f32 %v3294_v19, 0.0  ;;  %v14438_v2 = vmax.f32 %v3435_v15, %v3436_v5  ;;  %v3460_v38 = vrot.slane %v14323_v25, 4 }
 0x393   : > { %v14423_v10 = vmax.f32 %v14365_v60, %v3357_v54  ;;  %v3359_v61 = vmax.f32 %v3295_v13, 0.0  ;;  %v3443_v54 = vrot.slane %v3442_v36, 1  ;;  %v3467_v13 = vrot.slane %v14344_v1, 4 }
 0x394   : > { %v3360_v46 = vmax.f32 %v3296_v47, 0.0  ;;  %v3128_v39 = vpop.f32.mrb[52].mxu0  ;;  %v3474_v11 = vrot.slane %v14378_v40, 4 }
 0x395   : > { %v14433_v33 = vmax.f32 %v14373_v30, %v3359_v61  ;;  %v3221_v8 = vmul.f32 %v14112_v35, %v3128_v39  ;;  %v3130_v60 = vpop.f32.mrb[53].mxu0  ;;  %v3599_v30 = vld [vmem:[#allocation2 + $0xa8] sm:$0x1]  ;;  %v3656_v61 = vld [vmem:[#allocation2 + $0xb0] sm:$0xf]  ;;  %v3481_v39 = vrot.slane %v14402_v49, 4  ;;  %v3468_v31 = vmax.f32 %v14344_v1, %v3467_v13 }
 0x396   : > { %v3487_v53 = vmax.f32 %v3358_v4, %v3360_v46  ;;  %v3222_v17 = vmul.f32 %v14076_v42, %v3130_v60  ;;  %v3132_v19 = vpop.f32.mrb[54].mxu0  ;;  %v3600_v5 = vsel %vm14089_vm8, 0, %v3599_v30  ;;  %v3449_v4 = vmax.f32 %v3447_v3, %v3448_v0 }
 0x397   : > { %v3297_v48 = vadd.f32 %v14134_v12, %v3221_v8  ;;  %v3223_v51 = vmul.f32 %v14112_v35, %v3132_v19  ;;  %v3134_v58 = vpop.f32.mrb[55].mxu0  ;;  %v3455_v46 = vrot.slane %v3454_v59, 2  ;;  %3601 = vst [vmem:[#allocation2 + $0xa8] sm:$0x1] %v3600_v5 }
 0x398   : > { %v3298_v47 = vadd.f32 %v14081_v52, %v3222_v17  ;;  %v3224_v55 = vmul.f32 %v14076_v42, %v3134_v58  ;;  %v3488_v60 = vrot.slane %v3487_v53, 4  ;;  %v3461_v58 = vmax.f32 %v14323_v25, %v3460_v38 }
 0x399   : > { %v3361_v56 = vmax.f32 %v3297_v48, 0.0  ;;  %v3299_v15 = vadd.f32 %v14134_v12, %v3223_v51  ;;  %v3657_v48 = vsel %vm14101_vm11, 0, %v3656_v61  ;;  %v14457_v51 = vmax.f32 %v3442_v36, %v3443_v54 }
 0x39a   : > { %v3300_v8 = vadd.f32 %v14081_v52, %v3224_v55  ;;  %v3362_v30 = vmax.f32 %v3298_v47, 0.0  ;;  %3658 = vst [vmem:[#allocation2 + $0xb0] sm:$0xf] %v3657_v48  ;;  %v3475_v55 = vmax.f32 %v14378_v40, %v3474_v11  ;;  %v3482_v36 = vmax.f32 %v14402_v49, %v3481_v39  ;;  %v12388_v47 = vld [vmem:[%s17713_s4 + $0xe8] sm:$0xff]  }
 0x39b   : > { %v14453_v17 = vmax.f32 %v14395_v22, %v3361_v56  ;;  %v3363_v19 = vmax.f32 %v3299_v15, 0.0  ;;  %v3450_v15 = vrot.slane %v3449_v4, 1  ;;  %v3456_v1 = vmax.f32 %v3454_v59, %v3455_v46  ;;  %10812 = vmatprep.subr.bf16.mxu1 %v12388_v47 }
 0x39c   : > { %v3364_v3 = vmax.f32 %v3300_v8, 0.0  ;;  %v3138_v0 = vpop.f32.mrb[56].mxu0  ;;  %v3489_v13 = vmax.f32 %v3487_v53, %v3488_v60  ;;  %v3462_v61 = vrot.slane %v3461_v58, 2  ;;  %v3469_v39 = vrot.slane %v3468_v31, 2 }
 0x39d   : > { %v14463_v5 = vmax.f32 %v14398_v23, %v3363_v19  ;;  %v3225_v22 = vmul.f32 %v14112_v35, %v3138_v0  ;;  %v3140_v56 = vpop.f32.mrb[57].mxu0  ;;  %v3476_v48 = vrot.slane %v3475_v55, 2  ;;  %v14476_v0 = vmax.f32 %v3449_v4, %v3450_v15 }
 0x39e   : > { %v3494_v54 = vmax.f32 %v3362_v30, %v3364_v3  ;;  %v3226_v25 = vmul.f32 %v14076_v42, %v3140_v56  ;;  %v3142_v38 = vpop.f32.mrb[58].mxu0  ;;  %v3483_v59 = vrot.slane %v3482_v36, 2  ;;  %v3457_v60 = vrot.slane %v3456_v1, 1 }
 0x39f   : > { %v3301_v40 = vadd.f32 %v14134_v12, %v3225_v22  ;;  %v3227_v23 = vmul.f32 %v14112_v35, %v3142_v38  ;;  %v3144_v11 = vpop.f32.mrb[59].mxu0  ;;  %v3490_v22 = vrot.slane %v3489_v13, 2  ;;  %v3463_v47 = vmax.f32 %v3461_v58, %v3462_v61 }
 0x3a0   : > { %v3495_v8 = vrot.slane %v3494_v54, 4  ;;  %v3302_v19 = vadd.f32 %v14081_v52, %v3226_v25  ;;  %v3228_v49 = vmul.f32 %v14076_v42, %v3144_v11  ;;  %v12389_v25 = vld [vmem:[%s17713_s4 + $0xa8] sm:$0xff]   ;;  %v3470_v4 = vmax.f32 %v3468_v31, %v3469_v39 }
 0x3a1   : > { %v3365_v30 = vmax.f32 %v3301_v40, 0.0  ;;  %v3303_v3 = vadd.f32 %v14134_v12, %v3227_v23  ;;  %v3477_v15 = vmax.f32 %v3475_v55, %v3476_v48  ;;  %10813 = vmatpush3.bf16.msra.mxu1 %v12389_v25  ;;  %v3603_v58 = vsel %vm14089_vm8, 0, %v3602_v28 }
 0x3a2   : > { %v3496_v53 = vmax.f32 %v3494_v54, %v3495_v8  ;;  %v3304_v46 = vadd.f32 %v14081_v52, %v3228_v49  ;;  %v3366_v40 = vmax.f32 %v3302_v19, 0.0  ;;  %v3491_v61 = vmax.f32 %v3489_v13, %v3490_v22  ;;  %3604 = vst [vmem:[#allocation2 + $0xb4] sm:$0x1] %v3603_v58  ;;  %v12392_v58 = vld [vmem:[%s17713_s4 + $0xf0] sm:$0xff]  }
 0x3a3   : > { %v3385_v56 = vmax.f32 %v14423_v10, %v3365_v30  ;;  %v3367_v38 = vmax.f32 %v3303_v3, 0.0  ;;  %v3659_v10 = vld [vmem:[#allocation2 + $0xbc] sm:$0xf]  ;;  %v3484_v30 = vmax.f32 %v3482_v36, %v3483_v59  ;;  %v3464_v59 = vrot.slane %v3463_v47, 1  ;;  %10814 = vmatprep.subr.bf16.mxu1 %v12392_v58 }
 0x3a4   : > { %v3497_v11 = vrot.slane %v3496_v53, 2  ;;  %v3368_v7 = vmax.f32 %v3304_v46, 0.0  ;;  %v3148_v23 = vpop.f32.mrb[60].mxu0  ;;  %v3660_v19 = vsel %vm14101_vm11, 0, %v3659_v10  ;;  %v3471_v46 = vrot.slane %v3470_v4, 1 }
 0x3a5   : > { %v3400_v54 = vmax.f32 %v14433_v33, %v3367_v38  ;;  %v3229_v8 = vmul.f32 %v14112_v35, %v3148_v23  ;;  %v3150_v49 = vpop.f32.mrb[61].mxu0  ;;  %3661 = vst [vmem:[#allocation2 + $0xbc] sm:$0xf] %v3660_v19  ;;  %v3478_v22 = vrot.slane %v3477_v15, 1  ;;  %v3485_v38 = vrot.slane %v3484_v30, 1 }
 0x3a6   : > { %v3501_v3 = vmax.f32 %v3366_v40, %v3368_v7  ;;  %v3230_v24 = vmul.f32 %v14076_v42, %v3150_v49  ;;  %v3152_v63 = vpop.f32.mrb[62].mxu0  ;;  %v3498_v39 = vmax.f32 %v3496_v53, %v3497_v11  ;;  %v14496_v25 = vmax.f32 %v3456_v1, %v3457_v60 }
 0x3a7   : > { %v3305_v31 = vadd.f32 %v14134_v12, %v3229_v8  ;;  %v3231_v55 = vmul.f32 %v14112_v35, %v3152_v63  ;;  %v3154_v33 = vpop.f32.mrb[63].mxu0  ;;  %v3492_v40 = vrot.slane %v3491_v61, 1  ;;  %v14499_v49 = vmax.f32 %v3463_v47, %v3464_v59 }
 0x3a8   : > { %v3502_v48 = vrot.slane %v3501_v3, 4  ;;  %v3306_v7 = vadd.f32 %v14081_v52, %v3230_v24  ;;  %v3232_v36 = vmul.f32 %v14076_v42, %v3154_v33  ;;  %v3499_v24 = vrot.slane %v3498_v39, 1 }
 0x3a9   : > { %v3369_v28 = vmax.f32 %v3305_v31, 0.0  ;;  %v3307_v13 = vadd.f32 %v14134_v12, %v3231_v55  ;;  %v14501_v10 = vmax.f32 %v3470_v4, %v3471_v46  ;;  %v14508_v1 = vmax.f32 %v3484_v30, %v3485_v38 }
 0x3aa   : > { %v3503_v63 = vmax.f32 %v3501_v3, %v3502_v48  ;;  %v3308_v35 = vadd.f32 %v14081_v52, %v3232_v36  ;;  %v3370_v42 = vmax.f32 %v3306_v7, 0.0  ;;  %v14506_v52 = vmax.f32 %v3477_v15, %v3478_v22 }
 0x3ab   : > { %v3386_v53 = vmax.f32 %v14453_v17, %v3369_v28  ;;  %v3371_v11 = vmax.f32 %v3307_v13, 0.0  ;;  %v14523_v15 = vmax.f32 %v3491_v61, %v3492_v40  ;;  %v14525_v30 = vmax.f32 %v3498_v39, %v3499_v24  ;;  %v4087_v24 = vld [vmem:[#allocation2 + $0xc] sm:$0xf] }
 0x3ac   : > { %v3504_v23 = vrot.slane %v3503_v63, 2  ;;  %v3372_v8 = vmax.f32 %v3308_v35, 0.0 }
 0x3ad   : > { %v14503_v12 = vmax.f32 %v3385_v56, %v3386_v53  ;;  %v3401_v3 = vmax.f32 %v14463_v5, %v3371_v11 }
 0x3ae   : > { %v14510_v60 = vmax.f32 %v3503_v63, %v3504_v23  ;;  %v3508_v17 = vmax.f32 %v3370_v42, %v3372_v8 }
 0x3af   : > { %v14515_v47 = vmax.f32 %v3400_v54, %v3401_v3  ;;  %v3515_v56 = vadd.f32 %v14414_v26, %v14503_v12  ;;  %v3517_v5 = vadd.f32 %v14425_v21, %v14503_v12  ;;  %v3519_v4 = vadd.f32 %v14428_v18, %v14503_v12 }
 0x3b0   : > { %v3509_v55 = vrot.slane %v3508_v17, 4  ;;  %v3521_v39 = vadd.f32 %v14430_v34, %v14503_v12 }
 0x3b1   : > { %v3516_v54 = vadd.f32 %v14414_v26, %v14515_v47  ;;  %v10625_v33 = vpack.c.bf16 %v3515_v56, %v3515_v56  ;;  %v3518_v19 = vadd.f32 %v14425_v21, %v14515_v47  ;;  %v10627_v48 = vpack.c.bf16 %v3517_v5, %v3517_v5  ;;  %v4094_v56 = vld [vmem:[#allocation2 + $0x18] sm:$0xf]  ;;  %v12393_v5 = vld [vmem:[%s17713_s4 + $0xb0] sm:$0xff]  }
 0x3b2   : > { %v3510_v7 = vmax.f32 %v3508_v17, %v3509_v55  ;;  %v3520_v36 = vadd.f32 %v14428_v18, %v14515_v47  ;;  %v10629_v61 = vpack.c.bf16 %v3519_v4, %v3519_v4  ;;  %v17880_v55 = vmov 0  ;;  %10815 = vmatpush3.bf16.msra.mxu1 %v12393_v5 }
 0x3b3   : > { %v10626_v59 = vpack.c.bf16 %v3516_v54, %v3516_v54  ;;  %v3767_v46 = vshrl.u32 %v10625_v33, 16  ;;  %v3770_v28 = vshll.u32 %v10625_v33, 16  ;;  %v10628_v13 = vpack.c.bf16 %v3518_v19, %v3518_v19  ;;  %v4091_v54 = vld [vmem:[#allocation2 + $0x14] sm:$0x1] }
 0x3b4   : > { %v3511_v22 = vrot.slane %v3510_v7, 2  ;;  %v3784_v38 = vshrl.u32 %v10627_v48, 16  ;;  %v3787_v26 = vshll.u32 %v10627_v48, 16  ;;  %v14536_v63 = vpack.c.bf16 %v3520_v36, %v3520_v36 }
 0x3b5   : > { %v3769_v35 = vrot.slane %v3767_v46, 7  ;;  %v3775_v21 = vshrl.u32 %v10626_v59, 16  ;;  %v3778_v40 = vshll.u32 %v10626_v59, 16  ;;  %v3792_v53 = vshrl.u32 %v10628_v13, 16 }
 0x3b6   : > { %v3512_v11 = vmax.f32 %v3510_v7, %v3511_v22  ;;  %v3786_v18 = vrot.slane %v3784_v38, 7  ;;  %v3795_v23 = vshll.u32 %v10628_v13, 16  ;;  %v3801_v42 = vshrl.u32 %v10629_v61, 16 }
 0x3b7   : > { %v3772_v8 = vor.u32 %v3770_v28, %v3769_v35  ;;  %v3773_v3 = vrot.slane %v3769_v35, 4  ;;  %v3777_v17 = vrot.slane %v3775_v21, 7  ;;  %v3794_v58 = vrot.slane %v3792_v53, 7  ;;  %v4098_v28 = vld [vmem:[#allocation2 + $0x20] sm:$0x1] }
 0x3b8   : > { %v3513_v4 = vrot.slane %v3512_v11, 1  ;;  %v17881_v55 = vsel %vm14543_vm13, 4294967295, %v17880_v55  ;;  %v3789_v33 = vor.u32 %v3787_v26, %v3786_v18  ;;  %v3790_v19 = vrot.slane %v3786_v18, 4  ;;  %v4101_v53 = vld [vmem:[#allocation2 + $0x24] sm:$0xf] }
 0x3b9   : > { %17882 = vst [vmem:[#allocation31_spill] sm:$0xff] %v17881_v55  ;;  %v3803_v48 = vrot.slane %v3801_v42, 7  ;;  %v3780_v7 = vor.u32 %v3778_v40, %v3777_v17  ;;  %v3782_v36 = vrot.slane %v3777_v17, 4  ;;  %v4088_v59 = vsel %vm14101_vm11, %v3772_v8, %v4087_v24 }
 0x3ba   : > { %v3797_v46 = vor.u32 %v3795_v23, %v3794_v58  ;;  %v3514_v13 = vmax.f32 %v3512_v11, %v3513_v4  ;;  %4089 = vst [vmem:[#allocation2 + $0xc] sm:$0xf] %v4088_v59  ;;  %v3799_v22 = vrot.slane %v3794_v58, 4  ;;  %v4095_v38 = vsel %vm14101_vm11, %v3789_v33, %v4094_v56  ;;  %v4105_v33 = vld [vmem:[#allocation2 + $0x2c] sm:$0x1] }
 0x3bb   : > { %v3804_v35 = vshll.u32 %v10629_v61, 16  ;;  %v3781_v26 = vsel %vm14543_vm13, %v3773_v3, %v3780_v7  ;;  %v4092_v21 = vsel %vm14089_vm8, %v3782_v36, %v4091_v54  ;;  %4096 = vst [vmem:[#allocation2 + $0x18] sm:$0xf] %v4095_v38  ;;  %v14559_v11 = vadd.f32 %v14438_v2, %v14503_v12 }
 0x3bc   : > { %v3798_v40 = vsel %vm14543_vm13, %v3790_v19, %v3797_v46  ;;  %v3545_v24 = vadd.f32 %v3514_v13, %v14503_v12  ;;  %v3546_v18 = vadd.f32 %v3514_v13, %v14515_v47  ;;  %4090 = vst [vmem:[#allocation2 + $0x10] sm:$0xf] %v3781_v26  ;;  %4093 = vst [vmem:[#allocation2 + $0x14] sm:$0x1] %v4092_v21  ;;  %v3807_v42 = vrot.slane %v3803_v48, 4 }
 0x3bd   : > { %4097 = vst [vmem:[#allocation2 + $0x1c] sm:$0xf] %v3798_v40  ;;  %v4099_v61 = vsel %vm14089_vm8, %v3799_v22, %v4098_v28  ;;  %v3806_v23 = vor.u32 %v3804_v35, %v3803_v48  ;;  %v3809_v8 = vshrl.u32 %v14536_v63, 16  ;;  %v3522_v3 = vadd.f32 %v14430_v34, %v14515_v47  ;;  %v4192_v28 = vld [vmem:[#allocation2 + $0xc0] sm:$0xf] }
 0x3be   : > { %4100 = vst [vmem:[#allocation2 + $0x20] sm:$0x1] %v4099_v61  ;;  %v10631_v17 = vpack.c.bf16 %v3521_v39, %v3521_v39  ;;  %v10655_v58 = vpack.c.bf16 %v3545_v24, %v3545_v24  ;;  %v10656_v56 = vpack.c.bf16 %v3546_v18, %v3546_v18  ;;  %v3812_v5 = vshll.u32 %v14536_v63, 16  ;;  %v12396_v63 = vld [vmem:[%s17713_s4 + $0xf8] sm:$0xff]   ;;  %v4196_v40 = vld [vmem:[#allocation2 + $0xc8] sm:$0x1] }
 0x3bf   : > { %v4102_v4 = vsel %vm14101_vm11, %v3806_v23, %v4101_v53  ;;  %v3811_v54 = vrot.slane %v3809_v8, 7  ;;  %v14571_v19 = vpack.c.bf16 %v3522_v3, %v3522_v3  ;;  %v14575_v48 = vadd.f32 %v14438_v2, %v14515_v47  ;;  %10816 = vmatprep.subr.bf16.mxu1 %v12396_v63 }
 0x3c0   : > { %4103 = vst [vmem:[#allocation2 + $0x24] sm:$0xf] %v4102_v4  ;;  %v3818_v7 = vshrl.u32 %v10631_v17, 16  ;;  %v4022_v36 = vshrl.u32 %v10655_v58, 16  ;;  %v4025_v34 = vshll.u32 %v10655_v58, 16  ;;  %v4030_v39 = vshrl.u32 %v10656_v56, 16 }
 0x3c1   : > { %v3821_v59 = vshll.u32 %v10631_v17, 16  ;;  %v4033_v46 = vshll.u32 %v10656_v56, 16  ;;  %v4202_v13 = vld [vmem:[#allocation2 + $0xc] sm:$0xf]  ;;  %v3814_v22 = vor.u32 %v3812_v5, %v3811_v54  ;;  %v3816_v38 = vrot.slane %v3811_v54, 4 }
 0x3c2   : > { %v14580_v35 = vrot.slane %v3818_v7, 7  ;;  %v4024_v26 = vrot.slane %v4022_v36, 7  ;;  %v4032_v21 = vrot.slane %v4030_v39, 7  ;;  %v4278_v2 = vshrl.u32 %v4202_v13, 16  ;;  %v4205_v4 = vld [vmem:[#allocation2 + $0x18] sm:$0xf] }
 0x3c3   : > { %v4281_v53 = vshll.u32 %v4202_v13, 16  ;;  %v4203_v24 = vld [vmem:[#allocation2 + $0x10] sm:$0xf]  ;;  %v4204_v18 = vld [vmem:[#allocation2 + $0x14] sm:$0xf]  ;;  %v3815_v61 = vsel %vm14543_vm13, %v3807_v42, %v3814_v22  ;;  %v4106_v23 = vsel %vm14089_vm8, %v3816_v38, %v4105_v33  ;;  %v3826_v3 = vshrl.u32 %v14571_v19, 16 }
 0x3c4   : > { %v14587_v8 = vor.u32 %v3821_v59, %v14580_v35  ;;  %v4027_v17 = vor.u32 %v4025_v34, %v4024_v26  ;;  %v4028_v58 = vrot.slane %v4024_v26, 4  ;;  %v4035_v56 = vor.u32 %v4033_v46, %v4032_v21  ;;  %v4206_v54 = vld [vmem:[#allocation2 + $0x1c] sm:$0xf]  ;;  %4104 = vst [vmem:[#allocation2 + $0x28] sm:$0xf] %v3815_v61 }
 0x3c5   : > { %v4037_v5 = vrot.slane %v4032_v21, 4  ;;  %4107 = vst [vmem:[#allocation2 + $0x2c] sm:$0x1] %v4106_v23  ;;  %v4280_v7 = vrot.slane %v4278_v2, 4  ;;  %v4283_v36 = vrot.slane %v4281_v53, 5  ;;  %v4287_v39 = vshll.u32 %v4203_v24, 16 }
 0x3c6   : > { %v4291_v42 = vshrl.u32 %v4203_v24, 16  ;;  %v12397_v33 = vld [vmem:[%s17713_s4 + $0xb8] sm:$0xff]   ;;  %v4036_v59 = vsel %vm14543_vm13, %v4028_v58, %v4035_v56  ;;  %v4193_v34 = vsel %vm14101_vm11, %v4027_v17, %v4192_v28  ;;  %v4297_v46 = vshll.u32 %v4204_v18, 16  ;;  %v4207_v21 = vld [vmem:[#allocation2 + $0x20] sm:$0xf] }
 0x3c7   : > { %v4197_v63 = vsel %vm14089_vm8, %v4037_v5, %v4196_v40  ;;  %4194 = vst [vmem:[#allocation2 + $0xc0] sm:$0xf] %v4193_v34  ;;  %4195 = vst [vmem:[#allocation2 + $0xc4] sm:$0xf] %v4036_v59  ;;  %v4284_v22 = vor.u32 %v4283_v36, %v4280_v7  ;;  %v4289_v38 = vrot.slane %v4287_v39, 5  ;;  %v14601_v2 = vpack.c.bf16 %v14559_v11, %v14559_v11 }
 0x3c8   : > { %4198 = vst [vmem:[#allocation2 + $0xc8] sm:$0x1] %v4197_v63  ;;  %v4293_v26 = vrot.slane %v4291_v42, 4  ;;  %10817 = vmatpush3.bf16.msra.mxu1 %v12397_v33  ;;  %v14603_v53 = vcombine.low %v4202_v13, %v4203_v24  ;;  %v4302_v61 = vshrl.u32 %v4205_v4, 16  ;;  %v4305_v28 = vshll.u32 %v4205_v4, 16 }
 0x3c9   : > { %v4311_v23 = vshll.u32 %v4206_v54, 16  ;;  %v4285_v17 = vrot.slane %v4284_v22, 4  ;;  %v4299_v18 = vrot.slane %v4297_v46, 5  ;;  %v4315_v58 = vshrl.u32 %v4206_v54, 16  ;;  %v14605_v56 = vld [vmem:[#allocation2 + $0x24] sm:$0xf] }
 0x3ca   : > { %v4294_v40 = vor.u32 %v4293_v26, %v4289_v38  ;;  %v4304_v5 = vrot.slane %v4302_v61, 4  ;;  %v4307_v7 = vrot.slane %v4305_v28, 5  ;;  %v4321_v39 = vshll.u32 %v4207_v21, 16 }
 0x3cb   : > { %v4313_v36 = vrot.slane %v4311_v23, 5  ;;  %v4290_v11 = vsel %vm12846_vm5, %v4285_v17, %v4289_v38  ;;  %v4317_v33 = vrot.slane %v4315_v58, 4  ;;  %v14609_v13 = vcombine.low %v4205_v4, %v4206_v54  ;;  %v14611_v24 = vld [vmem:[#allocation2 + $0x28] sm:$0xf] }
 0x3cc   : > { %v4295_v42 = vrot.slane %v4294_v40, 4  ;;  %v4308_v59 = vor.u32 %v4307_v7, %v4304_v5  ;;  %v4210_v34 = vld [vmem:[#allocation2 + $0x2c] sm:$0xf]  ;;  %v4326_v63 = vshrl.u32 %v14605_v56, 16  ;;  %v4329_v46 = vshll.u32 %v14605_v56, 16 }
 0x3cd   : > { %v4335_v22 = vshll.u32 %v14611_v24, 16  ;;  %v4318_v21 = vor.u32 %v4317_v33, %v4313_v36  ;;  %v4339_v38 = vshrl.u32 %v14611_v24, 16  ;;  %v4345_v61 = vshll.u32 %v4210_v34, 16  ;;  %v4108_v7 = vld [vmem:[#allocation2 + $0x30] sm:$0xf] }
 0x3ce   : > { %v4300_v26 = vsel %vm12846_vm5, %v4295_v42, %v4299_v18  ;;  %v4309_v4 = vrot.slane %v4308_v59, 4  ;;  %v4328_v54 = vrot.slane %v4326_v63, 4  ;;  %v4331_v23 = vrot.slane %v4329_v46, 5 }
 0x3cf   : > { %v14619_v28 = vcombine.low %v4290_v11, %v4300_v26  ;;  %v4319_v17 = vrot.slane %v4318_v21, 4  ;;  %v4323_v40 = vrot.slane %v4321_v39, 5  ;;  %v4337_v58 = vrot.slane %v4335_v22, 5  ;;  %v12399_v11 = vld [vmem:[%s17713_s4 + $0x140] sm:$0xff]   ;;  %v4112_v22 = vld [vmem:[#allocation2 + $0x38] sm:$0x1] }
 0x3d0   : > { %v4341_v5 = vrot.slane %v4339_v38, 4  ;;  %v4314_v31 = vsel %vm12846_vm5, %v4309_v4, %v4313_v36  ;;  %v4332_v18 = vor.u32 %v4331_v23, %v4328_v54  ;;  %v4347_v42 = vrot.slane %v4345_v61, 5  ;;  %10914 = vmatprep.subr.bf16.mxu1 %v12399_v11  ;;  %v4119_v11 = vld [vmem:[#allocation2 + $0x44] sm:$0x1] }
 0x3d1   : > { %17883 = vst [vmem:[#allocation32_spill] sm:$0xff] %v14619_v28  ;;  %5697 = vmatprep.mubr.bf16.mxu1 %v14619_v28  ;;  %v3824_v33 = vrot.slane %v14580_v35, 4  ;;  %v4324_v39 = vsel %vm12846_vm5, %v4319_v17, %v4323_v40  ;;  %v3828_v34 = vrot.slane %v3826_v3, 7  ;;  %v3829_v63 = vshll.u32 %v14571_v19, 16 }
 0x3d2   : > { %5698 = vmatmul.mubr.bf16.gmra.mrb[4].mxu1 %v14603_v53  ;;  %v4342_v59 = vor.u32 %v4341_v5, %v4337_v58  ;;  %v14634_v36 = vcombine.low %v4314_v31, %v4324_v39  ;;  %v4333_v46 = vrot.slane %v4332_v18, 4  ;;  %v4109_v35 = vsel %vm14101_vm11, %v14587_v8, %v4108_v7 }
 0x3d3   : > { %v10634_v26 = vpack.c.bf16 %v14575_v48, %v14575_v48  ;;  %v3831_v38 = vor.u32 %v3829_v63, %v3828_v34  ;;  %v3833_v61 = vrot.slane %v3828_v34, 4  ;;  %4110 = vst [vmem:[#allocation2 + $0x30] sm:$0xf] %v4109_v35  ;;  %v3835_v3 = vshrl.u32 %v14601_v2, 16 }
 0x3d4   : > { %17884 = vst [vmem:[#allocation33_spill] sm:$0xff] %v14634_v36  ;;  %v4343_v21 = vrot.slane %v4342_v59, 4  ;;  %5705 = vmatprep.mubr.bf16.mxu1 %v14634_v36  ;;  %v4338_v31 = vsel %vm12846_vm5, %v4333_v46, %v4337_v58  ;;  %v3838_v19 = vshll.u32 %v14601_v2, 16  ;;  %v4115_v58 = vld [vmem:[#allocation2 + $0x3c] sm:$0xf]  ;;  %v3525_v2 = vadd.f32 %v14457_v51, %v14503_v12 }
 0x3d5   : > { %v3843_v4 = vshrl.u32 %v10634_v26, 16  ;;  %v3846_v8 = vshll.u32 %v10634_v26, 16  ;;  %v3832_v48 = vsel %vm14543_vm13, %v3824_v33, %v3831_v38  ;;  %v4113_v23 = vsel %vm14089_vm8, %v3833_v61, %v4112_v22  ;;  %v4175_v36 = vld [vmem:[#allocation2 + $0xa4] sm:$0x1] }
 0x3d6   : > { %v4348_v54 = vsel %vm12846_vm5, %v4343_v21, %v4347_v42  ;;  %v3837_v17 = vrot.slane %v3835_v3, 7  ;;  %4111 = vst [vmem:[#allocation2 + $0x34] sm:$0xf] %v3832_v48  ;;  %4114 = vst [vmem:[#allocation2 + $0x38] sm:$0x1] %v4113_v23  ;;  %v3526_v7 = vadd.f32 %v14457_v51, %v14515_v47  ;;  %v3527_v33 = vadd.f32 %v14476_v0, %v14503_v12 }
 0x3d7   : > { %v14652_v40 = vcombine.low %v4338_v31, %v4348_v54  ;;  %v3845_v5 = vrot.slane %v3843_v4, 7  ;;  %v3528_v39 = vadd.f32 %v14476_v0, %v14515_v47  ;;  %v10635_v63 = vpack.c.bf16 %v3525_v2, %v3525_v2 }
 0x3d8   : > { %v3840_v18 = vor.u32 %v3838_v19, %v3837_v17  ;;  %v3841_v42 = vrot.slane %v3837_v17, 4  ;;  %v10636_v46 = vpack.c.bf16 %v3526_v7, %v3526_v7  ;;  %v10637_v22 = vpack.c.bf16 %v3527_v33, %v3527_v33 }
 0x3d9   : > { %17885 = vst [vmem:[#allocation34_spill] sm:$0xff] %v14652_v40  ;;  %v3848_v59 = vor.u32 %v3846_v8, %v3845_v5  ;;  %v3850_v34 = vrot.slane %v3845_v5, 4  ;;  %v14665_v51 = vpack.c.bf16 %v3528_v39, %v3528_v39  ;;  %v3529_v26 = vadd.f32 %v14496_v25, %v14503_v12 }
 0x3da   : > { %5706 = vmatmul.mubr.bf16.gmra.mrb[8].mxu1 %v14609_v13  ;;  %v4116_v35 = vsel %vm14101_vm11, %v3840_v18, %v4115_v58  ;;  %v4211_v21 = vld [vmem:[#allocation2 + $0x30] sm:$0xf]  ;;  %v3852_v61 = vshrl.u32 %v10635_v63, 16  ;;  %v3855_v3 = vshll.u32 %v10635_v63, 16  ;;  %v3860_v4 = vshrl.u32 %v10636_v46, 16 }
 0x3db   : > { %5713 = vmatprep.mubr.bf16.mxu1 %v14652_v40  ;;  %v3849_v0 = vsel %vm14543_vm13, %v3841_v42, %v3848_v59  ;;  %4117 = vst [vmem:[#allocation2 + $0x3c] sm:$0xf] %v4116_v35  ;;  %v4120_v38 = vsel %vm14089_vm8, %v3850_v34, %v4119_v11  ;;  %v4350_v31 = vshrl.u32 %v4211_v21, 16  ;;  %v4353_v19 = vshll.u32 %v4211_v21, 16  ;;  %v4122_v59 = vld [vmem:[#allocation2 + $0x48] sm:$0xf] }
 0x3dc   : > { %4118 = vst [vmem:[#allocation2 + $0x40] sm:$0xf] %v3849_v0  ;;  %4121 = vst [vmem:[#allocation2 + $0x44] sm:$0x1] %v4120_v38  ;;  %v3863_v8 = vshll.u32 %v10636_v46, 16  ;;  %v3854_v54 = vrot.slane %v3852_v61, 7  ;;  %v14677_v5 = vcombine.low %v14605_v56, %v14611_v24  ;;  %v3530_v42 = vadd.f32 %v14496_v25, %v14515_v47 }
 0x3dd   : > { %v3869_v48 = vshrl.u32 %v10637_v22, 16  ;;  %v3872_v23 = vshll.u32 %v10637_v22, 16  ;;  %v3877_v17 = vshrl.u32 %v14665_v51, 16  ;;  %v4212_v58 = vld [vmem:[#allocation2 + $0x34] sm:$0xf]  ;;  %v4352_v7 = vrot.slane %v4350_v31, 4 }
 0x3de   : > { %v4213_v2 = vld [vmem:[#allocation2 + $0x38] sm:$0xf]  ;;  %v4355_v18 = vrot.slane %v4353_v19, 5  ;;  %v4359_v11 = vshll.u32 %v4212_v58, 16  ;;  %v4363_v33 = vshrl.u32 %v4212_v58, 16  ;;  %v14681_v34 = vpack.c.bf16 %v3529_v26, %v3529_v26 }
 0x3df   : > { %v4369_v39 = vshll.u32 %v4213_v2, 16  ;;  %v3857_v46 = vor.u32 %v3855_v3, %v3854_v54  ;;  %v3858_v35 = vrot.slane %v3854_v54, 4  ;;  %v3862_v22 = vrot.slane %v3860_v4, 7 }
 0x3e0   : > { %v4356_v63 = vor.u32 %v4355_v18, %v4352_v7  ;;  %v4361_v0 = vrot.slane %v4359_v11, 5  ;;  %v4365_v56 = vrot.slane %v4363_v33, 4  ;;  %v3871_v38 = vrot.slane %v3869_v48, 7  ;;  %v4126_v33 = vld [vmem:[#allocation2 + $0x50] sm:$0x1] }
 0x3e1   : > { %v4371_v24 = vrot.slane %v4369_v39, 5  ;;  %v3865_v25 = vor.u32 %v3863_v8, %v3862_v22  ;;  %v3867_v19 = vrot.slane %v3862_v22, 4  ;;  %v4123_v2 = vsel %vm14101_vm11, %v3857_v46, %v4122_v59 }
 0x3e2   : > { %5714 = vmatmul.mubr.bf16.gmra.mrb[12].mxu1 %v14677_v5  ;;  %v4357_v61 = vrot.slane %v4356_v63, 4  ;;  %v14684_v31 = vld [vmem:[#allocation2 + $0x3c] sm:$0xf]  ;;  %v4366_v26 = vor.u32 %v4365_v56, %v4361_v0  ;;  %v14688_v44 = vcombine.low %v4211_v21, %v4212_v58  ;;  %4124 = vst [vmem:[#allocation2 + $0x48] sm:$0xf] %v4123_v2  ;;  %v3874_v39 = vor.u32 %v3872_v23, %v3871_v38 }
 0x3e3   : > { %v4215_v3 = vld [vmem:[#allocation2 + $0x40] sm:$0xf]  ;;  %v4216_v54 = vld [vmem:[#allocation2 + $0x44] sm:$0xf]  ;;  %v4374_v4 = vshrl.u32 %v14684_v31, 16  ;;  %v4377_v7 = vshll.u32 %v14684_v31, 16  ;;  %v3866_v56 = vsel %vm14543_vm13, %v3858_v35, %v3865_v25  ;;  %v4127_v23 = vsel %vm14089_vm8, %v3867_v19, %v4126_v33 }
 0x3e4   : > { %v4383_v48 = vshll.u32 %v4215_v3, 16  ;;  %v4387_v18 = vshrl.u32 %v4215_v3, 16  ;;  %v4393_v11 = vshll.u32 %v4216_v54, 16  ;;  %v4362_v8 = vsel %vm12846_vm5, %v4357_v61, %v4361_v0  ;;  %4125 = vst [vmem:[#allocation2 + $0x4c] sm:$0xf] %v3866_v56 }
 0x3e5   : > { %v4367_v63 = vrot.slane %v4366_v26, 4  ;;  %v4376_v59 = vrot.slane %v4374_v4, 4  ;;  %v4379_v46 = vrot.slane %v4377_v7, 5  ;;  %v3875_v54 = vrot.slane %v3871_v38, 4  ;;  %4128 = vst [vmem:[#allocation2 + $0x50] sm:$0x1] %v4127_v23 }
 0x3e6   : > { %v4385_v21 = vrot.slane %v4383_v48, 5  ;;  %v4389_v58 = vrot.slane %v4387_v18, 4  ;;  %v4395_v22 = vrot.slane %v4393_v11, 5  ;;  %v3879_v26 = vrot.slane %v3877_v17, 7  ;;  %v4133_v25 = vld [vmem:[#allocation2 + $0x5c] sm:$0x1] }
 0x3e7   : > { %v4372_v2 = vsel %vm12846_vm5, %v4367_v63, %v4371_v24  ;;  %v4380_v37 = vor.u32 %v4379_v46, %v4376_v59  ;;  %v3880_v4 = vshll.u32 %v14665_v51, 16  ;;  %v4130_v35 = vsel %vm14101_vm11, %v3874_v39, %v4129_v62 }
 0x3e8   : > { %v14700_v0 = vcombine.low %v4362_v8, %v4372_v2  ;;  %v4390_v61 = vor.u32 %v4389_v58, %v4385_v21  ;;  %v10640_v48 = vpack.c.bf16 %v3530_v42, %v3530_v42  ;;  %v3886_v24 = vshrl.u32 %v14681_v34, 16  ;;  %4131 = vst [vmem:[#allocation2 + $0x54] sm:$0xf] %v4130_v35  ;;  %v4136_v58 = vld [vmem:[#allocation2 + $0x60] sm:$0xf] }
 0x3e9   : > { %v4381_v7 = vrot.slane %v4380_v37, 4  ;;  %v4217_v19 = vld [vmem:[#allocation2 + $0x48] sm:$0xf]  ;;  %v3882_v38 = vor.u32 %v3880_v4, %v3879_v26  ;;  %v3884_v11 = vrot.slane %v3879_v26, 4  ;;  %v3889_v33 = vshll.u32 %v14681_v34, 16 }
 0x3ea   : > { %17886 = vst [vmem:[#allocation35_spill] sm:$0xff] %v14700_v0  ;;  %5721 = vmatprep.mubr.bf16.mxu1 %v14700_v0  ;;  %v4391_v18 = vrot.slane %v4390_v61, 4  ;;  %v4398_v51 = vshrl.u32 %v4217_v19, 16  ;;  %v4401_v62 = vshll.u32 %v4217_v19, 16  ;;  %v3888_v17 = vrot.slane %v3886_v24, 7 }
 0x3eb   : > { %5722 = vmatmul.mubr.bf16.gmra.mrb[16].mxu1 %v14688_v44  ;;  %v4386_v37 = vsel %vm12846_vm5, %v4381_v7, %v4385_v21  ;;  %v3883_v39 = vsel %vm14543_vm13, %v3875_v54, %v3882_v38  ;;  %v4134_v8 = vsel %vm14089_vm8, %v3884_v11, %v4133_v25  ;;  %v3894_v63 = vshrl.u32 %v10640_v48, 16  ;;  %v4218_v2 = vld [vmem:[#allocation2 + $0x4c] sm:$0xf] }
 0x3ec   : > { %v4396_v42 = vsel %vm12846_vm5, %v4391_v18, %v4395_v22  ;;  %v4400_v34 = vrot.slane %v4398_v51, 4  ;;  %v4403_v46 = vrot.slane %v4401_v62, 5  ;;  %4132 = vst [vmem:[#allocation2 + $0x58] sm:$0xf] %v3883_v39  ;;  %4135 = vst [vmem:[#allocation2 + $0x5c] sm:$0x1] %v4134_v8  ;;  %v3891_v21 = vor.u32 %v3889_v33, %v3888_v17 }
 0x3ed   : > { %v14717_v59 = vcombine.low %v4386_v37, %v4396_v42  ;;  %v14720_v56 = vcombine.low %v14684_v31, %v4215_v3  ;;  %v3892_v22 = vrot.slane %v3888_v17, 4  ;;  %v3896_v23 = vrot.slane %v3894_v63, 7  ;;  %v4219_v54 = vld [vmem:[#allocation2 + $0x50] sm:$0xf]  ;;  %v4140_v3 = vld [vmem:[#allocation2 + $0x68] sm:$0x1] }
 0x3ee   : > { %v3897_v61 = vshll.u32 %v10640_v48, 16  ;;  %v4404_v26 = vor.u32 %v4403_v46, %v4400_v34  ;;  %v4407_v4 = vshll.u32 %v4218_v2, 16  ;;  %v4411_v7 = vshrl.u32 %v4218_v2, 16 }
 0x3ef   : > { %17887 = vst [vmem:[#allocation36_spill] sm:$0xff] %v14717_v59  ;;  %5729 = vmatprep.mubr.bf16.mxu1 %v14717_v59  ;;  %v3531_v35 = vadd.f32 %v14499_v49, %v14503_v12  ;;  %v4417_v25 = vshll.u32 %v4219_v54, 16  ;;  %v3901_v18 = vrot.slane %v3896_v23, 4  ;;  %v4137_v31 = vsel %vm14101_vm11, %v3891_v21, %v4136_v58  ;;  %v4220_v48 = vld [vmem:[#allocation2 + $0x54] sm:$0xf] }
 0x3f0   : > { %v3899_v24 = vor.u32 %v3897_v61, %v3896_v23  ;;  %v4405_v38 = vrot.slane %v4404_v26, 4  ;;  %v4409_v11 = vrot.slane %v4407_v4, 5  ;;  %v4413_v33 = vrot.slane %v4411_v7, 4  ;;  %4138 = vst [vmem:[#allocation2 + $0x60] sm:$0xf] %v4137_v31 }
 0x3f1   : > { %v3532_v37 = vadd.f32 %v14499_v49, %v14515_v47  ;;  %v14729_v51 = vcombine.low %v4217_v19, %v4218_v2  ;;  %v4422_v62 = vshrl.u32 %v4220_v48, 16  ;;  %v4425_v17 = vshll.u32 %v4220_v48, 16 }
 0x3f2   : > { %v3900_v42 = vsel %vm14543_vm13, %v3892_v22, %v3899_v24  ;;  %v4414_v39 = vor.u32 %v4413_v33, %v4409_v11  ;;  %v4419_v8 = vrot.slane %v4417_v25, 5  ;;  %v4141_v63 = vsel %vm14089_vm8, %v3901_v18, %v4140_v3 }
 0x3f3   : > { %5730 = vmatmul.mubr.bf16.gmra.mrb[20].mxu1 %v14720_v56  ;;  %4139 = vst [vmem:[#allocation2 + $0x64] sm:$0xf] %v3900_v42  ;;  %v10641_v34 = vpack.c.bf16 %v3531_v35, %v3531_v35  ;;  %v4410_v46 = vsel %vm12846_vm5, %v4405_v38, %v4409_v11  ;;  %v4221_v49 = vld [vmem:[#allocation2 + $0x58] sm:$0xf]  ;;  %v4222_v19 = vld [vmem:[#allocation2 + $0x5c] sm:$0xf]  ;;  %v10642_v2 = vpack.c.bf16 %v3532_v37, %v3532_v37 }
 0x3f4   : > { %v4424_v21 = vrot.slane %v4422_v62, 4  ;;  %v4427_v58 = vrot.slane %v4425_v17, 5  ;;  %4142 = vst [vmem:[#allocation2 + $0x68] sm:$0x1] %v4141_v63  ;;  %v4415_v23 = vrot.slane %v4414_v39, 4  ;;  %v4431_v22 = vshll.u32 %v4221_v49, 16 }
 0x3f5   : > { %v4435_v61 = vshrl.u32 %v4221_v49, 16  ;;  %v4441_v54 = vshll.u32 %v4222_v19, 16  ;;  %v14738_v4 = vcombine.low %v4220_v48, %v4221_v49  ;;  %v3903_v7 = vshrl.u32 %v10641_v34, 16 }
 0x3f6   : > { %v4428_v26 = vor.u32 %v4427_v58, %v4424_v21  ;;  %v3533_v35 = vadd.f32 %v14501_v10, %v14503_v12  ;;  %v4420_v25 = vsel %vm12846_vm5, %v4415_v23, %v4419_v8  ;;  %v4433_v24 = vrot.slane %v4431_v22, 5 }
 0x3f7   : > { %17888 = vst [vmem:[#allocation37_spill] sm:$0xff] %v14738_v4  ;;  %v4437_v18 = vrot.slane %v4435_v61, 4  ;;  %v3906_v31 = vshll.u32 %v10641_v34, 16  ;;  %v14744_v3 = vcombine.low %v4410_v46, %v4420_v25  ;;  %v4223_v11 = vld [vmem:[#allocation2 + $0x60] sm:$0xf]  ;;  %v3905_v33 = vrot.slane %v3903_v7, 7 }
 0x3f8   : > { %v4429_v38 = vrot.slane %v4428_v26, 4  ;;  %v3911_v37 = vshrl.u32 %v10642_v2, 16  ;;  %v4443_v17 = vrot.slane %v4441_v54, 5  ;;  %v4446_v48 = vshrl.u32 %v4223_v11, 16  ;;  %v4143_v46 = vld [vmem:[#allocation2 + $0x6c] sm:$0xf] }
 0x3f9   : > { %17889 = vst [vmem:[#allocation38_spill] sm:$0xff] %v14744_v3  ;;  %v4438_v62 = vor.u32 %v4437_v18, %v4433_v24  ;;  %v4449_v42 = vshll.u32 %v4223_v11, 16  ;;  %5737 = vmatprep.mubr.bf16.mxu1 %v14744_v3  ;;  %v3908_v8 = vor.u32 %v3906_v31, %v3905_v33  ;;  %v3914_v34 = vshll.u32 %v10642_v2, 16  ;;  %v4147_v25 = vld [vmem:[#allocation2 + $0x74] sm:$0x1] }
 0x3fa   : > { %v4434_v39 = vsel %vm12846_vm5, %v4429_v38, %v4433_v24  ;;  %v14749_v63 = vld [vmem:[#allocation2 + $0x64] sm:$0xf]  ;;  %v3913_v49 = vrot.slane %v3911_v37, 7  ;;  %v4448_v58 = vrot.slane %v4446_v48, 4  ;;  %v3909_v26 = vrot.slane %v3905_v33, 4 }
 0x3fb   : > { %5738 = vmatmul.mubr.bf16.gmra.mrb[24].mxu1 %v14729_v51  ;;  %v4439_v19 = vrot.slane %v4438_v62, 4  ;;  %v14752_v21 = vld [vmem:[#allocation2 + $0x68] sm:$0xf]  ;;  %v4451_v23 = vrot.slane %v4449_v42, 5  ;;  %v4455_v22 = vshll.u32 %v14749_v63, 16  ;;  %v4459_v61 = vshrl.u32 %v14749_v63, 16 }
 0x3fc   : > { %v4465_v54 = vshll.u32 %v14752_v21, 16  ;;  %v3916_v7 = vor.u32 %v3914_v34, %v3913_v49  ;;  %v3918_v31 = vrot.slane %v3913_v49, 4  ;;  %v14762_v62 = vcombine.low %v4223_v11, %v14749_v63 }
 0x3fd   : > { %v4444_v2 = vsel %vm12846_vm5, %v4439_v19, %v4443_v17  ;;  %v4452_v24 = vor.u32 %v4451_v23, %v4448_v58  ;;  %v4457_v18 = vrot.slane %v4455_v22, 5  ;;  %v4461_v37 = vrot.slane %v4459_v61, 4 }
 0x3fe   : > { %v14759_v38 = vcombine.low %v4434_v39, %v4444_v2  ;;  %17891 = vst [vmem:[#allocation40_spill] sm:$0xff] %v14762_v62  ;;  %v3917_v48 = vsel %vm14543_vm13, %v3909_v26, %v3916_v7  ;;  %v4144_v33 = vsel %vm14101_vm11, %v3908_v8, %v4143_v46  ;;  %v4148_v17 = vsel %vm14089_vm8, %v3918_v31, %v4147_v25 }
 0x3ff   : > { %v4453_v42 = vrot.slane %v4452_v24, 4  ;;  %4146 = vst [vmem:[#allocation2 + $0x70] sm:$0xf] %v3917_v48  ;;  %v3534_v49 = vadd.f32 %v14501_v10, %v14515_v47  ;;  %v4462_v39 = vor.u32 %v4461_v37, %v4457_v18  ;;  %4145 = vst [vmem:[#allocation2 + $0x6c] sm:$0xf] %v4144_v33  ;;  %v10643_v11 = vpack.c.bf16 %v3533_v35, %v3533_v35 }
 0x400   : > { %17890 = vst [vmem:[#allocation39_spill] sm:$0xff] %v14759_v38  ;;  %5745 = vmatprep.mubr.bf16.mxu1 %v14759_v38  ;;  %4149 = vst [vmem:[#allocation2 + $0x74] sm:$0x1] %v4148_v17  ;;  %v3535_v34 = vadd.f32 %v14506_v52, %v14503_v12  ;;  %v3536_v19 = vadd.f32 %v14506_v52, %v14515_v47  ;;  %v4467_v46 = vrot.slane %v4465_v54, 5  ;;  %v4150_v48 = vld [vmem:[#allocation2 + $0x78] sm:$0xf] }
 0x401   : > { %v4458_v8 = vsel %vm12846_vm5, %v4453_v42, %v4457_v18  ;;  %v10644_v58 = vpack.c.bf16 %v3534_v49, %v3534_v49  ;;  %v3537_v10 = vadd.f32 %v14508_v1, %v14503_v12  ;;  %v4463_v23 = vrot.slane %v4462_v39, 4 }
 0x402   : > { %v3920_v22 = vshrl.u32 %v10643_v11, 16  ;;  %v10645_v61 = vpack.c.bf16 %v3535_v34, %v3535_v34  ;;  %v3538_v35 = vadd.f32 %v14508_v1, %v14515_v47  ;;  %v3923_v26 = vshll.u32 %v10643_v11, 16 }
 0x403   : > { %5746 = vmatmul.mubr.bf16.gmra.mrb[28].mxu1 %v14738_v4  ;;  %v3928_v7 = vshrl.u32 %v10644_v58, 16  ;;  %v3931_v25 = vshll.u32 %v10644_v58, 16  ;;  %v10646_v52 = vpack.c.bf16 %v3536_v19, %v3536_v19  ;;  %v4468_v2 = vsel %vm12846_vm5, %v4463_v23, %v4467_v46 }
 0x404   : > { %v3922_v54 = vrot.slane %v3920_v22, 7  ;;  %v3937_v24 = vshrl.u32 %v10645_v61, 16  ;;  %v14786_v18 = vpack.c.bf16 %v3537_v10, %v3537_v10  ;;  %v14788_v31 = vcombine.low %v4458_v8, %v4468_v2 }
 0x405   : > { %v3930_v37 = vrot.slane %v3928_v7, 7  ;;  %v3940_v42 = vshll.u32 %v10645_v61, 16  ;;  %v3945_v33 = vshrl.u32 %v10646_v52, 16  ;;  %v3948_v11 = vshll.u32 %v10646_v52, 16 }
 0x406   : > { %17892 = vst [vmem:[#allocation41_spill] sm:$0xff] %v14788_v31  ;;  %v14790_v1 = vld [vmem:[#allocation2 + $0x70] sm:$0xf]  ;;  %v3925_v17 = vor.u32 %v3923_v26, %v3922_v54  ;;  %v3926_v49 = vrot.slane %v3922_v54, 4  ;;  %v3939_v39 = vrot.slane %v3937_v24, 7  ;;  %5753 = vmatprep.mubr.bf16.mxu1 %v14788_v31  ;;  %v10648_v10 = vpack.c.bf16 %v3538_v35, %v3538_v35 }
 0x407   : > { %v14793_v34 = vld [vmem:[#allocation2 + $0x6c] sm:$0xf]  ;;  %v14795_v19 = vld [vmem:[#allocation2 + $0x74] sm:$0xf]  ;;  %v4479_v46 = vshll.u32 %v14790_v1, 16  ;;  %v4483_v8 = vshrl.u32 %v14790_v1, 16  ;;  %v3933_v58 = vor.u32 %v3931_v25, %v3930_v37  ;;  %v3539_v7 = vadd.f32 %v14523_v15, %v14503_v12 }
 0x408   : > { %v4470_v23 = vshrl.u32 %v14793_v34, 16  ;;  %v4473_v22 = vshll.u32 %v14793_v34, 16  ;;  %v4489_v61 = vshll.u32 %v14795_v19, 16  ;;  %v4154_v26 = vld [vmem:[#allocation2 + $0x80] sm:$0x1]  ;;  %v3935_v24 = vrot.slane %v3930_v37, 4 }
 0x409   : > { %v4481_v52 = vrot.slane %v4479_v46, 5  ;;  %v4485_v2 = vrot.slane %v4483_v8, 4  ;;  %v3934_v54 = vsel %vm14543_vm13, %v3926_v49, %v3933_v58  ;;  %v4151_v35 = vsel %vm14101_vm11, %v3925_v17, %v4150_v48  ;;  %v4161_v17 = vld [vmem:[#allocation2 + $0x8c] sm:$0x1] }
 0x40a   : > { %v4472_v57 = vrot.slane %v4470_v23, 4  ;;  %v4475_v6 = vrot.slane %v4473_v22, 5  ;;  %v4491_v25 = vrot.slane %v4489_v61, 5  ;;  %4153 = vst [vmem:[#allocation2 + $0x7c] sm:$0xf] %v3934_v54  ;;  %v4155_v46 = vsel %vm14089_vm8, %v3935_v24, %v4154_v26 }
 0x40b   : > { %5754 = vmatmul.mubr.bf16.gmra.mrb[32].mxu1 %v14762_v62  ;;  %v4486_v50 = vor.u32 %v4485_v2, %v4481_v52  ;;  %4152 = vst [vmem:[#allocation2 + $0x78] sm:$0xf] %v4151_v35  ;;  %v3942_v8 = vor.u32 %v3940_v42, %v3939_v39  ;;  %v3943_v45 = vrot.slane %v3939_v39, 4  ;;  %4156 = vst [vmem:[#allocation2 + $0x80] sm:$0x1] %v4155_v46  ;;  %v3947_v37 = vrot.slane %v3945_v33, 7 }
 0x40c   : > { %v4476_v14 = vor.u32 %v4475_v6, %v4472_v57  ;;  %v3954_v49 = vshrl.u32 %v14786_v18, 16  ;;  %v3957_v58 = vshll.u32 %v14786_v18, 16  ;;  %v3962_v22 = vshrl.u32 %v10648_v10, 16  ;;  %v4164_v33 = vld [vmem:[#allocation2 + $0x90] sm:$0xf] }
 0x40d   : > { %v4487_v23 = vrot.slane %v4486_v50, 4  ;;  %v4158_v48 = vsel %vm14101_vm11, %v3942_v8, %v4157_v43  ;;  %v3965_v61 = vshll.u32 %v10648_v10, 16  ;;  %v3950_v54 = vor.u32 %v3948_v11, %v3947_v37 }
 0x40e   : > { %v4477_v2 = vrot.slane %v4476_v14, 4  ;;  %v3952_v35 = vrot.slane %v3947_v37, 4  ;;  %4159 = vst [vmem:[#allocation2 + $0x84] sm:$0xf] %v4158_v48  ;;  %v3956_v42 = vrot.slane %v3954_v49, 7  ;;  %v3964_v57 = vrot.slane %v3962_v22, 7 }
 0x40f   : > { %v4492_v6 = vsel %vm12846_vm5, %v4487_v23, %v4491_v25  ;;  %v3540_v18 = vadd.f32 %v14523_v15, %v14515_v47  ;;  %v14819_v50 = vpack.c.bf16 %v3539_v7, %v3539_v7  ;;  %v3951_v14 = vsel %vm14543_vm13, %v3943_v45, %v3950_v54  ;;  %v4168_v25 = vld [vmem:[#allocation2 + $0x98] sm:$0x1] }
 0x410   : > { %v4482_v43 = vsel %vm12846_vm5, %v4477_v2, %v4481_v52  ;;  %v4162_v39 = vsel %vm14089_vm8, %v3952_v35, %v4161_v17  ;;  %v3959_v11 = vor.u32 %v3957_v58, %v3956_v42  ;;  %4160 = vst [vmem:[#allocation2 + $0x88] sm:$0xf] %v3951_v14  ;;  %v3960_v24 = vrot.slane %v3956_v42, 4 }
 0x411   : > { %v14827_v10 = vcombine.low %v4482_v43, %v4492_v6  ;;  %v14829_v26 = vld [vmem:[#allocation2 + $0x7c] sm:$0xf]  ;;  %4163 = vst [vmem:[#allocation2 + $0x8c] sm:$0x1] %v4162_v39  ;;  %v3967_v15 = vor.u32 %v3965_v61, %v3964_v57  ;;  %v3969_v7 = vrot.slane %v3964_v57, 4  ;;  %v14833_v52 = vcombine.low %v14793_v34, %v14790_v1 }
 0x412   : > { %v14835_v46 = vld [vmem:[#allocation2 + $0x78] sm:$0xf]  ;;  %v4503_v45 = vshll.u32 %v14829_v26, 16  ;;  %v4507_v8 = vshrl.u32 %v14829_v26, 16  ;;  %v4165_v37 = vsel %vm14101_vm11, %v3959_v11, %v4164_v33  ;;  %v14842_v49 = vld [vmem:[#allocation2 + $0x80] sm:$0xf]  ;;  %v14848_v17 = vpack.c.bf16 %v3540_v18, %v3540_v18 }
 0x413   : > { %17893 = vst [vmem:[#allocation42_spill] sm:$0xff] %v14827_v10  ;;  %17894 = vst [vmem:[#allocation43_spill] sm:$0xff] %v14833_v52  ;;  %5761 = vmatprep.mubr.bf16.mxu1 %v14827_v10  ;;  %v4494_v58 = vshrl.u32 %v14835_v46, 16  ;;  %v4497_v23 = vshll.u32 %v14835_v46, 16  ;;  %v3968_v48 = vsel %vm14543_vm13, %v3960_v24, %v3967_v15  ;;  %v4513_v2 = vshll.u32 %v14842_v49, 16 }
 0x414   : > { %4166 = vst [vmem:[#allocation2 + $0x90] sm:$0xf] %v4165_v37  ;;  %5762 = vmatmul.mubr.bf16.gmra.mrb[36].mxu1 %v14833_v52  ;;  %v4505_v22 = vrot.slane %v4503_v45, 5  ;;  %v4509_v61 = vrot.slane %v4507_v8, 4  ;;  %4167 = vst [vmem:[#allocation2 + $0x94] sm:$0xf] %v3968_v48  ;;  %v4169_v54 = vsel %vm14089_vm8, %v3969_v7, %v4168_v25 }
 0x415   : > { %v4496_v35 = vrot.slane %v4494_v58, 4  ;;  %v4499_v42 = vrot.slane %v4497_v23, 5  ;;  %v14854_v6 = vld [vmem:[#allocation2 + $0x84] sm:$0xf]  ;;  %4170 = vst [vmem:[#allocation2 + $0x98] sm:$0x1] %v4169_v54 }
 0x416   : > { %v3971_v57 = vshrl.u32 %v14819_v50, 16  ;;  %v3974_v33 = vshll.u32 %v14819_v50, 16  ;;  %v4510_v18 = vor.u32 %v4509_v61, %v4505_v22  ;;  %v4515_v43 = vrot.slane %v4513_v2, 5 }
 0x417   : > { %v4518_v14 = vshrl.u32 %v14854_v6, 16  ;;  %v4521_v39 = vshll.u32 %v14854_v6, 16  ;;  %v4500_v11 = vor.u32 %v4499_v42, %v4496_v35  ;;  %v3979_v15 = vshrl.u32 %v14848_v17, 16  ;;  %v14873_v37 = vld [vmem:[#allocation2 + $0x88] sm:$0xf] }
 0x418   : > { %v14860_v24 = vrot.slane %v3971_v57, 7  ;;  %v3982_v7 = vshll.u32 %v14848_v17, 16  ;;  %v17895_v25 = vrot.slane %v14510_v60, 1  ;;  %v4511_v8 = vrot.slane %v4510_v18, 4  ;;  %v14875_v58 = vld [vmem:[#allocation2 + $0x8c] sm:$0xf] }
 0x419   : > { %v14871_v50 = vcombine.low %v14835_v46, %v14829_v26  ;;  %v4520_v23 = vrot.slane %v4518_v14, 4  ;;  %v4501_v48 = vrot.slane %v4500_v11, 4  ;;  %v4523_v61 = vrot.slane %v4521_v39, 5 }
 0x41a   : > { %v14867_v45 = vmax.f32 %v14510_v60, %v17895_v25  ;;  %v4527_v2 = vshll.u32 %v14873_v37, 16  ;;  %v4531_v17 = vshrl.u32 %v14873_v37, 16  ;;  %v4516_v60 = vsel %vm12846_vm5, %v4511_v8, %v4515_v43 }
 0x41b   : > { %17896 = vst [vmem:[#allocation44_spill] sm:$0xff] %v14871_v50  ;;  %v4537_v54 = vshll.u32 %v14875_v58, 16  ;;  %v14882_v35 = vld [vmem:[#allocation2 + $0x90] sm:$0xf]  ;;  %v3541_v42 = vadd.f32 %v14525_v30, %v14503_v12  ;;  %v3542_v57 = vadd.f32 %v14525_v30, %v14515_v47  ;;  %v4506_v18 = vsel %vm12846_vm5, %v4501_v48, %v4505_v22  ;;  %v14890_v25 = vld [vmem:[#allocation2 + $0x94] sm:$0xf] }
 0x41c   : > { %v4524_v14 = vor.u32 %v4523_v61, %v4520_v23  ;;  %v4529_v39 = vrot.slane %v4527_v2, 5  ;;  %v4533_v11 = vrot.slane %v4531_v17, 4  ;;  %v14892_v10 = vcombine.low %v4506_v18, %v4516_v60  ;;  %v14894_v43 = vld [vmem:[#allocation2 + $0x98] sm:$0xf]  ;;  %v4171_v17 = vld [vmem:[#allocation2 + $0x9c] sm:$0xf] }
 0x41d   : > { %v4542_v8 = vshrl.u32 %v14882_v35, 16  ;;  %v4545_v31 = vshll.u32 %v14882_v35, 16  ;;  %v3976_v38 = vor.u32 %v3974_v33, %v14860_v24  ;;  %v4551_v59 = vshll.u32 %v14890_v25, 16 }
 0x41e   : > { %17897 = vst [vmem:[#allocation45_spill] sm:$0xff] %v14892_v10  ;;  %v4525_v3 = vrot.slane %v4524_v14, 4  ;;  %v4534_v30 = vor.u32 %v4533_v11, %v4529_v39  ;;  %v4555_v22 = vshrl.u32 %v14890_v25, 16  ;;  %5769 = vmatprep.mubr.bf16.mxu1 %v14892_v10  ;;  %v4539_v23 = vrot.slane %v4537_v54, 5 }
 0x41f   : > { %v14904_v48 = vcombine.low %v14854_v6, %v14873_v37  ;;  %v4544_v61 = vrot.slane %v4542_v8, 4  ;;  %v4547_v2 = vrot.slane %v4545_v31, 5  ;;  %5770 = vmatmul.mubr.bf16.gmra.mrb[40].mxu1 %v14871_v50  ;;  %v4553_v33 = vrot.slane %v4551_v59, 5 }
 0x420   : > { %v4535_v60 = vrot.slane %v4534_v30, 4  ;;  %v4557_v18 = vrot.slane %v4555_v22, 4  ;;  %v4561_v14 = vshll.u32 %v14894_v43, 16  ;;  %v4530_v11 = vsel %vm12846_vm5, %v4525_v3, %v4529_v39  ;;  %v10706_v3 = vpop.f32.mrb[0].mxu1 }
 0x421   : > { %17898 = vst [vmem:[#allocation46_spill] sm:$0xff] %v14904_v48  ;;  %v4548_v0 = vor.u32 %v4547_v2, %v4544_v61  ;;  %v3977_v54 = vrot.slane %v14860_v24, 4  ;;  %v3981_v10 = vrot.slane %v3979_v15, 7  ;;  %v4172_v31 = vsel %vm14101_vm11, %v3976_v38, %v4171_v17  ;;  %v10707_v2 = vpop.f32.mrb[1].mxu1 }
 0x422   : > { %v4540_v40 = vsel %vm12846_vm5, %v4535_v60, %v4539_v23  ;;  %v4558_v8 = vor.u32 %v4557_v18, %v4553_v33  ;;  %v10651_v30 = vpack.c.bf16 %v3541_v42, %v3541_v42  ;;  %4173 = vst [vmem:[#allocation2 + $0x9c] sm:$0xf] %v4172_v31  ;;  %v4563_v61 = vrot.slane %v4561_v14, 5 }
 0x423   : > { %v14915_v59 = vcombine.low %v4530_v11, %v4540_v40  ;;  %v4549_v22 = vrot.slane %v4548_v0, 4  ;;  %v3984_v28 = vor.u32 %v3982_v7, %v3981_v10  ;;  %v3986_v50 = vrot.slane %v3981_v10, 4  ;;  %v14924_v10 = vpop.f32.mrb[2].mxu1 }
 0x424   : > { %v4559_v39 = vrot.slane %v4558_v8, 4  ;;  %v10652_v24 = vpack.c.bf16 %v3542_v57, %v3542_v57  ;;  %v3988_v15 = vshrl.u32 %v10651_v30, 16  ;;  %v3991_v40 = vshll.u32 %v10651_v30, 16 }
 0x425   : > { %5777 = vmatprep.mubr.bf16.mxu1 %v14915_v59  ;;  %v3985_v23 = vsel %vm14543_vm13, %v3977_v54, %v3984_v28  ;;  %v4176_v38 = vsel %vm14089_vm8, %v3986_v50, %v4175_v36  ;;  %v3543_v0 = vadd.f32 %v14867_v45, %v14503_v12  ;;  %v4554_v7 = vsel %vm12846_vm5, %v4549_v22, %v4553_v33  ;;  %v14930_v28 = vpop.f32.mrb[3].mxu1  ;;  %v4178_v36 = vld [vmem:[#allocation2 + $0xa8] sm:$0xf] }
 0x426   : > { %v4564_v42 = vsel %vm12846_vm5, %v4559_v39, %v4563_v61  ;;  %4174 = vst [vmem:[#allocation2 + $0xa0] sm:$0xf] %v3985_v23  ;;  %4177 = vst [vmem:[#allocation2 + $0xa4] sm:$0x1] %v4176_v38  ;;  %v3990_v57 = vrot.slane %v3988_v15, 7  ;;  %v3996_v17 = vshrl.u32 %v10652_v24, 16  ;;  %v3544_v12 = vadd.f32 %v14867_v45, %v14515_v47 }
 0x427   : > { %v14932_v60 = vcombine.low %v4554_v7, %v4564_v42  ;;  %v10653_v50 = vpack.c.bf16 %v3543_v0, %v3543_v0  ;;  %v17899_v18 = vrot.slane %v14145_v9, 5  ;;  %v17900_v33 = vrot.slane %v14149_v16, 9  ;;  %5778 = vmatmul.mubr.bf16.gmra.mrb[44].mxu1 %v14904_v48  ;;  %v4182_v45 = vld [vmem:[#allocation2 + $0xb0] sm:$0x1]  ;;  %v4185_v42 = vld [vmem:[#allocation2 + $0xb4] sm:$0xf] }
 0x428   : > { %v3993_v11 = vor.u32 %v3991_v40, %v3990_v57  ;;  %v3998_v54 = vrot.slane %v3996_v17, 7  ;;  %v3999_v8 = vshll.u32 %v10652_v24, 16  ;;  %v3994_v47 = vrot.slane %v3990_v57, 4 }
 0x429   : > { %v14942_v14 = vsel %vm12835_vm4, %v17900_v33, %v17899_v18  ;;  %5785 = vmatprep.mubr.bf16.mxu1 %v14932_v60  ;;  %v10654_v30 = vpack.c.bf16 %v3544_v12, %v3544_v12  ;;  %v4005_v9 = vshrl.u32 %v10653_v50, 16  ;;  %v14948_v22 = vld [vmem:[#allocation2 + $0x9c] sm:$0xf]  ;;  %v4008_v15 = vshll.u32 %v10653_v50, 16 }
 0x42a   : > { %v4001_v16 = vor.u32 %v3999_v8, %v3998_v54  ;;  %v4003_v39 = vrot.slane %v3998_v54, 4  ;;  %v4179_v61 = vsel %vm14101_vm11, %v3993_v11, %v4178_v36  ;;  %v4566_v23 = vshrl.u32 %v14948_v22, 16 }
 0x42b   : > { %v4569_v24 = vshll.u32 %v14948_v22, 16  ;;  %4180 = vst [vmem:[#allocation2 + $0xa8] sm:$0xf] %v4179_v61  ;;  %v4007_v38 = vrot.slane %v4005_v9, 7  ;;  %v4013_v40 = vshrl.u32 %v10654_v30, 16  ;;  %v14962_v18 = vadd.f32 %v10707_v2, %v10706_v3 }
 0x42c   : > { %v4002_v0 = vsel %vm14543_vm13, %v3994_v47, %v4001_v16  ;;  %v4183_v7 = vsel %vm14089_vm8, %v4003_v39, %v4182_v45  ;;  %v4568_v36 = vrot.slane %v4566_v23, 4  ;;  %v14966_v33 = vcombine.low %v14882_v35, %v14890_v25  ;;  %v4189_v23 = vld [vmem:[#allocation2 + $0xbc] sm:$0x1] }
 0x42d   : > { %v14958_v57 = vld [vmem:[#allocation2 + $0xa0] sm:$0xf]  ;;  %v14960_v17 = vld [vmem:[#allocation2 + $0xa4] sm:$0xf]  ;;  %v4571_v12 = vrot.slane %v4569_v24, 5  ;;  %v4010_v50 = vor.u32 %v4008_v15, %v4007_v38  ;;  %v4016_v8 = vshll.u32 %v10654_v30, 16 }
 0x42e   : > { %4181 = vst [vmem:[#allocation2 + $0xac] sm:$0xf] %v4002_v0  ;;  %4184 = vst [vmem:[#allocation2 + $0xb0] sm:$0x1] %v4183_v7  ;;  %v4575_v11 = vshll.u32 %v14958_v57, 16  ;;  %v4579_v54 = vshrl.u32 %v14958_v57, 16 }
 0x42f   : > { %17901 = vst [vmem:[#allocation47_spill] sm:$0xff] %v14966_v33  ;;  %v4572_v47 = vor.u32 %v4571_v12, %v4568_v36  ;;  %v4011_v45 = vrot.slane %v4007_v38, 4  ;;  %v4015_v9 = vrot.slane %v4013_v40, 7  ;;  %v4186_v16 = vsel %vm14101_vm11, %v4010_v50, %v4185_v42  ;;  %5786 = vmatmul.mubr.bf16.gmra.mrb[48].mxu1 %v14966_v33 }
 0x430   : > { %v4577_v39 = vrot.slane %v4575_v11, 5  ;;  %v4581_v3 = vrot.slane %v4579_v54, 4  ;;  %v4585_v2 = vshll.u32 %v14960_v17, 16  ;;  %4187 = vst [vmem:[#allocation2 + $0xb4] sm:$0xf] %v4186_v16 }
 0x431   : > { %v4018_v61 = vor.u32 %v4016_v8, %v4015_v9  ;;  %v4020_v15 = vrot.slane %v4015_v9, 4  ;;  %v4573_v24 = vrot.slane %v4572_v47, 4 }
 0x432   : > { %v4582_v0 = vor.u32 %v4581_v3, %v4577_v39  ;;  %v14974_v7 = vld [vmem:[#allocation2 + $0xa8] sm:$0xf]  ;;  %v4587_v36 = vrot.slane %v4585_v2, 5 }
 0x433   : > { %v4590_v30 = vshrl.u32 %v14974_v7, 16  ;;  %v4593_v38 = vshll.u32 %v14974_v7, 16  ;;  %v4019_v40 = vsel %vm14543_vm13, %v4011_v45, %v4018_v61  ;;  %v4190_v11 = vsel %vm14089_vm8, %v4020_v15, %v4189_v23 }
 0x434   : > { %v4583_v42 = vrot.slane %v4582_v0, 4  ;;  %4188 = vst [vmem:[#allocation2 + $0xb8] sm:$0xf] %v4019_v40  ;;  %4191 = vst [vmem:[#allocation2 + $0xbc] sm:$0x1] %v4190_v11  ;;  %v4578_v45 = vsel %vm12846_vm5, %v4573_v24, %v4577_v39 }
 0x435   : > { %v14980_v12 = vld [vmem:[#allocation2 + $0xac] sm:$0xf]  ;;  %v14982_v50 = vld [vmem:[#allocation2 + $0xb0] sm:$0xf]  ;;  %v4592_v54 = vrot.slane %v4590_v30, 4  ;;  %v4595_v8 = vrot.slane %v4593_v38, 5  ;;  %v14999_v30 = vcombine.low %v14948_v22, %v14958_v57 }
 0x436   : > { %v4599_v47 = vshll.u32 %v14980_v12, 16  ;;  %v4603_v9 = vshrl.u32 %v14980_v12, 16  ;;  %v4588_v16 = vsel %vm12846_vm5, %v4583_v42, %v4587_v36  ;;  %v4609_v3 = vshll.u32 %v14982_v50, 16 }
 0x437   : > { %v14993_v2 = vcombine.low %v4578_v45, %v4588_v16  ;;  %v4596_v61 = vor.u32 %v4595_v8, %v4592_v54  ;;  %v14995_v23 = vld [vmem:[#allocation2 + $0xb4] sm:$0xf]  ;;  %17902 = vst [vmem:[#allocation48_spill] sm:$0xff] %v14999_v30 }
 0x438   : > { %v4601_v0 = vrot.slane %v4599_v47, 5  ;;  %v4605_v15 = vrot.slane %v4603_v9, 4  ;;  %v4614_v38 = vshrl.u32 %v14995_v23, 16  ;;  %v4617_v39 = vshll.u32 %v14995_v23, 16 }
 0x439   : > { %5793 = vmatprep.mubr.bf16.mxu1 %v14993_v2  ;;  %v4597_v24 = vrot.slane %v4596_v61, 4  ;;  %v4611_v54 = vrot.slane %v4609_v3, 5 }
 0x43a   : > { %v4606_v40 = vor.u32 %v4605_v15, %v4601_v0  ;;  %5794 = vmatmul.mubr.bf16.gmra.mrb[52].mxu1 %v14999_v30  ;;  %v4616_v42 = vrot.slane %v4614_v38, 4  ;;  %v4619_v36 = vrot.slane %v4617_v39, 5 }
 0x43b   : > { %v15005_v8 = vld [vmem:[#allocation2 + $0xb8] sm:$0xf]  ;;  %v15007_v47 = vld [vmem:[#allocation2 + $0xbc] sm:$0xf]  ;;  %v4602_v31 = vsel %vm12846_vm5, %v4597_v24, %v4601_v0 }
 0x43c   : > { %v4607_v11 = vrot.slane %v4606_v40, 4  ;;  %v4620_v9 = vor.u32 %v4619_v36, %v4616_v42  ;;  %v4623_v45 = vshll.u32 %v15005_v8, 16  ;;  %v4627_v16 = vshrl.u32 %v15005_v8, 16 }
 0x43d   : > { %v4633_v15 = vshll.u32 %v15007_v47, 16  ;;  %v15021_v42 = vcombine.low %v14974_v7, %v14980_v12 }
 0x43e   : > { %v4612_v61 = vsel %vm12846_vm5, %v4607_v11, %v4611_v54  ;;  %v4621_v3 = vrot.slane %v4620_v9, 4  ;;  %v4625_v39 = vrot.slane %v4623_v45, 5  ;;  %v4629_v40 = vrot.slane %v4627_v16, 4  ;;  %v12558_v54 = vld [vmem:[#allocation2 + $0x10] sm:$0xf] }
 0x43f   : > { %v15016_v38 = vcombine.low %v4602_v31, %v4612_v61  ;;  %17903 = vst [vmem:[#allocation49_spill] sm:$0xff] %v15021_v42  ;;  %v4635_v11 = vrot.slane %v4633_v15, 5  ;;  %v4742_v31 = vrot.slane %v12558_v54, 5  ;;  %v12559_v16 = vld [vmem:[#allocation2 + $0xc] sm:$0xf]  ;;  %v4798_v15 = vrot.slane %v14790_v1, 5 }
 0x440   : > { %v4630_v36 = vor.u32 %v4629_v40, %v4625_v39  ;;  %v4626_v0 = vsel %vm12846_vm5, %v4621_v3, %v4625_v39  ;;  %v10287_v61 = vrot.slane %v12559_v16, 9  ;;  %v15033_v40 = vcombine.low %v14995_v23, %v15005_v8  ;;  %v15042_v54 = vld [vmem:[#allocation2 + $0x1c] sm:$0xf] }
 0x441   : > { %5801 = vmatprep.mubr.bf16.mxu1 %v15016_v38  ;;  %v4744_v55 = vrot.slane %v4742_v31, 4  ;;  %v10295_v3 = vrot.slane %v14793_v34, 9  ;;  %v4800_v16 = vrot.slane %v4798_v15, 4  ;;  %v4801_v1 = vrot.slane %v14795_v19, 5 }
 0x442   : > { %5802 = vmatmul.mubr.bf16.gmra.mrb[56].mxu1 %v15021_v42  ;;  %v4631_v24 = vrot.slane %v4630_v36, 4  ;;  %17904 = vst [vmem:[#allocation50_spill] sm:$0xff] %v15033_v40  ;;  %v4743_v39 = vsel %vm12835_vm4, %v10287_v61, %v4742_v31  ;;  %v12560_v36 = vld [vmem:[#allocation2 + $0x14] sm:$0xf]  ;;  %v4808_v61 = vrot.slane %v14842_v49, 5  ;;  %v10297_v19 = vrot.slane %v14854_v6, 9 }
 0x443   : > { %v4799_v34 = vsel %vm12835_vm4, %v10295_v3, %v4798_v15  ;;  %v15058_v3 = vadd.f32 %v14930_v28, %v14924_v10  ;;  %v10298_v49 = vrot.slane %v14882_v35, 9  ;;  %v4822_v28 = vrot.slane %v14894_v43, 5 }
 0x444   : > { %v4636_v9 = vsel %vm12846_vm5, %v4631_v24, %v4635_v11  ;;  %v4745_v24 = vrot.slane %v12560_v36, 5  ;;  %v4805_v11 = vrot.slane %v14829_v26, 5  ;;  %v4802_v36 = vsel %vm12835_vm4, %v4800_v16, %v4801_v1  ;;  %v15080_v16 = vld [vmem:[#allocation2 + $0xc0] sm:$0xf]  ;;  %v12401_v1 = vld [vmem:[%s17713_s4 + $0x148] sm:$0xff]  }
 0x445   : > { %v15028_v45 = vcombine.low %v4626_v0, %v4636_v9  ;;  %v10296_v0 = vrot.slane %v14835_v46, 9  ;;  %v4749_v9 = vrot.slane %v15042_v54, 5  ;;  %v15062_v15 = vcombine.low %v4799_v34, %v4802_v36  ;;  %v15095_v36 = vld [vmem:[#allocation2 + $0xc4] sm:$0xf] }
 0x446   : > { %v4746_v31 = vsel %vm12835_vm4, %v4744_v55, %v4745_v24  ;;  %v4807_v46 = vrot.slane %v4805_v11, 4  ;;  %v4815_v24 = vrot.slane %v14875_v58, 5  ;;  %v10299_v34 = vrot.slane %v14948_v22, 9 }
 0x447   : > { %5809 = vmatprep.mubr.bf16.mxu1 %v15028_v45  ;;  %v4806_v26 = vsel %vm12835_vm4, %v10296_v0, %v4805_v11  ;;  %17905 = vst [vmem:[#allocation51_spill] sm:$0xff] %v15062_v15  ;;  %v12400_v0 = vld [vmem:[%s17713_s4 + $0x100] sm:$0xff]   ;;  %v4826_v58 = vrot.slane %v14958_v57, 5  ;;  %v4829_v35 = vrot.slane %v14960_v17, 5  ;;  %v10300_v43 = vrot.slane %v14974_v7, 9 }
 0x448   : > { %v4809_v55 = vsel %vm12835_vm4, %v4807_v46, %v4808_v61  ;;  %v4833_v61 = vrot.slane %v14980_v12, 5  ;;  %v4638_v7 = vshrl.u32 %v15080_v16, 16  ;;  %v12402_v12 = vld [vmem:[%s17713_s4 + $0x108] sm:$0xff]  }
 0x449   : > { %v15071_v11 = vcombine.low %v4806_v26, %v4809_v55  ;;  %v4827_v57 = vsel %vm12835_vm4, %v10299_v34, %v4826_v58  ;;  %v4828_v17 = vrot.slane %v4826_v58, 4  ;;  %v4836_v55 = vrot.slane %v14982_v50, 5 }
 0x44a   : > { %5810 = vmatmul.mubr.bf16.gmra.mrb[60].mxu1 %v15033_v40  ;;  %v4835_v50 = vrot.slane %v4833_v61, 4  ;;  %v4751_v34 = vrot.slane %v4749_v9, 4 }
 0x44b   : > { %5850 = vmatprep.mubr.bf16.mxu1 %v14603_v53  ;;  %v4812_v53 = vrot.slane %v14873_v37, 5  ;;  %17906 = vst [vmem:[#allocation52_spill] sm:$0xff] %v15071_v11  ;;  %v4819_v37 = vrot.slane %v14890_v25, 5 }
 0x44c   : > { %v4837_v58 = vsel %vm12835_vm4, %v4835_v50, %v4836_v55 }
 0x44d   : > { %v4813_v6 = vsel %vm12835_vm4, %v10297_v19, %v4812_v53  ;;  %v4814_v10 = vrot.slane %v4812_v53, 4  ;;  %v4820_v25 = vsel %vm12835_vm4, %v10298_v49, %v4819_v37  ;;  %v4821_v46 = vrot.slane %v4819_v37, 4 }
 0x44e   : > { %v17908_v19 = vcombine.low %v14942_v14, %v14233_v20  ;;  %v4830_v20 = vsel %vm12835_vm4, %v4828_v17, %v4829_v35  ;;  %v4834_v14 = vsel %vm12835_vm4, %v10300_v43, %v4833_v61  ;;  %v4651_v37 = vshrl.u32 %v15095_v36, 16 }
 0x44f   : > { %v4816_v26 = vsel %vm12835_vm4, %v4814_v10, %v4815_v24  ;;  %v4823_v53 = vsel %vm12835_vm4, %v4821_v46, %v4822_v28  ;;  %v4641_v24 = vshll.u32 %v15080_v16, 16  ;;  %v15120_v10 = vcombine.low %v4827_v57, %v4830_v20 }
 0x450   : > { %v15090_v22 = vcombine.low %v4813_v6, %v4816_v26  ;;  %v15109_v49 = vcombine.low %v4820_v25, %v4823_v53  ;;  %v15115_v6 = vcombine.low %v4743_v39, %v4746_v31  ;;  %v10301_v28 = vrot.slane %v14995_v23, 9  ;;  %v4249_v31 = vld [vmem:[#allocation2 + $0xc8] sm:$0xf]  ;;  %v12404_v23 = vld [vmem:[%s17713_s4 + $0x110] sm:$0xff]  }
 0x451   : > { %v4840_v39 = vrot.slane %v15005_v8, 5  ;;  %v10302_v35 = vrot.slane %v15080_v16, 9  ;;  %v4843_v26 = vrot.slane %v15007_v47, 5  ;;  %v4850_v25 = vrot.slane %v15095_v36, 5  ;;  %v12405_v47 = vld [vmem:[%s17713_s4 + $0x158] sm:$0xff]  }
 0x452   : > { %17907 = vst [vmem:[#allocation53_spill] sm:$0xff] %v15090_v22  ;;  %5851 = vmatmul.mubr.bf16.vlgmr.msra.gmra.mrb[64].mxu1 %v17908_v19  ;;  %17909 = vst [vmem:[#allocation54_spill] sm:$0xff] %v15109_v49  ;;  %v4640_v46 = vrot.slane %v4638_v7, 4  ;;  %v4643_v8 = vrot.slane %v4641_v24, 5  ;;  %v4647_v17 = vshll.u32 %v15095_v36, 16  ;;  %v4853_v53 = vrot.slane %v4249_v31, 5 }
 0x453   : > { %5858 = vmatprep.mubr.bf16.mxu1 %v14609_v13  ;;  %10915 = vmatpush3.bf16.msra.mxu1 %v12400_v0  ;;  %v12403_v0 = vld [vmem:[%s17713_s4 + $0x150] sm:$0xff]   ;;  %v4841_v43 = vsel %vm12835_vm4, %v10301_v28, %v4840_v39  ;;  %v4842_v57 = vrot.slane %v4840_v39, 4  ;;  %v4851_v61 = vsel %vm12835_vm4, %v10302_v35, %v4850_v25  ;;  %v4852_v19 = vrot.slane %v4850_v25, 4  ;;  %v12563_v35 = vld [vmem:[#allocation2 + $0x18] sm:$0xf] }
 0x454   : > { %10916 = vmatprep.subr.bf16.mxu1 %v12401_v1  ;;  %v15130_v1 = vcombine.low %v4834_v14, %v4837_v58  ;;  %v4653_v55 = vrot.slane %v4651_v37, 4  ;;  %v4649_v20 = vrot.slane %v4647_v17, 5  ;;  %v4657_v14 = vshll.u32 %v4249_v31, 16  ;;  %v12406_v37 = vld [vmem:[%s17713_s4 + $0x118] sm:$0xff]   ;;  %v12564_v25 = vld [vmem:[#allocation2 + $0x28] sm:$0xf] }
 0x455   : > { %v4844_v7 = vsel %vm12835_vm4, %v4842_v57, %v4843_v26  ;;  %v4854_v50 = vsel %vm12835_vm4, %v4852_v19, %v4853_v53  ;;  %v10288_v26 = vrot.slane %v12563_v35, 9 }
 0x456   : > { %v15148_v24 = vcombine.low %v4841_v43, %v4844_v7  ;;  %v15156_v58 = vcombine.low %v4851_v61, %v4854_v50  ;;  %v4654_v31 = vor.u32 %v4653_v55, %v4649_v20  ;;  %v12407_v43 = vld [vmem:[%s17713_s4 + $0x160] sm:$0xff]   ;;  %v4659_v17 = vrot.slane %v4657_v14, 5 }
 0x457   : > { %10917 = vmatpush3.bf16.msra.mxu1 %v12402_v12  ;;  %v4644_v12 = vor.u32 %v4643_v8, %v4640_v46  ;;  %v4756_v46 = vrot.slane %v12564_v25, 5  ;;  %v4750_v61 = vsel %vm12835_vm4, %v10288_v26, %v4749_v9  ;;  %v12565_v9 = vld [vmem:[#allocation2 + $0x2c] sm:$0xf]  ;;  %v12566_v14 = vld [vmem:[#allocation2 + $0x24] sm:$0xf]  ;;  %v12413_v26 = vld [vmem:[%s17713_s4 + $0x178] sm:$0xff]  }
 0x458   : > { %10918 = vmatprep.subr.bf16.mxu1 %v12403_v0  ;;  %17910 = vst [vmem:[#allocation55_spill] sm:$0xff] %v15148_v24  ;;  %v12562_v0 = vld [vmem:[#allocation2 + $0x20] sm:$0xf]  ;;  %v4655_v8 = vrot.slane %v4654_v31, 4  ;;  %v4759_v7 = vrot.slane %v12565_v9, 5  ;;  %v10289_v50 = vrot.slane %v12566_v14, 9 }
 0x459   : > { %v4752_v28 = vrot.slane %v12562_v0, 5  ;;  %v4645_v39 = vrot.slane %v4644_v12, 4  ;;  %v4758_v54 = vrot.slane %v4756_v46, 4  ;;  %v12410_v12 = vld [vmem:[%s17713_s4 + $0x128] sm:$0xff]   ;;  %v12412_v31 = vld [vmem:[%s17713_s4 + $0x130] sm:$0xff]  }
 0x45a   : > { %5859 = vmatmul.mubr.bf16.gmra.mrb[68].mxu1 %v15115_v6  ;;  %v4660_v19 = vsel %vm12846_vm5, %v4655_v8, %v4659_v17  ;;  %v12569_v8 = vld [vmem:[#allocation2 + $0x30] sm:$0xf] }
 0x45b   : > { %5866 = vmatprep.mubr.bf16.mxu1 %v14677_v5  ;;  %10919 = vmatpush3.bf16.msra.mxu1 %v12404_v23  ;;  %v4753_v23 = vsel %vm12835_vm4, %v4751_v34, %v4752_v28  ;;  %v4650_v57 = vsel %vm12846_vm5, %v4645_v39, %v4649_v20  ;;  %v12409_v34 = vld [vmem:[%s17713_s4 + $0x168] sm:$0xff]   ;;  %v12411_v20 = vld [vmem:[%s17713_s4 + $0x170] sm:$0xff]   ;;  %v4760_v0 = vsel %vm12835_vm4, %v4758_v54, %v4759_v7  ;;  %v10290_v17 = vrot.slane %v12569_v8, 9  ;;  %v12571_v7 = vld [vmem:[#allocation2 + $0x44] sm:$0xf] }
 0x45c   : > { %10920 = vmatprep.subr.bf16.mxu1 %v12405_v47  ;;  %v12408_v47 = vld [vmem:[%s17713_s4 + $0x120] sm:$0xff]   ;;  %v15174_v53 = vcombine.low %v4750_v61, %v4753_v23  ;;  %v15179_v55 = vcombine.low %v4650_v57, %v4660_v19  ;;  %v12567_v28 = vld [vmem:[#allocation2 + $0x34] sm:$0xf]  ;;  %v4757_v39 = vsel %vm12835_vm4, %v10289_v50, %v4756_v46  ;;  %v12415_v46 = vld [vmem:[%s17713_s4 + $0x138] sm:$0xff]  }
 0x45d   : > { %v15196_v35 = vcombine.low %v4757_v39, %v4760_v0  ;;  %v12416_v57 = vld [vmem:[%s17713_s4 + $0x1c0] sm:$0xff]   ;;  %v12573_v0 = vld [vmem:[#allocation2 + $0x4c] sm:$0xf] }
 0x45e   : > { %17911 = vst [vmem:[#allocation56_spill] sm:$0xff] %v15174_v53 }
 0x45f   : > { %10921 = vmatpush3.bf16.msra.mxu1 %v12406_v37  ;;  %v4763_v37 = vrot.slane %v12567_v28, 5  ;;  %17912 = vst [vmem:[#allocation57_spill] sm:$0xff] %v15196_v35  ;;  %v4777_v28 = vrot.slane %v12573_v0, 5 }
 0x460   : > { %10922 = vmatprep.subr.bf16.mxu1 %v12407_v43  ;;  %v12568_v43 = vld [vmem:[#allocation2 + $0x38] sm:$0xf] }
 0x461   : > { %v4765_v25 = vrot.slane %v4763_v37, 4  ;;  %v4766_v23 = vrot.slane %v12568_v43, 5  ;;  %v12575_v43 = vld [vmem:[#allocation2 + $0x48] sm:$0xf] }
 0x462   : > { %5867 = vmatmul.mubr.bf16.gmra.mrb[72].mxu1 %v15174_v53 }
 0x463   : > { %5874 = vmatprep.mubr.bf16.mxu1 %v14688_v44  ;;  %10923 = vmatpush3.bf16.msra.mxu1 %v12408_v47  ;;  %v4767_v61 = vsel %vm12835_vm4, %v4765_v25, %v4766_v23  ;;  %v12570_v47 = vld [vmem:[#allocation2 + $0x40] sm:$0xf]  ;;  %v10292_v23 = vrot.slane %v12575_v43, 9  ;;  %v17918_v43 = vld [vmem:[#allocation44_spill] sm:$0xff] }
 0x464   : > { %10924 = vmatprep.subr.bf16.mxu1 %v12409_v34  ;;  %v4770_v19 = vrot.slane %v12570_v47, 5  ;;  %v4764_v34 = vsel %vm12835_vm4, %v10290_v17, %v4763_v37 }
 0x465   : > { %v15213_v54 = vcombine.low %v4764_v34, %v4767_v61  ;;  %v4778_v17 = vsel %vm12835_vm4, %v10292_v23, %v4777_v28 }
 0x466   : > { %v4772_v9 = vrot.slane %v4770_v19, 4 }
 0x467   : > { %10925 = vmatpush3.bf16.msra.mxu1 %v12410_v12  ;;  %17913 = vst [vmem:[#allocation58_spill] sm:$0xff] %v15213_v54  ;;  %v4773_v12 = vrot.slane %v12571_v7, 5 }
 0x468   : > { %10926 = vmatprep.subr.bf16.mxu1 %v12411_v20  ;;  %v12572_v20 = vld [vmem:[#allocation2 + $0x3c] sm:$0xf] }
 0x469   : > { %v10291_v14 = vrot.slane %v12572_v20, 9  ;;  %v4774_v50 = vsel %vm12835_vm4, %v4772_v9, %v4773_v12  ;;  %v12578_v9 = vld [vmem:[#allocation2 + $0x54] sm:$0xf]  ;;  %v4791_v20 = vrot.slane %v14749_v63, 5 }
 0x46a   : > { %5875 = vmatmul.mubr.bf16.gmra.mrb[76].mxu1 %v15196_v35  ;;  %v10293_v7 = vrot.slane %v12578_v9, 9 }
 0x46b   : > { %5882 = vmatprep.mubr.bf16.mxu1 %v14720_v56  ;;  %10927 = vmatpush3.bf16.msra.mxu1 %v12412_v31  ;;  %v4771_v37 = vsel %vm12835_vm4, %v10291_v14, %v4770_v19  ;;  %v4779_v31 = vrot.slane %v4777_v28, 4  ;;  %v12577_v19 = vld [vmem:[#allocation2 + $0x5c] sm:$0xf]  ;;  %v4793_v0 = vrot.slane %v4791_v20, 4  ;;  %v4794_v28 = vrot.slane %v14752_v21, 5 }
 0x46c   : > { %10928 = vmatprep.subr.bf16.mxu1 %v12413_v26  ;;  %v15221_v39 = vcombine.low %v4771_v37, %v4774_v50  ;;  %v12574_v26 = vld [vmem:[#allocation2 + $0x50] sm:$0xf]  ;;  %v4787_v34 = vrot.slane %v12577_v19, 5  ;;  %v12579_v37 = vld [vmem:[#allocation2 + $0x60] sm:$0xf] }
 0x46d   : > { %v4780_v25 = vrot.slane %v12574_v26, 5  ;;  %v4795_v26 = vsel %vm12835_vm4, %v4793_v0, %v4794_v28 }
 0x46e   : > { %17914 = vst [vmem:[#allocation59_spill] sm:$0xff] %v15221_v39 }
 0x46f   : > { %10929 = vmatpush3.bf16.msra.mxu1 %v12415_v46  ;;  %v4781_v46 = vsel %vm12835_vm4, %v4779_v31, %v4780_v25  ;;  %v10294_v31 = vrot.slane %v12579_v37, 9 }
 0x470   : > { %11026 = vmatprep.subr.bf16.mxu1 %v12416_v57  ;;  %v12576_v57 = vld [vmem:[#allocation2 + $0x58] sm:$0xf]  ;;  %v15229_v61 = vcombine.low %v4778_v17, %v4781_v46 }
 0x471   : > { %v4784_v8 = vrot.slane %v12576_v57, 5  ;;  %v4792_v63 = vsel %vm12835_vm4, %v10294_v31, %v4791_v20 }
 0x472   : > { %5883 = vmatmul.mubr.bf16.gmra.mrb[80].mxu1 %v15213_v54  ;;  %17915 = vst [vmem:[#allocation60_spill] sm:$0xff] %v15229_v61  ;;  %v15247_v25 = vcombine.low %v4792_v63, %v4795_v26 }
 0x473   : > { %5890 = vmatprep.mubr.bf16.mxu1 %v14729_v51  ;;  %v4786_v47 = vrot.slane %v4784_v8, 4  ;;  %v4785_v14 = vsel %vm12835_vm4, %v10293_v7, %v4784_v8 }
 0x474   : > { %17917 = vst [vmem:[#allocation62_spill] sm:$0xff] %v15247_v25 }
 0x475   : > { %v4788_v12 = vsel %vm12835_vm4, %v4786_v47, %v4787_v34 }
 0x476   : > { %v15238_v50 = vcombine.low %v4785_v14, %v4788_v12 }
 0x478   : > { %17916 = vst [vmem:[#allocation61_spill] sm:$0xff] %v15238_v50 }
 0x47a   : > { %5891 = vmatmul.mubr.bf16.gmra.mrb[84].mxu1 %v15221_v39 }
 0x47b   : > { %5898 = vmatprep.mubr.bf16.mxu1 %v14738_v4 }
 0x482   : > { %5899 = vmatmul.mubr.bf16.gmra.mrb[88].mxu1 %v15229_v61 }
 0x483   : > { %5906 = vmatprep.mubr.bf16.mxu1 %v14762_v62 }
 0x48a   : > { %5907 = vmatmul.mubr.bf16.gmra.mrb[92].mxu1 %v15238_v50 }
 0x48b   : > { %5914 = vmatprep.mubr.bf16.mxu1 %v14833_v52 }
 0x492   : > { %5915 = vmatmul.mubr.bf16.gmra.mrb[96].mxu1 %v15247_v25 }
 0x493   : > { %5922 = vmatprep.mubr.bf16.mxu1 %v17918_v43 }
 0x49a   : > { %5923 = vmatmul.mubr.bf16.gmra.mrb[100].mxu1 %v15062_v15 }
 0x49b   : > { %5930 = vmatprep.mubr.bf16.mxu1 %v14904_v48 }
 0x4a2   : > { %5931 = vmatmul.mubr.bf16.gmra.mrb[104].mxu1 %v15071_v11 }
 0x4a3   : > { %5938 = vmatprep.mubr.bf16.mxu1 %v14966_v33 }
 0x4a5   : > { %v10712_v21 = vpop.f32.mrb[4].mxu1 }
 0x4a6   : > { %v10713_v23 = vpop.f32.mrb[5].mxu1 }
 0x4a7   : > { %v15255_v46 = vadd.f32 %v10713_v23, %v10712_v21  ;;  %v10715_v57 = vpop.f32.mrb[6].mxu1  ;;  %v15275_v21 = vcombine.low %v15080_v16, %v15095_v36  ;;  %v12417_v36 = vld [vmem:[%s17713_s4 + $0x180] sm:$0xff]  }
 0x4a8   : > { %v10716_v8 = vpop.f32.mrb[7].mxu1 }
 0x4a9   : > { %v15258_v17 = vadd.f32 %v10716_v8, %v10715_v57  ;;  %17919 = vst [vmem:[#allocation63_spill] sm:$0xff] %v15275_v21 }
 0x4aa   : > { %5939 = vmatmul.mubr.bf16.gmra.mrb[108].mxu1 %v15090_v22 }
 0x4ab   : > { %5946 = vmatprep.mubr.bf16.mxu1 %v14999_v30 }
 0x4ad   : > { %v10718_v47 = vpop.f32.mrb[8].mxu1 }
 0x4ae   : > { %v10719_v19 = vpop.f32.mrb[9].mxu1 }
 0x4af   : > { %v15261_v34 = vadd.f32 %v10719_v19, %v10718_v47  ;;  %v10721_v9 = vpop.f32.mrb[10].mxu1 }
 0x4b0   : > { %v10722_v7 = vpop.f32.mrb[11].mxu1 }
 0x4b1   : > { %v15264_v12 = vadd.f32 %v10722_v7, %v10721_v9 }
 0x4b2   : > { %5947 = vmatmul.mubr.bf16.gmra.mrb[112].mxu1 %v15109_v49 }
 0x4b3   : > { %5954 = vmatprep.mubr.bf16.mxu1 %v15021_v42 }
 0x4b5   : > { %v10724_v20 = vpop.f32.mrb[12].mxu1 }
 0x4b6   : > { %v10725_v14 = vpop.f32.mrb[13].mxu1 }
 0x4b7   : > { %v15267_v0 = vadd.f32 %v10725_v14, %v10724_v20  ;;  %v10727_v28 = vpop.f32.mrb[14].mxu1 }
 0x4b8   : > { %v10728_v37 = vpop.f32.mrb[15].mxu1 }
 0x4b9   : > { %v15270_v31 = vadd.f32 %v10728_v37, %v10727_v28 }
 0x4ba   : > { %5955 = vmatmul.mubr.bf16.gmra.mrb[116].mxu1 %v15120_v10 }
 0x4bb   : > { %5962 = vmatprep.mubr.bf16.mxu1 %v15033_v40 }
 0x4be   : > { %v10730_v26 = vpop.f32.mrb[16].mxu1 }
 0x4bf   : > { %v10731_v63 = vpop.f32.mrb[17].mxu1 }
 0x4c0   : > { %v15277_v23 = vadd.f32 %v10731_v63, %v10730_v26  ;;  %v10733_v57 = vpop.f32.mrb[18].mxu1  ;;  %v12418_v26 = vld [vmem:[%s17713_s4 + $0x1c8] sm:$0xff]  }
 0x4c1   : > { %v10734_v8 = vpop.f32.mrb[19].mxu1 }
 0x4c2   : > { %5963 = vmatmul.mubr.bf16.gmra.mrb[120].mxu1 %v15130_v1  ;;  %v15281_v47 = vadd.f32 %v10734_v8, %v10733_v57  ;;  %v17920_v8 = vld [vmem:[#allocation32_spill] sm:$0xff] }
 0x4c3   : > { %5970 = vmatprep.mubr.bf16.mxu1 %v15275_v21 }
 0x4c6   : > { %v10736_v19 = vpop.f32.mrb[20].mxu1 }
 0x4c7   : > { %v10737_v9 = vpop.f32.mrb[21].mxu1 }
 0x4c8   : > { %v15283_v7 = vadd.f32 %v10737_v9, %v10736_v19  ;;  %v10739_v20 = vpop.f32.mrb[22].mxu1  ;;  %v12419_v9 = vld [vmem:[%s17713_s4 + $0x188] sm:$0xff]  }
 0x4c9   : > { %v10740_v14 = vpop.f32.mrb[23].mxu1 }
 0x4ca   : > { %5971 = vmatmul.mubr.bf16.gmra.mrb[124].mxu1 %v15148_v24  ;;  %v15287_v16 = vadd.f32 %v10740_v14, %v10739_v20  ;;  %v12420_v20 = vld [vmem:[%s17713_s4 + $0x1d0] sm:$0xff]  }
 0x4cb   : > { %6011 = vmatprep.mubr.bf16.mxu1 %v15115_v6 }
 0x4ce   : > { %v10742_v28 = vpop.f32.mrb[24].mxu1 }
 0x4cf   : > { %v10743_v37 = vpop.f32.mrb[25].mxu1 }
 0x4d0   : > { %v15295_v63 = vadd.f32 %v10743_v37, %v10742_v28  ;;  %v10745_v57 = vpop.f32.mrb[26].mxu1  ;;  %v12421_v28 = vld [vmem:[%s17713_s4 + $0x190] sm:$0xff]  }
 0x4d1   : > { %v10746_v19 = vpop.f32.mrb[27].mxu1 }
 0x4d2   : > { %6012 = vmatmul.mubr.bf16.vlgmr.msra.gmra.mrb[128].mxu1 %v17920_v8  ;;  %v15299_v6 = vadd.f32 %v10746_v19, %v10745_v57 }
 0x4d3   : > { %6019 = vmatprep.mubr.bf16.mxu1 %v15174_v53  ;;  %11027 = vmatpush3.bf16.msra.mxu1 %v12417_v36  ;;  %v12422_v36 = vld [vmem:[%s17713_s4 + $0x1d8] sm:$0xff]  }
 0x4d4   : > { %11028 = vmatprep.subr.bf16.mxu1 %v12418_v26  ;;  %v17921_v26 = vld [vmem:[#allocation33_spill] sm:$0xff] }
 0x4d6   : > { %v10748_v14 = vpop.f32.mrb[28].mxu1 }
 0x4d7   : > { %11029 = vmatpush3.bf16.msra.mxu1 %v12419_v9  ;;  %v10749_v37 = vpop.f32.mrb[29].mxu1  ;;  %v12423_v9 = vld [vmem:[%s17713_s4 + $0x198] sm:$0xff]  }
 0x4d8   : > { %11030 = vmatprep.subr.bf16.mxu1 %v12420_v20  ;;  %v15313_v57 = vadd.f32 %v10749_v37, %v10748_v14  ;;  %v10751_v8 = vpop.f32.mrb[30].mxu1  ;;  %v12424_v20 = vld [vmem:[%s17713_s4 + $0x1e0] sm:$0xff]  }
 0x4d9   : > { %v10752_v19 = vpop.f32.mrb[31].mxu1  ;;  %v12425_v37 = vld [vmem:[%s17713_s4 + $0x1a0] sm:$0xff]  }
 0x4da   : > { %6020 = vmatmul.mubr.bf16.gmra.mrb[132].mxu1 %v17921_v26  ;;  %v15317_v53 = vadd.f32 %v10752_v19, %v10751_v8 }
 0x4db   : > { %6027 = vmatprep.mubr.bf16.mxu1 %v15196_v35  ;;  %11031 = vmatpush3.bf16.msra.mxu1 %v12421_v28  ;;  %v12426_v28 = vld [vmem:[%s17713_s4 + $0x1e8] sm:$0xff]  }
 0x4dc   : > { %11032 = vmatprep.subr.bf16.mxu1 %v12422_v36  ;;  %v17922_v36 = vld [vmem:[#allocation34_spill] sm:$0xff] }
 0x4de   : > { %v10754_v14 = vpop.f32.mrb[32].mxu1 }
 0x4df   : > { %11033 = vmatpush3.bf16.msra.mxu1 %v12423_v9  ;;  %v10755_v21 = vpop.f32.mrb[33].mxu1  ;;  %v12427_v9 = vld [vmem:[%s17713_s4 + $0x1a8] sm:$0xff]  }
 0x4e0   : > { %11034 = vmatprep.subr.bf16.mxu1 %v12424_v20  ;;  %v15331_v8 = vadd.f32 %v10755_v21, %v10754_v14  ;;  %v10757_v19 = vpop.f32.mrb[34].mxu1  ;;  %v12428_v20 = vld [vmem:[%s17713_s4 + $0x1f0] sm:$0xff]  }
 0x4e1   : > { %v10758_v35 = vpop.f32.mrb[35].mxu1  ;;  %v12429_v21 = vld [vmem:[%s17713_s4 + $0x1b0] sm:$0xff]  }
 0x4e2   : > { %6028 = vmatmul.mubr.bf16.gmra.mrb[136].mxu1 %v17922_v36  ;;  %v15335_v32 = vadd.f32 %v10758_v35, %v10757_v19  ;;  %v12430_v35 = vld [vmem:[%s17713_s4 + $0x1f8] sm:$0xff]   ;;  %v17923_v19 = vld [vmem:[#allocation35_spill] sm:$0xff] }
 0x4e3   : > { %6035 = vmatprep.mubr.bf16.mxu1 %v15213_v54  ;;  %11035 = vmatpush3.bf16.msra.mxu1 %v12425_v37 }
 0x4e4   : > { %11036 = vmatprep.subr.bf16.mxu1 %v12426_v28 }
 0x4e7   : > { %11037 = vmatpush3.bf16.msra.mxu1 %v12427_v9  ;;  %v10760_v14 = vpop.f32.mrb[36].mxu1  ;;  %v12431_v9 = vld [vmem:[%s17713_s4 + $0x1b8] sm:$0xff]  }
 0x4e8   : > { %11038 = vmatprep.subr.bf16.mxu1 %v12428_v20  ;;  %v10761_v37 = vpop.f32.mrb[37].mxu1  ;;  %v15361_v20 = vld [vmem:[%s17713_s4 + $0x200] sm:$0xff]  }
 0x4e9   : > { %v15350_v54 = vadd.f32 %v10761_v37, %v10760_v14  ;;  %v10763_v28 = vpop.f32.mrb[38].mxu1  ;;  %v17924_v14 = vld [vmem:[#allocation36_spill] sm:$0xff] }
 0x4ea   : > { %6036 = vmatmul.mubr.bf16.gmra.mrb[140].mxu1 %v17923_v19  ;;  %v10764_v40 = vpop.f32.mrb[39].mxu1 }
 0x4eb   : > { %6043 = vmatprep.mubr.bf16.mxu1 %v15221_v39  ;;  %11039 = vmatpush3.bf16.msra.mxu1 %v12429_v21  ;;  %v15356_v42 = vadd.f32 %v10764_v40, %v10763_v28 }
 0x4ec   : > { %11040 = vmatprep.subr.bf16.mxu1 %v12430_v35  ;;  %v17926_v35 = vld [vmem:[#allocation38_spill] sm:$0xff] }
 0x4ef   : > { %11041 = vmatpush3.bf16.msra.mxu1 %v12431_v9 }
 0x4f0   : > { %11658 = vmatprep.subr.bf16.mxu1 %v15361_v20 }
 0x4f2   : > { %6044 = vmatmul.mubr.bf16.gmra.mrb[144].mxu1 %v17924_v14  ;;  %v10766_v21 = vpop.f32.mrb[40].mxu1 }
 0x4f3   : > { %6051 = vmatprep.mubr.bf16.mxu1 %v15229_v61  ;;  %v10767_v37 = vpop.f32.mrb[41].mxu1  ;;  %v17929_v61 = vld [vmem:[#allocation39_spill] sm:$0xff] }
 0x4f4   : > { %v15366_v39 = vadd.f32 %v10767_v37, %v10766_v21  ;;  %v10769_v30 = vpop.f32.mrb[42].mxu1 }
 0x4f5   : > { %v10770_v40 = vpop.f32.mrb[43].mxu1 }
 0x4f6   : > { %v15368_v28 = vadd.f32 %v10770_v40, %v10769_v30 }
 0x4f8   : > { %17925 = vst [vmem:[#allocation32_spill] sm:$0xff] %v15368_v28 }
 0x4fa   : > { %6052 = vmatmul.mubr.bf16.gmra.mrb[148].mxu1 %v17926_v35  ;;  %v10772_v33 = vpop.f32.mrb[44].mxu1 }
 0x4fb   : > { %6059 = vmatprep.mubr.bf16.mxu1 %v15238_v50  ;;  %v10773_v9 = vpop.f32.mrb[45].mxu1  ;;  %v17932_v50 = vld [vmem:[#allocation41_spill] sm:$0xff] }
 0x4fc   : > { %v15372_v48 = vadd.f32 %v10773_v9, %v10772_v33  ;;  %v10775_v43 = vpop.f32.mrb[46].mxu1 }
 0x4fd   : > { %v10776_v52 = vpop.f32.mrb[47].mxu1 }
 0x4fe   : > { %17927 = vst [vmem:[#allocation33_spill] sm:$0xff] %v15372_v48  ;;  %v15374_v62 = vadd.f32 %v10776_v52, %v10775_v43 }
 0x500   : > { %17928 = vst [vmem:[#allocation34_spill] sm:$0xff] %v15374_v62 }
 0x502   : > { %6060 = vmatmul.mubr.bf16.gmra.mrb[152].mxu1 %v17929_v61  ;;  %v10778_v21 = vpop.f32.mrb[48].mxu1 }
 0x503   : > { %6067 = vmatprep.mubr.bf16.mxu1 %v15247_v25  ;;  %v10779_v37 = vpop.f32.mrb[49].mxu1  ;;  %v17935_v25 = vld [vmem:[#allocation42_spill] sm:$0xff] }
 0x504   : > { %v15378_v30 = vadd.f32 %v10779_v37, %v10778_v21  ;;  %v10781_v40 = vpop.f32.mrb[50].mxu1 }
 0x505   : > { %v10782_v28 = vpop.f32.mrb[51].mxu1 }
 0x506   : > { %17930 = vst [vmem:[#allocation35_spill] sm:$0xff] %v15378_v30  ;;  %v15380_v4 = vadd.f32 %v10782_v28, %v10781_v40 }
 0x508   : > { %17931 = vst [vmem:[#allocation36_spill] sm:$0xff] %v15380_v4 }
 0x50a   : > { %6068 = vmatmul.mubr.bf16.gmra.mrb[156].mxu1 %v17932_v50 }
 0x50b   : > { %6075 = vmatprep.mubr.bf16.mxu1 %v15062_v15  ;;  %v17937_v15 = vld [vmem:[#allocation45_spill] sm:$0xff] }
 0x50d   : > { %v10784_v33 = vpop.f32.mrb[52].mxu1 }
 0x50e   : > { %v10785_v9 = vpop.f32.mrb[53].mxu1 }
 0x50f   : > { %v15384_v52 = vadd.f32 %v10785_v9, %v10784_v33  ;;  %v10787_v43 = vpop.f32.mrb[54].mxu1 }
 0x510   : > { %v10788_v62 = vpop.f32.mrb[55].mxu1 }
 0x511   : > { %17933 = vst [vmem:[#allocation38_spill] sm:$0xff] %v15384_v52  ;;  %v15386_v48 = vadd.f32 %v10788_v62, %v10787_v43 }
 0x512   : > { %6076 = vmatmul.mubr.bf16.gmra.mrb[160].mxu1 %v17935_v25 }
 0x513   : > { %17934 = vst [vmem:[#allocation39_spill] sm:$0xff] %v15386_v48  ;;  %6083 = vmatprep.mubr.bf16.mxu1 %v15071_v11 }
 0x515   : > { %v10790_v21 = vpop.f32.mrb[56].mxu1 }
 0x516   : > { %v10791_v37 = vpop.f32.mrb[57].mxu1 }
 0x517   : > { %v15390_v28 = vadd.f32 %v10791_v37, %v10790_v21  ;;  %v10793_v40 = vpop.f32.mrb[58].mxu1 }
 0x518   : > { %v10794_v4 = vpop.f32.mrb[59].mxu1 }
 0x519   : > { %v15392_v30 = vadd.f32 %v10794_v4, %v10793_v40 }
 0x51a   : > { %6084 = vmatmul.mubr.bf16.gmra.mrb[164].mxu1 %v17937_v15 }
 0x51b   : > { %17936 = vst [vmem:[#allocation41_spill] sm:$0xff] %v15392_v30  ;;  %6091 = vmatprep.mubr.bf16.mxu1 %v15090_v22 }
 0x51d   : > { %v10796_v33 = vpop.f32.mrb[60].mxu1 }
 0x51e   : > { %v10797_v9 = vpop.f32.mrb[61].mxu1 }
 0x51f   : > { %v15396_v62 = vadd.f32 %v10797_v9, %v10796_v33  ;;  %v10799_v43 = vpop.f32.mrb[62].mxu1 }
 0x520   : > { %v10800_v48 = vpop.f32.mrb[63].mxu1 }
 0x521   : > { %v15398_v52 = vadd.f32 %v10800_v48, %v10799_v43 }
 0x522   : > { %6092 = vmatmul.mubr.bf16.gmra.mrb[168].mxu1 %v14915_v59 }
 0x523   : > { %17938 = vst [vmem:[#allocation42_spill] sm:$0xff] %v15398_v52  ;;  %6099 = vmatprep.mubr.bf16.mxu1 %v15109_v49 }
 0x525   : > { %v10818_v21 = vpop.f32.mrb[64].mxu1 }
 0x526   : > { %v10819_v37 = vpop.f32.mrb[65].mxu1 }
 0x527   : > { %v10820_v4 = vadd.f32 %v10819_v37, %v10818_v21  ;;  %v10821_v40 = vpop.f32.mrb[66].mxu1 }
 0x528   : > { %v10822_v11 = vpop.f32.mrb[67].mxu1 }
 0x529   : > { %v15403_v30 = vadd.f32 %v10820_v4, %v14962_v18  ;;  %v10823_v22 = vadd.f32 %v10822_v11, %v10821_v40 }
 0x52a   : > { %6100 = vmatmul.mubr.bf16.gmra.mrb[172].mxu1 %v14932_v60 }
 0x52b   : > { %v15407_v33 = vadd.f32 %v10823_v22, %v15058_v3  ;;  %6107 = vmatprep.mubr.bf16.mxu1 %v15120_v10 }
 0x52d   : > { %v10824_v48 = vpop.f32.mrb[68].mxu1 }
 0x52e   : > { %v10825_v9 = vpop.f32.mrb[69].mxu1 }
 0x52f   : > { %v10826_v43 = vadd.f32 %v10825_v9, %v10824_v48  ;;  %v10827_v49 = vpop.f32.mrb[70].mxu1 }
 0x530   : > { %v10828_v52 = vpop.f32.mrb[71].mxu1 }
 0x531   : > { %v15411_v21 = vadd.f32 %v10826_v43, %v15255_v46  ;;  %v10829_v37 = vadd.f32 %v10828_v52, %v10827_v49 }
 0x532   : > { %6108 = vmatmul.mubr.bf16.gmra.mrb[176].mxu1 %v14993_v2 }
 0x533   : > { %v15415_v18 = vadd.f32 %v10829_v37, %v15258_v17  ;;  %6115 = vmatprep.mubr.bf16.mxu1 %v15130_v1 }
 0x535   : > { %v10830_v3 = vpop.f32.mrb[72].mxu1 }
 0x536   : > { %v10831_v11 = vpop.f32.mrb[73].mxu1 }
 0x537   : > { %v10832_v22 = vadd.f32 %v10831_v11, %v10830_v3  ;;  %v10833_v4 = vpop.f32.mrb[74].mxu1 }
 0x538   : > { %v10834_v40 = vpop.f32.mrb[75].mxu1 }
 0x539   : > { %v15419_v48 = vadd.f32 %v10832_v22, %v15261_v34  ;;  %v10835_v9 = vadd.f32 %v10834_v40, %v10833_v4 }
 0x53a   : > { %6116 = vmatmul.mubr.bf16.gmra.mrb[180].mxu1 %v15016_v38 }
 0x53b   : > { %v15423_v49 = vadd.f32 %v10835_v9, %v15264_v12  ;;  %6123 = vmatprep.mubr.bf16.mxu1 %v15148_v24  ;;  %v3608_v24 = vld [vmem:[#allocation2 + $0xcc] sm:$0x1] }
 0x53d   : > { %v10836_v46 = vpop.f32.mrb[76].mxu1 }
 0x53e   : > { %v10837_v17 = vpop.f32.mrb[77].mxu1 }
 0x53f   : > { %v10838_v52 = vadd.f32 %v10837_v17, %v10836_v46  ;;  %v10839_v43 = vpop.f32.mrb[78].mxu1 }
 0x540   : > { %v10840_v37 = vpop.f32.mrb[79].mxu1 }
 0x541   : > { %v15427_v3 = vadd.f32 %v10838_v52, %v15267_v0  ;;  %v10841_v11 = vadd.f32 %v10840_v37, %v10839_v43  ;;  %v3665_v0 = vld [vmem:[#allocation2 + $0xd4] sm:$0xf]  ;;  %v3609_v52 = vsel %vm14089_vm8, 0, %v3608_v24  ;;  %v15446_v37 = vld [vmem:[#allocation2 + $0xd0] sm:$0xf]  ;;  %v12433_v24 = vld [vmem:[%s17713_s4 + $0x208] sm:$0xff]  }
 0x542   : > { %6124 = vmatmul.mubr.bf16.gmra.mrb[184].mxu1 %v15028_v45  ;;  %3610 = vst [vmem:[#allocation2 + $0xcc] sm:$0x1] %v3609_v52 }
 0x543   : > { %v15431_v34 = vadd.f32 %v10841_v11, %v15270_v31  ;;  %6131 = vmatprep.mubr.bf16.mxu1 %v15156_v58  ;;  %v3666_v31 = vsel %vm14101_vm11, 0, %v3665_v0 }
 0x544   : > { %3667 = vst [vmem:[#allocation2 + $0xd4] sm:$0xf] %v3666_v31 }
 0x545   : > { %v10842_v12 = vpop.f32.mrb[80].mxu1 }
 0x546   : > { %v10843_v22 = vpop.f32.mrb[81].mxu1 }
 0x547   : > { %v10844_v4 = vadd.f32 %v10843_v22, %v10842_v12  ;;  %v10845_v40 = vpop.f32.mrb[82].mxu1  ;;  %v4860_v12 = vrot.slane %v15446_v37, 5 }
 0x548   : > { %v10846_v9 = vpop.f32.mrb[83].mxu1 }
 0x549   : > { %v15435_v46 = vadd.f32 %v10844_v4, %v15277_v23  ;;  %v10847_v17 = vadd.f32 %v10846_v9, %v10845_v40  ;;  %v15461_v0 = vld [vmem:[#allocation2 + $0xcc] sm:$0xf] }
 0x54a   : > { %6132 = vmatmul.mubr.bf16.gmra.mrb[188].mxu1 %v15179_v55  ;;  %v10303_v31 = vrot.slane %v15461_v0, 9 }
 0x54b   : > { %v15443_v43 = vadd.f32 %v10847_v17, %v15281_v47  ;;  %6172 = vmatprep.mubr.bf16.mxu1 %v17921_v26  ;;  %v4862_v26 = vrot.slane %v4860_v12, 4  ;;  %v15463_v52 = vld [vmem:[#allocation2 + $0xd4] sm:$0xf] }
 0x54d   : > { %v10848_v23 = vpop.f32.mrb[84].mxu1 }
 0x54e   : > { %v10849_v11 = vpop.f32.mrb[85].mxu1 }
 0x54f   : > { %v10850_v22 = vadd.f32 %v10849_v11, %v10848_v23  ;;  %v10851_v4 = vpop.f32.mrb[86].mxu1 }
 0x550   : > { %v10852_v40 = vpop.f32.mrb[87].mxu1 }
 0x551   : > { %v15453_v47 = vadd.f32 %v10850_v22, %v15283_v7  ;;  %v10853_v9 = vadd.f32 %v10852_v40, %v10851_v4  ;;  %v12434_v7 = vld [vmem:[%s17713_s4 + $0x210] sm:$0xff]   ;;  %v17955_v4 = vld [vmem:[#allocation49_spill] sm:$0xff] }
 0x552   : > { %6173 = vmatmul.mubr.bf16.vlgmr.msra.gmra.mrb[192].mxu1 %v14609_v13  ;;  %v4863_v13 = vrot.slane %v15463_v52, 5 }
 0x553   : > { %v15457_v17 = vadd.f32 %v10853_v9, %v15287_v16  ;;  %6180 = vmatprep.mubr.bf16.mxu1 %v17922_v36  ;;  %11659 = vmatpush3.bf16.msra.mxu1 %v15361_v20  ;;  %v15472_v36 = vsel %vm12835_vm4, %v10303_v31, %v4860_v12  ;;  %v12435_v9 = vld [vmem:[%s17713_s4 + $0x218] sm:$0xff]  }
 0x554   : > { %11660 = vmatprep.subr.bf16.mxu1 %v12433_v24  ;;  %v15476_v20 = vsel %vm12835_vm4, %v4862_v26, %v4863_v13 }
 0x555   : > { %v10854_v23 = vpop.f32.mrb[88].mxu1 }
 0x556   : > { %v10855_v16 = vpop.f32.mrb[89].mxu1 }
 0x557   : > { %v10856_v11 = vadd.f32 %v10855_v16, %v10854_v23  ;;  %v10857_v22 = vpop.f32.mrb[90].mxu1  ;;  %11661 = vmatpush3.bf16.msra.mxu1 %v12433_v24  ;;  %v12436_v24 = vld [vmem:[%s17713_s4 + $0x220] sm:$0xff]  }
 0x558   : > { %v10858_v40 = vpop.f32.mrb[91].mxu1  ;;  %11662 = vmatprep.subr.bf16.mxu1 %v12434_v7 }
 0x559   : > { %v15484_v27 = vadd.f32 %v10856_v11, %v15295_v63  ;;  %v10859_v12 = vadd.f32 %v10858_v40, %v10857_v22  ;;  %v12438_v11 = vld [vmem:[%s17713_s4 + $0x230] sm:$0xff]  }
 0x55a   : > { %6181 = vmatmul.mubr.bf16.gmra.mrb[196].mxu1 %v14677_v5  ;;  %v12437_v5 = vld [vmem:[%s17713_s4 + $0x228] sm:$0xff]  }
 0x55b   : > { %v15488_v26 = vadd.f32 %v10859_v12, %v15299_v6  ;;  %6188 = vmatprep.mubr.bf16.mxu1 %v17923_v19  ;;  %11663 = vmatpush3.bf16.msra.mxu1 %v12434_v7 }
 0x55c   : > { %11664 = vmatprep.subr.bf16.mxu1 %v12435_v9 }
 0x55d   : > { %v10860_v31 = vpop.f32.mrb[92].mxu1 }
 0x55e   : > { %v10861_v13 = vpop.f32.mrb[93].mxu1 }
 0x55f   : > { %v10862_v23 = vadd.f32 %v10861_v13, %v10860_v31  ;;  %v10863_v16 = vpop.f32.mrb[94].mxu1  ;;  %11665 = vmatpush3.bf16.msra.mxu1 %v12435_v9  ;;  %v15522_v31 = vld [vmem:[%s17716_s7] sm:$0xff]  }
 0x560   : > { %v10864_v63 = vpop.f32.mrb[95].mxu1  ;;  %11666 = vmatprep.subr.bf16.mxu1 %v12436_v24 }
 0x561   : > { %v15498_v6 = vadd.f32 %v10862_v23, %v15313_v57  ;;  %v10865_v19 = vadd.f32 %v10864_v63, %v10863_v16 }
 0x562   : > { %6189 = vmatmul.mubr.bf16.gmra.mrb[200].mxu1 %v14688_v44  ;;  %v12439_v44 = vld [vmem:[%s17713_s4 + $0x238] sm:$0xff]  }
 0x563   : > { %v15502_v7 = vadd.f32 %v10865_v19, %v15317_v53  ;;  %6196 = vmatprep.mubr.bf16.mxu1 %v17924_v14  ;;  %11667 = vmatpush3.bf16.msra.mxu1 %v12436_v24 }
 0x564   : > { %11668 = vmatprep.subr.bf16.mxu1 %v12437_v5 }
 0x565   : > { %v10866_v22 = vpop.f32.mrb[96].mxu1 }
 0x566   : > { %v10867_v40 = vpop.f32.mrb[97].mxu1 }
 0x567   : > { %v10868_v9 = vadd.f32 %v10867_v40, %v10866_v22  ;;  %v10869_v12 = vpop.f32.mrb[98].mxu1  ;;  %11669 = vmatpush3.bf16.msra.mxu1 %v12437_v5 }
 0x568   : > { %v10870_v57 = vpop.f32.mrb[99].mxu1  ;;  %11670 = vmatprep.subr.bf16.mxu1 %v12438_v11 }
 0x569   : > { %v15512_v53 = vadd.f32 %v10868_v9, %v15331_v8  ;;  %v10871_v14 = vadd.f32 %v10870_v57, %v10869_v12  ;;  %v17939_v57 = vld [vmem:[#allocation37_spill] sm:$0xff] }
 0x56a   : > { %6197 = vmatmul.mubr.bf16.gmra.mrb[204].mxu1 %v14720_v56 }
 0x56b   : > { %v15516_v24 = vadd.f32 %v10871_v14, %v15335_v32  ;;  %6204 = vmatprep.mubr.bf16.mxu1 %v17926_v35  ;;  %11671 = vmatpush3.bf16.msra.mxu1 %v12438_v11 }
 0x56c   : > { %11672 = vmatprep.subr.bf16.mxu1 %v12439_v44 }
 0x56d   : > { %v10872_v13 = vpop.f32.mrb[100].mxu1 }
 0x56e   : > { %v10873_v23 = vpop.f32.mrb[101].mxu1 }
 0x56f   : > { %v10874_v16 = vadd.f32 %v10873_v23, %v10872_v13  ;;  %v10875_v8 = vpop.f32.mrb[102].mxu1  ;;  %11673 = vmatpush3.bf16.msra.mxu1 %v12439_v44  ;;  %v17941_v23 = vld [vmem:[#allocation33_spill] sm:$0xff] }
 0x570   : > { %v10876_v63 = vpop.f32.mrb[103].mxu1  ;;  %11706 = vmatprep.subr.bf16.mxu1 %v15522_v31 }
 0x571   : > { %v15526_v32 = vadd.f32 %v10874_v16, %v15350_v54  ;;  %v10877_v56 = vadd.f32 %v10876_v63, %v10875_v8  ;;  %v17940_v54 = vld [vmem:[#allocation32_spill] sm:$0xff] }
 0x572   : > { %6205 = vmatmul.mubr.bf16.gmra.mrb[208].mxu1 %v14729_v51  ;;  %v17942_v63 = vld [vmem:[#allocation40_spill] sm:$0xff] }
 0x573   : > { %v15530_v35 = vadd.f32 %v10877_v56, %v15356_v42  ;;  %6212 = vmatprep.mubr.bf16.mxu1 %v17929_v61 }
 0x575   : > { %v10878_v5 = vpop.f32.mrb[104].mxu1 }
 0x576   : > { %v10879_v19 = vpop.f32.mrb[105].mxu1 }
 0x577   : > { %v10880_v11 = vadd.f32 %v10879_v19, %v10878_v5  ;;  %v10881_v22 = vpop.f32.mrb[106].mxu1 }
 0x578   : > { %v10882_v40 = vpop.f32.mrb[107].mxu1 }
 0x579   : > { %v15534_v9 = vadd.f32 %v10880_v11, %v15366_v39  ;;  %v10883_v12 = vadd.f32 %v10882_v40, %v10881_v22  ;;  %v17943_v39 = vld [vmem:[#allocation34_spill] sm:$0xff]  ;;  %v17944_v40 = vld [vmem:[#allocation35_spill] sm:$0xff] }
 0x57a   : > { %6213 = vmatmul.mubr.bf16.gmra.mrb[212].mxu1 %v17939_v57 }
 0x57b   : > { %v15538_v44 = vadd.f32 %v10883_v12, %v17940_v54  ;;  %6220 = vmatprep.mubr.bf16.mxu1 %v17932_v50  ;;  %v17945_v54 = vld [vmem:[#allocation43_spill] sm:$0xff] }
 0x57d   : > { %v10884_v51 = vpop.f32.mrb[108].mxu1 }
 0x57e   : > { %v10885_v42 = vpop.f32.mrb[109].mxu1 }
 0x57f   : > { %v10886_v14 = vadd.f32 %v10885_v42, %v10884_v51  ;;  %v10887_v61 = vpop.f32.mrb[110].mxu1  ;;  %v17946_v51 = vld [vmem:[#allocation36_spill] sm:$0xff] }
 0x580   : > { %v10888_v13 = vpop.f32.mrb[111].mxu1 }
 0x581   : > { %v15542_v16 = vadd.f32 %v10886_v14, %v17941_v23  ;;  %v10889_v8 = vadd.f32 %v10888_v13, %v10887_v61 }
 0x582   : > { %6221 = vmatmul.mubr.bf16.gmra.mrb[216].mxu1 %v17942_v63 }
 0x583   : > { %v15546_v56 = vadd.f32 %v10889_v8, %v17943_v39  ;;  %6228 = vmatprep.mubr.bf16.mxu1 %v17935_v25  ;;  %v17947_v8 = vld [vmem:[#allocation38_spill] sm:$0xff] }
 0x585   : > { %v10890_v5 = vpop.f32.mrb[112].mxu1 }
 0x586   : > { %v10891_v19 = vpop.f32.mrb[113].mxu1 }
 0x587   : > { %v10892_v11 = vadd.f32 %v10891_v19, %v10890_v5  ;;  %v10893_v50 = vpop.f32.mrb[114].mxu1  ;;  %v17948_v5 = vld [vmem:[#allocation44_spill] sm:$0xff]  ;;  %v17949_v19 = vld [vmem:[#allocation39_spill] sm:$0xff] }
 0x588   : > { %v10894_v22 = vpop.f32.mrb[115].mxu1 }
 0x589   : > { %v15550_v12 = vadd.f32 %v10892_v11, %v17944_v40  ;;  %v10895_v57 = vadd.f32 %v10894_v22, %v10893_v50 }
 0x58a   : > { %6229 = vmatmul.mubr.bf16.gmra.mrb[220].mxu1 %v17945_v54 }
 0x58b   : > { %v15554_v42 = vadd.f32 %v10895_v57, %v17946_v51  ;;  %6236 = vmatprep.mubr.bf16.mxu1 %v17937_v15 }
 0x58d   : > { %v10896_v14 = vpop.f32.mrb[116].mxu1 }
 0x58e   : > { %v10897_v61 = vpop.f32.mrb[117].mxu1 }
 0x58f   : > { %v10898_v13 = vadd.f32 %v10897_v61, %v10896_v14  ;;  %v10899_v25 = vpop.f32.mrb[118].mxu1  ;;  %v17950_v14 = vld [vmem:[#allocation46_spill] sm:$0xff]  ;;  %v17951_v61 = vld [vmem:[#allocation41_spill] sm:$0xff] }
 0x590   : > { %v10900_v23 = vpop.f32.mrb[119].mxu1 }
 0x591   : > { %v15558_v63 = vadd.f32 %v10898_v13, %v17947_v8  ;;  %v10901_v39 = vadd.f32 %v10900_v23, %v10899_v25 }
 0x592   : > { %6237 = vmatmul.mubr.bf16.gmra.mrb[224].mxu1 %v17948_v5 }
 0x593   : > { %v15562_v11 = vadd.f32 %v10901_v39, %v17949_v19  ;;  %6244 = vmatprep.mubr.bf16.mxu1 %v14915_v59 }
 0x595   : > { %v10902_v50 = vpop.f32.mrb[120].mxu1 }
 0x596   : > { %v10903_v22 = vpop.f32.mrb[121].mxu1 }
 0x597   : > { %v10904_v40 = vadd.f32 %v10903_v22, %v10902_v50  ;;  %v10905_v15 = vpop.f32.mrb[122].mxu1  ;;  %v17952_v50 = vld [vmem:[#allocation47_spill] sm:$0xff] }
 0x598   : > { %v10906_v57 = vpop.f32.mrb[123].mxu1 }
 0x599   : > { %v15566_v54 = vadd.f32 %v10904_v40, %v15390_v28  ;;  %v10907_v51 = vadd.f32 %v10906_v57, %v10905_v15  ;;  %v17953_v28 = vld [vmem:[#allocation42_spill] sm:$0xff] }
 0x59a   : > { %6245 = vmatmul.mubr.bf16.gmra.mrb[228].mxu1 %v17950_v14 }
 0x59b   : > { %v15570_v13 = vadd.f32 %v10907_v51, %v17951_v61  ;;  %6252 = vmatprep.mubr.bf16.mxu1 %v14932_v60  ;;  %v17954_v61 = vld [vmem:[#allocation48_spill] sm:$0xff] }
 0x59d   : > { %v10908_v25 = vpop.f32.mrb[124].mxu1 }
 0x59e   : > { %v10909_v23 = vpop.f32.mrb[125].mxu1 }
 0x59f   : > { %v10910_v8 = vadd.f32 %v10909_v23, %v10908_v25  ;;  %v10911_v59 = vpop.f32.mrb[126].mxu1  ;;  %v4665_v25 = vshll.u32 %v15461_v0, 16  ;;  %v4671_v23 = vshll.u32 %v15446_v37, 16 }
 0x5a0   : > { %v10912_v39 = vpop.f32.mrb[127].mxu1 }
 0x5a1   : > { %v15574_v5 = vadd.f32 %v10910_v8, %v15396_v62  ;;  %v10913_v19 = vadd.f32 %v10912_v39, %v10911_v59  ;;  %v4662_v62 = vshrl.u32 %v15461_v0, 16  ;;  %v4675_v8 = vshrl.u32 %v15446_v37, 16 }
 0x5a2   : > { %6253 = vmatmul.mubr.bf16.gmra.mrb[232].mxu1 %v17952_v50 }
 0x5a3   : > { %v15578_v22 = vadd.f32 %v10913_v19, %v17953_v28  ;;  %6260 = vmatprep.mubr.bf16.mxu1 %v14993_v2 }
 0x5a5   : > { %v10930_v40 = vpop.f32.mrb[128].mxu1 }
 0x5a6   : > { %v10931_v15 = vpop.f32.mrb[129].mxu1 }
 0x5a7   : > { %v10932_v57 = vadd.f32 %v10931_v15, %v10930_v40  ;;  %v10933_v60 = vpop.f32.mrb[130].mxu1  ;;  %v4667_v15 = vrot.slane %v4665_v25, 5 }
 0x5a8   : > { %v10934_v51 = vpop.f32.mrb[131].mxu1 }
 0x5a9   : > { %v10935_v14 = vadd.f32 %v10934_v51, %v10933_v60  ;;  %v15588_v2 = vadd.f32 %v10932_v57, %v15403_v30  ;;  %v4673_v60 = vrot.slane %v4671_v23, 5  ;;  %v4677_v51 = vrot.slane %v4675_v8, 4 }
 0x5aa   : > { %6261 = vmatmul.mubr.bf16.gmra.mrb[236].mxu1 %v17954_v61  ;;  %v4681_v30 = vshll.u32 %v15463_v52, 16 }
 0x5ab   : > { %6268 = vmatprep.mubr.bf16.mxu1 %v15016_v38  ;;  %v15591_v28 = vadd.f32 %v10935_v14, %v15407_v33  ;;  %v4664_v38 = vrot.slane %v4662_v62, 4  ;;  %v4678_v41 = vor.u32 %v4677_v51, %v4673_v60 }
 0x5ad   : > { %v10936_v59 = vpop.f32.mrb[132].mxu1  ;;  %v4668_v29 = vor.u32 %v4667_v15, %v4664_v38  ;;  %v4679_v8 = vrot.slane %v4678_v41, 4 }
 0x5ae   : > { %v10937_v39 = vpop.f32.mrb[133].mxu1 }
 0x5af   : > { %v10938_v19 = vadd.f32 %v10937_v39, %v10936_v59  ;;  %v10939_v50 = vpop.f32.mrb[134].mxu1  ;;  %v4669_v23 = vrot.slane %v4668_v29, 4 }
 0x5b0   : > { %v10940_v40 = vpop.f32.mrb[135].mxu1 }
 0x5b1   : > { %v10941_v61 = vadd.f32 %v10940_v40, %v10939_v50  ;;  %v15597_v59 = vadd.f32 %v10938_v19, %v15411_v21  ;;  %v4674_v40 = vsel %vm12846_vm5, %v4669_v23, %v4673_v60 }
 0x5b2   : > { %6269 = vmatmul.mubr.bf16.gmra.mrb[240].mxu1 %v17955_v4  ;;  %v4683_v4 = vrot.slane %v4681_v30, 5 }
 0x5b3   : > { %6276 = vmatprep.mubr.bf16.mxu1 %v15028_v45  ;;  %v15600_v62 = vadd.f32 %v10941_v61, %v15415_v18  ;;  %v17956_v45 = vld [vmem:[#allocation50_spill] sm:$0xff] }
 0x5b4   : > { %v4684_v21 = vsel %vm12846_vm5, %v4679_v8, %v4683_v4  ;;  %v17959_v8 = vld [vmem:[#allocation56_spill] sm:$0xff] }
 0x5b5   : > { %v10942_v57 = vpop.f32.mrb[136].mxu1  ;;  %v10356_v41 = vcombine.low %v4674_v40, %v4684_v21 }
 0x5b6   : > { %v10943_v33 = vpop.f32.mrb[137].mxu1 }
 0x5b7   : > { %v10944_v14 = vadd.f32 %v10943_v33, %v10942_v57  ;;  %v10945_v39 = vpop.f32.mrb[138].mxu1 }
 0x5b8   : > { %v10946_v25 = vpop.f32.mrb[139].mxu1 }
 0x5b9   : > { %v10947_v50 = vadd.f32 %v10946_v25, %v10945_v39  ;;  %v15609_v38 = vadd.f32 %v10944_v14, %v15419_v48  ;;  %v10355_v48 = vcombine.low %v15461_v0, %v15446_v37 }
 0x5ba   : > { %6277 = vmatmul.mubr.bf16.gmra.mrb[244].mxu1 %v17956_v45 }
 0x5bb   : > { %6284 = vmatprep.mubr.bf16.mxu1 %v15179_v55  ;;  %v15612_v51 = vadd.f32 %v10947_v50, %v15423_v49  ;;  %v17958_v55 = vld [vmem:[#allocation63_spill] sm:$0xff] }
 0x5bd   : > { %v10948_v19 = vpop.f32.mrb[140].mxu1 }
 0x5be   : > { %v10949_v18 = vpop.f32.mrb[141].mxu1 }
 0x5bf   : > { %v10950_v15 = vadd.f32 %v10949_v18, %v10948_v19  ;;  %v10951_v29 = vpop.f32.mrb[142].mxu1  ;;  %v17960_v19 = vld [vmem:[#allocation57_spill] sm:$0xff]  ;;  %v17961_v18 = vld [vmem:[#allocation58_spill] sm:$0xff] }
 0x5c0   : > { %v10952_v61 = vpop.f32.mrb[143].mxu1 }
 0x5c1   : > { %v10953_v30 = vadd.f32 %v10952_v61, %v10951_v29  ;;  %v15616_v57 = vadd.f32 %v10950_v15, %v15427_v3 }
 0x5c2   : > { %6285 = vmatmul.mubr.bf16.gmra.mrb[248].mxu1 %v17958_v55 }
 0x5c3   : > { %6292 = vmatprep.mubr.bf16.mxu1 %v10356_v41  ;;  %v15621_v25 = vadd.f32 %v10953_v30, %v15431_v34  ;;  %v12442_v34 = vld [vmem:[%s17716_s7 + $0x8] sm:$0xff]  }
 0x5c5   : > { %v10954_v60 = vpop.f32.mrb[144].mxu1 }
 0x5c6   : > { %v10955_v33 = vpop.f32.mrb[145].mxu1 }
 0x5c7   : > { %v10956_v14 = vadd.f32 %v10955_v33, %v10954_v60  ;;  %v10957_v39 = vpop.f32.mrb[146].mxu1  ;;  %v17962_v33 = vld [vmem:[#allocation59_spill] sm:$0xff] }
 0x5c8   : > { %v10958_v49 = vpop.f32.mrb[147].mxu1 }
 0x5c9   : > { %v10959_v23 = vadd.f32 %v10958_v49, %v10957_v39  ;;  %v15625_v50 = vadd.f32 %v10956_v14, %v15435_v46  ;;  %v12443_v46 = vld [vmem:[%s17716_s7 + $0x10] sm:$0xff]  }
 0x5ca   : > { %6293 = vmatmul.mubr.bf16.gmra.mrb[252].mxu1 %v10355_v48  ;;  %v17963_v48 = vld [vmem:[#allocation60_spill] sm:$0xff] }
 0x5cb   : > { %11674 = vmatprep.mubr.bf16.mxu1 %v17959_v8  ;;  %v15628_v21 = vadd.f32 %v10959_v23, %v15443_v43 }
 0x5cd   : > { %v10960_v4 = vpop.f32.mrb[148].mxu1 }
 0x5ce   : > { %v10961_v3 = vpop.f32.mrb[149].mxu1 }
 0x5cf   : > { %v10962_v45 = vadd.f32 %v10961_v3, %v10960_v4  ;;  %v10963_v40 = vpop.f32.mrb[150].mxu1  ;;  %v12446_v3 = vld [vmem:[%s17716_s7 + $0x28] sm:$0xff]  }
 0x5d0   : > { %v10964_v37 = vpop.f32.mrb[151].mxu1 }
 0x5d1   : > { %v10965_v0 = vadd.f32 %v10964_v37, %v10963_v40  ;;  %v15640_v43 = vadd.f32 %v10962_v45, %v15453_v47  ;;  %v12445_v47 = vld [vmem:[%s17716_s7 + $0x20] sm:$0xff]   ;;  %v17965_v37 = vld [vmem:[#allocation62_spill] sm:$0xff] }
 0x5d2   : > { %11675 = vmatmul.mubr.bf16.vlgmr.msra.gmra.mrb[0].mxu1 %v17960_v19  ;;  %v17964_v40 = vld [vmem:[#allocation61_spill] sm:$0xff] }
 0x5d3   : > { %11678 = vmatprep.mubr.bf16.mxu1 %v17961_v18  ;;  %11707 = vmatpush3.bf16.msra.mxu1 %v15522_v31  ;;  %v15643_v30 = vadd.f32 %v10965_v0, %v15457_v17  ;;  %v12444_v31 = vld [vmem:[%s17716_s7 + $0x18] sm:$0xff]  }
 0x5d4   : > { %11708 = vmatprep.subr.bf16.mxu1 %v12442_v34 }
 0x5d5   : > { %v10966_v15 = vpop.f32.mrb[152].mxu1 }
 0x5d6   : > { %v10967_v29 = vpop.f32.mrb[153].mxu1 }
 0x5d7   : > { %v10968_v41 = vadd.f32 %v10967_v29, %v10966_v15  ;;  %v10969_v61 = vpop.f32.mrb[154].mxu1  ;;  %11709 = vmatpush3.bf16.msra.mxu1 %v12442_v34  ;;  %v12448_v29 = vld [vmem:[%s17716_s7 + $0x38] sm:$0xff]  }
 0x5d8   : > { %v10970_v55 = vpop.f32.mrb[155].mxu1  ;;  %11710 = vmatprep.subr.bf16.mxu1 %v12443_v46 }
 0x5d9   : > { %v10971_v60 = vadd.f32 %v10970_v55, %v10969_v61  ;;  %v15654_v17 = vadd.f32 %v10968_v41, %v15484_v27  ;;  %v12447_v27 = vld [vmem:[%s17716_s7 + $0x30] sm:$0xff]   ;;  %v17967_v55 = vld [vmem:[#allocation52_spill] sm:$0xff] }
 0x5da   : > { %11679 = vmatmul.mubr.bf16.gmra.mrb[4].mxu1 %v17962_v33  ;;  %v17966_v61 = vld [vmem:[#allocation51_spill] sm:$0xff] }
 0x5db   : > { %11682 = vmatprep.mubr.bf16.mxu1 %v17963_v48  ;;  %11711 = vmatpush3.bf16.msra.mxu1 %v12443_v46  ;;  %v15657_v8 = vadd.f32 %v10971_v60, %v15488_v26 }
 0x5dc   : > { %11712 = vmatprep.subr.bf16.mxu1 %v12444_v31 }
 0x5dd   : > { %v10972_v14 = vpop.f32.mrb[156].mxu1 }
 0x5de   : > { %v10973_v39 = vpop.f32.mrb[157].mxu1 }
 0x5df   : > { %v10974_v49 = vadd.f32 %v10973_v39, %v10972_v14  ;;  %v10975_v23 = vpop.f32.mrb[158].mxu1  ;;  %11713 = vmatpush3.bf16.msra.mxu1 %v12444_v31  ;;  %v17968_v39 = vld [vmem:[#allocation53_spill] sm:$0xff] }
 0x5e0   : > { %v10976_v4 = vpop.f32.mrb[159].mxu1  ;;  %11714 = vmatprep.subr.bf16.mxu1 %v12445_v47 }
 0x5e1   : > { %v10977_v45 = vadd.f32 %v10976_v4, %v10975_v23  ;;  %v15668_v26 = vadd.f32 %v10974_v49, %v15498_v6  ;;  %v17969_v49 = vld [vmem:[#allocation54_spill] sm:$0xff] }
 0x5e2   : > { %11683 = vmatmul.mubr.bf16.gmra.mrb[8].mxu1 %v17964_v40 }
 0x5e3   : > { %11686 = vmatprep.mubr.bf16.mxu1 %v17965_v37  ;;  %11715 = vmatpush3.bf16.msra.mxu1 %v12445_v47  ;;  %v15671_v46 = vadd.f32 %v10977_v45, %v15502_v7 }
 0x5e4   : > { %11716 = vmatprep.subr.bf16.mxu1 %v12446_v3 }
 0x5e5   : > { %v10978_v34 = vpop.f32.mrb[160].mxu1 }
 0x5e6   : > { %v10979_v0 = vpop.f32.mrb[161].mxu1 }
 0x5e7   : > { %v10980_v19 = vadd.f32 %v10979_v0, %v10978_v34  ;;  %v10981_v18 = vpop.f32.mrb[162].mxu1  ;;  %11717 = vmatpush3.bf16.msra.mxu1 %v12446_v3 }
 0x5e8   : > { %v10982_v15 = vpop.f32.mrb[163].mxu1  ;;  %11718 = vmatprep.subr.bf16.mxu1 %v12447_v27 }
 0x5e9   : > { %v10983_v41 = vadd.f32 %v10982_v15, %v10981_v18  ;;  %v15679_v31 = vadd.f32 %v10980_v19, %v15512_v53 }
 0x5ea   : > { %11687 = vmatmul.mubr.bf16.gmra.mrb[12].mxu1 %v17966_v61 }
 0x5eb   : > { %11690 = vmatprep.mubr.bf16.mxu1 %v17967_v55  ;;  %11719 = vmatpush3.bf16.msra.mxu1 %v12447_v27  ;;  %v15682_v48 = vadd.f32 %v10983_v41, %v15516_v24 }
 0x5ec   : > { %11720 = vmatprep.subr.bf16.mxu1 %v12448_v29 }
 0x5ed   : > { %v10984_v6 = vpop.f32.mrb[164].mxu1 }
 0x5ee   : > { %v10985_v60 = vpop.f32.mrb[165].mxu1 }
 0x5ef   : > { %v10986_v7 = vadd.f32 %v10985_v60, %v10984_v6  ;;  %v10987_v33 = vpop.f32.mrb[166].mxu1  ;;  %11721 = vmatpush3.bf16.msra.mxu1 %v12448_v29 }
 0x5f0   : > { %v10988_v47 = vpop.f32.mrb[167].mxu1 }
 0x5f1   : > { %v10989_v14 = vadd.f32 %v10988_v47, %v10987_v33  ;;  %v15687_v4 = vadd.f32 %v10986_v7, %v15526_v32  ;;  %v17972_v7 = vld [vmem:[#allocation13_spill] sm:$0xff] }
 0x5f2   : > { %11691 = vmatmul.mubr.bf16.gmra.mrb[16].mxu1 %v17968_v39 }
 0x5f3   : > { %11694 = vmatprep.mubr.bf16.mxu1 %v17969_v49  ;;  %v15690_v40 = vadd.f32 %v10989_v14, %v15530_v35  ;;  %v17970_v35 = vld [vmem:[#allocation55_spill] sm:$0xff] }
 0x5f5   : > { %v10990_v23 = vpop.f32.mrb[168].mxu1 }
 0x5f6   : > { %v10991_v3 = vpop.f32.mrb[169].mxu1 }
 0x5f7   : > { %v10992_v53 = vadd.f32 %v10991_v3, %v10990_v23  ;;  %v10993_v45 = vpop.f32.mrb[170].mxu1  ;;  %v17973_v23 = vld [vmem:[#allocation14_spill] sm:$0xff]  ;;  %v17974_v3 = vld [vmem:[#allocation15_spill] sm:$0xff] }
 0x5f8   : > { %v10994_v37 = vpop.f32.mrb[171].mxu1 }
 0x5f9   : > { %v10995_v27 = vadd.f32 %v10994_v37, %v10993_v45  ;;  %v15695_v34 = vadd.f32 %v10992_v53, %v15534_v9 }
 0x5fa   : > { %11695 = vmatmul.mubr.bf16.gmra.mrb[20].mxu1 %v15120_v10 }
 0x5fb   : > { %11698 = vmatprep.mubr.bf16.mxu1 %v15130_v1  ;;  %v15698_v18 = vadd.f32 %v10995_v27, %v15538_v44  ;;  %v17971_v44 = vcombine.low %v15472_v36, %v15476_v20 }
 0x5fd   : > { %v10996_v24 = vpop.f32.mrb[172].mxu1 }
 0x5fe   : > { %v10997_v0 = vpop.f32.mrb[173].mxu1 }
 0x5ff   : > { %v10998_v19 = vadd.f32 %v10997_v0, %v10996_v24  ;;  %v10999_v32 = vpop.f32.mrb[174].mxu1  ;;  %v17976_v0 = vld [vmem:[#allocation18_spill] sm:$0xff] }
 0x600   : > { %v11000_v15 = vpop.f32.mrb[175].mxu1 }
 0x601   : > { %v11001_v29 = vadd.f32 %v11000_v15, %v10999_v32  ;;  %v15703_v10 = vadd.f32 %v10998_v19, %v15542_v16 }
 0x602   : > { %11699 = vmatmul.mubr.bf16.gmra.mrb[24].mxu1 %v17970_v35 }
 0x603   : > { %11702 = vmatprep.mubr.bf16.mxu1 %v15156_v58  ;;  %v15706_v55 = vadd.f32 %v11001_v29, %v15546_v56 }
 0x605   : > { %v11002_v41 = vpop.f32.mrb[176].mxu1 }
 0x606   : > { %v11003_v1 = vpop.f32.mrb[177].mxu1 }
 0x607   : > { %v11004_v61 = vadd.f32 %v11003_v1, %v11002_v41  ;;  %v11005_v9 = vpop.f32.mrb[178].mxu1 }
 0x608   : > { %v11006_v6 = vpop.f32.mrb[179].mxu1 }
 0x609   : > { %v11007_v60 = vadd.f32 %v11006_v6, %v11005_v9  ;;  %v15713_v58 = vadd.f32 %v11004_v61, %v15550_v12  ;;  %v17978_v61 = vld [vmem:[#allocation20_spill] sm:$0xff] }
 0x60a   : > { %11703 = vmatmul.mubr.bf16.gmra.mrb[28].mxu1 %v17971_v44 }
 0x60b   : > { %11722 = vmatprep.mubr.bf16.mxu1 %v17972_v7  ;;  %v15716_v39 = vadd.f32 %v11007_v60, %v15554_v42  ;;  %v17975_v42 = vld [vmem:[#allocation16_spill] sm:$0xff] }
 0x60d   : > { %v11008_v33 = vpop.f32.mrb[180].mxu1 }
 0x60e   : > { %v11009_v16 = vpop.f32.mrb[181].mxu1 }
 0x60f   : > { %v11010_v47 = vadd.f32 %v11009_v16, %v11008_v33  ;;  %v11011_v14 = vpop.f32.mrb[182].mxu1 }
 0x610   : > { %v11012_v56 = vpop.f32.mrb[183].mxu1 }
 0x611   : > { %v11013_v49 = vadd.f32 %v11012_v56, %v11011_v14  ;;  %v15721_v20 = vadd.f32 %v11010_v47, %v15558_v63  ;;  %v17980_v14 = vld [vmem:[#allocation22_spill] sm:$0xff]  ;;  %v12450_v56 = vld [vmem:[%s17719_s10 + $0x80] sm:$0xff]  }
 0x612   : > { %11723 = vmatmul.mubr.bf16.vlgmr.msra.gmra.mrb[32].mxu1 %v17973_v23 }
 0x613   : > { %11726 = vmatprep.mubr.bf16.mxu1 %v17974_v3  ;;  %v15724_v37 = vadd.f32 %v11013_v49, %v15562_v11  ;;  %v17977_v11 = vld [vmem:[#allocation19_spill] sm:$0xff] }
 0x615   : > { %v11014_v36 = vpop.f32.mrb[184].mxu1 }
 0x616   : > { %v11015_v53 = vpop.f32.mrb[185].mxu1 }
 0x617   : > { %v11016_v45 = vadd.f32 %v11015_v53, %v11014_v36  ;;  %v11017_v12 = vpop.f32.mrb[186].mxu1 }
 0x618   : > { %v11018_v27 = vpop.f32.mrb[187].mxu1 }
 0x619   : > { %v11019_v24 = vadd.f32 %v11018_v27, %v11017_v12  ;;  %v15729_v32 = vadd.f32 %v11016_v45, %v15566_v54  ;;  %v17981_v12 = vld [vmem:[#allocation23_spill] sm:$0xff]  ;;  %v17982_v27 = vld [vmem:[#allocation24_spill] sm:$0xff] }
 0x61a   : > { %11727 = vmatmul.mubr.bf16.gmra.mrb[36].mxu1 %v17975_v42 }
 0x61b   : > { %11730 = vmatprep.mubr.bf16.mxu1 %v17976_v0  ;;  %v15732_v35 = vadd.f32 %v11019_v24, %v15570_v13  ;;  %v17979_v13 = vld [vmem:[#allocation21_spill] sm:$0xff] }
 0x61d   : > { %v11020_v19 = vpop.f32.mrb[188].mxu1 }
 0x61e   : > { %v11021_v15 = vpop.f32.mrb[189].mxu1 }
 0x61f   : > { %v11022_v29 = vadd.f32 %v11021_v15, %v11020_v19  ;;  %v11023_v63 = vpop.f32.mrb[190].mxu1 }
 0x620   : > { %v11024_v41 = vpop.f32.mrb[191].mxu1 }
 0x621   : > { %v11025_v1 = vadd.f32 %v11024_v41, %v11023_v63  ;;  %v15737_v6 = vadd.f32 %v11022_v29, %v15574_v5  ;;  %v12449_v5 = vld [vmem:[%s17719_s10 + $0xc0] sm:$0xff]  }
 0x622   : > { %11731 = vmatmul.mubr.bf16.gmra.mrb[40].mxu1 %v17977_v11  ;;  %11298 = vmatprep.subr.bf16.mxu0 %v12449_v5  ;;  %v17983_v41 = vld [vmem:[#allocation25_spill] sm:$0xff]  ;;  %v12452_v11 = vld [vmem:[%s17719_s10 + $0x88] sm:$0xff]  }
 0x623   : > { %11734 = vmatprep.mubr.bf16.mxu1 %v17978_v61  ;;  %v15740_v7 = vadd.f32 %v11025_v1, %v15578_v22  ;;  %11299 = vmatpush3.bf16.msra.mxu0 %v12450_v56 }
 0x625   : > { %v11042_v9 = vpop.f32.mrb[192].mxu1 }
 0x626   : > { %v11043_v60 = vpop.f32.mrb[193].mxu1 }
 0x627   : > { %v11044_v44 = vadd.f32 %v11043_v60, %v11042_v9  ;;  %v11045_v54 = vpop.f32.mrb[194].mxu1 }
 0x628   : > { %v11046_v33 = vpop.f32.mrb[195].mxu1 }
 0x629   : > { %v11047_v16 = vadd.f32 %v11046_v33, %v11045_v54  ;;  %v15744_v47 = vadd.f32 %v11044_v44, %v15588_v2 }
 0x62a   : > { %11735 = vmatmul.mubr.bf16.gmra.mrb[44].mxu1 %v17979_v13 }
 0x62b   : > { %11738 = vmatprep.mubr.bf16.mxu1 %v17980_v14  ;;  %v15754_v22 = vadd.f32 %v11047_v16, %v15591_v28  ;;  %v17986_v16 = vld [vmem:[#allocation28_spill] sm:$0xff] }
 0x62d   : > { %v11048_v49 = vpop.f32.mrb[196].mxu1 }
 0x62e   : > { %v11049_v23 = vpop.f32.mrb[197].mxu1 }
 0x62f   : > { %v11050_v3 = vadd.f32 %v11049_v23, %v11048_v49  ;;  %v11051_v2 = vpop.f32.mrb[198].mxu1 }
 0x630   : > { %v11052_v36 = vpop.f32.mrb[199].mxu1 }
 0x631   : > { %v11053_v53 = vadd.f32 %v11052_v36, %v11051_v2  ;;  %v15757_v45 = vadd.f32 %v11050_v3, %v15597_v59  ;;  %v17984_v59 = vld [vmem:[#allocation26_spill] sm:$0xff]  ;;  %v17987_v36 = vld [vmem:[#allocation17_spill] sm:$0xff] }
 0x632   : > { %11739 = vmatmul.mubr.bf16.gmra.mrb[48].mxu1 %v17981_v12  ;;  %v12455_v12 = vld [vmem:[%s17719_s10] sm:$0xff]  }
 0x633   : > { %11742 = vmatprep.mubr.bf16.mxu1 %v17982_v27  ;;  %v15762_v24 = vadd.f32 %v11053_v53, %v15600_v62  ;;  %v12451_v62 = vld [vmem:[%s17719_s10 + $0xc8] sm:$0xff]   ;;  %v12453_v53 = vld [vmem:[%s17719_s10 + $0x40] sm:$0xff]  }
 0x634   : > { %11300 = vmatprep.subr.bf16.mxu0 %v12451_v62  ;;  %11186 = vmatprep.subr.bf16.mxu1 %v12453_v53  ;;  %v12464_v53 = vld [vmem:[%s17719_s10 + $0x18] sm:$0xff]  }
 0x635   : > { %v11054_v28 = vpop.f32.mrb[200].mxu1  ;;  %11301 = vmatpush3.bf16.msra.mxu0 %v12452_v11  ;;  %11187 = vmatpush3.bf16.msra.mxu1 %v12455_v12 }
 0x636   : > { %v11055_v42 = vpop.f32.mrb[201].mxu1 }
 0x637   : > { %v11056_v0 = vadd.f32 %v11055_v42, %v11054_v28  ;;  %v11057_v19 = vpop.f32.mrb[202].mxu1 }
 0x638   : > { %v11058_v15 = vpop.f32.mrb[203].mxu1 }
 0x639   : > { %v11059_v29 = vadd.f32 %v11058_v15, %v11057_v19  ;;  %v15765_v63 = vadd.f32 %v11056_v0, %v15609_v38 }
 0x63a   : > { %11743 = vmatmul.mubr.bf16.gmra.mrb[52].mxu1 %v17983_v41  ;;  %v12457_v41 = vld [vmem:[%s17719_s10 + $0x48] sm:$0xff]  }
 0x63b   : > { %11746 = vmatprep.mubr.bf16.mxu1 %v17984_v59  ;;  %v15770_v1 = vadd.f32 %v11059_v29, %v15612_v51  ;;  %v17985_v51 = vld [vmem:[#allocation27_spill] sm:$0xff]  ;;  %v12458_v59 = vld [vmem:[%s17719_s10 + $0x8] sm:$0xff]   ;;  %11188 = vmatprep.subr.bf16.mxu1 %v12457_v41 }
 0x63c   : > { %11189 = vmatpush3.bf16.msra.mxu1 %v12458_v59 }
 0x63d   : > { %v11060_v61 = vpop.f32.mrb[204].mxu1 }
 0x63e   : > { %v11061_v9 = vpop.f32.mrb[205].mxu1 }
 0x63f   : > { %v11062_v38 = vadd.f32 %v11061_v9, %v11060_v61  ;;  %v11063_v60 = vpop.f32.mrb[206].mxu1 }
 0x640   : > { %v11064_v44 = vpop.f32.mrb[207].mxu1 }
 0x641   : > { %v11065_v54 = vadd.f32 %v11064_v44, %v11063_v60  ;;  %v15779_v33 = vadd.f32 %v11062_v38, %v15616_v57  ;;  %v12459_v44 = vld [vmem:[%s17719_s10 + $0x50] sm:$0xff]  }
 0x642   : > { %11747 = vmatmul.mubr.bf16.gmra.mrb[56].mxu1 %v17985_v51  ;;  %v12461_v51 = vld [vmem:[%s17719_s10 + $0x10] sm:$0xff]   ;;  %11190 = vmatprep.subr.bf16.mxu1 %v12459_v44 }
 0x643   : > { %11750 = vmatprep.mubr.bf16.mxu1 %v17986_v16  ;;  %v15784_v13 = vadd.f32 %v11065_v54, %v15621_v25  ;;  %v12454_v25 = vld [vmem:[%s17719_s10 + $0xd0] sm:$0xff]   ;;  %v12460_v54 = vld [vmem:[%s17719_s10 + $0xd8] sm:$0xff]   ;;  %11191 = vmatpush3.bf16.msra.mxu1 %v12461_v51  ;;  %v6917_v51 = vld [vmem:[#allocation3 + $0xc] sm:$0x1] }
 0x644   : > { %11302 = vmatprep.subr.bf16.mxu0 %v12454_v25 }
 0x645   : > { %v11066_v14 = vpop.f32.mrb[208].mxu1 }
 0x646   : > { %v11067_v5 = vpop.f32.mrb[209].mxu1 }
 0x647   : > { %v11068_v56 = vadd.f32 %v11067_v5, %v11066_v14  ;;  %v11069_v49 = vpop.f32.mrb[210].mxu1 }
 0x648   : > { %v11070_v23 = vpop.f32.mrb[211].mxu1 }
 0x649   : > { %v11071_v3 = vadd.f32 %v11070_v23, %v11069_v49  ;;  %v15787_v2 = vadd.f32 %v11068_v56, %v15625_v50  ;;  %v12456_v50 = vld [vmem:[%s17719_s10 + $0x90] sm:$0xff]  }
 0x64a   : > { %11751 = vmatmul.mubr.bf16.gmra.mrb[60].mxu1 %v17987_v36  ;;  %11303 = vmatpush3.bf16.msra.mxu0 %v12456_v50  ;;  %v12463_v36 = vld [vmem:[%s17719_s10 + $0x58] sm:$0xff]  }
 0x64b   : > { %v15791_v57 = vadd.f32 %v11071_v3, %v15628_v21  ;;  %11304 = vmatprep.subr.bf16.mxu0 %v12460_v54  ;;  %11192 = vmatprep.subr.bf16.mxu1 %v12463_v36  ;;  %v12467_v36 = vld [vmem:[%s17719_s10 + $0x20] sm:$0xff]  }
 0x64c   : > { %11193 = vmatpush3.bf16.msra.mxu1 %v12464_v53  ;;  %v12468_v53 = vld [vmem:[%s17719_s10 + $0xa0] sm:$0xff]  }
 0x64d   : > { %v11072_v27 = vpop.f32.mrb[212].mxu1 }
 0x64e   : > { %v11073_v21 = vpop.f32.mrb[213].mxu1 }
 0x64f   : > { %v11074_v28 = vadd.f32 %v11073_v21, %v11072_v27  ;;  %v11075_v42 = vpop.f32.mrb[214].mxu1 }
 0x650   : > { %v11076_v0 = vpop.f32.mrb[215].mxu1 }
 0x651   : > { %v11077_v19 = vadd.f32 %v11076_v0, %v11075_v42  ;;  %v15806_v15 = vadd.f32 %v11074_v28, %v15640_v43  ;;  %v6920_v42 = vld [vmem:[#allocation3 + $0x18] sm:$0x1] }
 0x652   : > { %v6921_v41 = vsel %vm14089_vm8, 0, %v6920_v42 }
 0x653   : > { %v15809_v29 = vadd.f32 %v11077_v19, %v15643_v30  ;;  %6922 = vst [vmem:[#allocation3 + $0x18] sm:$0x1] %v6921_v41  ;;  %v6923_v41 = vld [vmem:[#allocation3 + $0x24] sm:$0x1]  ;;  %v12582_v19 = vld [vmem:[%s17719_s10 + $0x200] sm:$0xff]  }
 0x655   : > { %v11078_v62 = vpop.f32.mrb[216].mxu1 }
 0x656   : > { %v11079_v11 = vpop.f32.mrb[217].mxu1 }
 0x657   : > { %v11080_v61 = vadd.f32 %v11079_v11, %v11078_v62  ;;  %v11081_v9 = vpop.f32.mrb[218].mxu1 }
 0x658   : > { %v11082_v38 = vpop.f32.mrb[219].mxu1 }
 0x659   : > { %v11083_v43 = vadd.f32 %v11082_v38, %v11081_v9  ;;  %v15818_v60 = vadd.f32 %v11080_v61, %v15654_v17  ;;  %v12462_v17 = vld [vmem:[%s17719_s10 + $0x98] sm:$0xff]  }
 0x65a   : > { %11305 = vmatpush3.bf16.msra.mxu0 %v12462_v17 }
 0x65b   : > { %v15821_v30 = vadd.f32 %v11083_v43, %v15657_v8 }
 0x65d   : > { %v11084_v16 = vpop.f32.mrb[220].mxu1 }
 0x65e   : > { %v11085_v8 = vpop.f32.mrb[221].mxu1 }
 0x65f   : > { %v11086_v14 = vadd.f32 %v11085_v8, %v11084_v16  ;;  %v11087_v5 = vpop.f32.mrb[222].mxu1  ;;  %v6918_v16 = vsel %vm14089_vm8, 0, %v6917_v51  ;;  %v12465_v8 = vld [vmem:[%s17719_s10 + $0x60] sm:$0xff]  }
 0x660   : > { %v11088_v56 = vpop.f32.mrb[223].mxu1  ;;  %6919 = vst [vmem:[#allocation3 + $0xc] sm:$0x1] %v6918_v16  ;;  %11194 = vmatprep.subr.bf16.mxu1 %v12465_v8 }
 0x661   : > { %v11089_v49 = vadd.f32 %v11088_v56, %v11087_v5  ;;  %v15836_v23 = vadd.f32 %v11086_v14, %v15668_v26  ;;  %v6974_v14 = vld [vmem:[#allocation3 + $0x20] sm:$0xf]  ;;  %11195 = vmatpush3.bf16.msra.mxu1 %v12467_v36  ;;  %v6929_v36 = vld [vmem:[#allocation3 + $0x3c] sm:$0x1] }
 0x662   : > { %v12532_v56 = vld [vmem:[%s17719_s10 + $0x210] sm:$0xff]  }
 0x663   : > { %v15839_v3 = vadd.f32 %v11089_v49, %v15671_v46  ;;  %v6975_v49 = vsel %vm14101_vm11, 0, %v6974_v14  ;;  %v12470_v14 = vld [vmem:[%s17719_s10 + $0x28] sm:$0xff]  }
 0x664   : > { %6976 = vst [vmem:[#allocation3 + $0x20] sm:$0xf] %v6975_v49  ;;  %v6932_v49 = vld [vmem:[#allocation3 + $0x48] sm:$0x1] }
 0x665   : > { %v11090_v25 = vpop.f32.mrb[224].mxu1 }
 0x666   : > { %v11091_v12 = vpop.f32.mrb[225].mxu1 }
 0x667   : > { %v11092_v50 = vadd.f32 %v11091_v12, %v11090_v25  ;;  %v11093_v27 = vpop.f32.mrb[226].mxu1  ;;  %v6971_v25 = vld [vmem:[#allocation3 + $0x14] sm:$0xf]  ;;  %v6926_v12 = vld [vmem:[#allocation3 + $0x30] sm:$0x1] }
 0x668   : > { %v11094_v21 = vpop.f32.mrb[227].mxu1 }
 0x669   : > { %v11095_v26 = vadd.f32 %v11094_v21, %v11093_v27  ;;  %v15848_v28 = vadd.f32 %v11092_v50, %v15679_v31  ;;  %v6927_v27 = vsel %vm14089_vm8, 0, %v6926_v12  ;;  %v6986_v12 = vld [vmem:[#allocation3 + $0x50] sm:$0xf] }
 0x66a   : > { %6928 = vst [vmem:[#allocation3 + $0x30] sm:$0x1] %v6927_v27 }
 0x66b   : > { %v15851_v46 = vadd.f32 %v11095_v26, %v15682_v48 }
 0x66d   : > { %v11096_v0 = vpop.f32.mrb[228].mxu1 }
 0x66e   : > { %v11097_v59 = vpop.f32.mrb[229].mxu1 }
 0x66f   : > { %v11098_v62 = vadd.f32 %v11097_v59, %v11096_v0  ;;  %v11099_v11 = vpop.f32.mrb[230].mxu1 }
 0x670   : > { %v11100_v61 = vpop.f32.mrb[231].mxu1 }
 0x671   : > { %v11101_v9 = vadd.f32 %v11100_v61, %v11099_v11  ;;  %v15856_v38 = vadd.f32 %v11098_v62, %v15687_v4  ;;  %v12466_v4 = vld [vmem:[%s17719_s10 + $0xe0] sm:$0xff]   ;;  %v6924_v62 = vsel %vm14089_vm8, 0, %v6923_v41 }
 0x672   : > { %11306 = vmatprep.subr.bf16.mxu0 %v12466_v4  ;;  %6925 = vst [vmem:[#allocation3 + $0x24] sm:$0x1] %v6924_v62  ;;  %v12473_v62 = vld [vmem:[%s17719_s10 + $0x30] sm:$0xff]  }
 0x673   : > { %v15859_v31 = vadd.f32 %v11101_v9, %v15690_v40  ;;  %11307 = vmatpush3.bf16.msra.mxu0 %v12468_v53  ;;  %v6980_v9 = vld [vmem:[#allocation3 + $0x38] sm:$0xf] }
 0x674   : > { %v12471_v53 = vld [vmem:[%s17719_s10 + $0x70] sm:$0xff]  }
 0x675   : > { %v11102_v43 = vpop.f32.mrb[232].mxu1 }
 0x676   : > { %v11103_v48 = vpop.f32.mrb[233].mxu1 }
 0x677   : > { %v11104_v44 = vadd.f32 %v11103_v48, %v11102_v43  ;;  %v11105_v54 = vpop.f32.mrb[234].mxu1  ;;  %v6981_v43 = vsel %vm14101_vm11, 0, %v6980_v9 }
 0x678   : > { %v11106_v17 = vpop.f32.mrb[235].mxu1  ;;  %6982 = vst [vmem:[#allocation3 + $0x38] sm:$0xf] %v6981_v43 }
 0x679   : > { %v11107_v40 = vadd.f32 %v11106_v17, %v11105_v54  ;;  %v15870_v5 = vadd.f32 %v11104_v44, %v15695_v34  ;;  %v6972_v34 = vsel %vm14101_vm11, 0, %v6971_v25 }
 0x67a   : > { %6973 = vst [vmem:[#allocation3 + $0x14] sm:$0xf] %v6972_v34  ;;  %v12472_v34 = vld [vmem:[%s17719_s10 + $0xe8] sm:$0xff]  }
 0x67b   : > { %v15883_v50 = vadd.f32 %v11107_v40, %v15698_v18  ;;  %v12469_v18 = vld [vmem:[%s17719_s10 + $0x68] sm:$0xff]   ;;  %v6977_v40 = vld [vmem:[#allocation3 + $0x2c] sm:$0xf]  ;;  %11308 = vmatprep.subr.bf16.mxu0 %v12472_v34 }
 0x67c   : > { %11196 = vmatprep.subr.bf16.mxu1 %v12469_v18  ;;  %v12474_v18 = vld [vmem:[%s17719_s10 + $0xa8] sm:$0xff]  }
 0x67d   : > { %v11108_v21 = vpop.f32.mrb[236].mxu1  ;;  %11197 = vmatpush3.bf16.msra.mxu1 %v12470_v14  ;;  %11309 = vmatpush3.bf16.msra.mxu0 %v12474_v18 }
 0x67e   : > { %v11109_v26 = vpop.f32.mrb[237].mxu1  ;;  %11198 = vmatprep.subr.bf16.mxu1 %v12471_v53 }
 0x67f   : > { %v11110_v42 = vadd.f32 %v11109_v26, %v11108_v21  ;;  %v11111_v0 = vpop.f32.mrb[238].mxu1  ;;  %v6987_v21 = vsel %vm14101_vm11, 0, %v6986_v12 }
 0x680   : > { %v11112_v59 = vpop.f32.mrb[239].mxu1  ;;  %6988 = vst [vmem:[#allocation3 + $0x50] sm:$0xf] %v6987_v21 }
 0x681   : > { %v11113_v11 = vadd.f32 %v11112_v59, %v11111_v0  ;;  %v15893_v61 = vadd.f32 %v11110_v42, %v15703_v10  ;;  %11199 = vmatpush3.bf16.msra.mxu1 %v12473_v62 }
 0x683   : > { %v15898_v48 = vadd.f32 %v11113_v11, %v15706_v55  ;;  %v6978_v55 = vsel %vm14101_vm11, 0, %v6977_v40  ;;  %v6983_v11 = vld [vmem:[#allocation3 + $0x44] sm:$0xf] }
 0x684   : > { %6979 = vst [vmem:[#allocation3 + $0x2c] sm:$0xf] %v6978_v55  ;;  %v6984_v43 = vsel %vm14101_vm11, 0, %v6983_v11  ;;  %v12476_v55 = vld [vmem:[%s17719_s10 + $0x78] sm:$0xff]  }
 0x685   : > { %v11114_v44 = vpop.f32.mrb[240].mxu1  ;;  %6985 = vst [vmem:[#allocation3 + $0x44] sm:$0xf] %v6984_v43  ;;  %11200 = vmatprep.subr.bf16.mxu1 %v12476_v55  ;;  %v6914_v11 = vld [vmem:[#allocation3] sm:$0x1] }
 0x686   : > { %v11115_v54 = vpop.f32.mrb[241].mxu1  ;;  %v6968_v43 = vld [vmem:[#allocation3 + $0x8] sm:$0xf]  ;;  %v6941_v55 = vld [vmem:[#allocation3 + $0x6c] sm:$0x1] }
 0x687   : > { %v11116_v51 = vadd.f32 %v11115_v54, %v11114_v44  ;;  %v11117_v17 = vpop.f32.mrb[242].mxu1  ;;  %v6938_v44 = vld [vmem:[#allocation3 + $0x60] sm:$0x1] }
 0x688   : > { %v11118_v16 = vpop.f32.mrb[243].mxu1 }
 0x689   : > { %v11119_v8 = vadd.f32 %v11118_v16, %v11117_v17  ;;  %v15901_v4 = vadd.f32 %v11116_v51, %v15713_v58  ;;  %v6933_v58 = vsel %vm14089_vm8, 0, %v6932_v49  ;;  %v12477_v49 = vld [vmem:[%s17719_s10 + $0xb0] sm:$0xff]  }
 0x68a   : > { %6934 = vst [vmem:[#allocation3 + $0x48] sm:$0x1] %v6933_v58 }
 0x68b   : > { %v15904_v10 = vadd.f32 %v11119_v8, %v15716_v39  ;;  %v6930_v39 = vsel %vm14089_vm8, 0, %v6929_v36  ;;  %v6935_v8 = vld [vmem:[#allocation3 + $0x54] sm:$0x1]  ;;  %v6992_v36 = vld [vmem:[#allocation3 + $0x68] sm:$0xf] }
 0x68c   : > { %6931 = vst [vmem:[#allocation3 + $0x3c] sm:$0x1] %v6930_v39  ;;  %v6936_v40 = vsel %vm14089_vm8, 0, %v6935_v8  ;;  %v6993_v58 = vsel %vm14101_vm11, 0, %v6992_v36 }
 0x68d   : > { %v11120_v25 = vpop.f32.mrb[244].mxu1  ;;  %6937 = vst [vmem:[#allocation3 + $0x54] sm:$0x1] %v6936_v40  ;;  %6994 = vst [vmem:[#allocation3 + $0x68] sm:$0xf] %v6993_v58  ;;  %v12484_v58 = vld [vmem:[%s17719_s10 + $0x140] sm:$0xff]  }
 0x68e   : > { %v11121_v27 = vpop.f32.mrb[245].mxu1 }
 0x68f   : > { %v11122_v26 = vadd.f32 %v11121_v27, %v11120_v25  ;;  %v11123_v42 = vpop.f32.mrb[246].mxu1 }
 0x690   : > { %v11124_v0 = vpop.f32.mrb[247].mxu1 }
 0x691   : > { %v11125_v41 = vadd.f32 %v11124_v0, %v11123_v42  ;;  %v15924_v59 = vadd.f32 %v11122_v26, %v15721_v20  ;;  %v6939_v20 = vsel %vm14089_vm8, 0, %v6938_v44  ;;  %v6989_v26 = vld [vmem:[#allocation3 + $0x5c] sm:$0xf]  ;;  %v6915_v44 = vsel %vm14089_vm8, 0, %v6914_v11 }
 0x692   : > { %6940 = vst [vmem:[#allocation3 + $0x60] sm:$0x1] %v6939_v20  ;;  %v6990_v0 = vsel %vm14101_vm11, 0, %v6989_v26  ;;  %v6969_v20 = vsel %vm14101_vm11, 0, %v6968_v43  ;;  %6916 = vst [vmem:[#allocation3] sm:$0x1] %v6915_v44 }
 0x693   : > { %v15933_v9 = vadd.f32 %v11125_v41, %v15724_v37  ;;  %v12475_v37 = vld [vmem:[%s17719_s10 + $0xf0] sm:$0xff]   ;;  %v12479_v41 = vld [vmem:[%s17719_s10 + $0xf8] sm:$0xff]   ;;  %6991 = vst [vmem:[#allocation3 + $0x5c] sm:$0xf] %v6990_v0  ;;  %6970 = vst [vmem:[#allocation3 + $0x8] sm:$0xf] %v6969_v20 }
 0x694   : > { %11310 = vmatprep.subr.bf16.mxu0 %v12475_v37 }
 0x695   : > { %v11126_v54 = vpop.f32.mrb[248].mxu1  ;;  %11311 = vmatpush3.bf16.msra.mxu0 %v12477_v49 }
 0x696   : > { %v11127_v51 = vpop.f32.mrb[249].mxu1  ;;  %11312 = vmatprep.subr.bf16.mxu0 %v12479_v41 }
 0x697   : > { %v11128_v17 = vadd.f32 %v11127_v51, %v11126_v54  ;;  %v11129_v16 = vpop.f32.mrb[250].mxu1  ;;  %v15976_v54 = vld [vmem:[#allocation3 + $0x4] sm:$0xf]  ;;  %v6944_v51 = vld [vmem:[#allocation3 + $0x78] sm:$0x1] }
 0x698   : > { %v11130_v14 = vpop.f32.mrb[251].mxu1  ;;  %v6945_v37 = vsel %vm14089_vm8, 0, %v6944_v51  ;;  %v8087_v36 = vrot.slane %v15976_v54, 5 }
 0x699   : > { %v11131_v53 = vadd.f32 %v11130_v14, %v11129_v16  ;;  %v15951_v25 = vadd.f32 %v11128_v17, %v15729_v32  ;;  %v12478_v32 = vld [vmem:[%s17719_s10 + $0x38] sm:$0xff]   ;;  %v7619_v16 = vshrl.u32 %v15976_v54, 16  ;;  %6946 = vst [vmem:[#allocation3 + $0x78] sm:$0x1] %v6945_v37 }
 0x69a   : > { %11201 = vmatpush3.bf16.msra.mxu1 %v12478_v32  ;;  %v7551_v0 = vld [vmem:[#allocation3] sm:$0xf]  ;;  %v7553_v41 = vld [vmem:[#allocation3 + $0x8] sm:$0xf] }
 0x69b   : > { %v15956_v39 = vadd.f32 %v11131_v53, %v15732_v35  ;;  %v12480_v35 = vld [vmem:[%s17719_s10 + $0xb8] sm:$0xff]   ;;  %v7621_v40 = vrot.slane %v7619_v16, 4  ;;  %v6942_v53 = vsel %vm14089_vm8, 0, %v6941_v55  ;;  %11410 = vmatprep.subr.bf16.mxu1 %v12484_v58  ;;  %v7625_v11 = vshll.u32 %v7553_v41, 16  ;;  %v6995_v55 = vld [vmem:[#allocation3 + $0x74] sm:$0xf] }
 0x69c   : > { %11313 = vmatpush3.bf16.msra.mxu0 %v12480_v35  ;;  %6943 = vst [vmem:[#allocation3 + $0x6c] sm:$0x1] %v6942_v53  ;;  %v8089_v35 = vrot.slane %v8087_v36, 4  ;;  %v8090_v43 = vrot.slane %v7553_v41, 5 }
 0x69d   : > { %v11132_v34 = vpop.f32.mrb[252].mxu1 }
 0x69e   : > { %v11133_v12 = vpop.f32.mrb[253].mxu1 }
 0x69f   : > { %v11134_v27 = vadd.f32 %v11133_v12, %v11132_v34  ;;  %v11135_v21 = vpop.f32.mrb[254].mxu1  ;;  %v6998_v34 = vld [vmem:[#allocation3 + $0x80] sm:$0xf] }
 0x6a0   : > { %v11136_v42 = vpop.f32.mrb[255].mxu1 }
 0x6a1   : > { %v11137_v62 = vadd.f32 %v11136_v42, %v11135_v21  ;;  %v15970_v18 = vadd.f32 %v11134_v27, %v15737_v6  ;;  %v7615_v6 = vshll.u32 %v15976_v54, 16 }
 0x6a3   : > { %v15979_v17 = vadd.f32 %v11137_v62, %v15740_v7  ;;  %v7617_v14 = vrot.slane %v7615_v6, 5  ;;  %v7609_v62 = vshll.u32 %v7551_v0, 16 }
 0x6a5   : > { %v11676_v8 = vpop.f32.mrb[0].mxu1  ;;  %v7622_v42 = vor.u32 %v7621_v40, %v7617_v14  ;;  %v7611_v51 = vrot.slane %v7609_v62, 5  ;;  %v16010_v40 = vsel %vm12835_vm4, %v8089_v35, %v8090_v43 }
 0x6a6   : > { %v15986_v49 = vadd.f32 %v11676_v8, %v15757_v45  ;;  %v6335_v7 = vpop.f32.mrb[1].mxu1  ;;  %v6999_v45 = vsel %vm14101_vm11, 0, %v6998_v34  ;;  %v7627_v8 = vrot.slane %v7625_v11, 5  ;;  %v12485_v11 = vld [vmem:[%s17719_s10 + $0x100] sm:$0xff]  }
 0x6a7   : > { %v15995_v12 = vadd.f32 %v6335_v7, %v15744_v47  ;;  %v11677_v27 = vpop.f32.mrb[2].mxu1  ;;  %7000 = vst [vmem:[#allocation3 + $0x80] sm:$0xf] %v6999_v45  ;;  %v7606_v47 = vshrl.u32 %v7551_v0, 16  ;;  %v7623_v6 = vrot.slane %v7622_v42, 4 }
 0x6a8   : > { %v16000_v21 = vadd.f32 %v11677_v27, %v15762_v24  ;;  %v6338_v32 = vpop.f32.mrb[3].mxu1  ;;  %v10474_v24 = vrot.slane %v7551_v0, 9  ;;  %v6950_v27 = vld [vmem:[#allocation3 + $0x90] sm:$0x1] }
 0x6a9   : > { %v16003_v26 = vadd.f32 %v6338_v32, %v15754_v22  ;;  %v7608_v20 = vrot.slane %v7606_v47, 4  ;;  %v6951_v35 = vsel %vm14089_vm8, 0, %v6950_v27  ;;  %v10492_v47 = vcombine.low %v7551_v0, %v15976_v54  ;;  %v7001_v27 = vld [vmem:[#allocation3 + $0x8c] sm:$0xf] }
 0x6aa   : > { %v16017_v34 = vsel %vm12835_vm4, %v10474_v24, %v8087_v36  ;;  %v7628_v36 = vsel %vm12846_vm5, %v7623_v6, %v7627_v8  ;;  %6952 = vst [vmem:[#allocation3 + $0x90] sm:$0x1] %v6951_v35 }
 0x6ab   : > { %v7612_v58 = vor.u32 %v7611_v51, %v7608_v20 }
 0x6ad   : > { %v11680_v44 = vpop.f32.mrb[4].mxu1  ;;  %v7613_v41 = vrot.slane %v7612_v58, 4 }
 0x6ae   : > { %v16006_v16 = vadd.f32 %v11680_v44, %v15779_v33  ;;  %v6351_v37 = vpop.f32.mrb[5].mxu1  ;;  %v6996_v33 = vsel %vm14101_vm11, 0, %v6995_v55 }
 0x6af   : > { %v16013_v7 = vadd.f32 %v6351_v37, %v15765_v63  ;;  %v11681_v53 = vpop.f32.mrb[6].mxu1  ;;  %6997 = vst [vmem:[#allocation3 + $0x74] sm:$0xf] %v6996_v33 }
 0x6b0   : > { %v16022_v45 = vadd.f32 %v11681_v53, %v15784_v13  ;;  %v6354_v32 = vpop.f32.mrb[7].mxu1  ;;  %v7618_v13 = vsel %vm12846_vm5, %v7613_v41, %v7617_v14  ;;  %v7004_v53 = vld [vmem:[#allocation3 + $0x98] sm:$0xf]  ;;  %v6953_v41 = vld [vmem:[#allocation3 + $0x9c] sm:$0x1] }
 0x6b1   : > { %v16027_v63 = vadd.f32 %v6354_v32, %v15770_v1  ;;  %v10508_v62 = vcombine.low %v7618_v13, %v7628_v36  ;;  %v6947_v1 = vld [vmem:[#allocation3 + $0x84] sm:$0x1]  ;;  %v7005_v33 = vsel %vm14101_vm11, 0, %v7004_v53  ;;  %v16105_v53 = vld [vmem:[%s17715_s6] ss:$0 sm:$0xff] }
 0x6b2   : > { %v6948_v44 = vsel %vm14089_vm8, 0, %v6947_v1  ;;  %7006 = vst [vmem:[#allocation3 + $0x98] sm:$0xf] %v7005_v33  ;;  %v7007_v33 = vld [vmem:[#allocation3 + $0xa4] sm:$0xf] }
 0x6b3   : > { %9041 = vmatprep.mubr.bf16.mxu1 %v10508_v62  ;;  %6949 = vst [vmem:[#allocation3 + $0x84] sm:$0x1] %v6948_v44  ;;  %v12488_v44 = vld [vmem:[%s17719_s10 + $0x148] sm:$0xff]  }
 0x6b4   : > { %9042 = vmatmul.mubr.bf16.vlgmr.msra.gmra.mrb[64].mxu1 %v10492_v47 }
 0x6b5   : > { %v11684_v43 = vpop.f32.mrb[8].mxu1  ;;  %11411 = vmatpush3.bf16.msra.mxu1 %v12485_v11 }
 0x6b6   : > { %v16042_v20 = vadd.f32 %v11684_v43, %v15806_v15  ;;  %v6367_v51 = vpop.f32.mrb[9].mxu1  ;;  %11412 = vmatprep.subr.bf16.mxu1 %v12488_v44 }
 0x6b7   : > { %v16045_v14 = vadd.f32 %v6367_v51, %v15787_v2  ;;  %v11685_v54 = vpop.f32.mrb[10].mxu1  ;;  %v7010_v51 = vld [vmem:[#allocation3 + $0xb0] sm:$0xf] }
 0x6b8   : > { %v16048_v0 = vadd.f32 %v11685_v54, %v15809_v29  ;;  %v6370_v6 = vpop.f32.mrb[11].mxu1 }
 0x6b9   : > { %v16051_v24 = vadd.f32 %v6370_v6, %v15791_v57 }
 0x6bd   : > { %v11688_v37 = vpop.f32.mrb[12].mxu1 }
 0x6be   : > { %v16054_v15 = vadd.f32 %v11688_v37, %v15836_v23  ;;  %v6383_v8 = vpop.f32.mrb[13].mxu1  ;;  %v7002_v23 = vsel %vm14101_vm11, 0, %v7001_v27 }
 0x6bf   : > { %v16057_v55 = vadd.f32 %v6383_v8, %v15818_v60  ;;  %v11689_v2 = vpop.f32.mrb[14].mxu1  ;;  %7003 = vst [vmem:[#allocation3 + $0x8c] sm:$0xf] %v7002_v23  ;;  %v6956_v60 = vld [vmem:[#allocation3 + $0xa8] sm:$0x1] }
 0x6c0   : > { %v16060_v58 = vadd.f32 %v11689_v2, %v15839_v3  ;;  %v6386_v29 = vpop.f32.mrb[15].mxu1  ;;  %v6957_v32 = vsel %vm14089_vm8, 0, %v6956_v60  ;;  %v6954_v3 = vsel %vm14089_vm8, 0, %v6953_v41  ;;  %v6962_v41 = vld [vmem:[#allocation3 + $0xc0] sm:$0x1] }
 0x6c1   : > { %v16065_v57 = vadd.f32 %v6386_v29, %v15821_v30  ;;  %6958 = vst [vmem:[#allocation3 + $0xa8] sm:$0x1] %v6957_v32  ;;  %6955 = vst [vmem:[#allocation3 + $0x9c] sm:$0x1] %v6954_v3  ;;  %v12489_v29 = vld [vmem:[%s17719_s10 + $0x108] sm:$0xff]  }
 0x6c2   : > { %11413 = vmatpush3.bf16.msra.mxu1 %v12489_v29 }
 0x6c5   : > { %v11692_v36 = vpop.f32.mrb[16].mxu1 }
 0x6c6   : > { %v16074_v35 = vadd.f32 %v11692_v36, %v15856_v38  ;;  %v6399_v30 = vpop.f32.mrb[17].mxu1 }
 0x6c7   : > { %v16077_v13 = vadd.f32 %v6399_v30, %v15848_v28  ;;  %v11693_v47 = vpop.f32.mrb[18].mxu1  ;;  %v7011_v28 = vsel %vm14101_vm11, 0, %v7010_v51  ;;  %v6963_v30 = vsel %vm14089_vm8, 0, %v6962_v41 }
 0x6c8   : > { %v16080_v62 = vadd.f32 %v11693_v47, %v15859_v31  ;;  %v6402_v11 = vpop.f32.mrb[19].mxu1  ;;  %7012 = vst [vmem:[#allocation3 + $0xb0] sm:$0xf] %v7011_v28  ;;  %v6959_v47 = vld [vmem:[#allocation3 + $0xb4] sm:$0x1] }
 0x6c9   : > { %v16083_v1 = vadd.f32 %v6402_v11, %v15851_v46  ;;  %v16097_v46 = vld [vmem:[%s17714_s5] ss:$0 sm:$0xff]  ;;  %6964 = vst [vmem:[#allocation3 + $0xc0] sm:$0x1] %v6963_v30  ;;  %v6960_v44 = vsel %vm14089_vm8, 0, %v6959_v47 }
 0x6ca   : > { %6961 = vst [vmem:[#allocation3 + $0xb4] sm:$0x1] %v6960_v44  ;;  %v6473_v41 = vmul.f32 %v16097_v46, %v16013_v7  ;;  %v7016_v47 = vld [vmem:[#allocation3 + $0xc8] sm:$0xf]  ;;  %v6479_v7 = vmul.f32 %v16097_v46, %v16042_v20  ;;  %v7013_v20 = vld [vmem:[#allocation3 + $0xbc] sm:$0xf] }
 0x6cd   : > { %v11696_v43 = vpop.f32.mrb[20].mxu1 }
 0x6ce   : > { %v16089_v38 = vadd.f32 %v11696_v43, %v15893_v61  ;;  %v6415_v54 = vpop.f32.mrb[21].mxu1 }
 0x6cf   : > { %v6416_v31 = vadd.f32 %v6415_v54, %v15870_v5  ;;  %v11697_v6 = vpop.f32.mrb[22].mxu1 }
 0x6d0   : > { %v6427_v37 = vadd.f32 %v11697_v6, %v15898_v48  ;;  %v6418_v8 = vpop.f32.mrb[23].mxu1 }
 0x6d1   : > { %v6489_v61 = vmul.f32 %v16097_v46, %v6416_v31  ;;  %v6419_v2 = vadd.f32 %v6418_v8, %v15883_v50  ;;  %v7008_v50 = vsel %vm14101_vm11, 0, %v7007_v33  ;;  %v6470_v33 = vmul.f32 %v16097_v46, %v16003_v26 }
 0x6d2   : > { %v6492_v5 = vmul.f32 %v16097_v46, %v6427_v37  ;;  %7009 = vst [vmem:[#allocation3 + $0xa4] sm:$0xf] %v7008_v50  ;;  %v6472_v37 = vmul.f32 %v16097_v46, %v16000_v21 }
 0x6d3   : > { %v16112_v27 = vadd.f32 %v16105_v53, %v6489_v61  ;;  %v6490_v48 = vmul.f32 %v16097_v46, %v6419_v2 }
 0x6d4   : > { %v16118_v23 = vadd.f32 %v16105_v53, %v6492_v5  ;;  %v16160_v29 = vadd.f32 %v16105_v53, %v6472_v37 }
 0x6d5   : > { %v16121_v60 = vadd.f32 %v16105_v53, %v6490_v48  ;;  %v11700_v32 = vpop.f32.mrb[24].mxu1 }
 0x6d6   : > { %v6440_v3 = vadd.f32 %v11700_v32, %v15924_v59  ;;  %v6431_v36 = vpop.f32.mrb[25].mxu1  ;;  %v6471_v59 = vmul.f32 %v16097_v46, %v15986_v49  ;;  %v6475_v32 = vmul.f32 %v16097_v46, %v16006_v16  ;;  %v7017_v16 = vsel %vm14101_vm11, 0, %v7016_v47 }
 0x6d7   : > { %v6432_v11 = vadd.f32 %v6431_v36, %v15901_v4  ;;  %v11701_v43 = vpop.f32.mrb[26].mxu1  ;;  %v6469_v4 = vmul.f32 %v16097_v46, %v15995_v12  ;;  %7018 = vst [vmem:[#allocation3 + $0xc8] sm:$0xf] %v7017_v16  ;;  %v6484_v47 = vmul.f32 %v16097_v46, %v16060_v58  ;;  %v12493_v58 = vld [vmem:[%s17719_s10 + $0x1c0] sm:$0xff]  }
 0x6d8   : > { %v6495_v51 = vmul.f32 %v16097_v46, %v6440_v3  ;;  %v6443_v54 = vadd.f32 %v11701_v43, %v15933_v9  ;;  %v6434_v28 = vpop.f32.mrb[27].mxu1  ;;  %v6476_v3 = vmul.f32 %v16097_v46, %v16022_v45  ;;  %v6477_v45 = vmul.f32 %v16097_v46, %v16045_v14  ;;  %11522 = vmatprep.subr.bf16.mxu0 %v12493_v58 }
 0x6d9   : > { %v6493_v31 = vmul.f32 %v16097_v46, %v6432_v11  ;;  %v6435_v6 = vadd.f32 %v6434_v28, %v15904_v10  ;;  %v16151_v10 = vadd.f32 %v16105_v53, %v6471_v59  ;;  %v16157_v5 = vadd.f32 %v16105_v53, %v6469_v4 }
 0x6da   : > { %v16140_v8 = vadd.f32 %v16105_v53, %v6495_v51  ;;  %v6496_v9 = vmul.f32 %v16097_v46, %v6443_v54  ;;  %v6474_v11 = vmul.f32 %v16097_v46, %v16027_v63  ;;  %v6480_v63 = vmul.f32 %v16097_v46, %v16048_v0  ;;  %v16201_v0 = vld [vmem:[%s17717_s8] ss:$0 sm:$0xff] }
 0x6db   : > { %v16144_v61 = vadd.f32 %v16105_v53, %v6493_v31  ;;  %v6494_v49 = vmul.f32 %v16097_v46, %v6435_v6  ;;  %v6483_v14 = vmul.f32 %v16097_v46, %v16054_v15  ;;  %v6509_v59 = vadd.f32 %v16105_v53, %v6470_v33  ;;  %v16230_v33 = vld [vmem:[%s17718_s9] ss:$0 sm:$0xff] }
 0x6dc   : > { %v16148_v2 = vadd.f32 %v16105_v53, %v6496_v9  ;;  %v16207_v31 = vadd.f32 %v16105_v53, %v6475_v32  ;;  %v16210_v15 = vadd.f32 %v16105_v53, %v6473_v41  ;;  %v16216_v4 = vadd.f32 %v16105_v53, %v6476_v3 }
 0x6dd   : > { %v16154_v12 = vadd.f32 %v16105_v53, %v6494_v49  ;;  %v11704_v21 = vpop.f32.mrb[28].mxu1  ;;  %v16219_v37 = vadd.f32 %v16105_v53, %v6474_v11  ;;  %v16222_v9 = vadd.f32 %v16105_v53, %v6479_v7 }
 0x6de   : > { %v6456_v48 = vadd.f32 %v11704_v21, %v15970_v18  ;;  %v6447_v50 = vpop.f32.mrb[29].mxu1 }
 0x6df   : > { %v6448_v36 = vadd.f32 %v6447_v50, %v15951_v25  ;;  %v11705_v30 = vpop.f32.mrb[30].mxu1  ;;  %v16236_v50 = vadd.f32 %v16105_v53, %v6480_v63  ;;  %v6486_v63 = vmul.f32 %v16097_v46, %v16083_v1  ;;  %v12494_v1 = vld [vmem:[%s17719_s10 + $0x110] sm:$0xff]  }
 0x6e0   : > { %v6499_v26 = vmul.f32 %v16097_v46, %v6456_v48  ;;  %v6459_v18 = vadd.f32 %v11705_v30, %v15979_v17  ;;  %v6450_v43 = vpop.f32.mrb[31].mxu1  ;;  %v6478_v17 = vmul.f32 %v16097_v46, %v16051_v24  ;;  %v7014_v24 = vsel %vm14101_vm11, 0, %v7013_v20 }
 0x6e1   : > { %v6497_v25 = vmul.f32 %v16097_v46, %v6448_v36  ;;  %v6451_v44 = vadd.f32 %v6450_v43, %v15956_v39  ;;  %7015 = vst [vmem:[#allocation3 + $0xbc] sm:$0xf] %v7014_v24  ;;  %v16233_v48 = vadd.f32 %v16105_v53, %v6477_v45  ;;  %v16243_v36 = vadd.f32 %v16105_v53, %v6483_v14 }
 0x6e2   : > { %v16189_v51 = vadd.f32 %v16105_v53, %v6499_v26  ;;  %v6500_v54 = vmul.f32 %v16097_v46, %v6459_v18  ;;  %v16239_v32 = vadd.f32 %v16105_v53, %v6478_v17  ;;  %v6481_v30 = vmul.f32 %v16097_v46, %v16057_v55  ;;  %v12492_v55 = vld [vmem:[%s17719_s10 + $0x150] sm:$0xff]  }
 0x6e3   : > { %v16195_v28 = vadd.f32 %v16105_v53, %v6497_v25  ;;  %v6498_v39 = vmul.f32 %v16097_v46, %v6451_v44  ;;  %v6482_v18 = vmul.f32 %v16097_v46, %v16065_v57  ;;  %v6487_v43 = vmul.f32 %v16097_v46, %v16074_v35  ;;  %11414 = vmatprep.subr.bf16.mxu1 %v12492_v55 }
 0x6e4   : > { %v16213_v6 = vadd.f32 %v16105_v53, %v6500_v54  ;;  %v6485_v25 = vmul.f32 %v16097_v46, %v16077_v13  ;;  %v6488_v57 = vmul.f32 %v16097_v46, %v16080_v62  ;;  %v16273_v20 = vadd.f32 %v16105_v53, %v6481_v30  ;;  %11415 = vmatpush3.bf16.msra.mxu1 %v12494_v1 }
 0x6e5   : > { %v16225_v49 = vadd.f32 %v16105_v53, %v6498_v39  ;;  %v11724_v21 = vpop.f32.mrb[32].mxu1  ;;  %v16276_v13 = vadd.f32 %v16105_v53, %v6484_v47  ;;  %v16287_v39 = vadd.f32 %v16105_v53, %v6487_v43 }
 0x6e6   : > { %v6774_v41 = vmul.f32 %v11724_v21, %v16201_v0  ;;  %v6638_v3 = vpop.f32.mrb[33].mxu1 }
 0x6e7   : > { %17991 = vst [vmem:[#allocation45_spill] sm:$0xff] %v16225_v49  ;;  %v6772_v11 = vmul.f32 %v16201_v0, %v6638_v3  ;;  %v11725_v26 = vpop.f32.mrb[34].mxu1 }
 0x6e8   : > { %v6813_v16 = vadd.f32 %v16230_v33, %v6774_v41  ;;  %v6775_v7 = vmul.f32 %v11725_v26, %v16201_v0  ;;  %v6641_v45 = vpop.f32.mrb[35].mxu1  ;;  %v16291_v41 = vadd.f32 %v16105_v53, %v6485_v25 }
 0x6e9   : > { %v6811_v35 = vadd.f32 %v16230_v33, %v6772_v11  ;;  %v6773_v44 = vmul.f32 %v16201_v0, %v6641_v45  ;;  %v16297_v11 = vadd.f32 %v16105_v53, %v6486_v63 }
 0x6ea   : > { %v6845_v17 = vadd.f32 %v6813_v16, %v16151_v10  ;;  %v6814_v54 = vadd.f32 %v16230_v33, %v6775_v7  ;;  %v16284_v10 = vadd.f32 %v16105_v53, %v6482_v18 }
 0x6eb   : > { %v6843_v62 = vadd.f32 %v6811_v35, %v16157_v5  ;;  %v6812_v14 = vadd.f32 %v16230_v33, %v6773_v44  ;;  %v16294_v5 = vadd.f32 %v16105_v53, %v6488_v57 }
 0x6ec   : > { %v6877_v24 = vmax.f32 %v6845_v17, 0.0  ;;  %v6846_v21 = vadd.f32 %v6814_v54, %v16160_v29  ;;  %v16302_v29 = vmul.f32 %v16097_v46, %v16089_v38 }
 0x6ed   : > { %v6875_v3 = vmax.f32 %v6843_v62, 0.0  ;;  %v6844_v30 = vadd.f32 %v6812_v14, %v6509_v59  ;;  %v11728_v47 = vpop.f32.mrb[36].mxu1 }
 0x6ee   : > { %v10659_v26 = vpack.c.bf16 %v6877_v24, %v6877_v24  ;;  %v6878_v18 = vmax.f32 %v6846_v21, 0.0  ;;  %v6778_v43 = vmul.f32 %v11728_v47, %v16201_v0  ;;  %v6654_v16 = vpop.f32.mrb[37].mxu1  ;;  %v7446_v24 = vld [vmem:[#allocation3 + $0x18] sm:$0xf] }
 0x6ef   : > { %v10657_v7 = vpack.c.bf16 %v6875_v3, %v6875_v3  ;;  %v6876_v45 = vmax.f32 %v6844_v30, 0.0  ;;  %v6776_v55 = vmul.f32 %v16201_v0, %v6654_v16  ;;  %v11729_v58 = vpop.f32.mrb[38].mxu1 }
 0x6f0   : > { %v7136_v59 = vshrl.u32 %v10659_v26, 16  ;;  %v7139_v25 = vshll.u32 %v10659_v26, 16  ;;  %v10660_v57 = vpack.c.bf16 %v6878_v18, %v6878_v18  ;;  %v6817_v35 = vadd.f32 %v16230_v33, %v6778_v43  ;;  %v6657_v44 = vpop.f32.mrb[39].mxu1  ;;  %v7439_v43 = vld [vmem:[#allocation3 + $0xc] sm:$0xf] }
 0x6f1   : > { %v7119_v63 = vshrl.u32 %v10657_v7, 16  ;;  %v7122_v17 = vshll.u32 %v10657_v7, 16  ;;  %v10658_v54 = vpack.c.bf16 %v6876_v45, %v6876_v45  ;;  %v6815_v62 = vadd.f32 %v16230_v33, %v6776_v55  ;;  %v12498_v7 = vld [vmem:[%s17719_s10 + $0x158] sm:$0xff]  }
 0x6f2   : > { %v7138_v14 = vrot.slane %v7136_v59, 7  ;;  %v7144_v1 = vshrl.u32 %v10660_v57, 16  ;;  %v7147_v38 = vshll.u32 %v10660_v57, 16  ;;  %v6849_v46 = vadd.f32 %v6817_v35, %v16207_v31  ;;  %v7450_v59 = vld [vmem:[#allocation3 + $0x20] sm:$0x1]  ;;  %11416 = vmatprep.subr.bf16.mxu1 %v12498_v7 }
 0x6f3   : > { %v7121_v21 = vrot.slane %v7119_v63, 7  ;;  %v7127_v3 = vshrl.u32 %v10658_v54, 16  ;;  %v7130_v30 = vshll.u32 %v10658_v54, 16  ;;  %v6847_v47 = vadd.f32 %v6815_v62, %v16210_v15 }
 0x6f4   : > { %v7141_v26 = vor.u32 %v7139_v25, %v7138_v14  ;;  %v7142_v18 = vrot.slane %v7138_v14, 4  ;;  %v7146_v16 = vrot.slane %v7144_v1, 7  ;;  %v6881_v42 = vmax.f32 %v6849_v46, 0.0  ;;  %v7443_v25 = vld [vmem:[#allocation3 + $0x14] sm:$0x1] }
 0x6f5   : > { %v7124_v45 = vor.u32 %v7122_v17, %v7121_v21  ;;  %v7125_v55 = vrot.slane %v7121_v21, 4  ;;  %v7129_v57 = vrot.slane %v7127_v3, 7  ;;  %v6879_v31 = vmax.f32 %v6847_v47, 0.0  ;;  %v11732_v35 = vpop.f32.mrb[40].mxu1 }
 0x6f6   : > { %v7447_v63 = vsel %vm14101_vm11, %v7141_v26, %v7446_v24  ;;  %v7149_v54 = vor.u32 %v7147_v38, %v7146_v16  ;;  %v7151_v15 = vrot.slane %v7146_v16, 4  ;;  %v10663_v62 = vpack.c.bf16 %v6881_v42, %v6881_v42  ;;  %v6670_v14 = vpop.f32.mrb[41].mxu1  ;;  %v12500_v16 = vld [vmem:[%s17719_s10 + $0x118] sm:$0xff]  }
 0x6f7   : > { %7448 = vst [vmem:[#allocation3 + $0x18] sm:$0xf] %v7447_v63  ;;  %v7440_v1 = vsel %vm14101_vm11, %v7124_v45, %v7439_v43  ;;  %v7132_v46 = vor.u32 %v7130_v30, %v7129_v57  ;;  %v7134_v17 = vrot.slane %v7129_v57, 4  ;;  %v10661_v21 = vpack.c.bf16 %v6879_v31, %v6879_v31  ;;  %v11733_v49 = vpop.f32.mrb[42].mxu1  ;;  %11417 = vmatpush3.bf16.msra.mxu1 %v12500_v16  ;;  %v7460_v63 = vld [vmem:[#allocation3 + $0x30] sm:$0xf] }
 0x6f8   : > { %7441 = vst [vmem:[#allocation3 + $0xc] sm:$0xf] %v7440_v1  ;;  %v7150_v47 = vsel %vm14543_vm13, %v7142_v18, %v7149_v54  ;;  %v7451_v38 = vsel %vm14089_vm8, %v7151_v15, %v7450_v59  ;;  %v7170_v24 = vshrl.u32 %v10663_v62, 16  ;;  %v7173_v26 = vshll.u32 %v10663_v62, 16  ;;  %v6673_v42 = vpop.f32.mrb[43].mxu1 }
 0x6f9   : > { %7449 = vst [vmem:[#allocation3 + $0x1c] sm:$0xf] %v7150_v47  ;;  %7452 = vst [vmem:[#allocation3 + $0x20] sm:$0x1] %v7451_v38  ;;  %v7133_v30 = vsel %vm14543_vm13, %v7125_v55, %v7132_v46  ;;  %v7444_v43 = vsel %vm14089_vm8, %v7134_v17, %v7443_v25  ;;  %v7153_v7 = vshrl.u32 %v10661_v21, 16  ;;  %v7156_v18 = vshll.u32 %v10661_v21, 16 }
 0x6fa   : > { %7442 = vst [vmem:[#allocation3 + $0x10] sm:$0xf] %v7133_v30  ;;  %7445 = vst [vmem:[#allocation3 + $0x14] sm:$0x1] %v7444_v43  ;;  %v16327_v45 = vrot.slane %v7170_v24, 7  ;;  %v6779_v59 = vmul.f32 %v11729_v58, %v16201_v0  ;;  %v6777_v57 = vmul.f32 %v16201_v0, %v6657_v44  ;;  %v6782_v31 = vmul.f32 %v11732_v35, %v16201_v0 }
 0x6fb   : > { %v16332_v54 = vrot.slane %v7153_v7, 7  ;;  %v6780_v55 = vmul.f32 %v16201_v0, %v6670_v14  ;;  %v6783_v15 = vmul.f32 %v11733_v49, %v16201_v0  ;;  %v6781_v25 = vmul.f32 %v16201_v0, %v6673_v42  ;;  %v7453_v46 = vld [vmem:[#allocation3 + $0x24] sm:$0xf] }
 0x6fc   : > { %v7175_v62 = vor.u32 %v7173_v26, %v16327_v45  ;;  %v7176_v1 = vrot.slane %v16327_v45, 4  ;;  %v6818_v58 = vadd.f32 %v16230_v33, %v6779_v59  ;;  %v6816_v44 = vadd.f32 %v16230_v33, %v6777_v57 }
 0x6fd   : > { %v7158_v35 = vor.u32 %v7156_v18, %v16332_v54  ;;  %v6821_v21 = vadd.f32 %v16230_v33, %v6782_v31  ;;  %v6819_v14 = vadd.f32 %v16230_v33, %v6780_v55  ;;  %v11736_v49 = vpop.f32.mrb[44].mxu1  ;;  %v6822_v26 = vadd.f32 %v16230_v33, %v6783_v15 }
 0x6fe   : > { %v7461_v47 = vsel %vm14101_vm11, %v7175_v62, %v7460_v63  ;;  %v6850_v38 = vadd.f32 %v6818_v58, %v16216_v4  ;;  %v6848_v24 = vadd.f32 %v6816_v44, %v16219_v37  ;;  %v6686_v42 = vpop.f32.mrb[45].mxu1  ;;  %v6820_v7 = vadd.f32 %v16230_v33, %v6781_v25 }
 0x6ff   : > { %7462 = vst [vmem:[#allocation3 + $0x30] sm:$0xf] %v7461_v47  ;;  %v7454_v16 = vsel %vm14101_vm11, %v7158_v35, %v7453_v46  ;;  %v6853_v30 = vadd.f32 %v6821_v21, %v16222_v9  ;;  %v6851_v43 = vadd.f32 %v6819_v14, %v16233_v48  ;;  %v16355_v18 = vpop.f32.mrb[46].mxu1  ;;  %v6854_v37 = vadd.f32 %v6822_v26, %v16236_v50 }
 0x700   : > { %7455 = vst [vmem:[#allocation3 + $0x24] sm:$0xf] %v7454_v16  ;;  %v6882_v59 = vmax.f32 %v6850_v38, 0.0  ;;  %v6880_v4 = vmax.f32 %v6848_v24, 0.0  ;;  %v6786_v57 = vmul.f32 %v11736_v49, %v16201_v0  ;;  %v16359_v31 = vpop.f32.mrb[47].mxu1  ;;  %v6852_v15 = vadd.f32 %v6820_v7, %v16239_v32  ;;  %v12504_v32 = vld [vmem:[%s17719_s10 + $0x160] sm:$0xff]  }
 0x701   : > { %v6885_v63 = vmax.f32 %v6853_v30, 0.0  ;;  %v6883_v55 = vmax.f32 %v6851_v43, 0.0  ;;  %v6784_v9 = vmul.f32 %v16201_v0, %v6686_v42  ;;  %v6886_v25 = vmax.f32 %v6854_v37, 0.0  ;;  %v7464_v38 = vld [vmem:[#allocation3 + $0x38] sm:$0x1]  ;;  %v12506_v43 = vld [vmem:[%s17719_s10 + $0x120] sm:$0xff]   ;;  %11418 = vmatprep.subr.bf16.mxu1 %v12504_v32 }
 0x702   : > { %v10664_v48 = vpack.c.bf16 %v6882_v59, %v6882_v59  ;;  %v10662_v62 = vpack.c.bf16 %v6880_v4, %v6880_v4  ;;  %v6825_v46 = vadd.f32 %v16230_v33, %v6786_v57  ;;  %v6884_v35 = vmax.f32 %v6852_v15, 0.0  ;;  %v7457_v4 = vld [vmem:[#allocation3 + $0x2c] sm:$0x1]  ;;  %v7474_v15 = vld [vmem:[#allocation3 + $0x48] sm:$0xf]  ;;  %11419 = vmatpush3.bf16.msra.mxu1 %v12506_v43 }
 0x703   : > { %v10667_v58 = vpack.c.bf16 %v6885_v63, %v6885_v63  ;;  %v10665_v44 = vpack.c.bf16 %v6883_v55, %v6883_v55  ;;  %v6823_v50 = vadd.f32 %v16230_v33, %v6784_v9  ;;  %v10668_v37 = vpack.c.bf16 %v6886_v25, %v6886_v25  ;;  %v7467_v25 = vld [vmem:[#allocation3 + $0x3c] sm:$0xf] }
 0x704   : > { %v7178_v21 = vshrl.u32 %v10664_v48, 16  ;;  %v7181_v14 = vshll.u32 %v10664_v48, 16  ;;  %v7161_v49 = vshrl.u32 %v10662_v62, 16  ;;  %v7164_v47 = vshll.u32 %v10662_v62, 16 }
 0x705   : > { %v7204_v24 = vshrl.u32 %v10667_v58, 16  ;;  %v7207_v26 = vshll.u32 %v10667_v58, 16  ;;  %v7187_v42 = vshrl.u32 %v10665_v44, 16  ;;  %v7190_v16 = vshll.u32 %v10665_v44, 16  ;;  %v16368_v30 = vpop.f32.mrb[48].mxu1 }
 0x706   : > { %v7180_v7 = vrot.slane %v7178_v21, 7  ;;  %v7163_v59 = vrot.slane %v7161_v49, 7  ;;  %v10666_v57 = vpack.c.bf16 %v6884_v35, %v6884_v35  ;;  %v16373_v63 = vpop.f32.mrb[49].mxu1  ;;  %v6857_v48 = vadd.f32 %v6825_v46, %v16243_v36 }
 0x707   : > { %v7206_v55 = vrot.slane %v7204_v24, 7  ;;  %v16375_v9 = vrot.slane %v7187_v42, 7  ;;  %v6855_v62 = vadd.f32 %v6823_v50, %v16273_v20  ;;  %v16379_v58 = vpop.f32.mrb[50].mxu1  ;;  %v16385_v32 = vadd.f32 %v16105_v53, %v16302_v29 }
 0x708   : > { %v7183_v44 = vor.u32 %v7181_v14, %v7180_v7  ;;  %v7185_v21 = vrot.slane %v7180_v7, 4  ;;  %v7166_v49 = vor.u32 %v7164_v47, %v7163_v59  ;;  %v7168_v17 = vrot.slane %v7163_v59, 4  ;;  %v16381_v35 = vpop.f32.mrb[51].mxu1 }
 0x709   : > { %v7209_v24 = vor.u32 %v7207_v26, %v7206_v55  ;;  %v7210_v42 = vrot.slane %v7206_v55, 4  ;;  %v7192_v36 = vor.u32 %v7190_v16, %v16375_v9  ;;  %v17993_v50 = vrot.slane %v16332_v54, 4  ;;  %v16405_v54 = vld [vmem:[#allocation3 + $0xc] sm:$0xf] }
 0x70a   : > { %v7184_v20 = vsel %vm14543_vm13, %v7176_v1, %v7183_v44  ;;  %v7465_v46 = vsel %vm14089_vm8, %v7185_v21, %v7464_v38  ;;  %v7458_v53 = vsel %vm14089_vm8, %v7168_v17, %v7457_v4  ;;  %v7193_v45 = vrot.slane %v16375_v9, 4 }
 0x70b   : > { %v7167_v14 = vsel %vm14543_vm13, %v17993_v50, %v7166_v49  ;;  %7463 = vst [vmem:[#allocation3 + $0x34] sm:$0xf] %v7184_v20  ;;  %7466 = vst [vmem:[#allocation3 + $0x38] sm:$0x1] %v7465_v46  ;;  %v7475_v29 = vsel %vm14101_vm11, %v7209_v24, %v7474_v15  ;;  %v7468_v1 = vsel %vm14101_vm11, %v7192_v36, %v7467_v25  ;;  %v7212_v47 = vshrl.u32 %v10668_v37, 16 }
 0x70c   : > { %7456 = vst [vmem:[#allocation3 + $0x28] sm:$0xf] %v7167_v14  ;;  %7459 = vst [vmem:[#allocation3 + $0x2c] sm:$0x1] %v7458_v53  ;;  %v7215_v38 = vshll.u32 %v10668_v37, 16  ;;  %v7195_v26 = vshrl.u32 %v10666_v57, 16  ;;  %v6787_v59 = vmul.f32 %v16355_v18, %v16201_v0  ;;  %v6785_v4 = vmul.f32 %v16201_v0, %v16359_v31 }
 0x70d   : > { %7476 = vst [vmem:[#allocation3 + $0x48] sm:$0xf] %v7475_v29  ;;  %7469 = vst [vmem:[#allocation3 + $0x3c] sm:$0xf] %v7468_v1  ;;  %v6889_v17 = vmax.f32 %v6857_v48, 0.0  ;;  %v6887_v16 = vmax.f32 %v6855_v62, 0.0 }
 0x70e   : > { %v7214_v43 = vrot.slane %v7212_v47, 7  ;;  %v7198_v7 = vshll.u32 %v10666_v57, 16  ;;  %v16411_v55 = vpop.f32.mrb[52].mxu1  ;;  %v7478_v15 = vld [vmem:[#allocation3 + $0x50] sm:$0x1]  ;;  %v7197_v9 = vrot.slane %v7195_v26, 7  ;;  %v6826_v57 = vadd.f32 %v16230_v33, %v6787_v59 }
 0x70f   : > { %v10671_v44 = vpack.c.bf16 %v6889_v17, %v6889_v17  ;;  %v10669_v21 = vpack.c.bf16 %v6887_v16, %v6887_v16  ;;  %v7630_v49 = vshrl.u32 %v16405_v54, 16  ;;  %v16414_v37 = vpop.f32.mrb[53].mxu1  ;;  %v7471_v25 = vld [vmem:[#allocation3 + $0x44] sm:$0x1]  ;;  %v6824_v18 = vadd.f32 %v16230_v33, %v6785_v4  ;;  %v16420_v46 = vld [vmem:[#allocation3 + $0x10] sm:$0xf] }
 0x710   : > { %v7217_v48 = vor.u32 %v7215_v38, %v7214_v43  ;;  %v7219_v62 = vrot.slane %v7214_v43, 4  ;;  %v16418_v24 = vpop.f32.mrb[54].mxu1  ;;  %v7200_v31 = vor.u32 %v7198_v7, %v7197_v9  ;;  %v7202_v36 = vrot.slane %v7197_v9, 4  ;;  %v7488_v16 = vld [vmem:[#allocation3 + $0x60] sm:$0xf] }
 0x711   : > { %v7238_v20 = vshrl.u32 %v10671_v44, 16  ;;  %v7633_v50 = vshll.u32 %v16405_v54, 16  ;;  %v16423_v14 = vpop.f32.mrb[55].mxu1  ;;  %v7241_v1 = vshll.u32 %v10671_v44, 16  ;;  %v7221_v47 = vshrl.u32 %v10669_v21, 16 }
 0x712   : > { %v7218_v53 = vsel %vm14543_vm13, %v7210_v42, %v7217_v48  ;;  %v7479_v29 = vsel %vm14089_vm8, %v7219_v62, %v7478_v15  ;;  %v7201_v38 = vsel %vm14543_vm13, %v7193_v45, %v7200_v31  ;;  %v7472_v26 = vsel %vm14089_vm8, %v7202_v36, %v7471_v25  ;;  %v7481_v59 = vld [vmem:[#allocation3 + $0x54] sm:$0xf]  ;;  %v12495_v45 = vld [vmem:[%s17719_s10 + $0x180] sm:$0xff]  }
 0x713   : > { %7477 = vst [vmem:[#allocation3 + $0x4c] sm:$0xf] %v7218_v53  ;;  %7480 = vst [vmem:[#allocation3 + $0x50] sm:$0x1] %v7479_v29  ;;  %v16433_v17 = vrot.slane %v7238_v20, 7  ;;  %v6858_v43 = vadd.f32 %v6826_v57, %v16276_v13  ;;  %v16436_v42 = vrot.slane %v7221_v47, 7  ;;  %v6856_v4 = vadd.f32 %v6824_v18, %v16284_v10 }
 0x714   : > { %7470 = vst [vmem:[#allocation3 + $0x40] sm:$0xf] %v7201_v38  ;;  %7473 = vst [vmem:[#allocation3 + $0x44] sm:$0x1] %v7472_v26  ;;  %v7224_v7 = vshll.u32 %v10669_v21, 16  ;;  %v16441_v15 = vcombine.low %v16405_v54, %v16420_v46  ;;  %v7643_v13 = vshrl.u32 %v16420_v46, 16  ;;  %v6790_v48 = vmul.f32 %v16368_v30, %v16201_v0 }
 0x715   : > { %v7243_v9 = vor.u32 %v7241_v1, %v16433_v17  ;;  %v6890_v44 = vmax.f32 %v6858_v43, 0.0  ;;  %v16450_v21 = vld [vmem:[#allocation3 + $0x18] sm:$0xf]  ;;  %v12499_v10 = vld [vmem:[%s17719_s10 + $0x1c8] sm:$0xff]   ;;  %v7244_v62 = vrot.slane %v16433_v17, 4  ;;  %v6888_v57 = vmax.f32 %v6856_v4, 0.0 }
 0x716   : > { %v7226_v25 = vor.u32 %v7224_v7, %v16436_v42  ;;  %9202 = vmatprep.mubr.bf16.mxu0 %v16441_v15  ;;  %v6788_v18 = vmul.f32 %v16201_v0, %v16373_v63  ;;  %v16460_v31 = vpop.f32.mrb[56].mxu1  ;;  %v12510_v30 = vld [vmem:[%s17719_s10 + $0x168] sm:$0xff]   ;;  %v7227_v53 = vrot.slane %v16436_v42, 4  ;;  %v6829_v1 = vadd.f32 %v16230_v33, %v6790_v48  ;;  %v16475_v47 = vld [vmem:[#allocation3 + $0x1c] sm:$0xf] }
 0x717   : > { %v12512_v36 = vld [vmem:[%s17719_s10 + $0x128] sm:$0xff]   ;;  %v7489_v20 = vsel %vm14101_vm11, %v7243_v9, %v7488_v16  ;;  %v10672_v29 = vpack.c.bf16 %v6890_v44, %v6890_v44  ;;  %v17994_v63 = vcombine.low %v16017_v34, %v16010_v40  ;;  %v16477_v38 = vpop.f32.mrb[57].mxu1  ;;  %v10670_v17 = vpack.c.bf16 %v6888_v57, %v6888_v57  ;;  %11420 = vmatprep.subr.bf16.mxu1 %v12510_v30  ;;  %v12505_v44 = vld [vmem:[%s17719_s10 + $0x1d0] sm:$0xff]  }
 0x718   : > { %7490 = vst [vmem:[#allocation3 + $0x60] sm:$0xf] %v7489_v20  ;;  %v7482_v26 = vsel %vm14101_vm11, %v7226_v25, %v7481_v59  ;;  %v6827_v16 = vadd.f32 %v16230_v33, %v6788_v18  ;;  %v16483_v42 = vpop.f32.mrb[58].mxu1  ;;  %v12501_v40 = vld [vmem:[%s17719_s10 + $0x188] sm:$0xff]   ;;  %v6861_v4 = vadd.f32 %v6829_v1, %v16287_v39  ;;  %11421 = vmatpush3.bf16.msra.mxu1 %v12512_v36  ;;  %v7492_v20 = vld [vmem:[#allocation3 + $0x68] sm:$0x1] }
 0x719   : > { %9203 = vmatmul.mubr.bf16.vlgmr.msra.gmra.mrb[64].mxu0 %v17994_v63  ;;  %7483 = vst [vmem:[#allocation3 + $0x54] sm:$0xf] %v7482_v26  ;;  %v7246_v34 = vshrl.u32 %v10672_v29, 16  ;;  %v7249_v7 = vshll.u32 %v10672_v29, 16  ;;  %v16490_v9 = vpop.f32.mrb[59].mxu1  ;;  %v16499_v57 = vcombine.low %v16450_v21, %v16475_v47  ;;  %v6791_v30 = vmul.f32 %v16379_v58, %v16201_v0  ;;  %v12507_v63 = vld [vmem:[%s17719_s10 + $0x190] sm:$0xff]  }
 0x71a   : > { %11523 = vmatpush3.bf16.msra.mxu0 %v12495_v45  ;;  %v7229_v45 = vshrl.u32 %v10670_v17, 16  ;;  %v6859_v48 = vadd.f32 %v6827_v16, %v16291_v41  ;;  %v6893_v18 = vmax.f32 %v6861_v4, 0.0  ;;  %v7232_v36 = vshll.u32 %v10670_v17, 16  ;;  %v7485_v58 = vld [vmem:[#allocation3 + $0x5c] sm:$0x1]  ;;  %v12511_v17 = vld [vmem:[%s17719_s10 + $0x1d8] sm:$0xff]  }
 0x71b   : > { %11524 = vmatprep.subr.bf16.mxu0 %v12499_v10  ;;  %v7248_v39 = vrot.slane %v7246_v34, 7  ;;  %v6789_v10 = vmul.f32 %v16201_v0, %v16381_v35  ;;  %9210 = vmatprep.mubr.bf16.mxu0 %v16499_v57  ;;  %v6794_v41 = vmul.f32 %v16411_v55, %v16201_v0  ;;  %v6830_v35 = vadd.f32 %v16230_v33, %v6791_v30 }
 0x71c   : > { %v7231_v29 = vrot.slane %v7229_v45, 7  ;;  %v6891_v1 = vmax.f32 %v6859_v48, 0.0  ;;  %v10675_v34 = vpack.c.bf16 %v6893_v18, %v6893_v18 }
 0x71d   : > { %v7251_v26 = vor.u32 %v7249_v7, %v7248_v39  ;;  %v7253_v16 = vrot.slane %v7248_v39, 4  ;;  %v6828_v55 = vadd.f32 %v16230_v33, %v6789_v10 }
 0x71e   : > { %11525 = vmatpush3.bf16.msra.mxu0 %v12501_v40  ;;  %v7234_v4 = vor.u32 %v7232_v36, %v7231_v29  ;;  %v7236_v45 = vrot.slane %v7231_v29, 4  ;;  %v10673_v48 = vpack.c.bf16 %v6891_v1, %v6891_v1  ;;  %v16516_v40 = vpop.f32.mrb[60].mxu1  ;;  %v7272_v18 = vshrl.u32 %v10675_v34, 16 }
 0x71f   : > { %11526 = vmatprep.subr.bf16.mxu0 %v12505_v44  ;;  %v7252_v7 = vsel %vm14543_vm13, %v7244_v62, %v7251_v26  ;;  %v7493_v39 = vsel %vm14089_vm8, %v7253_v16, %v7492_v20  ;;  %v7632_v44 = vrot.slane %v7630_v49, 4  ;;  %v16524_v30 = vpop.f32.mrb[61].mxu1  ;;  %v7275_v36 = vshll.u32 %v10675_v34, 16  ;;  %v12513_v20 = vld [vmem:[%s17719_s10 + $0x198] sm:$0xff]   ;;  %v7502_v26 = vld [vmem:[#allocation3 + $0x78] sm:$0xf] }
 0x720   : > { %7491 = vst [vmem:[#allocation3 + $0x64] sm:$0xf] %v7252_v7  ;;  %7494 = vst [vmem:[#allocation3 + $0x68] sm:$0x1] %v7493_v39  ;;  %v7235_v29 = vsel %vm14543_vm13, %v7227_v53, %v7234_v4  ;;  %v7486_v10 = vsel %vm14089_vm8, %v7236_v45, %v7485_v58  ;;  %v7255_v1 = vshrl.u32 %v10673_v48, 16  ;;  %v16530_v62 = vpop.f32.mrb[62].mxu1  ;;  %v6862_v16 = vadd.f32 %v6830_v35, %v16294_v5 }
 0x721   : > { %7484 = vst [vmem:[#allocation3 + $0x58] sm:$0xf] %v7235_v29  ;;  %7487 = vst [vmem:[#allocation3 + $0x5c] sm:$0x1] %v7486_v10  ;;  %v16535_v49 = vrot.slane %v7272_v18, 7  ;;  %v6860_v53 = vadd.f32 %v6828_v55, %v16297_v11  ;;  %v6833_v58 = vadd.f32 %v16230_v33, %v6794_v41  ;;  %v16540_v34 = vpop.f32.mrb[63].mxu1 }
 0x722   : > { %11527 = vmatpush3.bf16.msra.mxu0 %v12507_v63  ;;  %v16542_v4 = vrot.slane %v7255_v1, 7  ;;  %v7258_v63 = vshll.u32 %v10673_v48, 16  ;;  %v7495_v45 = vld [vmem:[#allocation3 + $0x6c] sm:$0xf]  ;;  %v7635_v7 = vrot.slane %v7633_v50, 5  ;;  %v7639_v39 = vshll.u32 %v16420_v46, 16 }
 0x723   : > { %11528 = vmatprep.subr.bf16.mxu0 %v12511_v17  ;;  %v7277_v18 = vor.u32 %v7275_v36, %v16535_v49  ;;  %v6894_v29 = vmax.f32 %v6862_v16, 0.0  ;;  %v6892_v5 = vmax.f32 %v6860_v53, 0.0  ;;  %v16548_v35 = vld [vmem:[#allocation3 + $0x14] sm:$0xf]  ;;  %v7645_v11 = vrot.slane %v7643_v13, 4  ;;  %v12516_v16 = vld [vmem:[%s17719_s10 + $0x170] sm:$0xff]  }
 0x724   : > { %v7278_v41 = vrot.slane %v16535_v49, 4  ;;  %v7260_v17 = vor.u32 %v7258_v63, %v16542_v4  ;;  %v6865_v48 = vadd.f32 %v6833_v58, %v16385_v32  ;;  %v7636_v55 = vor.u32 %v7635_v7, %v7632_v44  ;;  %v12517_v13 = vld [vmem:[%s17719_s10 + $0x1e0] sm:$0xff]   ;;  %11422 = vmatprep.subr.bf16.mxu1 %v12516_v16 }
 0x725   : > { %v7503_v50 = vsel %vm14101_vm11, %v7277_v18, %v7502_v26  ;;  %v10676_v10 = vpack.c.bf16 %v6894_v29, %v6894_v29  ;;  %v10674_v36 = vpack.c.bf16 %v6892_v5, %v6892_v5  ;;  %v7641_v1 = vrot.slane %v7639_v39, 5  ;;  %v12518_v26 = vld [vmem:[%s17719_s10 + $0x130] sm:$0xff]   ;;  %v12519_v53 = vld [vmem:[%s17719_s10 + $0x1a0] sm:$0xff]  }
 0x726   : > { %11529 = vmatpush3.bf16.msra.mxu0 %v12513_v20  ;;  %7504 = vst [vmem:[#allocation3 + $0x78] sm:$0xf] %v7503_v50  ;;  %v7496_v32 = vsel %vm14101_vm11, %v7260_v17, %v7495_v45  ;;  %v6897_v44 = vmax.f32 %v6865_v48, 0.0  ;;  %v7637_v20 = vrot.slane %v7636_v55, 4  ;;  %v7649_v49 = vshll.u32 %v16548_v35, 16  ;;  %11423 = vmatpush3.bf16.msra.mxu1 %v12518_v26 }
 0x727   : > { %v7261_v58 = vrot.slane %v16542_v4, 4  ;;  %7497 = vst [vmem:[#allocation3 + $0x6c] sm:$0xf] %v7496_v32  ;;  %v7280_v63 = vshrl.u32 %v10676_v10, 16  ;;  %v7283_v7 = vshll.u32 %v10676_v10, 16  ;;  %v7263_v39 = vshrl.u32 %v10674_v36, 16  ;;  %11530 = vmatprep.subr.bf16.mxu0 %v12517_v13 }
 0x728   : > { %v7266_v45 = vshll.u32 %v10674_v36, 16  ;;  %v10679_v18 = vpack.c.bf16 %v6897_v44, %v6897_v44  ;;  %v7642_v29 = vsel %vm12846_vm5, %v7637_v20, %v7641_v1  ;;  %v7646_v5 = vor.u32 %v7645_v11, %v7641_v1  ;;  %v7506_v48 = vld [vmem:[#allocation3 + $0x80] sm:$0x1]  ;;  %v7499_v32 = vld [vmem:[#allocation3 + $0x74] sm:$0x1] }
 0x729   : > { %v7282_v17 = vrot.slane %v7280_v63, 7  ;;  %v7265_v55 = vrot.slane %v7263_v39, 7  ;;  %v7651_v50 = vrot.slane %v7649_v49, 5  ;;  %v8094_v4 = vrot.slane %v16420_v46, 5  ;;  %v16590_v63 = vld [vmem:[#allocation3 + $0x24] sm:$0xf] }
 0x72a   : > { %11531 = vmatpush3.bf16.msra.mxu0 %v12519_v53  ;;  %v7306_v25 = vshrl.u32 %v10679_v18, 16  ;;  %v7309_v10 = vshll.u32 %v10679_v18, 16  ;;  %v7647_v59 = vrot.slane %v7646_v5, 4  ;;  %v10475_v16 = vrot.slane %v16405_v54, 9  ;;  %v16606_v18 = vld [vmem:[#allocation3 + $0x20] sm:$0xf] }
 0x72b   : > { %v7285_v36 = vor.u32 %v7283_v7, %v7282_v17  ;;  %v7287_v13 = vrot.slane %v7282_v17, 4  ;;  %v7268_v44 = vor.u32 %v7266_v45, %v7265_v55  ;;  %v7270_v43 = vrot.slane %v7265_v55, 4  ;;  %v16592_v7 = vld [vmem:[#allocation3 + $0x28] sm:$0xf] }
 0x72c   : > { %v16577_v20 = vrot.slane %v7306_v25, 7  ;;  %v7652_v11 = vsel %vm12846_vm5, %v7647_v59, %v7651_v50  ;;  %v8096_v1 = vrot.slane %v8094_v4, 4  ;;  %v8097_v49 = vrot.slane %v16548_v35, 5  ;;  %v7516_v25 = vld [vmem:[#allocation3 + $0x90] sm:$0xf] }
 0x72d   : > { %v7286_v46 = vsel %vm14543_vm13, %v7278_v41, %v7285_v36  ;;  %v7507_v26 = vsel %vm14089_vm8, %v7287_v13, %v7506_v48  ;;  %v7269_v54 = vsel %vm14543_vm13, %v7261_v58, %v7268_v44  ;;  %v7500_v53 = vsel %vm14089_vm8, %v7270_v43, %v7499_v32 }
 0x72e   : > { %7505 = vst [vmem:[#allocation3 + $0x7c] sm:$0xf] %v7286_v46  ;;  %7508 = vst [vmem:[#allocation3 + $0x80] sm:$0x1] %v7507_v26  ;;  %v7311_v59 = vor.u32 %v7309_v10, %v16577_v20  ;;  %v16595_v35 = vcombine.low %v7642_v29, %v7652_v11  ;;  %v8095_v41 = vsel %vm12835_vm4, %v10475_v16, %v8094_v4  ;;  %v7312_v43 = vrot.slane %v16577_v20, 4 }
 0x72f   : > { %7498 = vst [vmem:[#allocation3 + $0x70] sm:$0xf] %v7269_v54  ;;  %7501 = vst [vmem:[#allocation3 + $0x74] sm:$0x1] %v7500_v53  ;;  %v8098_v58 = vsel %vm12835_vm4, %v8096_v1, %v8097_v49  ;;  %v6792_v45 = vmul.f32 %v16201_v0, %v16414_v37  ;;  %v7678_v29 = vshrl.u32 %v16590_v63, 16  ;;  %v16614_v17 = vcombine.low %v16590_v63, %v16592_v7 }
 0x730   : > { %v16602_v39 = vcombine.low %v8095_v41, %v8098_v58  ;;  %v7517_v5 = vsel %vm14101_vm11, %v7311_v59, %v7516_v25  ;;  %9049 = vmatprep.mubr.bf16.mxu1 %v16595_v35  ;;  %v6795_v48 = vmul.f32 %v16418_v24, %v16201_v0  ;;  %v17995_v55 = vshrl.u32 %v16450_v21, 16 }
 0x731   : > { %7518 = vst [vmem:[#allocation3 + $0x90] sm:$0xf] %v7517_v5  ;;  %v6831_v37 = vadd.f32 %v16230_v33, %v6792_v45  ;;  %9050 = vmatmul.mubr.bf16.gmra.mrb[68].mxu1 %v16441_v15  ;;  %v17996_v4 = vshll.u32 %v16450_v21, 16  ;;  %v7663_v10 = vshll.u32 %v16475_v47, 16  ;;  %v17997_v24 = vshrl.u32 %v16475_v47, 16 }
 0x732   : > { %9211 = vmatmul.mubr.bf16.gmra.mrb[68].mxu0 %v16602_v39  ;;  %v7656_v50 = vrot.slane %v17995_v55, 4  ;;  %v6834_v16 = vadd.f32 %v16230_v33, %v6795_v48  ;;  %v7673_v13 = vshll.u32 %v16606_v18, 16  ;;  %v6793_v15 = vmul.f32 %v16201_v0, %v16423_v14 }
 0x733   : > { %v7659_v32 = vrot.slane %v17996_v4, 5  ;;  %9218 = vmatprep.mubr.bf16.mxu0 %v16614_v17  ;;  %v7669_v36 = vrot.slane %v17997_v24, 4  ;;  %v6863_v44 = vadd.f32 %v6831_v37, %v16112_v27  ;;  %v7665_v1 = vrot.slane %v7663_v10, 5 }
 0x734   : > { %v6798_v49 = vmul.f32 %v16460_v31, %v16201_v0  ;;  %v7681_v46 = vshll.u32 %v16590_v63, 16  ;;  %v6866_v26 = vadd.f32 %v6834_v16, %v16118_v23  ;;  %v7675_v54 = vrot.slane %v7673_v13, 5  ;;  %v12522_v31 = vld [vmem:[%s17719_s10 + $0x178] sm:$0xff]  }
 0x735   : > { %v7660_v11 = vor.u32 %v7659_v32, %v7656_v50  ;;  %v6832_v53 = vadd.f32 %v16230_v33, %v6793_v15  ;;  %v6895_v25 = vmax.f32 %v6863_v44, 0.0  ;;  %v7670_v41 = vor.u32 %v7669_v36, %v7665_v1  ;;  %v12523_v50 = vld [vmem:[%s17719_s10 + $0x1e8] sm:$0xff]   ;;  %11424 = vmatprep.subr.bf16.mxu1 %v12522_v31  ;;  %v7513_v31 = vld [vmem:[#allocation3 + $0x8c] sm:$0x1] }
 0x736   : > { %v6837_v58 = vadd.f32 %v16230_v33, %v6798_v49  ;;  %v6898_v14 = vmax.f32 %v6866_v26, 0.0  ;;  %v10476_v45 = vrot.slane %v16450_v21, 9  ;;  %v8101_v5 = vrot.slane %v16475_v47, 5  ;;  %11532 = vmatprep.subr.bf16.mxu0 %v12523_v50  ;;  %v16682_v50 = vld [vmem:[#allocation3 + $0x30] sm:$0xf] }
 0x737   : > { %v7661_v59 = vrot.slane %v7660_v11, 4  ;;  %v6864_v27 = vadd.f32 %v6832_v53, %v16121_v60  ;;  %v10677_v23 = vpack.c.bf16 %v6895_v25, %v6895_v25  ;;  %v7671_v48 = vrot.slane %v7670_v41, 4  ;;  %v12524_v60 = vld [vmem:[%s17719_s10 + $0x138] sm:$0xff]   ;;  %v12526_v53 = vld [vmem:[%s17719_s10 + $0x1f0] sm:$0xff]  }
 0x738   : > { %v6869_v37 = vadd.f32 %v6837_v58, %v16140_v8  ;;  %v8104_v55 = vrot.slane %v16606_v18, 5  ;;  %v10680_v21 = vpack.c.bf16 %v6898_v14, %v6898_v14  ;;  %v8103_v32 = vrot.slane %v8101_v5, 4  ;;  %v12525_v8 = vld [vmem:[%s17719_s10 + $0x1a8] sm:$0xff]   ;;  %11425 = vmatpush3.bf16.msra.mxu1 %v12524_v60  ;;  %v7520_v41 = vld [vmem:[#allocation3 + $0x98] sm:$0x1]  ;;  %v12528_v60 = vld [vmem:[%s17719_s10 + $0x1f8] sm:$0xff]  }
 0x739   : > { %v7666_v47 = vsel %vm12846_vm5, %v7661_v59, %v7665_v1  ;;  %v6896_v4 = vmax.f32 %v6864_v27, 0.0  ;;  %v7289_v18 = vshrl.u32 %v10677_v23, 16  ;;  %v7676_v10 = vsel %vm12846_vm5, %v7671_v48, %v7675_v54  ;;  %11533 = vmatpush3.bf16.msra.mxu0 %v12525_v8  ;;  %v7509_v1 = vld [vmem:[#allocation3 + $0x84] sm:$0xf]  ;;  %v16691_v8 = vld [vmem:[#allocation3 + $0x34] sm:$0xf] }
 0x73a   : > { %v6901_v16 = vmax.f32 %v6869_v37, 0.0  ;;  %v8102_v24 = vsel %vm12835_vm4, %v10476_v45, %v8101_v5  ;;  %v7292_v36 = vshll.u32 %v10677_v23, 16  ;;  %v7314_v13 = vshrl.u32 %v10680_v21, 16  ;;  %11534 = vmatprep.subr.bf16.mxu0 %v12526_v53 }
 0x73b   : > { %v16663_v15 = vcombine.low %v7666_v47, %v7676_v10  ;;  %v10678_v44 = vpack.c.bf16 %v6896_v4, %v6896_v4  ;;  %v7291_v11 = vrot.slane %v7289_v18, 7  ;;  %v8105_v26 = vsel %vm12835_vm4, %v8103_v32, %v8104_v55 }
 0x73c   : > { %v10683_v49 = vpack.c.bf16 %v6901_v16, %v6901_v16  ;;  %v6796_v54 = vmul.f32 %v16201_v0, %v16477_v38  ;;  %v7316_v25 = vrot.slane %v7314_v13, 7  ;;  %v7317_v59 = vshll.u32 %v10680_v21, 16  ;;  %v12527_v0 = vld [vmem:[%s17719_s10 + $0x1b0] sm:$0xff]  }
 0x73d   : > { %9057 = vmatprep.mubr.bf16.mxu1 %v16663_v15  ;;  %v7297_v58 = vshrl.u32 %v10678_v44, 16  ;;  %v16673_v14 = vcombine.low %v8102_v24, %v8105_v26  ;;  %v7294_v27 = vor.u32 %v7292_v36, %v7291_v11  ;;  %v7691_v45 = vshrl.u32 %v16592_v7, 16  ;;  %11535 = vmatpush3.bf16.msra.mxu0 %v12527_v0  ;;  %v7530_v36 = vld [vmem:[#allocation3 + $0xa8] sm:$0xf] }
 0x73e   : > { %v7300_v5 = vshll.u32 %v10678_v44, 16  ;;  %v7340_v23 = vshrl.u32 %v10683_v49, 16  ;;  %9058 = vmatmul.mubr.bf16.gmra.mrb[72].mxu1 %v16499_v57  ;;  %v7319_v38 = vor.u32 %v7317_v59, %v7316_v25  ;;  %v7321_v48 = vrot.slane %v7316_v25, 4  ;;  %11536 = vmatprep.subr.bf16.mxu0 %v12528_v60 }
 0x73f   : > { %v7299_v37 = vrot.slane %v7297_v58, 7  ;;  %9219 = vmatmul.mubr.bf16.gmra.mrb[72].mxu0 %v16673_v14  ;;  %v6835_v55 = vadd.f32 %v16230_v33, %v6796_v54  ;;  %v7295_v21 = vrot.slane %v7291_v11, 4  ;;  %v7510_v47 = vsel %vm14101_vm11, %v7294_v27, %v7509_v1  ;;  %v12529_v33 = vld [vmem:[%s17719_s10 + $0x1b8] sm:$0xff]   ;;  %v7562_v1 = vld [vmem:[#allocation3 + $0x2c] sm:$0xf] }
 0x740   : > { %v16689_v4 = vrot.slane %v7340_v23, 7  ;;  %v7343_v32 = vshll.u32 %v10683_v49, 16  ;;  %7511 = vst [vmem:[#allocation3 + $0x84] sm:$0xf] %v7510_v47  ;;  %v7320_v18 = vsel %vm14543_vm13, %v7312_v43, %v7319_v38  ;;  %v7521_v10 = vsel %vm14089_vm8, %v7321_v48, %v7520_v41  ;;  %v16717_v54 = vld [vmem:[%s17717_s8] ss:$0 sm:$0xff] }
 0x741   : > { %v7302_v16 = vor.u32 %v7300_v5, %v7299_v37  ;;  %v7304_v24 = vrot.slane %v7299_v37, 4  ;;  %7519 = vst [vmem:[#allocation3 + $0x94] sm:$0xf] %v7320_v18  ;;  %7522 = vst [vmem:[#allocation3 + $0x98] sm:$0x1] %v7521_v10  ;;  %v6867_v44 = vadd.f32 %v6835_v55, %v16144_v61  ;;  %v7702_v11 = vshrl.u32 %v16682_v50, 16  ;;  %11537 = vmatpush3.bf16.msra.mxu0 %v12529_v33 }
 0x742   : > { %v7345_v13 = vor.u32 %v7343_v32, %v16689_v4  ;;  %v7705_v20 = vshll.u32 %v16682_v50, 16  ;;  %v16712_v26 = vcombine.low %v16682_v50, %v16691_v8  ;;  %v6799_v61 = vmul.f32 %v16717_v54, %v16483_v42  ;;  %v16731_v42 = vld [vmem:[%s17718_s9] ss:$0 sm:$0xff] }
 0x743   : > { %v7303_v43 = vsel %vm14543_vm13, %v7295_v21, %v7302_v16  ;;  %v7514_v49 = vsel %vm14089_vm8, %v7304_v24, %v7513_v31  ;;  %v6899_v25 = vmax.f32 %v6867_v44, 0.0  ;;  %v7680_v59 = vrot.slane %v7678_v29, 4  ;;  %v12530_v38 = vld [vmem:[%s17719_s10 + $0x200] sm:$0xff]   ;;  %v7523_v24 = vld [vmem:[#allocation3 + $0x9c] sm:$0xf] }
 0x744   : > { %7512 = vst [vmem:[#allocation3 + $0x88] sm:$0xf] %v7303_v43  ;;  %7515 = vst [vmem:[#allocation3 + $0x8c] sm:$0x1] %v7514_v49  ;;  %v7531_v53 = vsel %vm14101_vm11, %v7345_v13, %v7530_v36  ;;  %v7683_v41 = vrot.slane %v7681_v46, 5  ;;  %9226 = vmatprep.mubr.bf16.mxu0 %v16712_v26  ;;  %v6838_v58 = vadd.f32 %v16731_v42, %v6799_v61  ;;  %v7687_v27 = vshll.u32 %v16592_v7, 16 }
 0x745   : > { %7532 = vst [vmem:[#allocation3 + $0xa8] sm:$0xf] %v7531_v53  ;;  %v7693_v5 = vrot.slane %v7691_v45, 4  ;;  %v7697_v31 = vshll.u32 %v7562_v1, 16  ;;  %v10681_v23 = vpack.c.bf16 %v6899_v25, %v6899_v25  ;;  %v6797_v46 = vmul.f32 %v16717_v54, %v16490_v9  ;;  %11802 = vmatprep.subr.bf16.mxu1 %v12530_v38  ;;  %11754 = vmatprep.subr.bf16.mxu0 %v12530_v38 }
 0x746   : > { %v7684_v29 = vor.u32 %v7683_v41, %v7680_v59  ;;  %v6802_v0 = vmul.f32 %v16717_v54, %v16516_v40  ;;  %v7346_v48 = vrot.slane %v16689_v4, 4  ;;  %v6870_v37 = vadd.f32 %v6838_v58, %v16148_v2 }
 0x747   : > { %v7689_v55 = vrot.slane %v7687_v27, 5  ;;  %v7699_v60 = vrot.slane %v7697_v31, 5  ;;  %v7323_v45 = vshrl.u32 %v10681_v23, 16  ;;  %v6836_v47 = vadd.f32 %v16731_v42, %v6797_v46  ;;  %v16765_v27 = vld [vmem:[#allocation3 + $0x3c] sm:$0xf] }
 0x748   : > { %v7685_v21 = vrot.slane %v7684_v29, 4  ;;  %v10477_v32 = vrot.slane %v16590_v63, 9  ;;  %v6902_v9 = vmax.f32 %v6870_v37, 0.0  ;;  %v6841_v33 = vadd.f32 %v16731_v42, %v6802_v0  ;;  %v16771_v46 = vld [vmem:[#allocation3 + $0x40] sm:$0xf] }
 0x749   : > { %v7694_v40 = vor.u32 %v7693_v5, %v7689_v55  ;;  %v8108_v18 = vrot.slane %v16592_v7, 5  ;;  %v16748_v10 = vrot.slane %v7323_v45, 7  ;;  %v7326_v4 = vshll.u32 %v10681_v23, 16  ;;  %v7534_v37 = vld [vmem:[#allocation3 + $0xb0] sm:$0x1] }
 0x74a   : > { %v7690_v2 = vsel %vm12846_vm5, %v7685_v21, %v7689_v55  ;;  %v6868_v16 = vadd.f32 %v6836_v47, %v16154_v12  ;;  %v10684_v36 = vpack.c.bf16 %v6902_v9, %v6902_v9  ;;  %v6873_v63 = vadd.f32 %v6841_v33, %v16189_v51 }
 0x74b   : > { %v7695_v13 = vrot.slane %v7694_v40, 4  ;;  %v8111_v44 = vrot.slane %v7562_v1, 5  ;;  %v7328_v43 = vor.u32 %v7326_v4, %v16748_v10  ;;  %v8109_v7 = vsel %vm12835_vm4, %v10477_v32, %v8108_v18  ;;  %v7527_v4 = vld [vmem:[#allocation3 + $0xa4] sm:$0x1] }
 0x74c   : > { %v6900_v49 = vmax.f32 %v6868_v16, 0.0  ;;  %v8110_v61 = vrot.slane %v8108_v18, 4  ;;  %v7348_v53 = vshrl.u32 %v10684_v36, 16  ;;  %v7351_v25 = vshll.u32 %v10684_v36, 16 }
 0x74d   : > { %v7700_v59 = vsel %vm12846_vm5, %v7695_v13, %v7699_v60  ;;  %v6905_v41 = vmax.f32 %v6873_v63, 0.0  ;;  %v7524_v12 = vsel %vm14101_vm11, %v7328_v43, %v7523_v24  ;;  %v6800_v29 = vmul.f32 %v16717_v54, %v16524_v30  ;;  %v7544_v13 = vld [vmem:[#allocation3 + $0xc0] sm:$0xf] }
 0x74e   : > { %v16761_v58 = vcombine.low %v7690_v2, %v7700_v59  ;;  %v10682_v51 = vpack.c.bf16 %v6900_v49, %v6900_v49  ;;  %v8112_v1 = vsel %vm12835_vm4, %v8110_v61, %v8111_v44  ;;  %7525 = vst [vmem:[#allocation3 + $0x9c] sm:$0xf] %v7524_v12  ;;  %v7350_v5 = vrot.slane %v7348_v53, 7 }
 0x74f   : > { %v10687_v31 = vpack.c.bf16 %v6905_v41, %v6905_v41  ;;  %v16767_v23 = vcombine.low %v8109_v7, %v8112_v1  ;;  %v7329_v0 = vrot.slane %v16748_v10, 4  ;;  %v7715_v38 = vshrl.u32 %v16691_v8, 16  ;;  %v7565_v7 = vld [vmem:[#allocation3 + $0x38] sm:$0xf] }
 0x750   : > { %9065 = vmatprep.mubr.bf16.mxu1 %v16761_v58  ;;  %v7331_v55 = vshrl.u32 %v10682_v51, 16  ;;  %v7334_v60 = vshll.u32 %v10682_v51, 16  ;;  %v7353_v45 = vor.u32 %v7351_v25, %v7350_v5  ;;  %v7355_v21 = vrot.slane %v7350_v5, 4 }
 0x751   : > { %v7374_v47 = vshrl.u32 %v10687_v31, 16  ;;  %9227 = vmatmul.mubr.bf16.gmra.mrb[76].mxu0 %v16767_v23  ;;  %9066 = vmatmul.mubr.bf16.gmra.mrb[76].mxu1 %v16614_v17  ;;  %v7726_v30 = vshrl.u32 %v16765_v27, 16  ;;  %v7377_v9 = vshll.u32 %v10687_v31, 16  ;;  %v6839_v40 = vadd.f32 %v16731_v42, %v6800_v29 }
 0x752   : > { %v7333_v32 = vrot.slane %v7331_v55, 7  ;;  %v16782_v33 = vcombine.low %v16765_v27, %v16771_v46  ;;  %v7354_v18 = vsel %vm14543_vm13, %v7346_v48, %v7353_v45  ;;  %v7535_v10 = vsel %vm14089_vm8, %v7355_v21, %v7534_v37 }
 0x753   : > { %v16788_v2 = vrot.slane %v7374_v47, 7  ;;  %v6803_v16 = vmul.f32 %v16717_v54, %v16530_v62  ;;  %7533 = vst [vmem:[#allocation3 + $0xac] sm:$0xf] %v7354_v18  ;;  %7536 = vst [vmem:[#allocation3 + $0xb0] sm:$0x1] %v7535_v10  ;;  %v6871_v63 = vadd.f32 %v6839_v40, %v16195_v28  ;;  %v7704_v48 = vrot.slane %v7702_v11, 4 }
 0x754   : > { %v7336_v24 = vor.u32 %v7334_v60, %v7333_v32  ;;  %v7338_v36 = vrot.slane %v7333_v32, 4  ;;  %9234 = vmatprep.mubr.bf16.mxu0 %v16782_v33  ;;  %v7729_v43 = vshll.u32 %v16765_v27, 16  ;;  %v7707_v62 = vrot.slane %v7705_v20, 5 }
 0x755   : > { %v7379_v44 = vor.u32 %v7377_v9, %v16788_v2  ;;  %v6842_v49 = vadd.f32 %v16731_v42, %v6803_v16  ;;  %v6903_v53 = vmax.f32 %v6871_v63, 0.0  ;;  %v7711_v25 = vshll.u32 %v16691_v8, 16  ;;  %v16823_v16 = vld [vmem:[#allocation3 + $0x48] sm:$0xf] }
 0x756   : > { %v7337_v61 = vsel %vm14543_vm13, %v7329_v0, %v7336_v24  ;;  %v7528_v28 = vsel %vm14089_vm8, %v7338_v36, %v7527_v4  ;;  %v7708_v41 = vor.u32 %v7707_v62, %v7704_v48  ;;  %v7717_v12 = vrot.slane %v7715_v38, 4  ;;  %v17998_v4 = vld [vmem:[#allocation45_spill] sm:$0xff]  ;;  %v7568_v62 = vld [vmem:[#allocation3 + $0x44] sm:$0xf] }
 0x757   : > { %7526 = vst [vmem:[#allocation3 + $0xa0] sm:$0xf] %v7337_v61  ;;  %7529 = vst [vmem:[#allocation3 + $0xa4] sm:$0x1] %v7528_v28  ;;  %v7545_v11 = vsel %vm14101_vm11, %v7379_v44, %v7544_v13  ;;  %v6874_v59 = vadd.f32 %v6842_v49, %v16213_v6  ;;  %v10685_v20 = vpack.c.bf16 %v6903_v53, %v6903_v53  ;;  %v7713_v51 = vrot.slane %v7711_v25, 5 }
 0x758   : > { %7546 = vst [vmem:[#allocation3 + $0xc0] sm:$0xf] %v7545_v11  ;;  %v7721_v1 = vshll.u32 %v7565_v7, 16  ;;  %v6801_v5 = vmul.f32 %v16717_v54, %v16540_v34  ;;  %v7739_v31 = vshrl.u32 %v16771_v46, 16  ;;  %v7709_v0 = vrot.slane %v7708_v41, 4 }
 0x759   : > { %v6906_v29 = vmax.f32 %v6874_v59, 0.0  ;;  %v8115_v37 = vrot.slane %v16691_v8, 5  ;;  %v7380_v55 = vrot.slane %v16788_v2, 4  ;;  %v7357_v60 = vshrl.u32 %v10685_v20, 16  ;;  %v7537_v34 = vld [vmem:[#allocation3 + $0xb4] sm:$0xf] }
 0x75a   : > { %v7718_v45 = vor.u32 %v7717_v12, %v7713_v51  ;;  %v10478_v6 = vrot.slane %v16682_v50, 9  ;;  %v7360_v38 = vshll.u32 %v10685_v20, 16  ;;  %v7723_v47 = vrot.slane %v7721_v1, 5  ;;  %v16825_v24 = vld [vmem:[#allocation3 + $0x4c] sm:$0xf] }
 0x75b   : > { %v10688_v21 = vpack.c.bf16 %v6906_v29, %v6906_v29  ;;  %v6840_v32 = vadd.f32 %v16731_v42, %v6801_v5  ;;  %v16816_v9 = vrot.slane %v7357_v60, 7  ;;  %v8117_v40 = vrot.slane %v8115_v37, 4  ;;  %v7548_v53 = vld [vmem:[#allocation3 + $0xc8] sm:$0x1] }
 0x75c   : > { %v7719_v54 = vrot.slane %v7718_v45, 4  ;;  %v8118_v18 = vrot.slane %v7565_v7, 5  ;;  %v7714_v8 = vsel %vm12846_vm5, %v7709_v0, %v7713_v51  ;;  %v8116_v50 = vsel %vm12835_vm4, %v10478_v6, %v8115_v37  ;;  %v16858_v45 = vld [vmem:[#allocation3 + $0x54] sm:$0xf] }
 0x75d   : > { %v7382_v10 = vshrl.u32 %v10688_v21, 16  ;;  %v6872_v2 = vadd.f32 %v6840_v32, %v17998_v4  ;;  %v7362_v42 = vor.u32 %v7360_v38, %v16816_v9  ;;  %v7385_v36 = vshll.u32 %v10688_v21, 16 }
 0x75e   : > { %v7724_v13 = vsel %vm12846_vm5, %v7719_v54, %v7723_v47  ;;  %v8119_v63 = vsel %vm12835_vm4, %v8117_v40, %v8118_v18  ;;  %v7363_v61 = vrot.slane %v16816_v9, 4  ;;  %v7750_v25 = vshrl.u32 %v16823_v16, 16  ;;  %v7541_v9 = vld [vmem:[#allocation3 + $0xbc] sm:$0x1] }
 0x75f   : > { %v7384_v48 = vrot.slane %v7382_v10, 7  ;;  %v16832_v44 = vcombine.low %v7714_v8, %v7724_v13  ;;  %v6904_v49 = vmax.f32 %v6872_v2, 0.0  ;;  %v16834_v7 = vcombine.low %v8116_v50, %v8119_v63 }
 0x760   : > { %v7538_v28 = vsel %vm14101_vm11, %v7362_v42, %v7537_v34  ;;  %v16842_v11 = vcombine.low %v16823_v16, %v16825_v24  ;;  %v7728_v20 = vrot.slane %v7726_v30, 4  ;;  %v7731_v51 = vrot.slane %v7729_v43, 5 }
 0x761   : > { %7539 = vst [vmem:[#allocation3 + $0xb4] sm:$0xf] %v7538_v28  ;;  %v7387_v59 = vor.u32 %v7385_v36, %v7384_v48  ;;  %v7389_v41 = vrot.slane %v7384_v48, 4  ;;  %9073 = vmatprep.mubr.bf16.mxu1 %v16832_v44  ;;  %v10686_v12 = vpack.c.bf16 %v6904_v49, %v6904_v49  ;;  %9235 = vmatmul.mubr.bf16.gmra.mrb[80].mxu0 %v16834_v7  ;;  %v7735_v1 = vshll.u32 %v16771_v46, 16  ;;  %v16869_v36 = vld [vmem:[#allocation3 + $0x58] sm:$0xf] }
 0x762   : > { %9074 = vmatmul.mubr.bf16.gmra.mrb[80].mxu1 %v16712_v26  ;;  %9242 = vmatprep.mubr.bf16.mxu0 %v16842_v11  ;;  %v7741_v5 = vrot.slane %v7739_v31, 4  ;;  %v7745_v29 = vshll.u32 %v7568_v62, 16  ;;  %v7753_v30 = vshll.u32 %v16823_v16, 16  ;;  %v7763_v43 = vshrl.u32 %v16825_v24, 16 }
 0x763   : > { %v7388_v0 = vsel %vm14543_vm13, %v7380_v55, %v7387_v59  ;;  %v7549_v37 = vsel %vm14089_vm8, %v7389_v41, %v7548_v53  ;;  %v7365_v60 = vshrl.u32 %v10686_v12, 16  ;;  %v7368_v6 = vshll.u32 %v10686_v12, 16  ;;  %v16882_v41 = vld [vmem:[#allocation3 + $0x60] sm:$0xf] }
 0x764   : > { %7547 = vst [vmem:[#allocation3 + $0xc4] sm:$0xf] %v7388_v0  ;;  %7550 = vst [vmem:[#allocation3 + $0xc8] sm:$0x1] %v7549_v37  ;;  %v7732_v38 = vor.u32 %v7731_v51, %v7728_v20  ;;  %v7737_v21 = vrot.slane %v7735_v1, 5  ;;  %v7747_v47 = vrot.slane %v7745_v29, 5 }
 0x765   : > { %v7367_v31 = vrot.slane %v7365_v60, 7  ;;  %v10479_v32 = vrot.slane %v16765_v27, 9  ;;  %v8122_v55 = vrot.slane %v16771_v46, 5  ;;  %v8125_v40 = vrot.slane %v7568_v62, 5  ;;  %v7571_v46 = vld [vmem:[#allocation3 + $0x50] sm:$0xf] }
 0x766   : > { %v7733_v34 = vrot.slane %v7732_v38, 4  ;;  %v7742_v54 = vor.u32 %v7741_v5, %v7737_v21  ;;  %v7774_v18 = vshrl.u32 %v16858_v45, 16  ;;  %v7777_v2 = vshll.u32 %v16858_v45, 16  ;;  %v7574_v60 = vld [vmem:[#allocation3 + $0x5c] sm:$0xf] }
 0x767   : > { %v7370_v10 = vor.u32 %v7368_v6, %v7367_v31  ;;  %v7372_v8 = vrot.slane %v7367_v31, 4  ;;  %v8124_v4 = vrot.slane %v8122_v55, 4  ;;  %v8123_v27 = vsel %vm12835_vm4, %v10479_v32, %v8122_v55 }
 0x768   : > { %v7738_v50 = vsel %vm12846_vm5, %v7733_v34, %v7737_v21  ;;  %v7743_v42 = vrot.slane %v7742_v54, 4  ;;  %v7752_v13 = vrot.slane %v7750_v25, 4  ;;  %v7755_v62 = vrot.slane %v7753_v30, 5  ;;  %v16898_v21 = vld [vmem:[#allocation3 + $0x64] sm:$0xf] }
 0x769   : > { %v7371_v63 = vsel %vm14543_vm13, %v7363_v61, %v7370_v10  ;;  %v7542_v48 = vsel %vm14089_vm8, %v7372_v8, %v7541_v9  ;;  %v8126_v49 = vsel %vm12835_vm4, %v8124_v4, %v8125_v40  ;;  %v7759_v59 = vshll.u32 %v16825_v24, 16 }
 0x76a   : > { %7540 = vst [vmem:[#allocation3 + $0xb8] sm:$0xf] %v7371_v63  ;;  %7543 = vst [vmem:[#allocation3 + $0xbc] sm:$0x1] %v7542_v48  ;;  %v7748_v28 = vsel %vm12846_vm5, %v7743_v42, %v7747_v47  ;;  %v16879_v53 = vcombine.low %v8123_v27, %v8126_v49  ;;  %v7765_v25 = vrot.slane %v7763_v43, 4  ;;  %v16888_v61 = vcombine.low %v16858_v45, %v16869_v36 }
 0x76b   : > { %v16884_v3 = vcombine.low %v7738_v50, %v7748_v28  ;;  %v7756_v12 = vor.u32 %v7755_v62, %v7752_v13  ;;  %v7769_v20 = vshll.u32 %v7571_v46, 16  ;;  %v7787_v51 = vshrl.u32 %v16869_v36, 16  ;;  %v16914_v42 = vld [vmem:[#allocation3 + $0x6c] sm:$0xf]  ;;  %v7577_v28 = vld [vmem:[#allocation3 + $0x68] sm:$0xf] }
 0x76c   : > { %9243 = vmatmul.mubr.bf16.gmra.mrb[84].mxu0 %v16879_v53  ;;  %v7761_v1 = vrot.slane %v7759_v59, 5  ;;  %v8129_v5 = vrot.slane %v16825_v24, 5  ;;  %v10480_v29 = vrot.slane %v16823_v16, 9  ;;  %v8132_v0 = vrot.slane %v7571_v46, 5 }
 0x76d   : > { %9081 = vmatprep.mubr.bf16.mxu1 %v16884_v3  ;;  %9250 = vmatprep.mubr.bf16.mxu0 %v16888_v61  ;;  %v7798_v37 = vshrl.u32 %v16882_v41, 16  ;;  %v7757_v30 = vrot.slane %v7756_v12, 4  ;;  %v7771_v43 = vrot.slane %v7769_v20, 5  ;;  %v7801_v24 = vshll.u32 %v16882_v41, 16  ;;  %v16928_v20 = vld [vmem:[#allocation3 + $0x70] sm:$0xf] }
 0x76e   : > { %9082 = vmatmul.mubr.bf16.gmra.mrb[84].mxu1 %v16782_v33  ;;  %v7766_v6 = vor.u32 %v7765_v25, %v7761_v1  ;;  %v8131_v38 = vrot.slane %v8129_v5, 4  ;;  %v7776_v31 = vrot.slane %v7774_v18, 4  ;;  %v7779_v47 = vrot.slane %v7777_v2, 5 }
 0x76f   : > { %v7783_v32 = vshll.u32 %v16869_v36, 16  ;;  %v7789_v9 = vrot.slane %v7787_v51, 4  ;;  %v7793_v34 = vshll.u32 %v7574_v60, 16  ;;  %v8130_v54 = vsel %vm12835_vm4, %v10480_v29, %v8129_v5 }
 0x770   : > { %v7767_v55 = vrot.slane %v7766_v6, 4  ;;  %v8133_v16 = vsel %vm12835_vm4, %v8131_v38, %v8132_v0  ;;  %v7811_v40 = vshrl.u32 %v16898_v21, 16  ;;  %v7780_v10 = vor.u32 %v7779_v47, %v7776_v31 }
 0x771   : > { %v7785_v8 = vrot.slane %v7783_v32, 5  ;;  %v7762_v4 = vsel %vm12846_vm5, %v7757_v30, %v7761_v1  ;;  %v16911_v2 = vcombine.low %v8130_v54, %v8133_v16  ;;  %v8136_v50 = vrot.slane %v16869_v36, 5  ;;  %v16948_v32 = vld [vmem:[#allocation3 + $0x78] sm:$0xf]  ;;  %v7580_v54 = vld [vmem:[#allocation3 + $0x74] sm:$0xf] }
 0x772   : > { %v7772_v18 = vsel %vm12846_vm5, %v7767_v55, %v7771_v43  ;;  %v16920_v46 = vcombine.low %v16882_v41, %v16898_v21  ;;  %v7781_v13 = vrot.slane %v7780_v10, 4  ;;  %v7795_v48 = vrot.slane %v7793_v34, 5 }
 0x773   : > { %v16916_v27 = vcombine.low %v7762_v4, %v7772_v18  ;;  %v7790_v63 = vor.u32 %v7789_v9, %v7785_v8  ;;  %v10481_v49 = vrot.slane %v16858_v45, 9  ;;  %v8138_v62 = vrot.slane %v8136_v50, 4 }
 0x774   : > { %17999 = vst [vmem:[#allocation37_spill] sm:$0xff] %v16920_v46  ;;  %9251 = vmatmul.mubr.bf16.gmra.mrb[88].mxu0 %v16911_v2  ;;  %v8139_v59 = vrot.slane %v7574_v60, 5  ;;  %v7822_v25 = vshrl.u32 %v16914_v42, 16  ;;  %v7800_v12 = vrot.slane %v7798_v37, 4  ;;  %v7825_v51 = vshll.u32 %v16914_v42, 16 }
 0x775   : > { %9089 = vmatprep.mubr.bf16.mxu1 %v16916_v27  ;;  %9258 = vmatprep.mubr.bf16.mxu0 %v16920_v46  ;;  %v7791_v36 = vrot.slane %v7790_v63, 4  ;;  %v7803_v1 = vrot.slane %v7801_v24, 5  ;;  %v7807_v45 = vshll.u32 %v16898_v21, 16  ;;  %v7813_v5 = vrot.slane %v7811_v40, 4 }
 0x776   : > { %9090 = vmatmul.mubr.bf16.gmra.mrb[88].mxu1 %v16842_v11  ;;  %v7786_v29 = vsel %vm12846_vm5, %v7781_v13, %v7785_v8  ;;  %v8140_v60 = vsel %vm12835_vm4, %v8138_v62, %v8139_v59  ;;  %v7817_v37 = vshll.u32 %v7577_v28, 16  ;;  %v8143_v38 = vrot.slane %v16898_v21, 5 }
 0x777   : > { %v7796_v0 = vsel %vm12846_vm5, %v7791_v36, %v7795_v48  ;;  %v7804_v6 = vor.u32 %v7803_v1, %v7800_v12  ;;  %v7809_v43 = vrot.slane %v7807_v45, 5  ;;  %v8137_v24 = vsel %vm12835_vm4, %v10481_v49, %v8136_v50  ;;  %v16955_v50 = vld [vmem:[#allocation3 + $0x7c] sm:$0xf] }
 0x778   : > { %v16938_v30 = vcombine.low %v7786_v29, %v7796_v0  ;;  %v7835_v31 = vshrl.u32 %v16928_v20, 16  ;;  %v16946_v47 = vcombine.low %v16914_v42, %v16928_v20  ;;  %v16951_v55 = vcombine.low %v8137_v24, %v8140_v60  ;;  %v16974_v0 = vld [vmem:[#allocation3 + $0x84] sm:$0xf] }
 0x779   : > { %v7805_v16 = vrot.slane %v7804_v6, 4  ;;  %v7814_v9 = vor.u32 %v7813_v5, %v7809_v43  ;;  %v8145_v34 = vrot.slane %v8143_v38, 4  ;;  %v7819_v21 = vrot.slane %v7817_v37, 5 }
 0x77a   : > { %18000 = vst [vmem:[#allocation32_spill] sm:$0xff] %v16946_v47  ;;  %9097 = vmatprep.mubr.bf16.mxu1 %v16938_v30  ;;  %18001 = vst [vmem:[#allocation33_spill] sm:$0xff] %v16951_v55  ;;  %v10482_v40 = vrot.slane %v16882_v41, 9  ;;  %v7824_v10 = vrot.slane %v7822_v25, 4  ;;  %v7827_v8 = vrot.slane %v7825_v51, 5  ;;  %v8146_v18 = vrot.slane %v7577_v28, 5 }
 0x77b   : > { %v7815_v4 = vrot.slane %v7814_v9, 4  ;;  %v7846_v13 = vshrl.u32 %v16948_v32, 16  ;;  %v7831_v63 = vshll.u32 %v16928_v20, 16  ;;  %v7849_v48 = vshll.u32 %v16948_v32, 16 }
 0x77c   : > { %9259 = vmatmul.mubr.bf16.gmra.mrb[92].mxu0 %v16951_v55  ;;  %v7828_v49 = vor.u32 %v7827_v8, %v7824_v10  ;;  %v7837_v62 = vrot.slane %v7835_v31, 4  ;;  %v7841_v36 = vshll.u32 %v7580_v54, 16  ;;  %v7810_v41 = vsel %vm12846_vm5, %v7805_v16, %v7809_v43  ;;  %v7583_v43 = vld [vmem:[#allocation3 + $0x80] sm:$0xf]  ;;  %v7598_v55 = vld [vmem:[#allocation3 + $0xbc] sm:$0xf] }
 0x77d   : > { %9266 = vmatprep.mubr.bf16.mxu0 %v16946_v47  ;;  %v7820_v28 = vsel %vm12846_vm5, %v7815_v4, %v7819_v21  ;;  %v8147_v59 = vsel %vm12835_vm4, %v8145_v34, %v8146_v18  ;;  %v7833_v25 = vrot.slane %v7831_v63, 5  ;;  %v7859_v51 = vshrl.u32 %v16955_v50, 16 }
 0x77e   : > { %9098 = vmatmul.mubr.bf16.gmra.mrb[92].mxu1 %v16888_v61  ;;  %v16968_v12 = vcombine.low %v7810_v41, %v7820_v28  ;;  %v8150_v1 = vrot.slane %v16928_v20, 5  ;;  %v8144_v45 = vsel %vm12835_vm4, %v10482_v40, %v8143_v38  ;;  %v7829_v5 = vrot.slane %v7828_v49, 4  ;;  %v16983_v20 = vld [vmem:[#allocation3 + $0x88] sm:$0xf]  ;;  %v17003_v28 = vld [vmem:[#allocation3 + $0x90] sm:$0xf] }
 0x77f   : > { %v7838_v29 = vor.u32 %v7837_v62, %v7833_v25  ;;  %v16977_v60 = vcombine.low %v8144_v45, %v8147_v59  ;;  %v16981_v37 = vcombine.low %v16948_v32, %v16955_v50  ;;  %v7843_v6 = vrot.slane %v7841_v36, 5 }
 0x780   : > { %9105 = vmatprep.mubr.bf16.mxu1 %v16968_v12  ;;  %v8153_v31 = vrot.slane %v7580_v54, 5  ;;  %v7848_v16 = vrot.slane %v7846_v13, 4  ;;  %v7851_v38 = vrot.slane %v7849_v48, 5  ;;  %v8152_v9 = vrot.slane %v8150_v1, 4 }
 0x781   : > { %18002 = vst [vmem:[#allocation40_spill] sm:$0xff] %v16977_v60  ;;  %18003 = vst [vmem:[#allocation34_spill] sm:$0xff] %v16981_v37  ;;  %v7839_v24 = vrot.slane %v7838_v29, 4  ;;  %v7870_v34 = vshrl.u32 %v16974_v0, 16  ;;  %v7855_v21 = vshll.u32 %v16955_v50, 16  ;;  %v7861_v40 = vrot.slane %v7859_v51, 4 }
 0x782   : > { %v7834_v10 = vsel %vm12846_vm5, %v7829_v5, %v7833_v25  ;;  %v7873_v54 = vshll.u32 %v16974_v0, 16  ;;  %v7852_v4 = vor.u32 %v7851_v38, %v7848_v16  ;;  %v7883_v13 = vshrl.u32 %v16983_v20, 16  ;;  %v17007_v51 = vld [vmem:[#allocation3 + $0x94] sm:$0xf] }
 0x783   : > { %v7844_v8 = vsel %vm12846_vm5, %v7839_v24, %v7843_v6  ;;  %v7857_v63 = vrot.slane %v7855_v21, 5  ;;  %v7865_v48 = vshll.u32 %v7583_v43, 16  ;;  %v10483_v49 = vrot.slane %v16914_v42, 9  ;;  %v7586_v6 = vld [vmem:[#allocation3 + $0x8c] sm:$0xf] }
 0x784   : > { %9267 = vmatmul.mubr.bf16.gmra.mrb[96].mxu0 %v16977_v60  ;;  %v16994_v18 = vcombine.low %v7834_v10, %v7844_v8  ;;  %v8157_v62 = vrot.slane %v16955_v50, 5  ;;  %v8154_v36 = vsel %vm12835_vm4, %v8152_v9, %v8153_v31  ;;  %v7853_v25 = vrot.slane %v7852_v4, 4 }
 0x785   : > { %9274 = vmatprep.mubr.bf16.mxu0 %v16981_v37  ;;  %v7862_v41 = vor.u32 %v7861_v40, %v7857_v63  ;;  %v8151_v59 = vsel %vm12835_vm4, %v10483_v49, %v8150_v1  ;;  %v7872_v45 = vrot.slane %v7870_v34, 4  ;;  %v7875_v5 = vrot.slane %v7873_v54, 5 }
 0x786   : > { %18004 = vst [vmem:[#allocation35_spill] sm:$0xff] %v16994_v18  ;;  %9106 = vmatmul.mubr.bf16.gmra.mrb[96].mxu1 %v16920_v46  ;;  %v7867_v42 = vrot.slane %v7865_v48, 5  ;;  %v7879_v50 = vshll.u32 %v16983_v20, 16  ;;  %v7885_v24 = vrot.slane %v7883_v13, 4  ;;  %v17010_v16 = vcombine.low %v8151_v59, %v8154_v36 }
 0x787   : > { %9113 = vmatprep.mubr.bf16.mxu1 %v16994_v18  ;;  %v7863_v29 = vrot.slane %v7862_v41, 4  ;;  %v17014_v31 = vcombine.low %v16974_v0, %v16983_v20  ;;  %v8159_v38 = vrot.slane %v8157_v62, 4  ;;  %v8160_v9 = vrot.slane %v7583_v43, 5  ;;  %v17033_v41 = vld [vmem:[#allocation3 + $0xa0] sm:$0xf] }
 0x788   : > { %18005 = vst [vmem:[#allocation43_spill] sm:$0xff] %v17010_v16  ;;  %v7894_v34 = vshrl.u32 %v17003_v28, 16  ;;  %v7907_v21 = vshrl.u32 %v17007_v51, 16  ;;  %v7881_v40 = vrot.slane %v7879_v50, 5  ;;  %v7858_v10 = vsel %vm12846_vm5, %v7853_v25, %v7857_v63  ;;  %v17128_v18 = vld [vmem:[#allocation3 + $0xb0] sm:$0xf] }
 0x789   : > { %18006 = vst [vmem:[#allocation36_spill] sm:$0xff] %v17014_v31  ;;  %v7868_v1 = vsel %vm12846_vm5, %v7863_v29, %v7867_v42  ;;  %v7897_v8 = vshll.u32 %v17003_v28, 16  ;;  %v7876_v54 = vor.u32 %v7875_v5, %v7872_v45  ;;  %v7889_v4 = vshll.u32 %v7586_v6, 16  ;;  %v17036_v29 = vld [vmem:[#allocation3 + $0x9c] sm:$0xf] }
 0x78a   : > { %v17025_v43 = vcombine.low %v7858_v10, %v7868_v1  ;;  %v7886_v13 = vor.u32 %v7885_v24, %v7881_v40  ;;  %v10484_v48 = vrot.slane %v16948_v32, 9  ;;  %v8161_v49 = vsel %vm12835_vm4, %v8159_v38, %v8160_v9  ;;  %v7589_v24 = vld [vmem:[#allocation3 + $0x98] sm:$0xf] }
 0x78b   : > { %v8164_v63 = vrot.slane %v16983_v20, 5  ;;  %v7903_v59 = vshll.u32 %v17007_v51, 16  ;;  %v7909_v25 = vrot.slane %v7907_v21, 4  ;;  %v7877_v45 = vrot.slane %v7876_v54, 4 }
 0x78c   : > { %9275 = vmatmul.mubr.bf16.gmra.mrb[100].mxu0 %v17010_v16  ;;  %18007 = vst [vmem:[#allocation38_spill] sm:$0xff] %v17025_v43  ;;  %v7887_v36 = vrot.slane %v7886_v13, 4  ;;  %v7891_v5 = vrot.slane %v7889_v4, 5  ;;  %v7896_v42 = vrot.slane %v7894_v34, 4  ;;  %v7899_v50 = vrot.slane %v7897_v8, 5 }
 0x78d   : > { %9282 = vmatprep.mubr.bf16.mxu0 %v17014_v31  ;;  %v8158_v32 = vsel %vm12835_vm4, %v10484_v48, %v8157_v62  ;;  %v7905_v38 = vrot.slane %v7903_v59, 5  ;;  %v7931_v1 = vshrl.u32 %v17033_v41, 16  ;;  %v17047_v21 = vcombine.low %v17003_v28, %v17007_v51 }
 0x78e   : > { %9114 = vmatmul.mubr.bf16.gmra.mrb[100].mxu1 %v16946_v47  ;;  %v17040_v9 = vcombine.low %v8158_v32, %v8161_v49  ;;  %v7892_v20 = vsel %vm12846_vm5, %v7887_v36, %v7891_v5  ;;  %v8166_v10 = vrot.slane %v8164_v63, 4  ;;  %v7918_v34 = vshrl.u32 %v17036_v29, 16  ;;  %v17060_v5 = vld [vmem:[#allocation3 + $0xac] sm:$0xf] }
 0x78f   : > { %9121 = vmatprep.mubr.bf16.mxu1 %v17025_v43  ;;  %18009 = vst [vmem:[#allocation39_spill] sm:$0xff] %v17047_v21  ;;  %v7910_v8 = vor.u32 %v7909_v25, %v7905_v38  ;;  %v7882_v62 = vsel %vm12846_vm5, %v7877_v45, %v7881_v40  ;;  %v7921_v54 = vshll.u32 %v17036_v29, 16  ;;  %v7900_v4 = vor.u32 %v7899_v50, %v7896_v42  ;;  %v17062_v40 = vpop.f32.mrb[64].mxu1 }
 0x790   : > { %18008 = vst [vmem:[#allocation44_spill] sm:$0xff] %v17040_v9  ;;  %v7913_v13 = vshll.u32 %v7589_v24, 16  ;;  %v17055_v48 = vcombine.low %v7882_v62, %v7892_v20  ;;  %v8167_v49 = vrot.slane %v7586_v6, 5  ;;  %v8171_v36 = vrot.slane %v17007_v51, 5  ;;  %v17068_v6 = vld [vmem:[#allocation3 + $0xa8] sm:$0xf] }
 0x791   : > { %v7927_v59 = vshll.u32 %v17033_v41, 16  ;;  %v7911_v25 = vrot.slane %v7910_v8, 4  ;;  %v7933_v32 = vrot.slane %v7931_v1, 4  ;;  %v10485_v45 = vrot.slane %v16974_v0, 9  ;;  %v17072_v50 = vpop.f32.mrb[65].mxu1 }
 0x792   : > { %18010 = vst [vmem:[#allocation46_spill] sm:$0xff] %v17055_v48  ;;  %v8168_v42 = vsel %vm12835_vm4, %v8166_v10, %v8167_v49  ;;  %v7901_v20 = vrot.slane %v7900_v4, 4  ;;  %v7915_v8 = vrot.slane %v7913_v13, 5  ;;  %v7920_v62 = vrot.slane %v7918_v34, 4  ;;  %v17074_v1 = vpop.f32.mrb[66].mxu1 }
 0x793   : > { %v17070_v51 = vrot.slane %v7927_v59, 5  ;;  %v17080_v0 = vcombine.low %v17036_v29, %v17033_v41  ;;  %v8173_v10 = vrot.slane %v8171_v36, 4  ;;  %v7955_v49 = vshrl.u32 %v17060_v5, 16  ;;  %v7592_v59 = vld [vmem:[#allocation3 + $0xa4] sm:$0xf] }
 0x794   : > { %9283 = vmatmul.mubr.bf16.gmra.mrb[104].mxu0 %v17040_v9  ;;  %v7923_v9 = vrot.slane %v7921_v54, 5  ;;  %v7916_v34 = vsel %vm12846_vm5, %v7911_v25, %v7915_v8  ;;  %v8178_v4 = vrot.slane %v17033_v41, 5  ;;  %v8174_v13 = vrot.slane %v7589_v24, 5  ;;  %v17103_v41 = vld [vmem:[#allocation3 + $0xb4] sm:$0xf] }
 0x795   : > { %9290 = vmatprep.mubr.bf16.mxu0 %v17047_v21  ;;  %v7934_v54 = vor.u32 %v7933_v32, %v17070_v51  ;;  %v7945_v43 = vshll.u32 %v17068_v6, 16  ;;  %v7937_v47 = vshll.u32 %v7592_v59, 16  ;;  %v7951_v25 = vshll.u32 %v17060_v5, 16 }
 0x796   : > { %9122 = vmatmul.mubr.bf16.gmra.mrb[104].mxu1 %v16981_v37  ;;  %v17083_v37 = vpop.f32.mrb[67].mxu1  ;;  %v7957_v24 = vrot.slane %v7955_v49, 4 }
 0x797   : > { %9129 = vmatprep.mubr.bf16.mxu1 %v17055_v48  ;;  %v8165_v48 = vsel %vm12835_vm4, %v10485_v45, %v8164_v63  ;;  %v10486_v63 = vrot.slane %v17003_v28, 9  ;;  %v7942_v45 = vshrl.u32 %v17068_v6, 16  ;;  %v8175_v28 = vsel %vm12835_vm4, %v8173_v10, %v8174_v13 }
 0x798   : > { %v17085_v16 = vcombine.low %v8165_v48, %v8168_v42  ;;  %v7906_v48 = vsel %vm12846_vm5, %v7901_v20, %v7905_v38  ;;  %v7924_v42 = vor.u32 %v7923_v9, %v7920_v62  ;;  %v7935_v38 = vrot.slane %v7934_v54, 4  ;;  %v17108_v20 = vld [vmem:[#allocation3 + $0xb8] sm:$0xf] }
 0x799   : > { %v17099_v32 = vcombine.low %v7906_v48, %v7916_v34  ;;  %v8172_v8 = vsel %vm12835_vm4, %v10486_v63, %v8171_v36  ;;  %v8180_v9 = vrot.slane %v8178_v4, 4  ;;  %v17110_v62 = vrot.slane %v7951_v25, 5  ;;  %v17118_v48 = vld [vmem:[#allocation3 + $0xc0] sm:$0xf] }
 0x79a   : > { %18011 = vst [vmem:[#allocation41_spill] sm:$0xff] %v17085_v16  ;;  %v17115_v34 = vcombine.low %v17068_v6, %v17060_v5  ;;  %v10487_v10 = vrot.slane %v17036_v29, 9  ;;  %v7944_v49 = vrot.slane %v7942_v45, 4  ;;  %v7947_v13 = vrot.slane %v7945_v43, 5 }
 0x79b   : > { %18012 = vst [vmem:[#allocation47_spill] sm:$0xff] %v17099_v32  ;;  %v7925_v36 = vrot.slane %v7924_v42, 4  ;;  %v7939_v54 = vrot.slane %v7937_v47, 5  ;;  %v8181_v63 = vrot.slane %v7592_v59, 5  ;;  %v7979_v60 = vshrl.u32 %v17108_v20, 16 }
 0x79c   : > { %9291 = vmatmul.mubr.bf16.gmra.mrb[108].mxu0 %v17085_v16  ;;  %v17120_v16 = vcombine.low %v8172_v8, %v8175_v28  ;;  %v8179_v25 = vsel %vm12835_vm4, %v10487_v10, %v8178_v4  ;;  %v7958_v43 = vor.u32 %v7957_v24, %v17110_v62  ;;  %v7990_v59 = vshrl.u32 %v17118_v48, 16 }
 0x79d   : > { %9298 = vmatprep.mubr.bf16.mxu0 %v17080_v0  ;;  %v7940_v29 = vsel %vm12846_vm5, %v7935_v38, %v7939_v54  ;;  %v8182_v47 = vsel %vm12835_vm4, %v8180_v9, %v8181_v63  ;;  %v7975_v45 = vshll.u32 %v17108_v20, 16  ;;  %v7969_v4 = vshll.u32 %v17103_v41, 16 }
 0x79e   : > { %9130 = vmatmul.mubr.bf16.gmra.mrb[108].mxu1 %v17014_v31  ;;  %18013 = vst [vmem:[#allocation42_spill] sm:$0xff] %v17120_v16  ;;  %v17122_v31 = vld [vmem:[#allocation3 + $0xc4] sm:$0xf]  ;;  %v7948_v42 = vor.u32 %v7947_v13, %v7944_v49  ;;  %v7993_v28 = vshll.u32 %v17118_v48, 16  ;;  %v7930_v24 = vsel %vm12846_vm5, %v7925_v36, %v17070_v51  ;;  %v17146_v38 = vcombine.low %v17103_v41, %v17108_v20  ;;  %v7601_v51 = vld [vmem:[#allocation3 + $0xc8] sm:$0xf] }
 0x79f   : > { %9137 = vmatprep.mubr.bf16.mxu1 %v17099_v32  ;;  %v7966_v32 = vshrl.u32 %v17103_v41, 16  ;;  %v8003_v8 = vshrl.u32 %v17122_v31, 16  ;;  %v7961_v9 = vshll.u32 %v17128_v18, 16  ;;  %v17151_v10 = vadd.f32 %v17072_v50, %v17062_v40 }
 0x7a0   : > { %v17154_v49 = vcombine.low %v7930_v24, %v7940_v29  ;;  %v17156_v13 = vcombine.low %v8179_v25, %v8182_v47  ;;  %v7959_v54 = vrot.slane %v7958_v43, 4  ;;  %v8185_v63 = vrot.slane %v17060_v5, 5 }
 0x7a1   : > { %18014 = vst [vmem:[#allocation48_spill] sm:$0xff] %v17151_v10  ;;  %v7977_v36 = vrot.slane %v7975_v45, 5  ;;  %v17162_v46 = vadd.f32 %v17083_v37, %v17074_v1  ;;  %v7992_v40 = vrot.slane %v7990_v59, 4  ;;  %v7949_v50 = vrot.slane %v7948_v42, 4 }
 0x7a2   : > { %18015 = vst [vmem:[#allocation49_spill] sm:$0xff] %v17154_v49  ;;  %v7995_v29 = vrot.slane %v7993_v28, 5  ;;  %v7999_v25 = vshll.u32 %v17122_v31, 16  ;;  %v8005_v47 = vrot.slane %v8003_v8, 4  ;;  %v7963_v43 = vrot.slane %v7961_v9, 5 }
 0x7a3   : > { %v7968_v24 = vrot.slane %v7966_v32, 4  ;;  %v7971_v5 = vrot.slane %v7969_v4, 5  ;;  %v8009_v10 = vshll.u32 %v7601_v51, 16  ;;  %v8202_v37 = vrot.slane %v17122_v31, 5 }
 0x7a4   : > { %9299 = vmatmul.mubr.bf16.gmra.mrb[112].mxu0 %v17120_v16  ;;  %v7981_v16 = vrot.slane %v7979_v60, 4  ;;  %v8001_v45 = vrot.slane %v7999_v25, 5  ;;  %v10490_v60 = vrot.slane %v17118_v48, 9  ;;  %v7964_v1 = vsel %vm12846_vm5, %v7959_v54, %v7963_v43 }
 0x7a5   : > { %9306 = vmatprep.mubr.bf16.mxu0 %v17115_v34  ;;  %v8187_v59 = vrot.slane %v8185_v63, 4  ;;  %v8188_v42 = vrot.slane %v17128_v18, 5  ;;  %v7954_v32 = vsel %vm12846_vm5, %v7949_v50, %v17110_v62  ;;  %v8204_v25 = vrot.slane %v8202_v37, 4 }
 0x7a6   : > { %9138 = vmatmul.mubr.bf16.gmra.mrb[112].mxu1 %v17047_v21  ;;  %v7996_v21 = vor.u32 %v7995_v29, %v7992_v40  ;;  %v7982_v28 = vor.u32 %v7981_v16, %v7977_v36  ;;  %v8006_v8 = vor.u32 %v8005_v47, %v8001_v45  ;;  %v8203_v9 = vsel %vm12835_vm4, %v10490_v60, %v8202_v37 }
 0x7a7   : > { %9145 = vmatprep.mubr.bf16.mxu1 %v17154_v49  ;;  %v7972_v40 = vor.u32 %v7971_v5, %v7968_v24  ;;  %v7985_v29 = vshll.u32 %v7598_v55, 16  ;;  %v8205_v49 = vrot.slane %v7601_v51, 5  ;;  %v17178_v54 = vcombine.low %v7954_v32, %v7964_v1 }
 0x7a8   : > { %v7997_v4 = vrot.slane %v7996_v21, 4  ;;  %v8007_v16 = vrot.slane %v8006_v8, 4  ;;  %v8011_v62 = vrot.slane %v8009_v10, 5  ;;  %v10488_v21 = vrot.slane %v17068_v6, 9 }
 0x7a9   : > { %v7983_v50 = vrot.slane %v7982_v28, 4  ;;  %v8206_v47 = vsel %vm12835_vm4, %v8204_v25, %v8205_v49  ;;  %v8189_v51 = vsel %vm12835_vm4, %v8187_v59, %v8188_v42  ;;  %v8192_v43 = vrot.slane %v17108_v20, 5 }
 0x7aa   : > { %v8002_v18 = vsel %vm12846_vm5, %v7997_v4, %v8001_v45  ;;  %v8012_v24 = vsel %vm12846_vm5, %v8007_v16, %v8011_v62  ;;  %v17192_v5 = vcombine.low %v8203_v9, %v8206_v47  ;;  %v7973_v10 = vrot.slane %v7972_v40, 4  ;;  %v7019_v4 = vld [vmem:[#allocation3 + $0xd4] sm:$0xf]  ;;  %v18016_v40 = vld [vmem:[#allocation33_spill] sm:$0xff]  ;;  %v18020_v16 = vld [vmem:[#allocation40_spill] sm:$0xff] }
 0x7ab   : > { %v7987_v45 = vrot.slane %v7985_v29, 5  ;;  %v17194_v60 = vcombine.low %v8002_v18, %v8012_v24  ;;  %v8186_v6 = vsel %vm12835_vm4, %v10488_v21, %v8185_v63  ;;  %v17204_v20 = vcombine.low %v17118_v48, %v17122_v31  ;;  %v18018_v18 = vld [vmem:[#allocation37_spill] sm:$0xff]  ;;  %v18021_v62 = vld [vmem:[#allocation32_spill] sm:$0xff]  ;;  %v18023_v21 = vld [vmem:[#allocation43_spill] sm:$0xff] }
 0x7ac   : > { %9307 = vmatmul.mubr.bf16.gmra.mrb[116].mxu0 %v17156_v13  ;;  %v17198_v49 = vcombine.low %v8186_v6, %v8189_v51  ;;  %v8194_v1 = vrot.slane %v8192_v43, 4  ;;  %v7978_v59 = vsel %vm12846_vm5, %v7973_v10, %v7977_v36  ;;  %v8195_v63 = vrot.slane %v7598_v55, 5  ;;  %v6965_v36 = vld [vmem:[#allocation3 + $0xcc] sm:$0x1]  ;;  %v18026_v24 = vld [vmem:[#allocation44_spill] sm:$0xff] }
 0x7ad   : > { %9314 = vmatprep.mubr.bf16.mxu0 %v17146_v38  ;;  %v7988_v37 = vsel %vm12846_vm5, %v7983_v50, %v7987_v45  ;;  %v10489_v28 = vrot.slane %v17103_v41, 9  ;;  %v6966_v55 = vsel %vm14089_vm8, 0, %v6965_v36  ;;  %v7020_v8 = vsel %vm14101_vm11, 0, %v7019_v4  ;;  %v12531_v41 = vld [vmem:[%s17719_s10 + $0x208] sm:$0xff]   ;;  %v18028_v36 = vld [vmem:[#allocation47_spill] sm:$0xff]  ;;  %v18029_v4 = vld [vmem:[#allocation41_spill] sm:$0xff] }
 0x7ae   : > { %9146 = vmatmul.mubr.bf16.gmra.mrb[116].mxu1 %v17080_v0  ;;  %v17210_v42 = vcombine.low %v7978_v59, %v7988_v37  ;;  %v8196_v31 = vsel %vm12835_vm4, %v8194_v1, %v8195_v63  ;;  %6967 = vst [vmem:[#allocation3 + $0xcc] sm:$0x1] %v6966_v55  ;;  %7021 = vst [vmem:[#allocation3 + $0xd4] sm:$0xf] %v7020_v8  ;;  %v18024_v50 = vld [vmem:[#allocation34_spill] sm:$0xff] }
 0x7af   : > { %9153 = vmatprep.mubr.bf16.mxu1 %v17178_v54  ;;  %v8193_v48 = vsel %vm12835_vm4, %v10489_v28, %v8192_v43 }
 0x7b0   : > { %v17219_v32 = vcombine.low %v8193_v48, %v8196_v31  ;;  %v18027_v48 = vld [vmem:[#allocation36_spill] sm:$0xff] }
 0x7b4   : > { %9315 = vmatmul.mubr.bf16.gmra.mrb[120].mxu0 %v17198_v49 }
 0x7b5   : > { %9322 = vmatprep.mubr.bf16.mxu0 %v17204_v20 }
 0x7b6   : > { %9154 = vmatmul.mubr.bf16.gmra.mrb[120].mxu1 %v17115_v34 }
 0x7b7   : > { %9161 = vmatprep.mubr.bf16.mxu1 %v17210_v42 }
 0x7bc   : > { %9323 = vmatmul.mubr.bf16.gmra.mrb[124].mxu0 %v17219_v32 }
 0x7bd   : > { %9524 = vmatprep.mubr.bf16.mxu0 %v16663_v15 }
 0x7be   : > { %9162 = vmatmul.mubr.bf16.gmra.mrb[124].mxu1 %v17146_v38 }
 0x7bf   : > { %9363 = vmatprep.mubr.bf16.mxu1 %v16602_v39  ;;  %v12535_v39 = vld [vmem:[%s17719_s10 + $0x228] sm:$0xff]  }
 0x7c4   : > { %9525 = vmatmul.mubr.bf16.vlgmr.msra.gmra.mrb[128].mxu0 %v16499_v57  ;;  %v12533_v57 = vld [vmem:[%s17719_s10 + $0x218] sm:$0xff]  }
 0x7c5   : > { %9532 = vmatprep.mubr.bf16.mxu0 %v16761_v58  ;;  %11755 = vmatpush3.bf16.msra.mxu0 %v12582_v19 }
 0x7c6   : > { %9364 = vmatmul.mubr.bf16.vlgmr.msra.gmra.mrb[128].mxu1 %v16595_v35  ;;  %11756 = vmatprep.subr.bf16.mxu0 %v12531_v41  ;;  %v12534_v35 = vld [vmem:[%s17719_s10 + $0x220] sm:$0xff]  }
 0x7c7   : > { %9371 = vmatprep.mubr.bf16.mxu1 %v16673_v14  ;;  %11810 = vmatpush3.bf16.msra.mxu1 %v12582_v19 }
 0x7c8   : > { %11803 = vmatprep.subr.bf16.mxu1 %v12531_v41 }
 0x7c9   : > { %11757 = vmatpush3.bf16.msra.mxu0 %v12531_v41 }
 0x7ca   : > { %11758 = vmatprep.subr.bf16.mxu0 %v12532_v56 }
 0x7cb   : > { %11811 = vmatpush3.bf16.msra.mxu1 %v12531_v41 }
 0x7cc   : > { %9533 = vmatmul.mubr.bf16.gmra.mrb[132].mxu0 %v16614_v17  ;;  %11804 = vmatprep.subr.bf16.mxu1 %v12532_v56  ;;  %v12536_v17 = vld [vmem:[%s17719_s10 + $0x230] sm:$0xff]  }
 0x7cd   : > { %9540 = vmatprep.mubr.bf16.mxu0 %v16832_v44  ;;  %11759 = vmatpush3.bf16.msra.mxu0 %v12532_v56 }
 0x7ce   : > { %9372 = vmatmul.mubr.bf16.gmra.mrb[132].mxu1 %v16663_v15  ;;  %11760 = vmatprep.subr.bf16.mxu0 %v12533_v57  ;;  %v12537_v15 = vld [vmem:[%s17719_s10 + $0x238] sm:$0xff]  }
 0x7cf   : > { %9379 = vmatprep.mubr.bf16.mxu1 %v16767_v23  ;;  %11812 = vmatpush3.bf16.msra.mxu1 %v12532_v56 }
 0x7d0   : > { %11805 = vmatprep.subr.bf16.mxu1 %v12533_v57 }
 0x7d1   : > { %11761 = vmatpush3.bf16.msra.mxu0 %v12533_v57 }
 0x7d2   : > { %11762 = vmatprep.subr.bf16.mxu0 %v12534_v35 }
 0x7d3   : > { %11813 = vmatpush3.bf16.msra.mxu1 %v12533_v57 }
 0x7d4   : > { %9541 = vmatmul.mubr.bf16.gmra.mrb[136].mxu0 %v16712_v26  ;;  %11806 = vmatprep.subr.bf16.mxu1 %v12534_v35 }
 0x7d5   : > { %9548 = vmatprep.mubr.bf16.mxu0 %v16884_v3  ;;  %11763 = vmatpush3.bf16.msra.mxu0 %v12534_v35 }
 0x7d6   : > { %9380 = vmatmul.mubr.bf16.gmra.mrb[136].mxu1 %v16761_v58  ;;  %11764 = vmatprep.subr.bf16.mxu0 %v12535_v39 }
 0x7d7   : > { %9387 = vmatprep.mubr.bf16.mxu1 %v16834_v7  ;;  %11814 = vmatpush3.bf16.msra.mxu1 %v12534_v35  ;;  %v18030_v35 = vld [vmem:[#allocation39_spill] sm:$0xff] }
 0x7d8   : > { %11807 = vmatprep.subr.bf16.mxu1 %v12535_v39 }
 0x7d9   : > { %11765 = vmatpush3.bf16.msra.mxu0 %v12535_v39 }
 0x7da   : > { %11766 = vmatprep.subr.bf16.mxu0 %v12536_v17 }
 0x7db   : > { %11815 = vmatpush3.bf16.msra.mxu1 %v12535_v39 }
 0x7dc   : > { %9549 = vmatmul.mubr.bf16.gmra.mrb[140].mxu0 %v16782_v33  ;;  %11808 = vmatprep.subr.bf16.mxu1 %v12536_v17 }
 0x7dd   : > { %9556 = vmatprep.mubr.bf16.mxu0 %v16916_v27  ;;  %11767 = vmatpush3.bf16.msra.mxu0 %v12536_v17 }
 0x7de   : > { %9388 = vmatmul.mubr.bf16.gmra.mrb[140].mxu1 %v16832_v44  ;;  %11768 = vmatprep.subr.bf16.mxu0 %v12537_v15 }
 0x7df   : > { %9395 = vmatprep.mubr.bf16.mxu1 %v16879_v53  ;;  %11816 = vmatpush3.bf16.msra.mxu1 %v12536_v17 }
 0x7e0   : > { %11809 = vmatprep.subr.bf16.mxu1 %v12537_v15 }
 0x7e1   : > { %11769 = vmatpush3.bf16.msra.mxu0 %v12537_v15 }
 0x7e3   : > { %11817 = vmatpush3.bf16.msra.mxu1 %v12537_v15 }
 0x7e4   : > { %9557 = vmatmul.mubr.bf16.gmra.mrb[144].mxu0 %v16842_v11  ;;  %v18017_v11 = vld [vmem:[#allocation48_spill] sm:$0xff] }
 0x7e5   : > { %9564 = vmatprep.mubr.bf16.mxu0 %v16938_v30 }
 0x7e6   : > { %9396 = vmatmul.mubr.bf16.gmra.mrb[144].mxu1 %v16884_v3 }
 0x7e7   : > { %9403 = vmatprep.mubr.bf16.mxu1 %v16911_v2 }
 0x7ec   : > { %v11314_v26 = vpop.f32.mrb[64].mxu0  ;;  %9565 = vmatmul.mubr.bf16.gmra.mrb[148].mxu0 %v16888_v61  ;;  %v18019_v61 = vld [vmem:[#allocation35_spill] sm:$0xff] }
 0x7ed   : > { %v11315_v58 = vpop.f32.mrb[65].mxu0  ;;  %9572 = vmatprep.mubr.bf16.mxu0 %v16968_v12 }
 0x7ee   : > { %v11316_v33 = vadd.f32 %v11315_v58, %v11314_v26  ;;  %v11317_v44 = vpop.f32.mrb[66].mxu0  ;;  %9404 = vmatmul.mubr.bf16.gmra.mrb[148].mxu1 %v16916_v27  ;;  %v18022_v27 = vld [vmem:[#allocation38_spill] sm:$0xff]  ;;  %v18031_v26 = vld [vmem:[#allocation49_spill] sm:$0xff] }
 0x7ef   : > { %v11318_v9 = vpop.f32.mrb[67].mxu0  ;;  %9411 = vmatprep.mubr.bf16.mxu1 %v18016_v40 }
 0x7f0   : > { %v17278_v29 = vadd.f32 %v11316_v33, %v18017_v11  ;;  %v11319_v25 = vadd.f32 %v11318_v9, %v11317_v44  ;;  %v18032_v11 = vld [vmem:[#allocation42_spill] sm:$0xff] }
 0x7f2   : > { %v17281_v3 = vadd.f32 %v11319_v25, %v17162_v46  ;;  %v18025_v46 = vld [vmem:[#allocation46_spill] sm:$0xff] }
 0x7f4   : > { %9573 = vmatmul.mubr.bf16.gmra.mrb[152].mxu0 %v18018_v18  ;;  %v17311_v18 = vld [vmem:[#allocation3 + $0xd0] sm:$0xf] }
 0x7f5   : > { %9580 = vmatprep.mubr.bf16.mxu0 %v18019_v61 }
 0x7f6   : > { %9412 = vmatmul.mubr.bf16.gmra.mrb[152].mxu1 %v16938_v30 }
 0x7f7   : > { %9419 = vmatprep.mubr.bf16.mxu1 %v18020_v16 }
 0x7fc   : > { %9581 = vmatmul.mubr.bf16.gmra.mrb[156].mxu0 %v18021_v62  ;;  %v8023_v62 = vshll.u32 %v17311_v18, 16 }
 0x7fd   : > { %9588 = vmatprep.mubr.bf16.mxu0 %v18022_v27 }
 0x7fe   : > { %9420 = vmatmul.mubr.bf16.gmra.mrb[156].mxu1 %v16968_v12 }
 0x7ff   : > { %9427 = vmatprep.mubr.bf16.mxu1 %v18023_v21 }
 0x804   : > { %9589 = vmatmul.mubr.bf16.gmra.mrb[160].mxu0 %v18024_v50  ;;  %v11208_v51 = vpop.f32.mrb[68].mxu1 }
 0x805   : > { %9596 = vmatprep.mubr.bf16.mxu0 %v18025_v46  ;;  %v11320_v47 = vpop.f32.mrb[68].mxu0  ;;  %v11209_v30 = vpop.f32.mrb[69].mxu1 }
 0x806   : > { %9428 = vmatmul.mubr.bf16.gmra.mrb[160].mxu1 %v18019_v61  ;;  %v11321_v43 = vpop.f32.mrb[69].mxu0  ;;  %v11210_v45 = vadd.f32 %v11209_v30, %v11208_v51  ;;  %v11211_v37 = vpop.f32.mrb[70].mxu1  ;;  %v17313_v61 = vld [vmem:[#allocation3 + $0xcc] sm:$0xf] }
 0x807   : > { %9435 = vmatprep.mubr.bf16.mxu1 %v18026_v24  ;;  %v11322_v10 = vadd.f32 %v11321_v43, %v11320_v47  ;;  %v11323_v6 = vpop.f32.mrb[70].mxu0  ;;  %v11212_v12 = vpop.f32.mrb[71].mxu1  ;;  %v8014_v50 = vshrl.u32 %v17313_v61, 16  ;;  %v8025_v47 = vrot.slane %v8023_v62, 5 }
 0x808   : > { %v11324_v1 = vpop.f32.mrb[71].mxu0  ;;  %v11213_v28 = vadd.f32 %v11212_v12, %v11211_v37 }
 0x809   : > { %v17295_v59 = vadd.f32 %v11322_v10, %v11210_v45  ;;  %v11325_v63 = vadd.f32 %v11324_v1, %v11323_v6  ;;  %v8016_v43 = vrot.slane %v8014_v50, 4  ;;  %v17323_v10 = vld [vmem:[#allocation3 + $0xd4] sm:$0xf] }
 0x80b   : > { %v17297_v31 = vadd.f32 %v11325_v63, %v11213_v28 }
 0x80c   : > { %9597 = vmatmul.mubr.bf16.gmra.mrb[164].mxu0 %v18027_v48 }
 0x80d   : > { %9604 = vmatprep.mubr.bf16.mxu0 %v18028_v36 }
 0x80e   : > { %9436 = vmatmul.mubr.bf16.gmra.mrb[164].mxu1 %v18022_v27  ;;  %v8027_v27 = vshrl.u32 %v17311_v18, 16 }
 0x80f   : > { %9443 = vmatprep.mubr.bf16.mxu1 %v18029_v4 }
 0x810   : > { %v8029_v51 = vrot.slane %v8027_v27, 4 }
 0x811   : > { %v11214_v55 = vpop.f32.mrb[72].mxu1 }
 0x812   : > { %v11326_v8 = vpop.f32.mrb[72].mxu0  ;;  %v11215_v41 = vpop.f32.mrb[73].mxu1  ;;  %v8030_v1 = vor.u32 %v8029_v51, %v8025_v47 }
 0x813   : > { %v11327_v19 = vpop.f32.mrb[73].mxu0  ;;  %v11216_v56 = vadd.f32 %v11215_v41, %v11214_v55  ;;  %v11217_v57 = vpop.f32.mrb[74].mxu1  ;;  %v8033_v55 = vshll.u32 %v17323_v10, 16 }
 0x814   : > { %9605 = vmatmul.mubr.bf16.gmra.mrb[168].mxu0 %v18030_v35  ;;  %v11328_v39 = vadd.f32 %v11327_v19, %v11326_v8  ;;  %v11329_v17 = vpop.f32.mrb[74].mxu0  ;;  %v11218_v15 = vpop.f32.mrb[75].mxu1 }
 0x815   : > { %9612 = vmatprep.mubr.bf16.mxu0 %v18031_v26  ;;  %v11330_v58 = vpop.f32.mrb[75].mxu0  ;;  %v11219_v33 = vadd.f32 %v11218_v15, %v11217_v57 }
 0x816   : > { %9444 = vmatmul.mubr.bf16.gmra.mrb[168].mxu1 %v18025_v46  ;;  %v17306_v44 = vadd.f32 %v11328_v39, %v11216_v56  ;;  %v11331_v9 = vadd.f32 %v11330_v58, %v11329_v17  ;;  %v8017_v46 = vshll.u32 %v17313_v61, 16  ;;  %v8031_v39 = vrot.slane %v8030_v1, 4 }
 0x817   : > { %9451 = vmatprep.mubr.bf16.mxu1 %v18032_v11  ;;  %v8035_v17 = vrot.slane %v8033_v55, 5 }
 0x818   : > { %v17309_v25 = vadd.f32 %v11331_v9, %v11219_v33  ;;  %v8019_v30 = vrot.slane %v8017_v46, 5 }
 0x81c   : > { %9613 = vmatmul.mubr.bf16.gmra.mrb[172].mxu0 %v17080_v0 }
 0x81d   : > { %9620 = vmatprep.mubr.bf16.mxu0 %v17178_v54 }
 0x81e   : > { %9452 = vmatmul.mubr.bf16.gmra.mrb[172].mxu1 %v18028_v36  ;;  %v8020_v36 = vor.u32 %v8019_v30, %v8016_v43  ;;  %v10543_v43 = vcombine.low %v17313_v61, %v17311_v18 }
 0x81f   : > { %9459 = vmatprep.mubr.bf16.mxu1 %v17156_v13 }
 0x820   : > { %v8021_v35 = vrot.slane %v8020_v36, 4 }
 0x822   : > { %v8026_v15 = vsel %vm12846_vm5, %v8021_v35, %v8025_v47 }
 0x824   : > { %9621 = vmatmul.mubr.bf16.gmra.mrb[176].mxu0 %v17115_v34  ;;  %v11332_v0 = vpop.f32.mrb[76].mxu0  ;;  %v11220_v45 = vpop.f32.mrb[76].mxu1 }
 0x825   : > { %9628 = vmatprep.mubr.bf16.mxu0 %v17210_v42  ;;  %v11333_v6 = vpop.f32.mrb[77].mxu0  ;;  %v11221_v37 = vpop.f32.mrb[77].mxu1 }
 0x826   : > { %9460 = vmatmul.mubr.bf16.gmra.mrb[176].mxu1 %v18031_v26  ;;  %v11334_v12 = vadd.f32 %v11333_v6, %v11332_v0  ;;  %v11222_v63 = vadd.f32 %v11221_v37, %v11220_v45  ;;  %v11335_v28 = vpop.f32.mrb[78].mxu0  ;;  %v11223_v48 = vpop.f32.mrb[78].mxu1  ;;  %v8036_v26 = vsel %vm12846_vm5, %v8031_v39, %v8035_v17 }
 0x827   : > { %9467 = vmatprep.mubr.bf16.mxu1 %v17198_v49  ;;  %v11336_v8 = vpop.f32.mrb[79].mxu0  ;;  %v11224_v34 = vpop.f32.mrb[79].mxu1  ;;  %v10544_v58 = vcombine.low %v8026_v15, %v8036_v26 }
 0x828   : > { %v17330_v41 = vadd.f32 %v11334_v12, %v11222_v63  ;;  %v11337_v19 = vadd.f32 %v11336_v8, %v11335_v28  ;;  %v11225_v56 = vadd.f32 %v11224_v34, %v11223_v48 }
 0x82a   : > { %v17332_v57 = vadd.f32 %v11337_v19, %v11225_v56 }
 0x82c   : > { %9629 = vmatmul.mubr.bf16.gmra.mrb[180].mxu0 %v17146_v38 }
 0x82d   : > { %9636 = vmatprep.mubr.bf16.mxu0 %v17194_v60 }
 0x82e   : > { %9468 = vmatmul.mubr.bf16.gmra.mrb[180].mxu1 %v17178_v54 }
 0x82f   : > { %9475 = vmatprep.mubr.bf16.mxu1 %v17219_v32 }
 0x834   : > { %9637 = vmatmul.mubr.bf16.gmra.mrb[184].mxu0 %v17204_v20  ;;  %v11338_v33 = vpop.f32.mrb[80].mxu0 }
 0x835   : > { %v11226_v9 = vpop.f32.mrb[80].mxu1  ;;  %v11339_v62 = vpop.f32.mrb[81].mxu0  ;;  %9644 = vmatprep.mubr.bf16.mxu0 %v10544_v58 }
 0x836   : > { %9476 = vmatmul.mubr.bf16.gmra.mrb[184].mxu1 %v17210_v42  ;;  %v11340_v38 = vadd.f32 %v11339_v62, %v11338_v33  ;;  %v11227_v27 = vpop.f32.mrb[81].mxu1  ;;  %v11341_v54 = vpop.f32.mrb[82].mxu0 }
 0x837   : > { %9483 = vmatprep.mubr.bf16.mxu1 %v17192_v5  ;;  %v11228_v50 = vadd.f32 %v11227_v27, %v11226_v9  ;;  %v11229_v46 = vpop.f32.mrb[82].mxu1  ;;  %v11342_v52 = vpop.f32.mrb[83].mxu0 }
 0x838   : > { %v11343_v47 = vadd.f32 %v11342_v52, %v11341_v54  ;;  %v11230_v51 = vpop.f32.mrb[83].mxu1 }
 0x839   : > { %v17347_v20 = vadd.f32 %v11340_v38, %v11228_v50  ;;  %v11231_v30 = vadd.f32 %v11230_v51, %v11229_v46 }
 0x83b   : > { %v17349_v0 = vadd.f32 %v11343_v47, %v11231_v30 }
 0x83c   : > { %9645 = vmatmul.mubr.bf16.gmra.mrb[188].mxu0 %v10543_v43 }
 0x83d   : > { %11770 = vmatprep.mubr.bf16.mxu0 %v16673_v14 }
 0x83e   : > { %9484 = vmatmul.mubr.bf16.gmra.mrb[188].mxu1 %v17194_v60 }
 0x83f   : > { %11778 = vmatprep.mubr.bf16.mxu1 %v16911_v2  ;;  %v11344_v42 = vpop.f32.mrb[84].mxu0 }
 0x840   : > { %v11345_v45 = vpop.f32.mrb[85].mxu0 }
 0x841   : > { %v11232_v6 = vpop.f32.mrb[84].mxu1  ;;  %v11346_v37 = vadd.f32 %v11345_v45, %v11344_v42  ;;  %v11347_v1 = vpop.f32.mrb[86].mxu0 }
 0x842   : > { %v11233_v12 = vpop.f32.mrb[85].mxu1  ;;  %v11348_v63 = vpop.f32.mrb[87].mxu0 }
 0x843   : > { %v11234_v28 = vadd.f32 %v11233_v12, %v11232_v6  ;;  %v11235_v48 = vpop.f32.mrb[86].mxu1  ;;  %v11349_v36 = vadd.f32 %v11348_v63, %v11347_v1 }
 0x844   : > { %v11236_v55 = vpop.f32.mrb[87].mxu1  ;;  %11771 = vmatmul.mubr.bf16.vlgmr.msra.gmra.mrb[192].mxu0 %v16767_v23 }
 0x845   : > { %v17355_v8 = vadd.f32 %v11346_v37, %v11234_v28  ;;  %v11237_v14 = vadd.f32 %v11236_v55, %v11235_v48  ;;  %11774 = vmatprep.mubr.bf16.mxu0 %v16834_v7 }
 0x846   : > { %11779 = vmatmul.mubr.bf16.vlgmr.msra.gmra.mrb[192].mxu1 %v18016_v40 }
 0x847   : > { %v17359_v2 = vadd.f32 %v11349_v36, %v11237_v14  ;;  %11782 = vmatprep.mubr.bf16.mxu1 %v18020_v16  ;;  %v11350_v60 = vpop.f32.mrb[88].mxu0 }
 0x848   : > { %v11351_v34 = vpop.f32.mrb[89].mxu0 }
 0x849   : > { %v11238_v19 = vpop.f32.mrb[88].mxu1  ;;  %v11352_v56 = vadd.f32 %v11351_v34, %v11350_v60  ;;  %v11353_v35 = vpop.f32.mrb[90].mxu0 }
 0x84a   : > { %v11239_v39 = vpop.f32.mrb[89].mxu1  ;;  %v11354_v17 = vpop.f32.mrb[91].mxu0 }
 0x84b   : > { %v11240_v15 = vadd.f32 %v11239_v39, %v11238_v19  ;;  %v11241_v23 = vpop.f32.mrb[90].mxu1  ;;  %v11355_v26 = vadd.f32 %v11354_v17, %v11353_v35 }
 0x84c   : > { %v11242_v58 = vpop.f32.mrb[91].mxu1  ;;  %11775 = vmatmul.mubr.bf16.gmra.mrb[196].mxu0 %v16879_v53 }
 0x84d   : > { %v17363_v7 = vadd.f32 %v11352_v56, %v11240_v15  ;;  %v11243_v40 = vadd.f32 %v11242_v58, %v11241_v23  ;;  %v10491_v15 = vrot.slane %v17313_v61, 9  ;;  %v8215_v23 = vrot.slane %v17323_v10, 5 }
 0x84e   : > { %11783 = vmatmul.mubr.bf16.gmra.mrb[196].mxu1 %v18023_v21 }
 0x84f   : > { %v17366_v33 = vadd.f32 %v11355_v26, %v11243_v40  ;;  %11786 = vmatprep.mubr.bf16.mxu1 %v18026_v24  ;;  %v11356_v16 = vpop.f32.mrb[92].mxu0 }
 0x850   : > { %v11357_v9 = vpop.f32.mrb[93].mxu0 }
 0x851   : > { %v11244_v62 = vpop.f32.mrb[92].mxu1  ;;  %v11358_v38 = vadd.f32 %v11357_v9, %v11356_v16  ;;  %v11359_v27 = vpop.f32.mrb[94].mxu0 }
 0x852   : > { %v11245_v54 = vpop.f32.mrb[93].mxu1  ;;  %v11360_v50 = vpop.f32.mrb[95].mxu0 }
 0x853   : > { %v11246_v46 = vadd.f32 %v11245_v54, %v11244_v62  ;;  %v11247_v52 = vpop.f32.mrb[94].mxu1  ;;  %v11361_v47 = vadd.f32 %v11360_v50, %v11359_v27 }
 0x854   : > { %v11248_v53 = vpop.f32.mrb[95].mxu1 }
 0x855   : > { %v17369_v51 = vadd.f32 %v11358_v38, %v11246_v46  ;;  %v11249_v43 = vadd.f32 %v11248_v53, %v11247_v52 }
 0x856   : > { %11787 = vmatmul.mubr.bf16.gmra.mrb[200].mxu1 %v18029_v4  ;;  %v8212_v4 = vrot.slane %v17311_v18, 5 }
 0x857   : > { %v17372_v21 = vadd.f32 %v11361_v47, %v11249_v43  ;;  %11790 = vmatprep.mubr.bf16.mxu1 %v18032_v11  ;;  %v11362_v24 = vpop.f32.mrb[96].mxu0 }
 0x858   : > { %v11363_v30 = vpop.f32.mrb[97].mxu0  ;;  %v8214_v35 = vrot.slane %v8212_v4, 4 }
 0x859   : > { %v11250_v42 = vpop.f32.mrb[96].mxu1  ;;  %v11364_v45 = vadd.f32 %v11363_v30, %v11362_v24  ;;  %v11365_v6 = vpop.f32.mrb[98].mxu0 }
 0x85a   : > { %v11251_v37 = vpop.f32.mrb[97].mxu1  ;;  %v11366_v1 = vpop.f32.mrb[99].mxu0  ;;  %v8216_v9 = vsel %vm12835_vm4, %v8214_v35, %v8215_v23 }
 0x85b   : > { %v11252_v12 = vadd.f32 %v11251_v37, %v11250_v42  ;;  %v11253_v63 = vpop.f32.mrb[98].mxu1  ;;  %v11367_v28 = vadd.f32 %v11366_v1, %v11365_v6 }
 0x85c   : > { %v11254_v48 = vpop.f32.mrb[99].mxu1 }
 0x85d   : > { %v17375_v36 = vadd.f32 %v11364_v45, %v11252_v12  ;;  %v11255_v55 = vadd.f32 %v11254_v48, %v11253_v63 }
 0x85e   : > { %11791 = vmatmul.mubr.bf16.gmra.mrb[204].mxu1 %v17156_v13 }
 0x85f   : > { %v17379_v14 = vadd.f32 %v11367_v28, %v11255_v55  ;;  %11794 = vmatprep.mubr.bf16.mxu1 %v17198_v49  ;;  %v11368_v11 = vpop.f32.mrb[100].mxu0  ;;  %v8213_v49 = vsel %vm12835_vm4, %v10491_v15, %v8212_v4 }
 0x860   : > { %v11369_v60 = vpop.f32.mrb[101].mxu0  ;;  %v10545_v50 = vcombine.low %v8213_v49, %v8216_v9 }
 0x861   : > { %v11256_v34 = vpop.f32.mrb[100].mxu1  ;;  %v11370_v19 = vadd.f32 %v11369_v60, %v11368_v11  ;;  %v11371_v56 = vpop.f32.mrb[102].mxu0 }
 0x862   : > { %v11257_v39 = vpop.f32.mrb[101].mxu1  ;;  %v11372_v17 = vpop.f32.mrb[103].mxu0 }
 0x863   : > { %v11258_v26 = vadd.f32 %v11257_v39, %v11256_v34  ;;  %v11259_v18 = vpop.f32.mrb[102].mxu1  ;;  %v11373_v58 = vadd.f32 %v11372_v17, %v11371_v56 }
 0x864   : > { %v11260_v13 = vpop.f32.mrb[103].mxu1 }
 0x865   : > { %v17384_v40 = vadd.f32 %v11370_v19, %v11258_v26  ;;  %v11261_v16 = vadd.f32 %v11260_v13, %v11259_v18 }
 0x866   : > { %11795 = vmatmul.mubr.bf16.gmra.mrb[208].mxu1 %v17219_v32 }
 0x867   : > { %v17391_v62 = vadd.f32 %v11373_v58, %v11261_v16  ;;  %11798 = vmatprep.mubr.bf16.mxu1 %v17192_v5  ;;  %v11374_v61 = vpop.f32.mrb[104].mxu0 }
 0x868   : > { %v11375_v10 = vpop.f32.mrb[105].mxu0 }
 0x869   : > { %v11262_v38 = vpop.f32.mrb[104].mxu1  ;;  %v11376_v27 = vadd.f32 %v11375_v10, %v11374_v61  ;;  %v11377_v54 = vpop.f32.mrb[106].mxu0 }
 0x86a   : > { %v11263_v46 = vpop.f32.mrb[105].mxu1  ;;  %v11378_v52 = vpop.f32.mrb[107].mxu0 }
 0x86b   : > { %v11264_v47 = vadd.f32 %v11263_v46, %v11262_v38  ;;  %v11265_v32 = vpop.f32.mrb[106].mxu1  ;;  %v11379_v53 = vadd.f32 %v11378_v52, %v11377_v54 }
 0x86c   : > { %v11266_v43 = vpop.f32.mrb[107].mxu1 }
 0x86d   : > { %v17394_v24 = vadd.f32 %v11376_v27, %v11264_v47  ;;  %v11267_v22 = vadd.f32 %v11266_v43, %v11265_v32 }
 0x86e   : > { %11799 = vmatmul.mubr.bf16.gmra.mrb[212].mxu1 %v10545_v50 }
 0x86f   : > { %v17396_v30 = vadd.f32 %v11379_v53, %v11267_v22  ;;  %v11380_v42 = vpop.f32.mrb[108].mxu0 }
 0x870   : > { %v11381_v5 = vpop.f32.mrb[109].mxu0 }
 0x871   : > { %v11268_v45 = vpop.f32.mrb[108].mxu1  ;;  %v11382_v6 = vadd.f32 %v11381_v5, %v11380_v42  ;;  %v11383_v37 = vpop.f32.mrb[110].mxu0 }
 0x872   : > { %v11269_v1 = vpop.f32.mrb[109].mxu1  ;;  %v11384_v12 = vpop.f32.mrb[111].mxu0 }
 0x873   : > { %v11270_v63 = vadd.f32 %v11269_v1, %v11268_v45  ;;  %v11271_v28 = vpop.f32.mrb[110].mxu1  ;;  %v11385_v48 = vadd.f32 %v11384_v12, %v11383_v37 }
 0x874   : > { %v11272_v55 = vpop.f32.mrb[111].mxu1 }
 0x875   : > { %v17398_v4 = vadd.f32 %v11382_v6, %v11270_v63  ;;  %v11273_v11 = vadd.f32 %v11272_v55, %v11271_v28 }
 0x877   : > { %v17400_v60 = vadd.f32 %v11385_v48, %v11273_v11  ;;  %v11386_v34 = vpop.f32.mrb[112].mxu0 }
 0x878   : > { %v11387_v19 = vpop.f32.mrb[113].mxu0 }
 0x879   : > { %v11274_v56 = vpop.f32.mrb[112].mxu1  ;;  %v11388_v35 = vadd.f32 %v11387_v19, %v11386_v34  ;;  %v11389_v39 = vpop.f32.mrb[114].mxu0 }
 0x87a   : > { %v11275_v17 = vpop.f32.mrb[113].mxu1  ;;  %v11390_v15 = vpop.f32.mrb[115].mxu0 }
 0x87b   : > { %v11276_v23 = vadd.f32 %v11275_v17, %v11274_v56  ;;  %v11277_v26 = vpop.f32.mrb[114].mxu1  ;;  %v11391_v18 = vadd.f32 %v11390_v15, %v11389_v39 }
 0x87c   : > { %v11278_v58 = vpop.f32.mrb[115].mxu1 }
 0x87d   : > { %v17402_v13 = vadd.f32 %v11388_v35, %v11276_v23  ;;  %v11279_v16 = vadd.f32 %v11278_v58, %v11277_v26 }
 0x87f   : > { %v17404_v49 = vadd.f32 %v11391_v18, %v11279_v16  ;;  %v11392_v9 = vpop.f32.mrb[116].mxu0 }
 0x880   : > { %v11393_v61 = vpop.f32.mrb[117].mxu0 }
 0x881   : > { %v11280_v10 = vpop.f32.mrb[116].mxu1  ;;  %v11394_v38 = vadd.f32 %v11393_v61, %v11392_v9  ;;  %v11395_v27 = vpop.f32.mrb[118].mxu0 }
 0x882   : > { %v11281_v54 = vpop.f32.mrb[117].mxu1  ;;  %v11396_v50 = vpop.f32.mrb[119].mxu0 }
 0x883   : > { %v11282_v46 = vadd.f32 %v11281_v54, %v11280_v10  ;;  %v11283_v52 = vpop.f32.mrb[118].mxu1  ;;  %v11397_v47 = vadd.f32 %v11396_v50, %v11395_v27 }
 0x884   : > { %v11284_v32 = vpop.f32.mrb[119].mxu1 }
 0x885   : > { %v17406_v53 = vadd.f32 %v11394_v38, %v11282_v46  ;;  %v11285_v43 = vadd.f32 %v11284_v32, %v11283_v52 }
 0x887   : > { %v17408_v22 = vadd.f32 %v11397_v47, %v11285_v43  ;;  %v11398_v42 = vpop.f32.mrb[120].mxu0 }
 0x888   : > { %v11399_v5 = vpop.f32.mrb[121].mxu0 }
 0x889   : > { %v11286_v45 = vpop.f32.mrb[120].mxu1  ;;  %v11400_v6 = vadd.f32 %v11399_v5, %v11398_v42  ;;  %v11401_v37 = vpop.f32.mrb[122].mxu0 }
 0x88a   : > { %v11287_v1 = vpop.f32.mrb[121].mxu1  ;;  %v11402_v12 = vpop.f32.mrb[123].mxu0 }
 0x88b   : > { %v11288_v63 = vadd.f32 %v11287_v1, %v11286_v45  ;;  %v11289_v28 = vpop.f32.mrb[122].mxu1  ;;  %v11403_v48 = vadd.f32 %v11402_v12, %v11401_v37 }
 0x88c   : > { %v11290_v55 = vpop.f32.mrb[123].mxu1 }
 0x88d   : > { %v17410_v11 = vadd.f32 %v11400_v6, %v11288_v63  ;;  %v11291_v34 = vadd.f32 %v11290_v55, %v11289_v28 }
 0x88f   : > { %v17412_v19 = vadd.f32 %v11403_v48, %v11291_v34  ;;  %v11404_v56 = vpop.f32.mrb[124].mxu0 }
 0x890   : > { %v11405_v35 = vpop.f32.mrb[125].mxu0 }
 0x891   : > { %v11292_v39 = vpop.f32.mrb[124].mxu1  ;;  %v11406_v17 = vadd.f32 %v11405_v35, %v11404_v56  ;;  %v11407_v15 = vpop.f32.mrb[126].mxu0 }
 0x892   : > { %v11293_v23 = vpop.f32.mrb[125].mxu1  ;;  %v11408_v26 = vpop.f32.mrb[127].mxu0 }
 0x893   : > { %v11294_v18 = vadd.f32 %v11293_v23, %v11292_v39  ;;  %v11295_v58 = vpop.f32.mrb[126].mxu1  ;;  %v11409_v16 = vadd.f32 %v11408_v26, %v11407_v15 }
 0x894   : > { %v11296_v9 = vpop.f32.mrb[127].mxu1 }
 0x895   : > { %v17414_v61 = vadd.f32 %v11406_v17, %v11294_v18  ;;  %v11297_v10 = vadd.f32 %v11296_v9, %v11295_v58 }
 0x897   : > { %v17416_v38 = vadd.f32 %v11409_v16, %v11297_v10  ;;  %v11538_v27 = vpop.f32.mrb[128].mxu0 }
 0x898   : > { %v11539_v54 = vpop.f32.mrb[129].mxu0 }
 0x899   : > { %v11426_v50 = vpop.f32.mrb[128].mxu1  ;;  %v11540_v46 = vadd.f32 %v11539_v54, %v11538_v27  ;;  %v11541_v52 = vpop.f32.mrb[130].mxu0 }
 0x89a   : > { %v11427_v47 = vpop.f32.mrb[129].mxu1  ;;  %v11542_v32 = vpop.f32.mrb[131].mxu0 }
 0x89b   : > { %v11428_v43 = vadd.f32 %v11427_v47, %v11426_v50  ;;  %v11429_v42 = vpop.f32.mrb[130].mxu1  ;;  %v11543_v5 = vadd.f32 %v11542_v32, %v11541_v52 }
 0x89c   : > { %v11430_v45 = vpop.f32.mrb[131].mxu1 }
 0x89d   : > { %v9366_v6 = vadd.f32 %v11428_v43, %v17278_v29  ;;  %v11431_v37 = vadd.f32 %v11430_v45, %v11429_v42 }
 0x89f   : > { %v9369_v1 = vadd.f32 %v11431_v37, %v17281_v3  ;;  %v11544_v12 = vpop.f32.mrb[132].mxu0  ;;  %v17420_v63 = vadd.f32 %v11540_v46, %v9366_v6 }
 0x8a0   : > { %v11545_v28 = vpop.f32.mrb[133].mxu0 }
 0x8a1   : > { %v11432_v48 = vpop.f32.mrb[132].mxu1  ;;  %v11546_v55 = vadd.f32 %v11545_v28, %v11544_v12  ;;  %v11547_v34 = vpop.f32.mrb[134].mxu0  ;;  %v17422_v56 = vadd.f32 %v11543_v5, %v9369_v1 }
 0x8a2   : > { %v11433_v35 = vpop.f32.mrb[133].mxu1  ;;  %v11548_v39 = vpop.f32.mrb[135].mxu0 }
 0x8a3   : > { %v11434_v17 = vadd.f32 %v11433_v35, %v11432_v48  ;;  %v11435_v15 = vpop.f32.mrb[134].mxu1  ;;  %v11549_v23 = vadd.f32 %v11548_v39, %v11547_v34 }
 0x8a4   : > { %v11436_v26 = vpop.f32.mrb[135].mxu1 }
 0x8a5   : > { %v9374_v29 = vadd.f32 %v11434_v17, %v17295_v59  ;;  %v11437_v18 = vadd.f32 %v11436_v26, %v11435_v15 }
 0x8a7   : > { %v9377_v3 = vadd.f32 %v11437_v18, %v17297_v31  ;;  %v11550_v58 = vpop.f32.mrb[136].mxu0  ;;  %v17426_v16 = vadd.f32 %v11546_v55, %v9374_v29 }
 0x8a8   : > { %v11551_v9 = vpop.f32.mrb[137].mxu0 }
 0x8a9   : > { %v11438_v10 = vpop.f32.mrb[136].mxu1  ;;  %v11552_v27 = vadd.f32 %v11551_v9, %v11550_v58  ;;  %v11553_v54 = vpop.f32.mrb[138].mxu0  ;;  %v17428_v50 = vadd.f32 %v11549_v23, %v9377_v3 }
 0x8aa   : > { %v11439_v46 = vpop.f32.mrb[137].mxu1  ;;  %v11554_v52 = vpop.f32.mrb[139].mxu0 }
 0x8ab   : > { %v11440_v47 = vadd.f32 %v11439_v46, %v11438_v10  ;;  %v11441_v32 = vpop.f32.mrb[138].mxu1  ;;  %v11555_v43 = vadd.f32 %v11554_v52, %v11553_v54 }
 0x8ac   : > { %v11442_v42 = vpop.f32.mrb[139].mxu1 }
 0x8ad   : > { %v9382_v59 = vadd.f32 %v11440_v47, %v17306_v44  ;;  %v11443_v5 = vadd.f32 %v11442_v42, %v11441_v32 }
 0x8af   : > { %v9385_v31 = vadd.f32 %v11443_v5, %v17309_v25  ;;  %v11556_v45 = vpop.f32.mrb[140].mxu0  ;;  %v17432_v6 = vadd.f32 %v11552_v27, %v9382_v59 }
 0x8b0   : > { %v11557_v37 = vpop.f32.mrb[141].mxu0 }
 0x8b1   : > { %v11444_v1 = vpop.f32.mrb[140].mxu1  ;;  %v11558_v12 = vadd.f32 %v11557_v37, %v11556_v45  ;;  %v11559_v28 = vpop.f32.mrb[142].mxu0  ;;  %v17434_v48 = vadd.f32 %v11555_v43, %v9385_v31 }
 0x8b2   : > { %v11445_v55 = vpop.f32.mrb[141].mxu1  ;;  %v11560_v34 = vpop.f32.mrb[143].mxu0 }
 0x8b3   : > { %v11446_v35 = vadd.f32 %v11445_v55, %v11444_v1  ;;  %v11447_v39 = vpop.f32.mrb[142].mxu1  ;;  %v11561_v17 = vadd.f32 %v11560_v34, %v11559_v28 }
 0x8b4   : > { %v11448_v15 = vpop.f32.mrb[143].mxu1 }
 0x8b5   : > { %v9390_v44 = vadd.f32 %v11446_v35, %v17330_v41  ;;  %v11449_v23 = vadd.f32 %v11448_v15, %v11447_v39 }
 0x8b7   : > { %v9393_v25 = vadd.f32 %v11449_v23, %v17332_v57  ;;  %v11562_v26 = vpop.f32.mrb[144].mxu0  ;;  %v17438_v29 = vadd.f32 %v11558_v12, %v9390_v44 }
 0x8b8   : > { %v11563_v18 = vpop.f32.mrb[145].mxu0 }
 0x8b9   : > { %v11450_v3 = vpop.f32.mrb[144].mxu1  ;;  %v11564_v58 = vadd.f32 %v11563_v18, %v11562_v26  ;;  %v11565_v9 = vpop.f32.mrb[146].mxu0  ;;  %v17440_v10 = vadd.f32 %v11561_v17, %v9393_v25 }
 0x8ba   : > { %v11451_v27 = vpop.f32.mrb[145].mxu1  ;;  %v11566_v54 = vpop.f32.mrb[147].mxu0 }
 0x8bb   : > { %v11452_v46 = vadd.f32 %v11451_v27, %v11450_v3  ;;  %v11453_v52 = vpop.f32.mrb[146].mxu1  ;;  %v11567_v47 = vadd.f32 %v11566_v54, %v11565_v9 }
 0x8bc   : > { %v11454_v32 = vpop.f32.mrb[147].mxu1 }
 0x8bd   : > { %v9398_v41 = vadd.f32 %v11452_v46, %v17347_v20  ;;  %v11455_v43 = vadd.f32 %v11454_v32, %v11453_v52 }
 0x8bf   : > { %v9401_v57 = vadd.f32 %v11455_v43, %v17349_v0  ;;  %v11568_v42 = vpop.f32.mrb[148].mxu0  ;;  %v17444_v59 = vadd.f32 %v11564_v58, %v9398_v41 }
 0x8c0   : > { %v11569_v5 = vpop.f32.mrb[149].mxu0 }
 0x8c1   : > { %v11456_v31 = vpop.f32.mrb[148].mxu1  ;;  %v11570_v45 = vadd.f32 %v11569_v5, %v11568_v42  ;;  %v11571_v37 = vpop.f32.mrb[150].mxu0  ;;  %v17446_v1 = vadd.f32 %v11567_v47, %v9401_v57 }
 0x8c2   : > { %v11457_v12 = vpop.f32.mrb[149].mxu1  ;;  %v11572_v28 = vpop.f32.mrb[151].mxu0 }
 0x8c3   : > { %v11458_v55 = vadd.f32 %v11457_v12, %v11456_v31  ;;  %v11459_v34 = vpop.f32.mrb[150].mxu1  ;;  %v11573_v35 = vadd.f32 %v11572_v28, %v11571_v37 }
 0x8c4   : > { %v11460_v39 = vpop.f32.mrb[151].mxu1 }
 0x8c5   : > { %v9406_v20 = vadd.f32 %v11458_v55, %v17355_v8  ;;  %v11461_v17 = vadd.f32 %v11460_v39, %v11459_v34 }
 0x8c7   : > { %v9409_v0 = vadd.f32 %v11461_v17, %v17359_v2  ;;  %v11574_v15 = vpop.f32.mrb[152].mxu0  ;;  %v17450_v44 = vadd.f32 %v11570_v45, %v9406_v20 }
 0x8c8   : > { %v11575_v23 = vpop.f32.mrb[153].mxu0 }
 0x8c9   : > { %v11462_v25 = vpop.f32.mrb[152].mxu1  ;;  %v11576_v26 = vadd.f32 %v11575_v23, %v11574_v15  ;;  %v11577_v18 = vpop.f32.mrb[154].mxu0  ;;  %v17452_v3 = vadd.f32 %v11573_v35, %v9409_v0 }
 0x8ca   : > { %v11463_v58 = vpop.f32.mrb[153].mxu1  ;;  %v11578_v9 = vpop.f32.mrb[155].mxu0 }
 0x8cb   : > { %v11464_v27 = vadd.f32 %v11463_v58, %v11462_v25  ;;  %v11465_v54 = vpop.f32.mrb[154].mxu1  ;;  %v11579_v46 = vadd.f32 %v11578_v9, %v11577_v18 }
 0x8cc   : > { %v11466_v52 = vpop.f32.mrb[155].mxu1 }
 0x8cd   : > { %v9414_v8 = vadd.f32 %v11464_v27, %v17363_v7  ;;  %v11467_v47 = vadd.f32 %v11466_v52, %v11465_v54 }
 0x8cf   : > { %v9417_v2 = vadd.f32 %v11467_v47, %v17366_v33  ;;  %v11580_v32 = vpop.f32.mrb[156].mxu0  ;;  %v17456_v41 = vadd.f32 %v11576_v26, %v9414_v8 }
 0x8d0   : > { %v11581_v43 = vpop.f32.mrb[157].mxu0 }
 0x8d1   : > { %v11468_v57 = vpop.f32.mrb[156].mxu1  ;;  %v11582_v42 = vadd.f32 %v11581_v43, %v11580_v32  ;;  %v11583_v5 = vpop.f32.mrb[158].mxu0  ;;  %v17458_v31 = vadd.f32 %v11579_v46, %v9417_v2 }
 0x8d2   : > { %v11469_v45 = vpop.f32.mrb[157].mxu1  ;;  %v11584_v37 = vpop.f32.mrb[159].mxu0 }
 0x8d3   : > { %v11470_v12 = vadd.f32 %v11469_v45, %v11468_v57  ;;  %v11471_v28 = vpop.f32.mrb[158].mxu1  ;;  %v11585_v55 = vadd.f32 %v11584_v37, %v11583_v5 }
 0x8d4   : > { %v11472_v34 = vpop.f32.mrb[159].mxu1 }
 0x8d5   : > { %v9422_v7 = vadd.f32 %v11470_v12, %v17369_v51  ;;  %v11473_v35 = vadd.f32 %v11472_v34, %v11471_v28 }
 0x8d7   : > { %v9425_v33 = vadd.f32 %v11473_v35, %v17372_v21  ;;  %v11586_v39 = vpop.f32.mrb[160].mxu0  ;;  %v17462_v20 = vadd.f32 %v11582_v42, %v9422_v7 }
 0x8d8   : > { %v11587_v17 = vpop.f32.mrb[161].mxu0 }
 0x8d9   : > { %v11474_v0 = vpop.f32.mrb[160].mxu1  ;;  %v11588_v15 = vadd.f32 %v11587_v17, %v11586_v39  ;;  %v11589_v23 = vpop.f32.mrb[162].mxu0  ;;  %v17464_v25 = vadd.f32 %v11585_v55, %v9425_v33 }
 0x8da   : > { %v11475_v26 = vpop.f32.mrb[161].mxu1  ;;  %v11590_v18 = vpop.f32.mrb[163].mxu0 }
 0x8db   : > { %v11476_v58 = vadd.f32 %v11475_v26, %v11474_v0  ;;  %v11477_v9 = vpop.f32.mrb[162].mxu1  ;;  %v11591_v27 = vadd.f32 %v11590_v18, %v11589_v23 }
 0x8dc   : > { %v11478_v54 = vpop.f32.mrb[163].mxu1 }
 0x8dd   : > { %v9430_v51 = vadd.f32 %v11476_v58, %v17375_v36  ;;  %v11479_v46 = vadd.f32 %v11478_v54, %v11477_v9 }
 0x8df   : > { %v9433_v21 = vadd.f32 %v11479_v46, %v17379_v14  ;;  %v11592_v52 = vpop.f32.mrb[164].mxu0  ;;  %v17468_v8 = vadd.f32 %v11588_v15, %v9430_v51 }
 0x8e0   : > { %v11593_v47 = vpop.f32.mrb[165].mxu0 }
 0x8e1   : > { %v11480_v2 = vpop.f32.mrb[164].mxu1  ;;  %v11594_v32 = vadd.f32 %v11593_v47, %v11592_v52  ;;  %v11595_v43 = vpop.f32.mrb[166].mxu0  ;;  %v17470_v57 = vadd.f32 %v11591_v27, %v9433_v21 }
 0x8e2   : > { %v11481_v42 = vpop.f32.mrb[165].mxu1  ;;  %v11596_v5 = vpop.f32.mrb[167].mxu0 }
 0x8e3   : > { %v11482_v45 = vadd.f32 %v11481_v42, %v11480_v2  ;;  %v11483_v37 = vpop.f32.mrb[166].mxu1  ;;  %v11597_v12 = vadd.f32 %v11596_v5, %v11595_v43 }
 0x8e4   : > { %v11484_v28 = vpop.f32.mrb[167].mxu1 }
 0x8e5   : > { %v9438_v36 = vadd.f32 %v11482_v45, %v17384_v40  ;;  %v11485_v55 = vadd.f32 %v11484_v28, %v11483_v37 }
 0x8e7   : > { %v9441_v14 = vadd.f32 %v11485_v55, %v17391_v62  ;;  %v11598_v34 = vpop.f32.mrb[168].mxu0  ;;  %v17474_v7 = vadd.f32 %v11594_v32, %v9438_v36 }
 0x8e8   : > { %v11599_v35 = vpop.f32.mrb[169].mxu0 }
 0x8e9   : > { %v11486_v33 = vpop.f32.mrb[168].mxu1  ;;  %v11600_v39 = vadd.f32 %v11599_v35, %v11598_v34  ;;  %v11601_v17 = vpop.f32.mrb[170].mxu0  ;;  %v17476_v0 = vadd.f32 %v11597_v12, %v9441_v14 }
 0x8ea   : > { %v11487_v15 = vpop.f32.mrb[169].mxu1  ;;  %v11602_v23 = vpop.f32.mrb[171].mxu0 }
 0x8eb   : > { %v11488_v26 = vadd.f32 %v11487_v15, %v11486_v33  ;;  %v11489_v18 = vpop.f32.mrb[170].mxu1  ;;  %v11603_v58 = vadd.f32 %v11602_v23, %v11601_v17 }
 0x8ec   : > { %v11490_v9 = vpop.f32.mrb[171].mxu1 }
 0x8ed   : > { %v9446_v40 = vadd.f32 %v11488_v26, %v17394_v24  ;;  %v11491_v27 = vadd.f32 %v11490_v9, %v11489_v18 }
 0x8ef   : > { %v9449_v62 = vadd.f32 %v11491_v27, %v17396_v30  ;;  %v11604_v54 = vpop.f32.mrb[172].mxu0  ;;  %v17480_v51 = vadd.f32 %v11600_v39, %v9446_v40 }
 0x8f0   : > { %v11605_v46 = vpop.f32.mrb[173].mxu0 }
 0x8f1   : > { %v11492_v21 = vpop.f32.mrb[172].mxu1  ;;  %v11606_v52 = vadd.f32 %v11605_v46, %v11604_v54  ;;  %v11607_v47 = vpop.f32.mrb[174].mxu0  ;;  %v17482_v2 = vadd.f32 %v11603_v58, %v9449_v62 }
 0x8f2   : > { %v11493_v32 = vpop.f32.mrb[173].mxu1  ;;  %v11608_v43 = vpop.f32.mrb[175].mxu0 }
 0x8f3   : > { %v11494_v42 = vadd.f32 %v11493_v32, %v11492_v21  ;;  %v11495_v5 = vpop.f32.mrb[174].mxu1  ;;  %v11609_v45 = vadd.f32 %v11608_v43, %v11607_v47 }
 0x8f4   : > { %v11496_v37 = vpop.f32.mrb[175].mxu1 }
 0x8f5   : > { %v9454_v24 = vadd.f32 %v11494_v42, %v17398_v4  ;;  %v11497_v12 = vadd.f32 %v11496_v37, %v11495_v5 }
 0x8f7   : > { %v9457_v30 = vadd.f32 %v11497_v12, %v17400_v60  ;;  %v11610_v28 = vpop.f32.mrb[176].mxu0  ;;  %v17486_v36 = vadd.f32 %v11606_v52, %v9454_v24 }
 0x8f8   : > { %v11611_v55 = vpop.f32.mrb[177].mxu0 }
 0x8f9   : > { %v11498_v14 = vpop.f32.mrb[176].mxu1  ;;  %v11612_v34 = vadd.f32 %v11611_v55, %v11610_v28  ;;  %v11613_v35 = vpop.f32.mrb[178].mxu0  ;;  %v17488_v33 = vadd.f32 %v11609_v45, %v9457_v30 }
 0x8fa   : > { %v11499_v39 = vpop.f32.mrb[177].mxu1  ;;  %v11614_v17 = vpop.f32.mrb[179].mxu0 }
 0x8fb   : > { %v11500_v15 = vadd.f32 %v11499_v39, %v11498_v14  ;;  %v11501_v23 = vpop.f32.mrb[178].mxu1  ;;  %v11615_v26 = vadd.f32 %v11614_v17, %v11613_v35 }
 0x8fc   : > { %v11502_v18 = vpop.f32.mrb[179].mxu1 }
 0x8fd   : > { %v9462_v4 = vadd.f32 %v11500_v15, %v17402_v13  ;;  %v11503_v58 = vadd.f32 %v11502_v18, %v11501_v23 }
 0x8ff   : > { %v9465_v60 = vadd.f32 %v11503_v58, %v17404_v49  ;;  %v11616_v9 = vpop.f32.mrb[180].mxu0  ;;  %v17492_v40 = vadd.f32 %v11612_v34, %v9462_v4 }
 0x900   : > { %v11617_v27 = vpop.f32.mrb[181].mxu0 }
 0x901   : > { %v11504_v62 = vpop.f32.mrb[180].mxu1  ;;  %v11618_v54 = vadd.f32 %v11617_v27, %v11616_v9  ;;  %v11619_v46 = vpop.f32.mrb[182].mxu0  ;;  %v17494_v21 = vadd.f32 %v11615_v26, %v9465_v60 }
 0x902   : > { %v11505_v52 = vpop.f32.mrb[181].mxu1  ;;  %v11620_v47 = vpop.f32.mrb[183].mxu0 }
 0x903   : > { %v11506_v32 = vadd.f32 %v11505_v52, %v11504_v62  ;;  %v11507_v43 = vpop.f32.mrb[182].mxu1  ;;  %v11621_v42 = vadd.f32 %v11620_v47, %v11619_v46 }
 0x904   : > { %v11508_v5 = vpop.f32.mrb[183].mxu1 }
 0x905   : > { %v9470_v13 = vadd.f32 %v11506_v32, %v17406_v53  ;;  %v11509_v45 = vadd.f32 %v11508_v5, %v11507_v43 }
 0x907   : > { %v9473_v49 = vadd.f32 %v11509_v45, %v17408_v22  ;;  %v11622_v37 = vpop.f32.mrb[184].mxu0  ;;  %v17498_v24 = vadd.f32 %v11618_v54, %v9470_v13  ;;  %v17514_v13 = vld [vmem:[%s17720_s11] ss:$0 sm:$0xff] }
 0x908   : > { %v11623_v12 = vpop.f32.mrb[185].mxu0 }
 0x909   : > { %v11510_v30 = vpop.f32.mrb[184].mxu1  ;;  %v11624_v28 = vadd.f32 %v11623_v12, %v11622_v37  ;;  %v11625_v55 = vpop.f32.mrb[186].mxu0  ;;  %v17500_v14 = vadd.f32 %v11621_v42, %v9473_v49  ;;  %v17522_v12 = vld [vmem:[%s17721_s12] ss:$0 sm:$0xff] }
 0x90a   : > { %v11511_v34 = vpop.f32.mrb[185].mxu1  ;;  %v11626_v35 = vpop.f32.mrb[187].mxu0 }
 0x90b   : > { %v11512_v39 = vadd.f32 %v11511_v34, %v11510_v30  ;;  %v11513_v17 = vpop.f32.mrb[186].mxu1  ;;  %v11627_v15 = vadd.f32 %v11626_v35, %v11625_v55 }
 0x90c   : > { %v11514_v23 = vpop.f32.mrb[187].mxu1 }
 0x90d   : > { %v9478_v53 = vadd.f32 %v11512_v39, %v17410_v11  ;;  %v11515_v26 = vadd.f32 %v11514_v23, %v11513_v17 }
 0x90f   : > { %v9481_v22 = vadd.f32 %v11515_v26, %v17412_v19  ;;  %v11628_v18 = vpop.f32.mrb[188].mxu0  ;;  %v17504_v4 = vadd.f32 %v11624_v28, %v9478_v53 }
 0x910   : > { %v11629_v58 = vpop.f32.mrb[189].mxu0 }
 0x911   : > { %v11516_v60 = vpop.f32.mrb[188].mxu1  ;;  %v11630_v9 = vadd.f32 %v11629_v58, %v11628_v18  ;;  %v11631_v27 = vpop.f32.mrb[190].mxu0  ;;  %v17506_v62 = vadd.f32 %v11627_v15, %v9481_v22 }
 0x912   : > { %v11517_v54 = vpop.f32.mrb[189].mxu1  ;;  %v11632_v46 = vpop.f32.mrb[191].mxu0 }
 0x913   : > { %v11518_v52 = vadd.f32 %v11517_v54, %v11516_v60  ;;  %v11519_v47 = vpop.f32.mrb[190].mxu1  ;;  %v11633_v32 = vadd.f32 %v11632_v46, %v11631_v27 }
 0x914   : > { %v11520_v11 = vpop.f32.mrb[191].mxu1 }
 0x915   : > { %v9486_v43 = vadd.f32 %v11518_v52, %v17414_v61  ;;  %v11521_v19 = vadd.f32 %v11520_v11, %v11519_v47 }
 0x917   : > { %v9489_v42 = vadd.f32 %v11521_v19, %v17416_v38  ;;  %v11772_v5 = vpop.f32.mrb[192].mxu0  ;;  %v17516_v45 = vadd.f32 %v11630_v9, %v9486_v43 }
 0x918   : > { %v9696_v49 = vadd.f32 %v11772_v5, %v17426_v16  ;;  %v9687_v37 = vpop.f32.mrb[193].mxu0 }
 0x919   : > { %v9688_v61 = vadd.f32 %v9687_v37, %v17420_v63  ;;  %v11780_v38 = vpop.f32.mrb[192].mxu1  ;;  %v11773_v30 = vpop.f32.mrb[194].mxu0  ;;  %v17525_v28 = vadd.f32 %v11633_v32, %v9489_v42 }
 0x91a   : > { %v9823_v55 = vmul.f32 %v17514_v13, %v9696_v49  ;;  %v9728_v34 = vadd.f32 %v11780_v38, %v17450_v44  ;;  %v9699_v16 = vadd.f32 %v11773_v30, %v17428_v50  ;;  %v9719_v35 = vpop.f32.mrb[193].mxu1  ;;  %v9690_v39 = vpop.f32.mrb[195].mxu0 }
 0x91b   : > { %v9821_v17 = vmul.f32 %v17514_v13, %v9688_v61  ;;  %v9720_v15 = vadd.f32 %v9719_v35, %v17444_v59  ;;  %v9691_v63 = vadd.f32 %v9690_v39, %v17422_v56  ;;  %v11781_v23 = vpop.f32.mrb[194].mxu1 }
 0x91c   : > { %v9862_v53 = vadd.f32 %v17522_v12, %v9823_v55  ;;  %v9831_v26 = vmul.f32 %v17514_v13, %v9728_v34  ;;  %v9824_v22 = vmul.f32 %v17514_v13, %v9699_v16  ;;  %v9731_v18 = vadd.f32 %v11781_v23, %v17452_v3  ;;  %v9722_v44 = vpop.f32.mrb[195].mxu1 }
 0x91d   : > { %v9860_v50 = vadd.f32 %v17522_v12, %v9821_v17  ;;  %v9829_v58 = vmul.f32 %v17514_v13, %v9720_v15  ;;  %v9822_v60 = vmul.f32 %v17514_v13, %v9691_v63  ;;  %v9723_v59 = vadd.f32 %v9722_v44, %v17446_v1 }
 0x91e   : > { %v9894_v9 = vmax.f32 %v9862_v53, 0.0  ;;  %v9870_v56 = vadd.f32 %v17522_v12, %v9831_v26  ;;  %v9863_v27 = vadd.f32 %v17522_v12, %v9824_v22  ;;  %v9832_v54 = vmul.f32 %v17514_v13, %v9731_v18 }
 0x91f   : > { %v9892_v46 = vmax.f32 %v9860_v50, 0.0  ;;  %v9868_v52 = vadd.f32 %v17522_v12, %v9829_v58  ;;  %v9861_v3 = vadd.f32 %v17522_v12, %v9822_v60  ;;  %v9830_v47 = vmul.f32 %v17514_v13, %v9723_v59  ;;  %v11776_v32 = vpop.f32.mrb[196].mxu0 }
 0x920   : > { %9926 = vst [vmem:[%s17549_s27 + $0x10] sm:$0xff] %v9894_v9  ;;  %v9902_v1 = vmax.f32 %v9870_v56, 0.0  ;;  %v9895_v11 = vmax.f32 %v9863_v27, 0.0  ;;  %v9871_v43 = vadd.f32 %v17522_v12, %v9832_v54  ;;  %v9712_v19 = vadd.f32 %v11776_v32, %v17438_v29  ;;  %v9703_v42 = vpop.f32.mrb[197].mxu0 }
 0x921   : > { %9924 = vst [vmem:[%s17549_s27] sm:$0xff] %v9892_v46  ;;  %v9900_v5 = vmax.f32 %v9868_v52, 0.0  ;;  %v9893_v49 = vmax.f32 %v9861_v3, 0.0  ;;  %v9869_v37 = vadd.f32 %v17522_v12, %v9830_v47  ;;  %v9704_v61 = vadd.f32 %v9703_v42, %v17432_v6  ;;  %v11784_v38 = vpop.f32.mrb[196].mxu1  ;;  %v11777_v30 = vpop.f32.mrb[198].mxu0 }
 0x922   : > { %9934 = vst [vmem:[%s17549_s27 + $0x50] sm:$0xff] %v9902_v1  ;;  %9927 = vst [vmem:[%s17549_s27 + $0x18] sm:$0xff] %v9895_v11  ;;  %v9903_v55 = vmax.f32 %v9871_v43, 0.0  ;;  %v9827_v34 = vmul.f32 %v17514_v13, %v9712_v19  ;;  %v9744_v29 = vadd.f32 %v11784_v38, %v17462_v20  ;;  %v9715_v16 = vadd.f32 %v11777_v30, %v17440_v10  ;;  %v9735_v35 = vpop.f32.mrb[197].mxu1  ;;  %v9706_v39 = vpop.f32.mrb[199].mxu0 }
 0x923   : > { %9932 = vst [vmem:[%s17549_s27 + $0x40] sm:$0xff] %v9900_v5  ;;  %9925 = vst [vmem:[%s17549_s27 + $0x8] sm:$0xff] %v9893_v49  ;;  %v9901_v17 = vmax.f32 %v9869_v37, 0.0  ;;  %v9825_v6 = vmul.f32 %v17514_v13, %v9704_v61  ;;  %v9736_v15 = vadd.f32 %v9735_v35, %v17456_v41  ;;  %v9707_v63 = vadd.f32 %v9706_v39, %v17434_v48  ;;  %v11785_v23 = vpop.f32.mrb[198].mxu1 }
 0x924   : > { %9935 = vst [vmem:[%s17549_s27 + $0x58] sm:$0xff] %v9903_v55  ;;  %v9866_v53 = vadd.f32 %v17522_v12, %v9827_v34  ;;  %v9835_v20 = vmul.f32 %v17514_v13, %v9744_v29  ;;  %v9828_v10 = vmul.f32 %v17514_v13, %v9715_v16  ;;  %v9747_v26 = vadd.f32 %v11785_v23, %v17464_v25  ;;  %v9738_v22 = vpop.f32.mrb[199].mxu1 }
 0x925   : > { %9933 = vst [vmem:[%s17549_s27 + $0x48] sm:$0xff] %v9901_v17  ;;  %v9864_v18 = vadd.f32 %v17522_v12, %v9825_v6  ;;  %v9833_v41 = vmul.f32 %v17514_v13, %v9736_v15  ;;  %v9826_v48 = vmul.f32 %v17514_v13, %v9707_v63  ;;  %v9739_v44 = vadd.f32 %v9738_v22, %v17458_v31 }
 0x926   : > { %v9898_v50 = vmax.f32 %v9866_v53, 0.0  ;;  %v9874_v58 = vadd.f32 %v17522_v12, %v9835_v20  ;;  %v9867_v60 = vadd.f32 %v17522_v12, %v9828_v10  ;;  %v9836_v25 = vmul.f32 %v17514_v13, %v9747_v26 }
 0x927   : > { %v9896_v59 = vmax.f32 %v9864_v18, 0.0  ;;  %v9872_v9 = vadd.f32 %v17522_v12, %v9833_v41  ;;  %v9865_v56 = vadd.f32 %v17522_v12, %v9826_v48  ;;  %v9834_v27 = vmul.f32 %v17514_v13, %v9739_v44 }
 0x928   : > { %9930 = vst [vmem:[%s17549_s27 + $0x30] sm:$0xff] %v9898_v50  ;;  %v9906_v31 = vmax.f32 %v9874_v58, 0.0  ;;  %v9899_v54 = vmax.f32 %v9867_v60, 0.0  ;;  %v9875_v46 = vadd.f32 %v17522_v12, %v9836_v25 }
 0x929   : > { %9928 = vst [vmem:[%s17549_s27 + $0x20] sm:$0xff] %v9896_v59  ;;  %v9904_v52 = vmax.f32 %v9872_v9, 0.0  ;;  %v9897_v3 = vmax.f32 %v9865_v56, 0.0  ;;  %v9873_v47 = vadd.f32 %v17522_v12, %v9834_v27  ;;  %v11788_v32 = vpop.f32.mrb[200].mxu1 }
 0x92a   : > { %9938 = vst [vmem:[%s17549_s27 + $0x70] sm:$0xff] %v9906_v31  ;;  %9931 = vst [vmem:[%s17549_s27 + $0x38] sm:$0xff] %v9899_v54  ;;  %v9907_v1 = vmax.f32 %v9875_v46, 0.0  ;;  %v9760_v11 = vadd.f32 %v11788_v32, %v17474_v7  ;;  %v9751_v43 = vpop.f32.mrb[201].mxu1 }
 0x92b   : > { %9936 = vst [vmem:[%s17549_s27 + $0x60] sm:$0xff] %v9904_v52  ;;  %9929 = vst [vmem:[%s17549_s27 + $0x28] sm:$0xff] %v9897_v3  ;;  %v9905_v19 = vmax.f32 %v9873_v47, 0.0  ;;  %v9752_v42 = vadd.f32 %v9751_v43, %v17468_v8  ;;  %v11789_v5 = vpop.f32.mrb[202].mxu1 }
 0x92c   : > { %9939 = vst [vmem:[%s17549_s27 + $0x78] sm:$0xff] %v9907_v1  ;;  %v9839_v49 = vmul.f32 %v17514_v13, %v9760_v11  ;;  %v9763_v37 = vadd.f32 %v11789_v5, %v17476_v0  ;;  %v9754_v61 = vpop.f32.mrb[203].mxu1 }
 0x92d   : > { %9937 = vst [vmem:[%s17549_s27 + $0x68] sm:$0xff] %v9905_v19  ;;  %v9837_v38 = vmul.f32 %v17514_v13, %v9752_v42  ;;  %v9755_v7 = vadd.f32 %v9754_v61, %v17470_v57 }
 0x92e   : > { %v9878_v30 = vadd.f32 %v17522_v12, %v9839_v49  ;;  %v9840_v55 = vmul.f32 %v17514_v13, %v9763_v37 }
 0x92f   : > { %v9876_v8 = vadd.f32 %v17522_v12, %v9837_v38  ;;  %v9838_v34 = vmul.f32 %v17514_v13, %v9755_v7 }
 0x930   : > { %v9910_v29 = vmax.f32 %v9878_v30, 0.0  ;;  %v9879_v16 = vadd.f32 %v17522_v12, %v9840_v55 }
 0x931   : > { %v9908_v0 = vmax.f32 %v9876_v8, 0.0  ;;  %v9877_v35 = vadd.f32 %v17522_v12, %v9838_v34  ;;  %v11792_v39 = vpop.f32.mrb[204].mxu1 }
 0x932   : > { %9942 = vst [vmem:[%s17549_s27 + $0x90] sm:$0xff] %v9910_v29  ;;  %v9911_v17 = vmax.f32 %v9879_v16, 0.0  ;;  %v9776_v57 = vadd.f32 %v11792_v39, %v17486_v36  ;;  %v9767_v6 = vpop.f32.mrb[205].mxu1 }
 0x933   : > { %9940 = vst [vmem:[%s17549_s27 + $0x80] sm:$0xff] %v9908_v0  ;;  %v9909_v15 = vmax.f32 %v9877_v35, 0.0  ;;  %v9768_v63 = vadd.f32 %v9767_v6, %v17480_v51  ;;  %v11793_v23 = vpop.f32.mrb[206].mxu1 }
 0x934   : > { %9943 = vst [vmem:[%s17549_s27 + $0x98] sm:$0xff] %v9911_v17  ;;  %v9843_v53 = vmul.f32 %v17514_v13, %v9776_v57  ;;  %v9779_v20 = vadd.f32 %v11793_v23, %v17488_v33  ;;  %v9770_v10 = vpop.f32.mrb[207].mxu1 }
 0x935   : > { %9941 = vst [vmem:[%s17549_s27 + $0x88] sm:$0xff] %v9909_v15  ;;  %v9841_v26 = vmul.f32 %v17514_v13, %v9768_v63  ;;  %v9771_v22 = vadd.f32 %v9770_v10, %v17482_v2 }
 0x936   : > { %v9882_v36 = vadd.f32 %v17522_v12, %v9843_v53  ;;  %v9844_v18 = vmul.f32 %v17514_v13, %v9779_v20 }
 0x937   : > { %v9880_v51 = vadd.f32 %v17522_v12, %v9841_v26  ;;  %v9842_v41 = vmul.f32 %v17514_v13, %v9771_v22 }
 0x938   : > { %v9914_v48 = vmax.f32 %v9882_v36, 0.0  ;;  %v9883_v44 = vadd.f32 %v17522_v12, %v9844_v18 }
 0x939   : > { %v9912_v33 = vmax.f32 %v9880_v51, 0.0  ;;  %v9881_v50 = vadd.f32 %v17522_v12, %v9842_v41  ;;  %v11796_v58 = vpop.f32.mrb[208].mxu1 }
 0x93a   : > { %9946 = vst [vmem:[%s17549_s27 + $0xb0] sm:$0xff] %v9914_v48  ;;  %v9915_v60 = vmax.f32 %v9883_v44, 0.0  ;;  %v9792_v2 = vadd.f32 %v11796_v58, %v17498_v24  ;;  %v9783_v25 = vpop.f32.mrb[209].mxu1 }
 0x93b   : > { %9944 = vst [vmem:[%s17549_s27 + $0xa0] sm:$0xff] %v9912_v33  ;;  %v9913_v59 = vmax.f32 %v9881_v50, 0.0  ;;  %v9784_v9 = vadd.f32 %v9783_v25, %v17492_v40  ;;  %v11797_v56 = vpop.f32.mrb[210].mxu1 }
 0x93c   : > { %9947 = vst [vmem:[%s17549_s27 + $0xb8] sm:$0xff] %v9915_v60  ;;  %v9847_v27 = vmul.f32 %v17514_v13, %v9792_v2  ;;  %v9795_v31 = vadd.f32 %v11797_v56, %v17500_v14  ;;  %v9786_v54 = vpop.f32.mrb[211].mxu1 }
 0x93d   : > { %9945 = vst [vmem:[%s17549_s27 + $0xa8] sm:$0xff] %v9913_v59  ;;  %v9845_v46 = vmul.f32 %v17514_v13, %v9784_v9  ;;  %v9787_v52 = vadd.f32 %v9786_v54, %v17494_v21 }
 0x93e   : > { %v9886_v24 = vadd.f32 %v17522_v12, %v9847_v27  ;;  %v9848_v3 = vmul.f32 %v17514_v13, %v9795_v31 }
 0x93f   : > { %v9884_v40 = vadd.f32 %v17522_v12, %v9845_v46  ;;  %v9846_v47 = vmul.f32 %v17514_v13, %v9787_v52 }
 0x940   : > { %v9918_v32 = vmax.f32 %v9886_v24, 0.0  ;;  %v9887_v1 = vadd.f32 %v17522_v12, %v9848_v3 }
 0x941   : > { %v9916_v14 = vmax.f32 %v9884_v40, 0.0  ;;  %v9885_v11 = vadd.f32 %v17522_v12, %v9846_v47  ;;  %v11800_v43 = vpop.f32.mrb[212].mxu1 }
 0x942   : > { %9950 = vst [vmem:[%s17549_s27 + $0xd0] sm:$0xff] %v9918_v32  ;;  %v9919_v19 = vmax.f32 %v9887_v1, 0.0  ;;  %v9808_v21 = vadd.f32 %v11800_v43, %v17516_v45  ;;  %v9799_v42 = vpop.f32.mrb[213].mxu1 }
 0x943   : > { %9948 = vst [vmem:[%s17549_s27 + $0xc0] sm:$0xff] %v9916_v14  ;;  %v9917_v5 = vmax.f32 %v9885_v11, 0.0  ;;  %v9800_v49 = vadd.f32 %v9799_v42, %v17504_v4  ;;  %v11801_v37 = vpop.f32.mrb[214].mxu1 }
 0x944   : > { %9951 = vst [vmem:[%s17549_s27 + $0xd8] sm:$0xff] %v9919_v19  ;;  %v9851_v61 = vmul.f32 %v17514_v13, %v9808_v21  ;;  %v9811_v38 = vadd.f32 %v11801_v37, %v17525_v28  ;;  %v9802_v7 = vpop.f32.mrb[215].mxu1 }
 0x945   : > { %9949 = vst [vmem:[%s17549_s27 + $0xc8] sm:$0xff] %v9917_v5  ;;  %v9849_v30 = vmul.f32 %v17514_v13, %v9800_v49  ;;  %v9803_v45 = vadd.f32 %v9802_v7, %v17506_v62 }
 0x946   : > { %v9890_v55 = vadd.f32 %v17522_v12, %v9851_v61  ;;  %v9852_v8 = vmul.f32 %v17514_v13, %v9811_v38 }
 0x947   : > { %v9888_v4 = vadd.f32 %v17522_v12, %v9849_v30  ;;  %v9850_v34 = vmul.f32 %v17514_v13, %v9803_v45 }
 0x948   : > { %v9922_v28 = vmax.f32 %v9890_v55, 0.0  ;;  %v9891_v29 = vadd.f32 %v17522_v12, %v9852_v8 }
 0x949   : > { %v9920_v16 = vmax.f32 %v9888_v4, 0.0  ;;  %v9889_v62 = vadd.f32 %v17522_v12, %v9850_v34 }
 0x94a   : > { %9954 = vst [vmem:[%s17549_s27 + $0xf0] sm:$0xff] %v9922_v28  ;;  %v9923_v0 = vmax.f32 %v9891_v29, 0.0 }
 0x94b   : > { %9952 = vst [vmem:[%s17549_s27 + $0xe0] sm:$0xff] %v9920_v16  ;;  %v9921_v13 = vmax.f32 %v9889_v62, 0.0 }
 0x94c   : > { %9955 = vst [vmem:[%s17549_s27 + $0xf8] sm:$0xff] %v9923_v0 }
 0x94d   : > { %9953 = vst [vmem:[%s17549_s27 + $0xe8] sm:$0xff] %v9921_v13 }
 0x94e   : > { %12596 = shalt.err (!%p12593_p3)
}
 0x94f   : > { %s12597_s30 = scalar_lea.hbm %s17659_s24, 4096  ;;  %s12601_s19 = scalar_lea.hbm %s17722_s13, 8192 }
 0x950   : > { %p12598_p4 = scmp.ne.s32.totalorder %s17659_s24, %s12597_s30  ;;  %p12602_p9 = scmp.lt.u32.totalorder %s17659_s24, %s17722_s13 }
 0x951   : > { %p12603_p10 = scmp.lt.u32.totalorder %s12601_s19, %s12597_s30  ;;  %p12605_p12 = scmp.lt.u32.totalorder %s12597_s30, %s17659_s24 }
 0x952   : > { %p12599_p7 = pnand %p12598_p4, %p12759_p5 }
 0x953   : > { %p12604_p11 = por %p12603_p10, %p12602_p9 }
 0x954   : > { %p12600_p8 = pneg %p12599_p7 }
 0x955   : > { %p12606_p13 = por %p12605_p12, %p12604_p11 }
 0x957   : > { %p12607_p0 = pnand %p12606_p13, %p12600_p8 }
 0x959   : > { %12610 = shalt.err (!%p12607_p0)
}
 0x95a   : > { %s12649_s16 = smov 128   ;;  %s12650_s15 = smov 8  }
 0x95b   : > { %12075 = dma.vmem_to_hbm [thread:$0]  (%p12759_p5), %s17661_s21, 4096, %s17659_s24, %s17668_s29, %s12649_s16, %s12649_s16, %s12650_s15  }
 0x95c PF: > { %p12081_p1 = scmp.ge.s32.totalorder %s12645_s28, 2  ;;  %s9985_s20 = sand.u32 1, %s12633_s25  }
 0x95d   : > { %s9986_s30 = scalar_lea.sflag [#allocation5], %s9985_s20 }
 0x95e   : > { %p12078_p2 = pnand %p12081_p1, %p12763_p6 }
 0x960   : > { %12628 = dma.done.wait (!%p12078_p2), %s9986_s30, 4096  }
 0x961   : > { %12630 = vsyncadd (!%p12078_p2), %s9986_s30, 4294963200  ;;  %s18034_s28 = sld [smem:[#allocation8_spill]]  ;;  %s18035_s14 = sld [smem:[#allocation7_spill]] }
 0x962   : > { %s18036_s27 = sld [smem:[#allocation9_spill]]  ;;  %s18037_s25 = smov %s12637_s26 }
 0x967   : > { %p23_p3 = scmp.ge.s32.totalorder %s18034_s28, 4   ;;  %s18038_s26 = smov %s18035_s14 }
 0x969   :  { %25 = sbr.rel (!%p23_p3) target bundleno = 3 (0x3), region = 111 }
 0x970   :  { %9991 = vsyncpa [#allocation5], 1 }
 0x971   :  { %9993 = vsyncpa [#allocation5 + $0x1], 1 }

</bundles_post_ra>
